<compile_context>
chip_gen: v7x
topology: tpu7x:2x2x1
jax: 0.10.0
libtpu: 0.0.40
codegen_flags: <defaults>
</compile_context>

<pallas_src>
import math

import jax
import jax.numpy as jnp
from jax.experimental import pallas as pl
from jax.experimental.pallas import tpu as pltpu


# ---------------------------------------------------------------------------
# Fused GRUAE kernel factory.
# ---------------------------------------------------------------------------
def make_gruae_kernel(T, B, I, H, num_layers, OP):
    f32 = jnp.float32
    bf16 = jnp.bfloat16
    L2 = 2 * num_layers        # encoder layers + decoder layers

    def kernel(*refs):
        # refs = [x (T,B,I),
        #         (wi (3,in,H) bf16, wh (3,H,H) bf16,
        #          bi (3,B,H) f32,   bhn (B,H) f32) * (2*num_layers),
        #         lin_w (H,OP) f32, lin_b (B,OP) f32,
        #         out (T,B,OP) f32]
        x_ref = refs[0]
        layer_refs = [tuple(refs[1 + 4 * l: 1 + 4 * (l + 1)]) for l in range(L2)]
        lin_w_ref = refs[1 + 4 * L2]
        lin_b_ref = refs[2 + 4 * L2]
        out_ref = refs[3 + 4 * L2]

        def gru_step(lr, h, x_t):
            """One GRU cell step. Dots in bf16 (f32 accumulate); gates in f32."""
            wi_ref, wh_ref, bi_ref, bhn_ref = lr
            xb = x_t.astype(bf16)
            hb = h.astype(bf16)
            # Per-gate dots: each (B, H) result is lane-tile aligned (no
            # lane extraction from a fused 3H row on the dependent chain).
            gx = [jnp.dot(xb, wi_ref[g], preferred_element_type=f32) + bi_ref[g]
                  for g in range(3)]
            gh = [jnp.dot(hb, wh_ref[g], preferred_element_type=f32)
                  for g in range(3)]
            r = jax.nn.sigmoid(gx[0] + gh[0])
            z = jax.nn.sigmoid(gx[1] + gh[1])
            n = jnp.tanh(gx[2] + r * (gh[2] + bhn_ref[...]))
            return n + z * (h - n)          # == (1 - z) * n + z * h

        def run_stack(stack_refs, get_x, h0, sink=None):
            """Wavefront-scheduled (diagonal order) GRU stack, static unroll.

            Layer l at step t is emitted once h_{l,t-1} and the layer-(l-1)
            output at t exist, so same-diagonal work across layers is
            independent and overlaps in the MXU/EUP pipelines.
            """
            nls = len(stack_refs)
            h = list(h0)
            outs = [[None] * T for _ in range(nls)]
            for d in range(T + nls - 1):
                for l in range(nls):
                    t = d - l
                    if 0 <= t < T:
                        xt = get_x(t) if l == 0 else outs[l - 1][t]
                        h[l] = gru_step(stack_refs[l], h[l], xt)
                        outs[l][t] = h[l]
                        if sink is not None and l == nls - 1:
                            sink(t, h[l])
            return outs[-1], h              # top-layer sequence, final hiddens

        # ----- Encoder stack (h0 = 0) -----
        zeros_h = [jnp.zeros((B, H), f32) for _ in range(num_layers)]
        enc_seq, enc_h = run_stack(layer_refs[:num_layers],
                                   lambda t: x_ref[t], zeros_h)

        # ----- Decoder stack (h0 = encoder final hidden per layer), with the
        # ----- output Linear fused into the wavefront as a per-step sink -----
        lin_w = lin_w_ref[...]              # (H, OP) f32, hoisted load
        lin_b = lin_b_ref[...]              # (B, OP) f32, pre-broadcast

        def write_out(t, h_top):
            # Lane-dense (OP = multiple of 128) full-tile store, per step.
            out_ref[t] = (jnp.dot(h_top, lin_w, preferred_element_type=f32)
                          + lin_b)

        run_stack(layer_refs[num_layers:], lambda t: enc_seq[t], enc_h,
                  sink=write_out)

    return kernel


# ---------------------------------------------------------------------------
# Parameter construction (deterministic, xavier-uniform-like; synthetic init).
# Per-gate packing (gate order r, z, n — matches PyTorch row order):
#   wi : (3, in, H)   wh : (3, H, H)
#   bi : (3, H)  = [b_ir+b_hr | b_iz+b_hz | b_in]
#   bhn: (H,)    = b_hn            (stays inside r * (h W_hn + b_hn))
# ---------------------------------------------------------------------------
def _xavier(key, shape, gain):
    fan_out, fan_in = shape
    bound = gain * math.sqrt(6.0 / (fan_in + fan_out))
    return jax.random.uniform(key, shape, jnp.float32, -bound, bound)


def make_gru_layer_params(key, in_size, hidden):
    gain = math.sqrt(2.0)
    k = jax.random.split(key, 4)
    w_ih = _xavier(k[0], (3 * hidden, in_size), gain)   # rows: r, z, n
    w_hh = _xavier(k[1], (3 * hidden, hidden), gain)
    bscale = 1.0 / math.sqrt(hidden)
    b_ih = jax.random.uniform(k[2], (3 * hidden,), jnp.float32, -bscale, bscale)
    b_hh = jax.random.uniform(k[3], (3 * hidden,), jnp.float32, -bscale, bscale)

    H = hidden
    wi = jnp.stack([w_ih[g * H:(g + 1) * H, :].T for g in range(3)])   # (3,in,H)
    wh = jnp.stack([w_hh[g * H:(g + 1) * H, :].T for g in range(3)])   # (3,H,H)
    bi = jnp.stack([b_ih[0:H] + b_hh[0:H],
                    b_ih[H:2 * H] + b_hh[H:2 * H],
                    b_ih[2 * H:3 * H]])                                # (3,H)
    bhn = b_hh[2 * H:3 * H]                                            # (H,)
    return (wi, wh, bi, bhn)


def make_gruae_params(key, input_size, hidden_size, num_layers):
    keys = jax.random.split(key, 2 * num_layers + 1)
    layers = []
    for l in range(num_layers):                         # encoder
        layers.append(make_gru_layer_params(
            keys[l], input_size if l == 0 else hidden_size, hidden_size))
    for l in range(num_layers):                         # decoder
        layers.append(make_gru_layer_params(
            keys[num_layers + l], hidden_size, hidden_size))
    gain = math.sqrt(2.0)
    lk = jax.random.split(keys[-1], 2)
    lin_w = _xavier(lk[0], (input_size, hidden_size), gain)        # (O, H)
    bscale = 1.0 / math.sqrt(hidden_size)
    lin_b = jax.random.uniform(lk[1], (input_size,), jnp.float32, -bscale, bscale)
    return {"layers": layers, "lin_w_t": lin_w.T, "lin_b": lin_b.reshape(1, -1)}


# ---------------------------------------------------------------------------
# GRUAE forward (batch-first input, matching the PyTorch module).
# ---------------------------------------------------------------------------
@jax.jit
def gruae_forward(x_bti, params):
    B, T, I = x_bti.shape
    layers = params["layers"]
    num_layers = len(layers) // 2
    H = layers[0][1].shape[-1]                          # wh is (3, H, H)
    OP = ((I + 127) // 128) * 128                       # lane-dense output width

    # Boundary re-layout only; all intermediates stay inside the kernel.
    x_tbi = jnp.transpose(x_bti, (1, 0, 2)).astype(jnp.float32)    # (T, B, I)

    args = [x_tbi]
    for (wi, wh, bi, bhn) in layers:
        args.append(wi.astype(jnp.bfloat16))                         # (3,in,H)
        args.append(wh.astype(jnp.bfloat16))                         # (3,H,H)
        # Biases pre-broadcast to B rows => no per-step broadcast_in_dim.
        args.append(jnp.broadcast_to(bi[:, None, :], (3, B, H)).astype(jnp.float32))
        args.append(jnp.broadcast_to(bhn[None, :], (B, H)).astype(jnp.float32))

    # Zero-pad the output Linear to a 128-lane-dense slab.
    lin_w_p = jnp.zeros((H, OP), jnp.float32).at[:, :I].set(params["lin_w_t"])
    lin_b_p = jnp.zeros((B, OP), jnp.float32).at[:, :I].set(
        jnp.broadcast_to(params["lin_b"], (B, I)))
    args += [lin_w_p, lin_b_p]

    y_pad = pl.pallas_call(
        make_gruae_kernel(T, B, I, H, num_layers, OP),
        out_shape=jax.ShapeDtypeStruct((T, B, OP), jnp.float32),
    )(*args)

    return jnp.transpose(y_pad[:, :, :I], (1, 0, 2))    # (B, T, I)


# ---------------------------------------------------------------------------
# Pure-JAX f32 reference (same math, no Pallas) for a correctness check.
# ---------------------------------------------------------------------------
def _gru_layer_ref(x_tbi, h0, wi, wh, bi, bhn):
    T = x_tbi.shape[0]
    h = h0
    outs = []
    for t in range(T):
        x = x_tbi[t]
        gx = [x @ wi[g] + bi[g] for g in range(3)]
        gh = [h @ wh[g] for g in range(3)]
        r = jax.nn.sigmoid(gx[0] + gh[0])
        z = jax.nn.sigmoid(gx[1] + gh[1])
        n = jnp.tanh(gx[2] + r * (gh[2] + bhn))
        h = (1.0 - z) * n + z * h
        outs.append(h)
    return jnp.stack(outs, axis=0), h


def _gruae_ref(x_bti, params):
    B, T, I = x_bti.shape
    layers = params["layers"]
    L = len(layers) // 2
    H = layers[0][1].shape[-1]
    seq = jnp.transpose(x_bti, (1, 0, 2)).astype(jnp.float32)
    finals = []
    for l in range(L):
        wi, wh, bi, bhn = layers[l]
        seq, h_last = _gru_layer_ref(seq, jnp.zeros((B, H), jnp.float32),
                                     wi, wh, bi, bhn)
        finals.append(h_last)
    for l in range(L):
        wi, wh, bi, bhn = layers[L + l]
        seq, _ = _gru_layer_ref(seq, finals[l], wi, wh, bi, bhn)
    y = seq.reshape(T * B, H) @ params["lin_w_t"] + params["lin_b"]
    return jnp.transpose(y.reshape(T, B, I), (1, 0, 2))


if __name__ == "__main__":
    input_size, hidden_size, num_layers = 4, 32, 2
    B, T = 2, 8

    key = jax.random.PRNGKey(0)
    k_in, k_par = jax.random.split(key)
    x = jax.random.normal(k_in, (B, T, input_size), jnp.float32)
    params = make_gruae_params(k_par, input_size, hidden_size, num_layers)

    y = gruae_forward(x, params)
    jax.block_until_ready(y)
    assert y.shape == (B, T, input_size), y.shape

    y_ref = _gruae_ref(x, params)
    err = float(jnp.max(jnp.abs(y - y_ref)))
    scale = float(jnp.max(jnp.abs(y_ref)))
    # Kernel uses bf16 MXU operands (f32 accumulate), reference is pure f32;
    # allow 5e-2 absolute, scaled by output magnitude (relative criterion).
    assert err <= 5e-2 * max(1.0, scale), (
        f"max abs diff vs reference: {err} (scale {scale})")

    print("KERNEL_OK")
</pallas_src>

<mosaic_0001>
module attributes {stable_mosaic.version = 11 : i64} {
  func.func @kernel(%arg0: memref<8x2x4xf32, #tpu.memory_space<vmem>>, %arg1: memref<3x4x32xbf16, #tpu.memory_space<vmem>>, %arg2: memref<3x32x32xbf16, #tpu.memory_space<vmem>>, %arg3: memref<3x2x32xf32, #tpu.memory_space<vmem>>, %arg4: memref<2x32xf32, #tpu.memory_space<vmem>>, %arg5: memref<3x32x32xbf16, #tpu.memory_space<vmem>>, %arg6: memref<3x32x32xbf16, #tpu.memory_space<vmem>>, %arg7: memref<3x2x32xf32, #tpu.memory_space<vmem>>, %arg8: memref<2x32xf32, #tpu.memory_space<vmem>>, %arg9: memref<3x32x32xbf16, #tpu.memory_space<vmem>>, %arg10: memref<3x32x32xbf16, #tpu.memory_space<vmem>>, %arg11: memref<3x2x32xf32, #tpu.memory_space<vmem>>, %arg12: memref<2x32xf32, #tpu.memory_space<vmem>>, %arg13: memref<3x32x32xbf16, #tpu.memory_space<vmem>>, %arg14: memref<3x32x32xbf16, #tpu.memory_space<vmem>>, %arg15: memref<3x2x32xf32, #tpu.memory_space<vmem>>, %arg16: memref<2x32xf32, #tpu.memory_space<vmem>>, %arg17: memref<32x128xf32, #tpu.memory_space<vmem>>, %arg18: memref<2x128xf32, #tpu.memory_space<vmem>>, %arg19: memref<8x2x128xf32, #tpu.memory_space<vmem>>) attributes {dimension_semantics = [], scalar_prefetch = 0 : i64, scratch_operands = 0 : i64, tpu.core_type = #tpu.core_type<tc>} {
    %cst = arith.constant 0.000000e+00 : f32
    %0 = vector.broadcast %cst : f32 to vector<2x32xf32>
    %cst_0 = arith.constant 0.000000e+00 : f32
    %1 = vector.broadcast %cst_0 : f32 to vector<2x32xf32>
    %c0 = arith.constant 0 : index
    %c0_1 = arith.constant 0 : index
    %c0_2 = arith.constant 0 : index
    %2 = vector.load %arg0[%c0, %c0_1, %c0_2] : memref<8x2x4xf32, #tpu.memory_space<vmem>>, vector<1x2x4xf32>
    %3 = vector.shape_cast %2 : vector<1x2x4xf32> to vector<2x4xf32>
    %4 = arith.truncf %3 : vector<2x4xf32> to vector<2x4xbf16>
    %5 = arith.truncf %0 : vector<2x32xf32> to vector<2x32xbf16>
    %c0_3 = arith.constant 0 : index
    %c0_4 = arith.constant 0 : index
    %c0_5 = arith.constant 0 : index
    %6 = vector.load %arg1[%c0_3, %c0_4, %c0_5] : memref<3x4x32xbf16, #tpu.memory_space<vmem>>, vector<1x4x32xbf16>
    %7 = vector.shape_cast %6 : vector<1x4x32xbf16> to vector<4x32xbf16>
    %cst_6 = arith.constant dense<0.000000e+00> : vector<2x32xf32>
    %8 = tpu.matmul %4, %7, %cst_6 {dimension_numbers = #tpu.dot_dimension_numbers<[1], [0], [0], [1], [0, 0, 1, 1], [], []>} : vector<2x4xbf16>, vector<4x32xbf16>, vector<2x32xf32> -> vector<2x32xf32>
    %c0_7 = arith.constant 0 : index
    %c0_8 = arith.constant 0 : index
    %c0_9 = arith.constant 0 : index
    %9 = vector.load %arg3[%c0_7, %c0_8, %c0_9] : memref<3x2x32xf32, #tpu.memory_space<vmem>>, vector<1x2x32xf32>
    %10 = vector.shape_cast %9 : vector<1x2x32xf32> to vector<2x32xf32>
    %11 = arith.addf %8, %10 : vector<2x32xf32>
    %c1 = arith.constant 1 : index
    %c0_10 = arith.constant 0 : index
    %c0_11 = arith.constant 0 : index
    %12 = vector.load %arg1[%c1, %c0_10, %c0_11] : memref<3x4x32xbf16, #tpu.memory_space<vmem>>, vector<1x4x32xbf16>
    %13 = vector.shape_cast %12 : vector<1x4x32xbf16> to vector<4x32xbf16>
    %cst_12 = arith.constant dense<0.000000e+00> : vector<2x32xf32>
    %14 = tpu.matmul %4, %13, %cst_12 {dimension_numbers = #tpu.dot_dimension_numbers<[1], [0], [0], [1], [0, 0, 1, 1], [], []>} : vector<2x4xbf16>, vector<4x32xbf16>, vector<2x32xf32> -> vector<2x32xf32>
    %c1_13 = arith.constant 1 : index
    %c0_14 = arith.constant 0 : index
    %c0_15 = arith.constant 0 : index
    %15 = vector.load %arg3[%c1_13, %c0_14, %c0_15] : memref<3x2x32xf32, #tpu.memory_space<vmem>>, vector<1x2x32xf32>
    %16 = vector.shape_cast %15 : vector<1x2x32xf32> to vector<2x32xf32>
    %17 = arith.addf %14, %16 : vector<2x32xf32>
    %c2 = arith.constant 2 : index
    %c0_16 = arith.constant 0 : index
    %c0_17 = arith.constant 0 : index
    %18 = vector.load %arg1[%c2, %c0_16, %c0_17] : memref<3x4x32xbf16, #tpu.memory_space<vmem>>, vector<1x4x32xbf16>
    %19 = vector.shape_cast %18 : vector<1x4x32xbf16> to vector<4x32xbf16>
    %cst_18 = arith.constant dense<0.000000e+00> : vector<2x32xf32>
    %20 = tpu.matmul %4, %19, %cst_18 {dimension_numbers = #tpu.dot_dimension_numbers<[1], [0], [0], [1], [0, 0, 1, 1], [], []>} : vector<2x4xbf16>, vector<4x32xbf16>, vector<2x32xf32> -> vector<2x32xf32>
    %c2_19 = arith.constant 2 : index
    %c0_20 = arith.constant 0 : index
    %c0_21 = arith.constant 0 : index
    %21 = vector.load %arg3[%c2_19, %c0_20, %c0_21] : memref<3x2x32xf32, #tpu.memory_space<vmem>>, vector<1x2x32xf32>
    %22 = vector.shape_cast %21 : vector<1x2x32xf32> to vector<2x32xf32>
    %23 = arith.addf %20, %22 : vector<2x32xf32>
    %c0_22 = arith.constant 0 : index
    %c0_23 = arith.constant 0 : index
    %c0_24 = arith.constant 0 : index
    %24 = vector.load %arg2[%c0_22, %c0_23, %c0_24] : memref<3x32x32xbf16, #tpu.memory_space<vmem>>, vector<1x32x32xbf16>
    %25 = vector.shape_cast %24 : vector<1x32x32xbf16> to vector<32x32xbf16>
    %cst_25 = arith.constant dense<0.000000e+00> : vector<2x32xf32>
    %26 = tpu.matmul %5, %25, %cst_25 {dimension_numbers = #tpu.dot_dimension_numbers<[1], [0], [0], [1], [0, 0, 1, 1], [], []>} : vector<2x32xbf16>, vector<32x32xbf16>, vector<2x32xf32> -> vector<2x32xf32>
    %c1_26 = arith.constant 1 : index
    %c0_27 = arith.constant 0 : index
    %c0_28 = arith.constant 0 : index
    %27 = vector.load %arg2[%c1_26, %c0_27, %c0_28] : memref<3x32x32xbf16, #tpu.memory_space<vmem>>, vector<1x32x32xbf16>
    %28 = vector.shape_cast %27 : vector<1x32x32xbf16> to vector<32x32xbf16>
    %cst_29 = arith.constant dense<0.000000e+00> : vector<2x32xf32>
    %29 = tpu.matmul %5, %28, %cst_29 {dimension_numbers = #tpu.dot_dimension_numbers<[1], [0], [0], [1], [0, 0, 1, 1], [], []>} : vector<2x32xbf16>, vector<32x32xbf16>, vector<2x32xf32> -> vector<2x32xf32>
    %c2_30 = arith.constant 2 : index
    %c0_31 = arith.constant 0 : index
    %c0_32 = arith.constant 0 : index
    %30 = vector.load %arg2[%c2_30, %c0_31, %c0_32] : memref<3x32x32xbf16, #tpu.memory_space<vmem>>, vector<1x32x32xbf16>
    %31 = vector.shape_cast %30 : vector<1x32x32xbf16> to vector<32x32xbf16>
    %cst_33 = arith.constant dense<0.000000e+00> : vector<2x32xf32>
    %32 = tpu.matmul %5, %31, %cst_33 {dimension_numbers = #tpu.dot_dimension_numbers<[1], [0], [0], [1], [0, 0, 1, 1], [], []>} : vector<2x32xbf16>, vector<32x32xbf16>, vector<2x32xf32> -> vector<2x32xf32>
    %33 = arith.addf %11, %26 : vector<2x32xf32>
    %34 = arith.negf %33 : vector<2x32xf32>
    %35 = math.exp %34 : vector<2x32xf32>
    %cst_34 = arith.constant 1.000000e+00 : f32
    %36 = vector.broadcast %cst_34 : f32 to vector<2x32xf32>
    %37 = arith.addf %36, %35 : vector<2x32xf32>
    %38 = arith.divf %36, %37 : vector<2x32xf32>
    %39 = arith.addf %17, %29 : vector<2x32xf32>
    %40 = arith.negf %39 : vector<2x32xf32>
    %41 = math.exp %40 : vector<2x32xf32>
    %cst_35 = arith.constant 1.000000e+00 : f32
    %42 = vector.broadcast %cst_35 : f32 to vector<2x32xf32>
    %43 = arith.addf %42, %41 : vector<2x32xf32>
    %44 = arith.divf %42, %43 : vector<2x32xf32>
    %c0_36 = arith.constant 0 : index
    %c0_37 = arith.constant 0 : index
    %45 = vector.load %arg4[%c0_36, %c0_37] : memref<2x32xf32, #tpu.memory_space<vmem>>, vector<2x32xf32>
    %46 = arith.addf %32, %45 : vector<2x32xf32>
    %47 = arith.mulf %38, %46 : vector<2x32xf32>
    %48 = arith.addf %23, %47 : vector<2x32xf32>
    %49 = math.tanh %48 : vector<2x32xf32>
    %50 = arith.subf %0, %49 : vector<2x32xf32>
    %51 = arith.mulf %44, %50 : vector<2x32xf32>
    %52 = arith.addf %49, %51 : vector<2x32xf32>
    %c1_38 = arith.constant 1 : index
    %c0_39 = arith.constant 0 : index
    %c0_40 = arith.constant 0 : index
    %53 = vector.load %arg0[%c1_38, %c0_39, %c0_40] : memref<8x2x4xf32, #tpu.memory_space<vmem>>, vector<1x2x4xf32>
    %54 = vector.shape_cast %53 : vector<1x2x4xf32> to vector<2x4xf32>
    %55 = arith.truncf %54 : vector<2x4xf32> to vector<2x4xbf16>
    %56 = arith.truncf %52 : vector<2x32xf32> to vector<2x32xbf16>
    %c0_41 = arith.constant 0 : index
    %c0_42 = arith.constant 0 : index
    %c0_43 = arith.constant 0 : index
    %57 = vector.load %arg1[%c0_41, %c0_42, %c0_43] : memref<3x4x32xbf16, #tpu.memory_space<vmem>>, vector<1x4x32xbf16>
    %58 = vector.shape_cast %57 : vector<1x4x32xbf16> to vector<4x32xbf16>
    %cst_44 = arith.constant dense<0.000000e+00> : vector<2x32xf32>
    %59 = tpu.matmul %55, %58, %cst_44 {dimension_numbers = #tpu.dot_dimension_numbers<[1], [0], [0], [1], [0, 0, 1, 1], [], []>} : vector<2x4xbf16>, vector<4x32xbf16>, vector<2x32xf32> -> vector<2x32xf32>
    %c0_45 = arith.constant 0 : index
    %c0_46 = arith.constant 0 : index
    %c0_47 = arith.constant 0 : index
    %60 = vector.load %arg3[%c0_45, %c0_46, %c0_47] : memref<3x2x32xf32, #tpu.memory_space<vmem>>, vector<1x2x32xf32>
    %61 = vector.shape_cast %60 : vector<1x2x32xf32> to vector<2x32xf32>
    %62 = arith.addf %59, %61 : vector<2x32xf32>
    %c1_48 = arith.constant 1 : index
    %c0_49 = arith.constant 0 : index
    %c0_50 = arith.constant 0 : index
    %63 = vector.load %arg1[%c1_48, %c0_49, %c0_50] : memref<3x4x32xbf16, #tpu.memory_space<vmem>>, vector<1x4x32xbf16>
    %64 = vector.shape_cast %63 : vector<1x4x32xbf16> to vector<4x32xbf16>
    %cst_51 = arith.constant dense<0.000000e+00> : vector<2x32xf32>
    %65 = tpu.matmul %55, %64, %cst_51 {dimension_numbers = #tpu.dot_dimension_numbers<[1], [0], [0], [1], [0, 0, 1, 1], [], []>} : vector<2x4xbf16>, vector<4x32xbf16>, vector<2x32xf32> -> vector<2x32xf32>
    %c1_52 = arith.constant 1 : index
    %c0_53 = arith.constant 0 : index
    %c0_54 = arith.constant 0 : index
    %66 = vector.load %arg3[%c1_52, %c0_53, %c0_54] : memref<3x2x32xf32, #tpu.memory_space<vmem>>, vector<1x2x32xf32>
    %67 = vector.shape_cast %66 : vector<1x2x32xf32> to vector<2x32xf32>
    %68 = arith.addf %65, %67 : vector<2x32xf32>
    %c2_55 = arith.constant 2 : index
    %c0_56 = arith.constant 0 : index
    %c0_57 = arith.constant 0 : index
    %69 = vector.load %arg1[%c2_55, %c0_56, %c0_57] : memref<3x4x32xbf16, #tpu.memory_space<vmem>>, vector<1x4x32xbf16>
    %70 = vector.shape_cast %69 : vector<1x4x32xbf16> to vector<4x32xbf16>
    %cst_58 = arith.constant dense<0.000000e+00> : vector<2x32xf32>
    %71 = tpu.matmul %55, %70, %cst_58 {dimension_numbers = #tpu.dot_dimension_numbers<[1], [0], [0], [1], [0, 0, 1, 1], [], []>} : vector<2x4xbf16>, vector<4x32xbf16>, vector<2x32xf32> -> vector<2x32xf32>
    %c2_59 = arith.constant 2 : index
    %c0_60 = arith.constant 0 : index
    %c0_61 = arith.constant 0 : index
    %72 = vector.load %arg3[%c2_59, %c0_60, %c0_61] : memref<3x2x32xf32, #tpu.memory_space<vmem>>, vector<1x2x32xf32>
    %73 = vector.shape_cast %72 : vector<1x2x32xf32> to vector<2x32xf32>
    %74 = arith.addf %71, %73 : vector<2x32xf32>
    %c0_62 = arith.constant 0 : index
    %c0_63 = arith.constant 0 : index
    %c0_64 = arith.constant 0 : index
    %75 = vector.load %arg2[%c0_62, %c0_63, %c0_64] : memref<3x32x32xbf16, #tpu.memory_space<vmem>>, vector<1x32x32xbf16>
    %76 = vector.shape_cast %75 : vector<1x32x32xbf16> to vector<32x32xbf16>
    %cst_65 = arith.constant dense<0.000000e+00> : vector<2x32xf32>
    %77 = tpu.matmul %56, %76, %cst_65 {dimension_numbers = #tpu.dot_dimension_numbers<[1], [0], [0], [1], [0, 0, 1, 1], [], []>} : vector<2x32xbf16>, vector<32x32xbf16>, vector<2x32xf32> -> vector<2x32xf32>
    %c1_66 = arith.constant 1 : index
    %c0_67 = arith.constant 0 : index
    %c0_68 = arith.constant 0 : index
    %78 = vector.load %arg2[%c1_66, %c0_67, %c0_68] : memref<3x32x32xbf16, #tpu.memory_space<vmem>>, vector<1x32x32xbf16>
    %79 = vector.shape_cast %78 : vector<1x32x32xbf16> to vector<32x32xbf16>
    %cst_69 = arith.constant dense<0.000000e+00> : vector<2x32xf32>
    %80 = tpu.matmul %56, %79, %cst_69 {dimension_numbers = #tpu.dot_dimension_numbers<[1], [0], [0], [1], [0, 0, 1, 1], [], []>} : vector<2x32xbf16>, vector<32x32xbf16>, vector<2x32xf32> -> vector<2x32xf32>
    %c2_70 = arith.constant 2 : index
    %c0_71 = arith.constant 0 : index
    %c0_72 = arith.constant 0 : index
    %81 = vector.load %arg2[%c2_70, %c0_71, %c0_72] : memref<3x32x32xbf16, #tpu.memory_space<vmem>>, vector<1x32x32xbf16>
    %82 = vector.shape_cast %81 : vector<1x32x32xbf16> to vector<32x32xbf16>
    %cst_73 = arith.constant dense<0.000000e+00> : vector<2x32xf32>
    %83 = tpu.matmul %56, %82, %cst_73 {dimension_numbers = #tpu.dot_dimension_numbers<[1], [0], [0], [1], [0, 0, 1, 1], [], []>} : vector<2x32xbf16>, vector<32x32xbf16>, vector<2x32xf32> -> vector<2x32xf32>
    %84 = arith.addf %62, %77 : vector<2x32xf32>
    %85 = arith.negf %84 : vector<2x32xf32>
    %86 = math.exp %85 : vector<2x32xf32>
    %cst_74 = arith.constant 1.000000e+00 : f32
    %87 = vector.broadcast %cst_74 : f32 to vector<2x32xf32>
    %88 = arith.addf %87, %86 : vector<2x32xf32>
    %89 = arith.divf %87, %88 : vector<2x32xf32>
    %90 = arith.addf %68, %80 : vector<2x32xf32>
    %91 = arith.negf %90 : vector<2x32xf32>
    %92 = math.exp %91 : vector<2x32xf32>
    %cst_75 = arith.constant 1.000000e+00 : f32
    %93 = vector.broadcast %cst_75 : f32 to vector<2x32xf32>
    %94 = arith.addf %93, %92 : vector<2x32xf32>
    %95 = arith.divf %93, %94 : vector<2x32xf32>
    %c0_76 = arith.constant 0 : index
    %c0_77 = arith.constant 0 : index
    %96 = vector.load %arg4[%c0_76, %c0_77] : memref<2x32xf32, #tpu.memory_space<vmem>>, vector<2x32xf32>
    %97 = arith.addf %83, %96 : vector<2x32xf32>
    %98 = arith.mulf %89, %97 : vector<2x32xf32>
    %99 = arith.addf %74, %98 : vector<2x32xf32>
    %100 = math.tanh %99 : vector<2x32xf32>
    %101 = arith.subf %52, %100 : vector<2x32xf32>
    %102 = arith.mulf %95, %101 : vector<2x32xf32>
    %103 = arith.addf %100, %102 : vector<2x32xf32>
    %104 = arith.truncf %52 : vector<2x32xf32> to vector<2x32xbf16>
    %105 = arith.truncf %1 : vector<2x32xf32> to vector<2x32xbf16>
    %c0_78 = arith.constant 0 : index
    %c0_79 = arith.constant 0 : index
    %c0_80 = arith.constant 0 : index
    %106 = vector.load %arg5[%c0_78, %c0_79, %c0_80] : memref<3x32x32xbf16, #tpu.memory_space<vmem>>, vector<1x32x32xbf16>
    %107 = vector.shape_cast %106 : vector<1x32x32xbf16> to vector<32x32xbf16>
    %cst_81 = arith.constant dense<0.000000e+00> : vector<2x32xf32>
    %108 = tpu.matmul %104, %107, %cst_81 {dimension_numbers = #tpu.dot_dimension_numbers<[1], [0], [0], [1], [0, 0, 1, 1], [], []>} : vector<2x32xbf16>, vector<32x32xbf16>, vector<2x32xf32> -> vector<2x32xf32>
    %c0_82 = arith.constant 0 : index
    %c0_83 = arith.constant 0 : index
    %c0_84 = arith.constant 0 : index
    %109 = vector.load %arg7[%c0_82, %c0_83, %c0_84] : memref<3x2x32xf32, #tpu.memory_space<vmem>>, vector<1x2x32xf32>
    %110 = vector.shape_cast %109 : vector<1x2x32xf32> to vector<2x32xf32>
    %111 = arith.addf %108, %110 : vector<2x32xf32>
    %c1_85 = arith.constant 1 : index
    %c0_86 = arith.constant 0 : index
    %c0_87 = arith.constant 0 : index
    %112 = vector.load %arg5[%c1_85, %c0_86, %c0_87] : memref<3x32x32xbf16, #tpu.memory_space<vmem>>, vector<1x32x32xbf16>
    %113 = vector.shape_cast %112 : vector<1x32x32xbf16> to vector<32x32xbf16>
    %cst_88 = arith.constant dense<0.000000e+00> : vector<2x32xf32>
    %114 = tpu.matmul %104, %113, %cst_88 {dimension_numbers = #tpu.dot_dimension_numbers<[1], [0], [0], [1], [0, 0, 1, 1], [], []>} : vector<2x32xbf16>, vector<32x32xbf16>, vector<2x32xf32> -> vector<2x32xf32>
    %c1_89 = arith.constant 1 : index
    %c0_90 = arith.constant 0 : index
    %c0_91 = arith.constant 0 : index
    %115 = vector.load %arg7[%c1_89, %c0_90, %c0_91] : memref<3x2x32xf32, #tpu.memory_space<vmem>>, vector<1x2x32xf32>
    %116 = vector.shape_cast %115 : vector<1x2x32xf32> to vector<2x32xf32>
    %117 = arith.addf %114, %116 : vector<2x32xf32>
    %c2_92 = arith.constant 2 : index
    %c0_93 = arith.constant 0 : index
    %c0_94 = arith.constant 0 : index
    %118 = vector.load %arg5[%c2_92, %c0_93, %c0_94] : memref<3x32x32xbf16, #tpu.memory_space<vmem>>, vector<1x32x32xbf16>
    %119 = vector.shape_cast %118 : vector<1x32x32xbf16> to vector<32x32xbf16>
    %cst_95 = arith.constant dense<0.000000e+00> : vector<2x32xf32>
    %120 = tpu.matmul %104, %119, %cst_95 {dimension_numbers = #tpu.dot_dimension_numbers<[1], [0], [0], [1], [0, 0, 1, 1], [], []>} : vector<2x32xbf16>, vector<32x32xbf16>, vector<2x32xf32> -> vector<2x32xf32>
    %c2_96 = arith.constant 2 : index
    %c0_97 = arith.constant 0 : index
    %c0_98 = arith.constant 0 : index
    %121 = vector.load %arg7[%c2_96, %c0_97, %c0_98] : memref<3x2x32xf32, #tpu.memory_space<vmem>>, vector<1x2x32xf32>
    %122 = vector.shape_cast %121 : vector<1x2x32xf32> to vector<2x32xf32>
    %123 = arith.addf %120, %122 : vector<2x32xf32>
    %c0_99 = arith.constant 0 : index
    %c0_100 = arith.constant 0 : index
    %c0_101 = arith.constant 0 : index
    %124 = vector.load %arg6[%c0_99, %c0_100, %c0_101] : memref<3x32x32xbf16, #tpu.memory_space<vmem>>, vector<1x32x32xbf16>
    %125 = vector.shape_cast %124 : vector<1x32x32xbf16> to vector<32x32xbf16>
    %cst_102 = arith.constant dense<0.000000e+00> : vector<2x32xf32>
    %126 = tpu.matmul %105, %125, %cst_102 {dimension_numbers = #tpu.dot_dimension_numbers<[1], [0], [0], [1], [0, 0, 1, 1], [], []>} : vector<2x32xbf16>, vector<32x32xbf16>, vector<2x32xf32> -> vector<2x32xf32>
    %c1_103 = arith.constant 1 : index
    %c0_104 = arith.constant 0 : index
    %c0_105 = arith.constant 0 : index
    %127 = vector.load %arg6[%c1_103, %c0_104, %c0_105] : memref<3x32x32xbf16, #tpu.memory_space<vmem>>, vector<1x32x32xbf16>
    %128 = vector.shape_cast %127 : vector<1x32x32xbf16> to vector<32x32xbf16>
    %cst_106 = arith.constant dense<0.000000e+00> : vector<2x32xf32>
    %129 = tpu.matmul %105, %128, %cst_106 {dimension_numbers = #tpu.dot_dimension_numbers<[1], [0], [0], [1], [0, 0, 1, 1], [], []>} : vector<2x32xbf16>, vector<32x32xbf16>, vector<2x32xf32> -> vector<2x32xf32>
    %c2_107 = arith.constant 2 : index
    %c0_108 = arith.constant 0 : index
    %c0_109 = arith.constant 0 : index
    %130 = vector.load %arg6[%c2_107, %c0_108, %c0_109] : memref<3x32x32xbf16, #tpu.memory_space<vmem>>, vector<1x32x32xbf16>
    %131 = vector.shape_cast %130 : vector<1x32x32xbf16> to vector<32x32xbf16>
    %cst_110 = arith.constant dense<0.000000e+00> : vector<2x32xf32>
    %132 = tpu.matmul %105, %131, %cst_110 {dimension_numbers = #tpu.dot_dimension_numbers<[1], [0], [0], [1], [0, 0, 1, 1], [], []>} : vector<2x32xbf16>, vector<32x32xbf16>, vector<2x32xf32> -> vector<2x32xf32>
    %133 = arith.addf %111, %126 : vector<2x32xf32>
    %134 = arith.negf %133 : vector<2x32xf32>
    %135 = math.exp %134 : vector<2x32xf32>
    %cst_111 = arith.constant 1.000000e+00 : f32
    %136 = vector.broadcast %cst_111 : f32 to vector<2x32xf32>
    %137 = arith.addf %136, %135 : vector<2x32xf32>
    %138 = arith.divf %136, %137 : vector<2x32xf32>
    %139 = arith.addf %117, %129 : vector<2x32xf32>
    %140 = arith.negf %139 : vector<2x32xf32>
    %141 = math.exp %140 : vector<2x32xf32>
    %cst_112 = arith.constant 1.000000e+00 : f32
    %142 = vector.broadcast %cst_112 : f32 to vector<2x32xf32>
    %143 = arith.addf %142, %141 : vector<2x32xf32>
    %144 = arith.divf %142, %143 : vector<2x32xf32>
    %c0_113 = arith.constant 0 : index
    %c0_114 = arith.constant 0 : index
    %145 = vector.load %arg8[%c0_113, %c0_114] : memref<2x32xf32, #tpu.memory_space<vmem>>, vector<2x32xf32>
    %146 = arith.addf %132, %145 : vector<2x32xf32>
    %147 = arith.mulf %138, %146 : vector<2x32xf32>
    %148 = arith.addf %123, %147 : vector<2x32xf32>
    %149 = math.tanh %148 : vector<2x32xf32>
    %150 = arith.subf %1, %149 : vector<2x32xf32>
    %151 = arith.mulf %144, %150 : vector<2x32xf32>
    %152 = arith.addf %149, %151 : vector<2x32xf32>
    %c2_115 = arith.constant 2 : index
    %c0_116 = arith.constant 0 : index
    %c0_117 = arith.constant 0 : index
    %153 = vector.load %arg0[%c2_115, %c0_116, %c0_117] : memref<8x2x4xf32, #tpu.memory_space<vmem>>, vector<1x2x4xf32>
    %154 = vector.shape_cast %153 : vector<1x2x4xf32> to vector<2x4xf32>
    %155 = arith.truncf %154 : vector<2x4xf32> to vector<2x4xbf16>
    %156 = arith.truncf %103 : vector<2x32xf32> to vector<2x32xbf16>
    %c0_118 = arith.constant 0 : index
    %c0_119 = arith.constant 0 : index
    %c0_120 = arith.constant 0 : index
    %157 = vector.load %arg1[%c0_118, %c0_119, %c0_120] : memref<3x4x32xbf16, #tpu.memory_space<vmem>>, vector<1x4x32xbf16>
    %158 = vector.shape_cast %157 : vector<1x4x32xbf16> to vector<4x32xbf16>
    %cst_121 = arith.constant dense<0.000000e+00> : vector<2x32xf32>
    %159 = tpu.matmul %155, %158, %cst_121 {dimension_numbers = #tpu.dot_dimension_numbers<[1], [0], [0], [1], [0, 0, 1, 1], [], []>} : vector<2x4xbf16>, vector<4x32xbf16>, vector<2x32xf32> -> vector<2x32xf32>
    %c0_122 = arith.constant 0 : index
    %c0_123 = arith.constant 0 : index
    %c0_124 = arith.constant 0 : index
    %160 = vector.load %arg3[%c0_122, %c0_123, %c0_124] : memref<3x2x32xf32, #tpu.memory_space<vmem>>, vector<1x2x32xf32>
    %161 = vector.shape_cast %160 : vector<1x2x32xf32> to vector<2x32xf32>
    %162 = arith.addf %159, %161 : vector<2x32xf32>
    %c1_125 = arith.constant 1 : index
    %c0_126 = arith.constant 0 : index
    %c0_127 = arith.constant 0 : index
    %163 = vector.load %arg1[%c1_125, %c0_126, %c0_127] : memref<3x4x32xbf16, #tpu.memory_space<vmem>>, vector<1x4x32xbf16>
    %164 = vector.shape_cast %163 : vector<1x4x32xbf16> to vector<4x32xbf16>
    %cst_128 = arith.constant dense<0.000000e+00> : vector<2x32xf32>
    %165 = tpu.matmul %155, %164, %cst_128 {dimension_numbers = #tpu.dot_dimension_numbers<[1], [0], [0], [1], [0, 0, 1, 1], [], []>} : vector<2x4xbf16>, vector<4x32xbf16>, vector<2x32xf32> -> vector<2x32xf32>
    %c1_129 = arith.constant 1 : index
    %c0_130 = arith.constant 0 : index
    %c0_131 = arith.constant 0 : index
    %166 = vector.load %arg3[%c1_129, %c0_130, %c0_131] : memref<3x2x32xf32, #tpu.memory_space<vmem>>, vector<1x2x32xf32>
    %167 = vector.shape_cast %166 : vector<1x2x32xf32> to vector<2x32xf32>
    %168 = arith.addf %165, %167 : vector<2x32xf32>
    %c2_132 = arith.constant 2 : index
    %c0_133 = arith.constant 0 : index
    %c0_134 = arith.constant 0 : index
    %169 = vector.load %arg1[%c2_132, %c0_133, %c0_134] : memref<3x4x32xbf16, #tpu.memory_space<vmem>>, vector<1x4x32xbf16>
    %170 = vector.shape_cast %169 : vector<1x4x32xbf16> to vector<4x32xbf16>
    %cst_135 = arith.constant dense<0.000000e+00> : vector<2x32xf32>
    %171 = tpu.matmul %155, %170, %cst_135 {dimension_numbers = #tpu.dot_dimension_numbers<[1], [0], [0], [1], [0, 0, 1, 1], [], []>} : vector<2x4xbf16>, vector<4x32xbf16>, vector<2x32xf32> -> vector<2x32xf32>
    %c2_136 = arith.constant 2 : index
    %c0_137 = arith.constant 0 : index
    %c0_138 = arith.constant 0 : index
    %172 = vector.load %arg3[%c2_136, %c0_137, %c0_138] : memref<3x2x32xf32, #tpu.memory_space<vmem>>, vector<1x2x32xf32>
    %173 = vector.shape_cast %172 : vector<1x2x32xf32> to vector<2x32xf32>
    %174 = arith.addf %171, %173 : vector<2x32xf32>
    %c0_139 = arith.constant 0 : index
    %c0_140 = arith.constant 0 : index
    %c0_141 = arith.constant 0 : index
    %175 = vector.load %arg2[%c0_139, %c0_140, %c0_141] : memref<3x32x32xbf16, #tpu.memory_space<vmem>>, vector<1x32x32xbf16>
    %176 = vector.shape_cast %175 : vector<1x32x32xbf16> to vector<32x32xbf16>
    %cst_142 = arith.constant dense<0.000000e+00> : vector<2x32xf32>
    %177 = tpu.matmul %156, %176, %cst_142 {dimension_numbers = #tpu.dot_dimension_numbers<[1], [0], [0], [1], [0, 0, 1, 1], [], []>} : vector<2x32xbf16>, vector<32x32xbf16>, vector<2x32xf32> -> vector<2x32xf32>
    %c1_143 = arith.constant 1 : index
    %c0_144 = arith.constant 0 : index
    %c0_145 = arith.constant 0 : index
    %178 = vector.load %arg2[%c1_143, %c0_144, %c0_145] : memref<3x32x32xbf16, #tpu.memory_space<vmem>>, vector<1x32x32xbf16>
    %179 = vector.shape_cast %178 : vector<1x32x32xbf16> to vector<32x32xbf16>
    %cst_146 = arith.constant dense<0.000000e+00> : vector<2x32xf32>
    %180 = tpu.matmul %156, %179, %cst_146 {dimension_numbers = #tpu.dot_dimension_numbers<[1], [0], [0], [1], [0, 0, 1, 1], [], []>} : vector<2x32xbf16>, vector<32x32xbf16>, vector<2x32xf32> -> vector<2x32xf32>
    %c2_147 = arith.constant 2 : index
    %c0_148 = arith.constant 0 : index
    %c0_149 = arith.constant 0 : index
    %181 = vector.load %arg2[%c2_147, %c0_148, %c0_149] : memref<3x32x32xbf16, #tpu.memory_space<vmem>>, vector<1x32x32xbf16>
    %182 = vector.shape_cast %181 : vector<1x32x32xbf16> to vector<32x32xbf16>
    %cst_150 = arith.constant dense<0.000000e+00> : vector<2x32xf32>
    %183 = tpu.matmul %156, %182, %cst_150 {dimension_numbers = #tpu.dot_dimension_numbers<[1], [0], [0], [1], [0, 0, 1, 1], [], []>} : vector<2x32xbf16>, vector<32x32xbf16>, vector<2x32xf32> -> vector<2x32xf32>
    %184 = arith.addf %162, %177 : vector<2x32xf32>
    %185 = arith.negf %184 : vector<2x32xf32>
    %186 = math.exp %185 : vector<2x32xf32>
    %cst_151 = arith.constant 1.000000e+00 : f32
    %187 = vector.broadcast %cst_151 : f32 to vector<2x32xf32>
    %188 = arith.addf %187, %186 : vector<2x32xf32>
    %189 = arith.divf %187, %188 : vector<2x32xf32>
    %190 = arith.addf %168, %180 : vector<2x32xf32>
    %191 = arith.negf %190 : vector<2x32xf32>
    %192 = math.exp %191 : vector<2x32xf32>
    %cst_152 = arith.constant 1.000000e+00 : f32
    %193 = vector.broadcast %cst_152 : f32 to vector<2x32xf32>
    %194 = arith.addf %193, %192 : vector<2x32xf32>
    %195 = arith.divf %193, %194 : vector<2x32xf32>
    %c0_153 = arith.constant 0 : index
    %c0_154 = arith.constant 0 : index
    %196 = vector.load %arg4[%c0_153, %c0_154] : memref<2x32xf32, #tpu.memory_space<vmem>>, vector<2x32xf32>
    %197 = arith.addf %183, %196 : vector<2x32xf32>
    %198 = arith.mulf %189, %197 : vector<2x32xf32>
    %199 = arith.addf %174, %198 : vector<2x32xf32>
    %200 = math.tanh %199 : vector<2x32xf32>
    %201 = arith.subf %103, %200 : vector<2x32xf32>
    %202 = arith.mulf %195, %201 : vector<2x32xf32>
    %203 = arith.addf %200, %202 : vector<2x32xf32>
    %204 = arith.truncf %103 : vector<2x32xf32> to vector<2x32xbf16>
    %205 = arith.truncf %152 : vector<2x32xf32> to vector<2x32xbf16>
    %c0_155 = arith.constant 0 : index
    %c0_156 = arith.constant 0 : index
    %c0_157 = arith.constant 0 : index
    %206 = vector.load %arg5[%c0_155, %c0_156, %c0_157] : memref<3x32x32xbf16, #tpu.memory_space<vmem>>, vector<1x32x32xbf16>
    %207 = vector.shape_cast %206 : vector<1x32x32xbf16> to vector<32x32xbf16>
    %cst_158 = arith.constant dense<0.000000e+00> : vector<2x32xf32>
    %208 = tpu.matmul %204, %207, %cst_158 {dimension_numbers = #tpu.dot_dimension_numbers<[1], [0], [0], [1], [0, 0, 1, 1], [], []>} : vector<2x32xbf16>, vector<32x32xbf16>, vector<2x32xf32> -> vector<2x32xf32>
    %c0_159 = arith.constant 0 : index
    %c0_160 = arith.constant 0 : index
    %c0_161 = arith.constant 0 : index
    %209 = vector.load %arg7[%c0_159, %c0_160, %c0_161] : memref<3x2x32xf32, #tpu.memory_space<vmem>>, vector<1x2x32xf32>
    %210 = vector.shape_cast %209 : vector<1x2x32xf32> to vector<2x32xf32>
    %211 = arith.addf %208, %210 : vector<2x32xf32>
    %c1_162 = arith.constant 1 : index
    %c0_163 = arith.constant 0 : index
    %c0_164 = arith.constant 0 : index
    %212 = vector.load %arg5[%c1_162, %c0_163, %c0_164] : memref<3x32x32xbf16, #tpu.memory_space<vmem>>, vector<1x32x32xbf16>
    %213 = vector.shape_cast %212 : vector<1x32x32xbf16> to vector<32x32xbf16>
    %cst_165 = arith.constant dense<0.000000e+00> : vector<2x32xf32>
    %214 = tpu.matmul %204, %213, %cst_165 {dimension_numbers = #tpu.dot_dimension_numbers<[1], [0], [0], [1], [0, 0, 1, 1], [], []>} : vector<2x32xbf16>, vector<32x32xbf16>, vector<2x32xf32> -> vector<2x32xf32>
    %c1_166 = arith.constant 1 : index
    %c0_167 = arith.constant 0 : index
    %c0_168 = arith.constant 0 : index
    %215 = vector.load %arg7[%c1_166, %c0_167, %c0_168] : memref<3x2x32xf32, #tpu.memory_space<vmem>>, vector<1x2x32xf32>
    %216 = vector.shape_cast %215 : vector<1x2x32xf32> to vector<2x32xf32>
    %217 = arith.addf %214, %216 : vector<2x32xf32>
    %c2_169 = arith.constant 2 : index
    %c0_170 = arith.constant 0 : index
    %c0_171 = arith.constant 0 : index
    %218 = vector.load %arg5[%c2_169, %c0_170, %c0_171] : memref<3x32x32xbf16, #tpu.memory_space<vmem>>, vector<1x32x32xbf16>
    %219 = vector.shape_cast %218 : vector<1x32x32xbf16> to vector<32x32xbf16>
    %cst_172 = arith.constant dense<0.000000e+00> : vector<2x32xf32>
    %220 = tpu.matmul %204, %219, %cst_172 {dimension_numbers = #tpu.dot_dimension_numbers<[1], [0], [0], [1], [0, 0, 1, 1], [], []>} : vector<2x32xbf16>, vector<32x32xbf16>, vector<2x32xf32> -> vector<2x32xf32>
    %c2_173 = arith.constant 2 : index
    %c0_174 = arith.constant 0 : index
    %c0_175 = arith.constant 0 : index
    %221 = vector.load %arg7[%c2_173, %c0_174, %c0_175] : memref<3x2x32xf32, #tpu.memory_space<vmem>>, vector<1x2x32xf32>
    %222 = vector.shape_cast %221 : vector<1x2x32xf32> to vector<2x32xf32>
    %223 = arith.addf %220, %222 : vector<2x32xf32>
    %c0_176 = arith.constant 0 : index
    %c0_177 = arith.constant 0 : index
    %c0_178 = arith.constant 0 : index
    %224 = vector.load %arg6[%c0_176, %c0_177, %c0_178] : memref<3x32x32xbf16, #tpu.memory_space<vmem>>, vector<1x32x32xbf16>
    %225 = vector.shape_cast %224 : vector<1x32x32xbf16> to vector<32x32xbf16>
    %cst_179 = arith.constant dense<0.000000e+00> : vector<2x32xf32>
    %226 = tpu.matmul %205, %225, %cst_179 {dimension_numbers = #tpu.dot_dimension_numbers<[1], [0], [0], [1], [0, 0, 1, 1], [], []>} : vector<2x32xbf16>, vector<32x32xbf16>, vector<2x32xf32> -> vector<2x32xf32>
    %c1_180 = arith.constant 1 : index
    %c0_181 = arith.constant 0 : index
    %c0_182 = arith.constant 0 : index
    %227 = vector.load %arg6[%c1_180, %c0_181, %c0_182] : memref<3x32x32xbf16, #tpu.memory_space<vmem>>, vector<1x32x32xbf16>
    %228 = vector.shape_cast %227 : vector<1x32x32xbf16> to vector<32x32xbf16>
    %cst_183 = arith.constant dense<0.000000e+00> : vector<2x32xf32>
    %229 = tpu.matmul %205, %228, %cst_183 {dimension_numbers = #tpu.dot_dimension_numbers<[1], [0], [0], [1], [0, 0, 1, 1], [], []>} : vector<2x32xbf16>, vector<32x32xbf16>, vector<2x32xf32> -> vector<2x32xf32>
    %c2_184 = arith.constant 2 : index
    %c0_185 = arith.constant 0 : index
    %c0_186 = arith.constant 0 : index
    %230 = vector.load %arg6[%c2_184, %c0_185, %c0_186] : memref<3x32x32xbf16, #tpu.memory_space<vmem>>, vector<1x32x32xbf16>
    %231 = vector.shape_cast %230 : vector<1x32x32xbf16> to vector<32x32xbf16>
    %cst_187 = arith.constant dense<0.000000e+00> : vector<2x32xf32>
    %232 = tpu.matmul %205, %231, %cst_187 {dimension_numbers = #tpu.dot_dimension_numbers<[1], [0], [0], [1], [0, 0, 1, 1], [], []>} : vector<2x32xbf16>, vector<32x32xbf16>, vector<2x32xf32> -> vector<2x32xf32>
    %233 = arith.addf %211, %226 : vector<2x32xf32>
    %234 = arith.negf %233 : vector<2x32xf32>
    %235 = math.exp %234 : vector<2x32xf32>
    %cst_188 = arith.constant 1.000000e+00 : f32
    %236 = vector.broadcast %cst_188 : f32 to vector<2x32xf32>
    %237 = arith.addf %236, %235 : vector<2x32xf32>
    %238 = arith.divf %236, %237 : vector<2x32xf32>
    %239 = arith.addf %217, %229 : vector<2x32xf32>
    %240 = arith.negf %239 : vector<2x32xf32>
    %241 = math.exp %240 : vector<2x32xf32>
    %cst_189 = arith.constant 1.000000e+00 : f32
    %242 = vector.broadcast %cst_189 : f32 to vector<2x32xf32>
    %243 = arith.addf %242, %241 : vector<2x32xf32>
    %244 = arith.divf %242, %243 : vector<2x32xf32>
    %c0_190 = arith.constant 0 : index
    %c0_191 = arith.constant 0 : index
    %245 = vector.load %arg8[%c0_190, %c0_191] : memref<2x32xf32, #tpu.memory_space<vmem>>, vector<2x32xf32>
    %246 = arith.addf %232, %245 : vector<2x32xf32>
    %247 = arith.mulf %238, %246 : vector<2x32xf32>
    %248 = arith.addf %223, %247 : vector<2x32xf32>
    %249 = math.tanh %248 : vector<2x32xf32>
    %250 = arith.subf %152, %249 : vector<2x32xf32>
    %251 = arith.mulf %244, %250 : vector<2x32xf32>
    %252 = arith.addf %249, %251 : vector<2x32xf32>
    %c3 = arith.constant 3 : index
    %c0_192 = arith.constant 0 : index
    %c0_193 = arith.constant 0 : index
    %253 = vector.load %arg0[%c3, %c0_192, %c0_193] : memref<8x2x4xf32, #tpu.memory_space<vmem>>, vector<1x2x4xf32>
    %254 = vector.shape_cast %253 : vector<1x2x4xf32> to vector<2x4xf32>
    %255 = arith.truncf %254 : vector<2x4xf32> to vector<2x4xbf16>
    %256 = arith.truncf %203 : vector<2x32xf32> to vector<2x32xbf16>
    %c0_194 = arith.constant 0 : index
    %c0_195 = arith.constant 0 : index
    %c0_196 = arith.constant 0 : index
    %257 = vector.load %arg1[%c0_194, %c0_195, %c0_196] : memref<3x4x32xbf16, #tpu.memory_space<vmem>>, vector<1x4x32xbf16>
    %258 = vector.shape_cast %257 : vector<1x4x32xbf16> to vector<4x32xbf16>
    %cst_197 = arith.constant dense<0.000000e+00> : vector<2x32xf32>
    %259 = tpu.matmul %255, %258, %cst_197 {dimension_numbers = #tpu.dot_dimension_numbers<[1], [0], [0], [1], [0, 0, 1, 1], [], []>} : vector<2x4xbf16>, vector<4x32xbf16>, vector<2x32xf32> -> vector<2x32xf32>
    %c0_198 = arith.constant 0 : index
    %c0_199 = arith.constant 0 : index
    %c0_200 = arith.constant 0 : index
    %260 = vector.load %arg3[%c0_198, %c0_199, %c0_200] : memref<3x2x32xf32, #tpu.memory_space<vmem>>, vector<1x2x32xf32>
    %261 = vector.shape_cast %260 : vector<1x2x32xf32> to vector<2x32xf32>
    %262 = arith.addf %259, %261 : vector<2x32xf32>
    %c1_201 = arith.constant 1 : index
    %c0_202 = arith.constant 0 : index
    %c0_203 = arith.constant 0 : index
    %263 = vector.load %arg1[%c1_201, %c0_202, %c0_203] : memref<3x4x32xbf16, #tpu.memory_space<vmem>>, vector<1x4x32xbf16>
    %264 = vector.shape_cast %263 : vector<1x4x32xbf16> to vector<4x32xbf16>
    %cst_204 = arith.constant dense<0.000000e+00> : vector<2x32xf32>
    %265 = tpu.matmul %255, %264, %cst_204 {dimension_numbers = #tpu.dot_dimension_numbers<[1], [0], [0], [1], [0, 0, 1, 1], [], []>} : vector<2x4xbf16>, vector<4x32xbf16>, vector<2x32xf32> -> vector<2x32xf32>
    %c1_205 = arith.constant 1 : index
    %c0_206 = arith.constant 0 : index
    %c0_207 = arith.constant 0 : index
    %266 = vector.load %arg3[%c1_205, %c0_206, %c0_207] : memref<3x2x32xf32, #tpu.memory_space<vmem>>, vector<1x2x32xf32>
    %267 = vector.shape_cast %266 : vector<1x2x32xf32> to vector<2x32xf32>
    %268 = arith.addf %265, %267 : vector<2x32xf32>
    %c2_208 = arith.constant 2 : index
    %c0_209 = arith.constant 0 : index
    %c0_210 = arith.constant 0 : index
    %269 = vector.load %arg1[%c2_208, %c0_209, %c0_210] : memref<3x4x32xbf16, #tpu.memory_space<vmem>>, vector<1x4x32xbf16>
    %270 = vector.shape_cast %269 : vector<1x4x32xbf16> to vector<4x32xbf16>
    %cst_211 = arith.constant dense<0.000000e+00> : vector<2x32xf32>
    %271 = tpu.matmul %255, %270, %cst_211 {dimension_numbers = #tpu.dot_dimension_numbers<[1], [0], [0], [1], [0, 0, 1, 1], [], []>} : vector<2x4xbf16>, vector<4x32xbf16>, vector<2x32xf32> -> vector<2x32xf32>
    %c2_212 = arith.constant 2 : index
    %c0_213 = arith.constant 0 : index
    %c0_214 = arith.constant 0 : index
    %272 = vector.load %arg3[%c2_212, %c0_213, %c0_214] : memref<3x2x32xf32, #tpu.memory_space<vmem>>, vector<1x2x32xf32>
    %273 = vector.shape_cast %272 : vector<1x2x32xf32> to vector<2x32xf32>
    %274 = arith.addf %271, %273 : vector<2x32xf32>
    %c0_215 = arith.constant 0 : index
    %c0_216 = arith.constant 0 : index
    %c0_217 = arith.constant 0 : index
    %275 = vector.load %arg2[%c0_215, %c0_216, %c0_217] : memref<3x32x32xbf16, #tpu.memory_space<vmem>>, vector<1x32x32xbf16>
    %276 = vector.shape_cast %275 : vector<1x32x32xbf16> to vector<32x32xbf16>
    %cst_218 = arith.constant dense<0.000000e+00> : vector<2x32xf32>
    %277 = tpu.matmul %256, %276, %cst_218 {dimension_numbers = #tpu.dot_dimension_numbers<[1], [0], [0], [1], [0, 0, 1, 1], [], []>} : vector<2x32xbf16>, vector<32x32xbf16>, vector<2x32xf32> -> vector<2x32xf32>
    %c1_219 = arith.constant 1 : index
    %c0_220 = arith.constant 0 : index
    %c0_221 = arith.constant 0 : index
    %278 = vector.load %arg2[%c1_219, %c0_220, %c0_221] : memref<3x32x32xbf16, #tpu.memory_space<vmem>>, vector<1x32x32xbf16>
    %279 = vector.shape_cast %278 : vector<1x32x32xbf16> to vector<32x32xbf16>
    %cst_222 = arith.constant dense<0.000000e+00> : vector<2x32xf32>
    %280 = tpu.matmul %256, %279, %cst_222 {dimension_numbers = #tpu.dot_dimension_numbers<[1], [0], [0], [1], [0, 0, 1, 1], [], []>} : vector<2x32xbf16>, vector<32x32xbf16>, vector<2x32xf32> -> vector<2x32xf32>
    %c2_223 = arith.constant 2 : index
    %c0_224 = arith.constant 0 : index
    %c0_225 = arith.constant 0 : index
    %281 = vector.load %arg2[%c2_223, %c0_224, %c0_225] : memref<3x32x32xbf16, #tpu.memory_space<vmem>>, vector<1x32x32xbf16>
    %282 = vector.shape_cast %281 : vector<1x32x32xbf16> to vector<32x32xbf16>
    %cst_226 = arith.constant dense<0.000000e+00> : vector<2x32xf32>
    %283 = tpu.matmul %256, %282, %cst_226 {dimension_numbers = #tpu.dot_dimension_numbers<[1], [0], [0], [1], [0, 0, 1, 1], [], []>} : vector<2x32xbf16>, vector<32x32xbf16>, vector<2x32xf32> -> vector<2x32xf32>
    %284 = arith.addf %262, %277 : vector<2x32xf32>
    %285 = arith.negf %284 : vector<2x32xf32>
    %286 = math.exp %285 : vector<2x32xf32>
    %cst_227 = arith.constant 1.000000e+00 : f32
    %287 = vector.broadcast %cst_227 : f32 to vector<2x32xf32>
    %288 = arith.addf %287, %286 : vector<2x32xf32>
    %289 = arith.divf %287, %288 : vector<2x32xf32>
    %290 = arith.addf %268, %280 : vector<2x32xf32>
    %291 = arith.negf %290 : vector<2x32xf32>
    %292 = math.exp %291 : vector<2x32xf32>
    %cst_228 = arith.constant 1.000000e+00 : f32
    %293 = vector.broadcast %cst_228 : f32 to vector<2x32xf32>
    %294 = arith.addf %293, %292 : vector<2x32xf32>
    %295 = arith.divf %293, %294 : vector<2x32xf32>
    %c0_229 = arith.constant 0 : index
    %c0_230 = arith.constant 0 : index
    %296 = vector.load %arg4[%c0_229, %c0_230] : memref<2x32xf32, #tpu.memory_space<vmem>>, vector<2x32xf32>
    %297 = arith.addf %283, %296 : vector<2x32xf32>
    %298 = arith.mulf %289, %297 : vector<2x32xf32>
    %299 = arith.addf %274, %298 : vector<2x32xf32>
    %300 = math.tanh %299 : vector<2x32xf32>
    %301 = arith.subf %203, %300 : vector<2x32xf32>
    %302 = arith.mulf %295, %301 : vector<2x32xf32>
    %303 = arith.addf %300, %302 : vector<2x32xf32>
    %304 = arith.truncf %203 : vector<2x32xf32> to vector<2x32xbf16>
    %305 = arith.truncf %252 : vector<2x32xf32> to vector<2x32xbf16>
    %c0_231 = arith.constant 0 : index
    %c0_232 = arith.constant 0 : index
    %c0_233 = arith.constant 0 : index
    %306 = vector.load %arg5[%c0_231, %c0_232, %c0_233] : memref<3x32x32xbf16, #tpu.memory_space<vmem>>, vector<1x32x32xbf16>
    %307 = vector.shape_cast %306 : vector<1x32x32xbf16> to vector<32x32xbf16>
    %cst_234 = arith.constant dense<0.000000e+00> : vector<2x32xf32>
    %308 = tpu.matmul %304, %307, %cst_234 {dimension_numbers = #tpu.dot_dimension_numbers<[1], [0], [0], [1], [0, 0, 1, 1], [], []>} : vector<2x32xbf16>, vector<32x32xbf16>, vector<2x32xf32> -> vector<2x32xf32>
    %c0_235 = arith.constant 0 : index
    %c0_236 = arith.constant 0 : index
    %c0_237 = arith.constant 0 : index
    %309 = vector.load %arg7[%c0_235, %c0_236, %c0_237] : memref<3x2x32xf32, #tpu.memory_space<vmem>>, vector<1x2x32xf32>
    %310 = vector.shape_cast %309 : vector<1x2x32xf32> to vector<2x32xf32>
    %311 = arith.addf %308, %310 : vector<2x32xf32>
    %c1_238 = arith.constant 1 : index
    %c0_239 = arith.constant 0 : index
    %c0_240 = arith.constant 0 : index
    %312 = vector.load %arg5[%c1_238, %c0_239, %c0_240] : memref<3x32x32xbf16, #tpu.memory_space<vmem>>, vector<1x32x32xbf16>
    %313 = vector.shape_cast %312 : vector<1x32x32xbf16> to vector<32x32xbf16>
    %cst_241 = arith.constant dense<0.000000e+00> : vector<2x32xf32>
    %314 = tpu.matmul %304, %313, %cst_241 {dimension_numbers = #tpu.dot_dimension_numbers<[1], [0], [0], [1], [0, 0, 1, 1], [], []>} : vector<2x32xbf16>, vector<32x32xbf16>, vector<2x32xf32> -> vector<2x32xf32>
    %c1_242 = arith.constant 1 : index
    %c0_243 = arith.constant 0 : index
    %c0_244 = arith.constant 0 : index
    %315 = vector.load %arg7[%c1_242, %c0_243, %c0_244] : memref<3x2x32xf32, #tpu.memory_space<vmem>>, vector<1x2x32xf32>
    %316 = vector.shape_cast %315 : vector<1x2x32xf32> to vector<2x32xf32>
    %317 = arith.addf %314, %316 : vector<2x32xf32>
    %c2_245 = arith.constant 2 : index
    %c0_246 = arith.constant 0 : index
    %c0_247 = arith.constant 0 : index
    %318 = vector.load %arg5[%c2_245, %c0_246, %c0_247] : memref<3x32x32xbf16, #tpu.memory_space<vmem>>, vector<1x32x32xbf16>
    %319 = vector.shape_cast %318 : vector<1x32x32xbf16> to vector<32x32xbf16>
    %cst_248 = arith.constant dense<0.000000e+00> : vector<2x32xf32>
    %320 = tpu.matmul %304, %319, %cst_248 {dimension_numbers = #tpu.dot_dimension_numbers<[1], [0], [0], [1], [0, 0, 1, 1], [], []>} : vector<2x32xbf16>, vector<32x32xbf16>, vector<2x32xf32> -> vector<2x32xf32>
    %c2_249 = arith.constant 2 : index
    %c0_250 = arith.constant 0 : index
    %c0_251 = arith.constant 0 : index
    %321 = vector.load %arg7[%c2_249, %c0_250, %c0_251] : memref<3x2x32xf32, #tpu.memory_space<vmem>>, vector<1x2x32xf32>
    %322 = vector.shape_cast %321 : vector<1x2x32xf32> to vector<2x32xf32>
    %323 = arith.addf %320, %322 : vector<2x32xf32>
    %c0_252 = arith.constant 0 : index
    %c0_253 = arith.constant 0 : index
    %c0_254 = arith.constant 0 : index
    %324 = vector.load %arg6[%c0_252, %c0_253, %c0_254] : memref<3x32x32xbf16, #tpu.memory_space<vmem>>, vector<1x32x32xbf16>
    %325 = vector.shape_cast %324 : vector<1x32x32xbf16> to vector<32x32xbf16>
    %cst_255 = arith.constant dense<0.000000e+00> : vector<2x32xf32>
    %326 = tpu.matmul %305, %325, %cst_255 {dimension_numbers = #tpu.dot_dimension_numbers<[1], [0], [0], [1], [0, 0, 1, 1], [], []>} : vector<2x32xbf16>, vector<32x32xbf16>, vector<2x32xf32> -> vector<2x32xf32>
    %c1_256 = arith.constant 1 : index
    %c0_257 = arith.constant 0 : index
    %c0_258 = arith.constant 0 : index
    %327 = vector.load %arg6[%c1_256, %c0_257, %c0_258] : memref<3x32x32xbf16, #tpu.memory_space<vmem>>, vector<1x32x32xbf16>
    %328 = vector.shape_cast %327 : vector<1x32x32xbf16> to vector<32x32xbf16>
    %cst_259 = arith.constant dense<0.000000e+00> : vector<2x32xf32>
    %329 = tpu.matmul %305, %328, %cst_259 {dimension_numbers = #tpu.dot_dimension_numbers<[1], [0], [0], [1], [0, 0, 1, 1], [], []>} : vector<2x32xbf16>, vector<32x32xbf16>, vector<2x32xf32> -> vector<2x32xf32>
    %c2_260 = arith.constant 2 : index
    %c0_261 = arith.constant 0 : index
    %c0_262 = arith.constant 0 : index
    %330 = vector.load %arg6[%c2_260, %c0_261, %c0_262] : memref<3x32x32xbf16, #tpu.memory_space<vmem>>, vector<1x32x32xbf16>
    %331 = vector.shape_cast %330 : vector<1x32x32xbf16> to vector<32x32xbf16>
    %cst_263 = arith.constant dense<0.000000e+00> : vector<2x32xf32>
    %332 = tpu.matmul %305, %331, %cst_263 {dimension_numbers = #tpu.dot_dimension_numbers<[1], [0], [0], [1], [0, 0, 1, 1], [], []>} : vector<2x32xbf16>, vector<32x32xbf16>, vector<2x32xf32> -> vector<2x32xf32>
    %333 = arith.addf %311, %326 : vector<2x32xf32>
    %334 = arith.negf %333 : vector<2x32xf32>
    %335 = math.exp %334 : vector<2x32xf32>
    %cst_264 = arith.constant 1.000000e+00 : f32
    %336 = vector.broadcast %cst_264 : f32 to vector<2x32xf32>
    %337 = arith.addf %336, %335 : vector<2x32xf32>
    %338 = arith.divf %336, %337 : vector<2x32xf32>
    %339 = arith.addf %317, %329 : vector<2x32xf32>
    %340 = arith.negf %339 : vector<2x32xf32>
    %341 = math.exp %340 : vector<2x32xf32>
    %cst_265 = arith.constant 1.000000e+00 : f32
    %342 = vector.broadcast %cst_265 : f32 to vector<2x32xf32>
    %343 = arith.addf %342, %341 : vector<2x32xf32>
    %344 = arith.divf %342, %343 : vector<2x32xf32>
    %c0_266 = arith.constant 0 : index
    %c0_267 = arith.constant 0 : index
    %345 = vector.load %arg8[%c0_266, %c0_267] : memref<2x32xf32, #tpu.memory_space<vmem>>, vector<2x32xf32>
    %346 = arith.addf %332, %345 : vector<2x32xf32>
    %347 = arith.mulf %338, %346 : vector<2x32xf32>
    %348 = arith.addf %323, %347 : vector<2x32xf32>
    %349 = math.tanh %348 : vector<2x32xf32>
    %350 = arith.subf %252, %349 : vector<2x32xf32>
    %351 = arith.mulf %344, %350 : vector<2x32xf32>
    %352 = arith.addf %349, %351 : vector<2x32xf32>
    %c4 = arith.constant 4 : index
    %c0_268 = arith.constant 0 : index
    %c0_269 = arith.constant 0 : index
    %353 = vector.load %arg0[%c4, %c0_268, %c0_269] : memref<8x2x4xf32, #tpu.memory_space<vmem>>, vector<1x2x4xf32>
    %354 = vector.shape_cast %353 : vector<1x2x4xf32> to vector<2x4xf32>
    %355 = arith.truncf %354 : vector<2x4xf32> to vector<2x4xbf16>
    %356 = arith.truncf %303 : vector<2x32xf32> to vector<2x32xbf16>
    %c0_270 = arith.constant 0 : index
    %c0_271 = arith.constant 0 : index
    %c0_272 = arith.constant 0 : index
    %357 = vector.load %arg1[%c0_270, %c0_271, %c0_272] : memref<3x4x32xbf16, #tpu.memory_space<vmem>>, vector<1x4x32xbf16>
    %358 = vector.shape_cast %357 : vector<1x4x32xbf16> to vector<4x32xbf16>
    %cst_273 = arith.constant dense<0.000000e+00> : vector<2x32xf32>
    %359 = tpu.matmul %355, %358, %cst_273 {dimension_numbers = #tpu.dot_dimension_numbers<[1], [0], [0], [1], [0, 0, 1, 1], [], []>} : vector<2x4xbf16>, vector<4x32xbf16>, vector<2x32xf32> -> vector<2x32xf32>
    %c0_274 = arith.constant 0 : index
    %c0_275 = arith.constant 0 : index
    %c0_276 = arith.constant 0 : index
    %360 = vector.load %arg3[%c0_274, %c0_275, %c0_276] : memref<3x2x32xf32, #tpu.memory_space<vmem>>, vector<1x2x32xf32>
    %361 = vector.shape_cast %360 : vector<1x2x32xf32> to vector<2x32xf32>
    %362 = arith.addf %359, %361 : vector<2x32xf32>
    %c1_277 = arith.constant 1 : index
    %c0_278 = arith.constant 0 : index
    %c0_279 = arith.constant 0 : index
    %363 = vector.load %arg1[%c1_277, %c0_278, %c0_279] : memref<3x4x32xbf16, #tpu.memory_space<vmem>>, vector<1x4x32xbf16>
    %364 = vector.shape_cast %363 : vector<1x4x32xbf16> to vector<4x32xbf16>
    %cst_280 = arith.constant dense<0.000000e+00> : vector<2x32xf32>
    %365 = tpu.matmul %355, %364, %cst_280 {dimension_numbers = #tpu.dot_dimension_numbers<[1], [0], [0], [1], [0, 0, 1, 1], [], []>} : vector<2x4xbf16>, vector<4x32xbf16>, vector<2x32xf32> -> vector<2x32xf32>
    %c1_281 = arith.constant 1 : index
    %c0_282 = arith.constant 0 : index
    %c0_283 = arith.constant 0 : index
    %366 = vector.load %arg3[%c1_281, %c0_282, %c0_283] : memref<3x2x32xf32, #tpu.memory_space<vmem>>, vector<1x2x32xf32>
    %367 = vector.shape_cast %366 : vector<1x2x32xf32> to vector<2x32xf32>
    %368 = arith.addf %365, %367 : vector<2x32xf32>
    %c2_284 = arith.constant 2 : index
    %c0_285 = arith.constant 0 : index
    %c0_286 = arith.constant 0 : index
    %369 = vector.load %arg1[%c2_284, %c0_285, %c0_286] : memref<3x4x32xbf16, #tpu.memory_space<vmem>>, vector<1x4x32xbf16>
    %370 = vector.shape_cast %369 : vector<1x4x32xbf16> to vector<4x32xbf16>
    %cst_287 = arith.constant dense<0.000000e+00> : vector<2x32xf32>
    %371 = tpu.matmul %355, %370, %cst_287 {dimension_numbers = #tpu.dot_dimension_numbers<[1], [0], [0], [1], [0, 0, 1, 1], [], []>} : vector<2x4xbf16>, vector<4x32xbf16>, vector<2x32xf32> -> vector<2x32xf32>
    %c2_288 = arith.constant 2 : index
    %c0_289 = arith.constant 0 : index
    %c0_290 = arith.constant 0 : index
    %372 = vector.load %arg3[%c2_288, %c0_289, %c0_290] : memref<3x2x32xf32, #tpu.memory_space<vmem>>, vector<1x2x32xf32>
    %373 = vector.shape_cast %372 : vector<1x2x32xf32> to vector<2x32xf32>
    %374 = arith.addf %371, %373 : vector<2x32xf32>
    %c0_291 = arith.constant 0 : index
    %c0_292 = arith.constant 0 : index
    %c0_293 = arith.constant 0 : index
    %375 = vector.load %arg2[%c0_291, %c0_292, %c0_293] : memref<3x32x32xbf16, #tpu.memory_space<vmem>>, vector<1x32x32xbf16>
    %376 = vector.shape_cast %375 : vector<1x32x32xbf16> to vector<32x32xbf16>
    %cst_294 = arith.constant dense<0.000000e+00> : vector<2x32xf32>
    %377 = tpu.matmul %356, %376, %cst_294 {dimension_numbers = #tpu.dot_dimension_numbers<[1], [0], [0], [1], [0, 0, 1, 1], [], []>} : vector<2x32xbf16>, vector<32x32xbf16>, vector<2x32xf32> -> vector<2x32xf32>
    %c1_295 = arith.constant 1 : index
    %c0_296 = arith.constant 0 : index
    %c0_297 = arith.constant 0 : index
    %378 = vector.load %arg2[%c1_295, %c0_296, %c0_297] : memref<3x32x32xbf16, #tpu.memory_space<vmem>>, vector<1x32x32xbf16>
    %379 = vector.shape_cast %378 : vector<1x32x32xbf16> to vector<32x32xbf16>
    %cst_298 = arith.constant dense<0.000000e+00> : vector<2x32xf32>
    %380 = tpu.matmul %356, %379, %cst_298 {dimension_numbers = #tpu.dot_dimension_numbers<[1], [0], [0], [1], [0, 0, 1, 1], [], []>} : vector<2x32xbf16>, vector<32x32xbf16>, vector<2x32xf32> -> vector<2x32xf32>
    %c2_299 = arith.constant 2 : index
    %c0_300 = arith.constant 0 : index
    %c0_301 = arith.constant 0 : index
    %381 = vector.load %arg2[%c2_299, %c0_300, %c0_301] : memref<3x32x32xbf16, #tpu.memory_space<vmem>>, vector<1x32x32xbf16>
    %382 = vector.shape_cast %381 : vector<1x32x32xbf16> to vector<32x32xbf16>
    %cst_302 = arith.constant dense<0.000000e+00> : vector<2x32xf32>
    %383 = tpu.matmul %356, %382, %cst_302 {dimension_numbers = #tpu.dot_dimension_numbers<[1], [0], [0], [1], [0, 0, 1, 1], [], []>} : vector<2x32xbf16>, vector<32x32xbf16>, vector<2x32xf32> -> vector<2x32xf32>
    %384 = arith.addf %362, %377 : vector<2x32xf32>
    %385 = arith.negf %384 : vector<2x32xf32>
    %386 = math.exp %385 : vector<2x32xf32>
    %cst_303 = arith.constant 1.000000e+00 : f32
    %387 = vector.broadcast %cst_303 : f32 to vector<2x32xf32>
    %388 = arith.addf %387, %386 : vector<2x32xf32>
    %389 = arith.divf %387, %388 : vector<2x32xf32>
    %390 = arith.addf %368, %380 : vector<2x32xf32>
    %391 = arith.negf %390 : vector<2x32xf32>
    %392 = math.exp %391 : vector<2x32xf32>
    %cst_304 = arith.constant 1.000000e+00 : f32
    %393 = vector.broadcast %cst_304 : f32 to vector<2x32xf32>
    %394 = arith.addf %393, %392 : vector<2x32xf32>
    %395 = arith.divf %393, %394 : vector<2x32xf32>
    %c0_305 = arith.constant 0 : index
    %c0_306 = arith.constant 0 : index
    %396 = vector.load %arg4[%c0_305, %c0_306] : memref<2x32xf32, #tpu.memory_space<vmem>>, vector<2x32xf32>
    %397 = arith.addf %383, %396 : vector<2x32xf32>
    %398 = arith.mulf %389, %397 : vector<2x32xf32>
    %399 = arith.addf %374, %398 : vector<2x32xf32>
    %400 = math.tanh %399 : vector<2x32xf32>
    %401 = arith.subf %303, %400 : vector<2x32xf32>
    %402 = arith.mulf %395, %401 : vector<2x32xf32>
    %403 = arith.addf %400, %402 : vector<2x32xf32>
    %404 = arith.truncf %303 : vector<2x32xf32> to vector<2x32xbf16>
    %405 = arith.truncf %352 : vector<2x32xf32> to vector<2x32xbf16>
    %c0_307 = arith.constant 0 : index
    %c0_308 = arith.constant 0 : index
    %c0_309 = arith.constant 0 : index
    %406 = vector.load %arg5[%c0_307, %c0_308, %c0_309] : memref<3x32x32xbf16, #tpu.memory_space<vmem>>, vector<1x32x32xbf16>
    %407 = vector.shape_cast %406 : vector<1x32x32xbf16> to vector<32x32xbf16>
    %cst_310 = arith.constant dense<0.000000e+00> : vector<2x32xf32>
    %408 = tpu.matmul %404, %407, %cst_310 {dimension_numbers = #tpu.dot_dimension_numbers<[1], [0], [0], [1], [0, 0, 1, 1], [], []>} : vector<2x32xbf16>, vector<32x32xbf16>, vector<2x32xf32> -> vector<2x32xf32>
    %c0_311 = arith.constant 0 : index
    %c0_312 = arith.constant 0 : index
    %c0_313 = arith.constant 0 : index
    %409 = vector.load %arg7[%c0_311, %c0_312, %c0_313] : memref<3x2x32xf32, #tpu.memory_space<vmem>>, vector<1x2x32xf32>
    %410 = vector.shape_cast %409 : vector<1x2x32xf32> to vector<2x32xf32>
    %411 = arith.addf %408, %410 : vector<2x32xf32>
    %c1_314 = arith.constant 1 : index
    %c0_315 = arith.constant 0 : index
    %c0_316 = arith.constant 0 : index
    %412 = vector.load %arg5[%c1_314, %c0_315, %c0_316] : memref<3x32x32xbf16, #tpu.memory_space<vmem>>, vector<1x32x32xbf16>
    %413 = vector.shape_cast %412 : vector<1x32x32xbf16> to vector<32x32xbf16>
    %cst_317 = arith.constant dense<0.000000e+00> : vector<2x32xf32>
    %414 = tpu.matmul %404, %413, %cst_317 {dimension_numbers = #tpu.dot_dimension_numbers<[1], [0], [0], [1], [0, 0, 1, 1], [], []>} : vector<2x32xbf16>, vector<32x32xbf16>, vector<2x32xf32> -> vector<2x32xf32>
    %c1_318 = arith.constant 1 : index
    %c0_319 = arith.constant 0 : index
    %c0_320 = arith.constant 0 : index
    %415 = vector.load %arg7[%c1_318, %c0_319, %c0_320] : memref<3x2x32xf32, #tpu.memory_space<vmem>>, vector<1x2x32xf32>
    %416 = vector.shape_cast %415 : vector<1x2x32xf32> to vector<2x32xf32>
    %417 = arith.addf %414, %416 : vector<2x32xf32>
    %c2_321 = arith.constant 2 : index
    %c0_322 = arith.constant 0 : index
    %c0_323 = arith.constant 0 : index
    %418 = vector.load %arg5[%c2_321, %c0_322, %c0_323] : memref<3x32x32xbf16, #tpu.memory_space<vmem>>, vector<1x32x32xbf16>
    %419 = vector.shape_cast %418 : vector<1x32x32xbf16> to vector<32x32xbf16>
    %cst_324 = arith.constant dense<0.000000e+00> : vector<2x32xf32>
    %420 = tpu.matmul %404, %419, %cst_324 {dimension_numbers = #tpu.dot_dimension_numbers<[1], [0], [0], [1], [0, 0, 1, 1], [], []>} : vector<2x32xbf16>, vector<32x32xbf16>, vector<2x32xf32> -> vector<2x32xf32>
    %c2_325 = arith.constant 2 : index
    %c0_326 = arith.constant 0 : index
    %c0_327 = arith.constant 0 : index
    %421 = vector.load %arg7[%c2_325, %c0_326, %c0_327] : memref<3x2x32xf32, #tpu.memory_space<vmem>>, vector<1x2x32xf32>
    %422 = vector.shape_cast %421 : vector<1x2x32xf32> to vector<2x32xf32>
    %423 = arith.addf %420, %422 : vector<2x32xf32>
    %c0_328 = arith.constant 0 : index
    %c0_329 = arith.constant 0 : index
    %c0_330 = arith.constant 0 : index
    %424 = vector.load %arg6[%c0_328, %c0_329, %c0_330] : memref<3x32x32xbf16, #tpu.memory_space<vmem>>, vector<1x32x32xbf16>
    %425 = vector.shape_cast %424 : vector<1x32x32xbf16> to vector<32x32xbf16>
    %cst_331 = arith.constant dense<0.000000e+00> : vector<2x32xf32>
    %426 = tpu.matmul %405, %425, %cst_331 {dimension_numbers = #tpu.dot_dimension_numbers<[1], [0], [0], [1], [0, 0, 1, 1], [], []>} : vector<2x32xbf16>, vector<32x32xbf16>, vector<2x32xf32> -> vector<2x32xf32>
    %c1_332 = arith.constant 1 : index
    %c0_333 = arith.constant 0 : index
    %c0_334 = arith.constant 0 : index
    %427 = vector.load %arg6[%c1_332, %c0_333, %c0_334] : memref<3x32x32xbf16, #tpu.memory_space<vmem>>, vector<1x32x32xbf16>
    %428 = vector.shape_cast %427 : vector<1x32x32xbf16> to vector<32x32xbf16>
    %cst_335 = arith.constant dense<0.000000e+00> : vector<2x32xf32>
    %429 = tpu.matmul %405, %428, %cst_335 {dimension_numbers = #tpu.dot_dimension_numbers<[1], [0], [0], [1], [0, 0, 1, 1], [], []>} : vector<2x32xbf16>, vector<32x32xbf16>, vector<2x32xf32> -> vector<2x32xf32>
    %c2_336 = arith.constant 2 : index
    %c0_337 = arith.constant 0 : index
    %c0_338 = arith.constant 0 : index
    %430 = vector.load %arg6[%c2_336, %c0_337, %c0_338] : memref<3x32x32xbf16, #tpu.memory_space<vmem>>, vector<1x32x32xbf16>
    %431 = vector.shape_cast %430 : vector<1x32x32xbf16> to vector<32x32xbf16>
    %cst_339 = arith.constant dense<0.000000e+00> : vector<2x32xf32>
    %432 = tpu.matmul %405, %431, %cst_339 {dimension_numbers = #tpu.dot_dimension_numbers<[1], [0], [0], [1], [0, 0, 1, 1], [], []>} : vector<2x32xbf16>, vector<32x32xbf16>, vector<2x32xf32> -> vector<2x32xf32>
    %433 = arith.addf %411, %426 : vector<2x32xf32>
    %434 = arith.negf %433 : vector<2x32xf32>
    %435 = math.exp %434 : vector<2x32xf32>
    %cst_340 = arith.constant 1.000000e+00 : f32
    %436 = vector.broadcast %cst_340 : f32 to vector<2x32xf32>
    %437 = arith.addf %436, %435 : vector<2x32xf32>
    %438 = arith.divf %436, %437 : vector<2x32xf32>
    %439 = arith.addf %417, %429 : vector<2x32xf32>
    %440 = arith.negf %439 : vector<2x32xf32>
    %441 = math.exp %440 : vector<2x32xf32>
    %cst_341 = arith.constant 1.000000e+00 : f32
    %442 = vector.broadcast %cst_341 : f32 to vector<2x32xf32>
    %443 = arith.addf %442, %441 : vector<2x32xf32>
    %444 = arith.divf %442, %443 : vector<2x32xf32>
    %c0_342 = arith.constant 0 : index
    %c0_343 = arith.constant 0 : index
    %445 = vector.load %arg8[%c0_342, %c0_343] : memref<2x32xf32, #tpu.memory_space<vmem>>, vector<2x32xf32>
    %446 = arith.addf %432, %445 : vector<2x32xf32>
    %447 = arith.mulf %438, %446 : vector<2x32xf32>
    %448 = arith.addf %423, %447 : vector<2x32xf32>
    %449 = math.tanh %448 : vector<2x32xf32>
    %450 = arith.subf %352, %449 : vector<2x32xf32>
    %451 = arith.mulf %444, %450 : vector<2x32xf32>
    %452 = arith.addf %449, %451 : vector<2x32xf32>
    %c5 = arith.constant 5 : index
    %c0_344 = arith.constant 0 : index
    %c0_345 = arith.constant 0 : index
    %453 = vector.load %arg0[%c5, %c0_344, %c0_345] : memref<8x2x4xf32, #tpu.memory_space<vmem>>, vector<1x2x4xf32>
    %454 = vector.shape_cast %453 : vector<1x2x4xf32> to vector<2x4xf32>
    %455 = arith.truncf %454 : vector<2x4xf32> to vector<2x4xbf16>
    %456 = arith.truncf %403 : vector<2x32xf32> to vector<2x32xbf16>
    %c0_346 = arith.constant 0 : index
    %c0_347 = arith.constant 0 : index
    %c0_348 = arith.constant 0 : index
    %457 = vector.load %arg1[%c0_346, %c0_347, %c0_348] : memref<3x4x32xbf16, #tpu.memory_space<vmem>>, vector<1x4x32xbf16>
    %458 = vector.shape_cast %457 : vector<1x4x32xbf16> to vector<4x32xbf16>
    %cst_349 = arith.constant dense<0.000000e+00> : vector<2x32xf32>
    %459 = tpu.matmul %455, %458, %cst_349 {dimension_numbers = #tpu.dot_dimension_numbers<[1], [0], [0], [1], [0, 0, 1, 1], [], []>} : vector<2x4xbf16>, vector<4x32xbf16>, vector<2x32xf32> -> vector<2x32xf32>
    %c0_350 = arith.constant 0 : index
    %c0_351 = arith.constant 0 : index
    %c0_352 = arith.constant 0 : index
    %460 = vector.load %arg3[%c0_350, %c0_351, %c0_352] : memref<3x2x32xf32, #tpu.memory_space<vmem>>, vector<1x2x32xf32>
    %461 = vector.shape_cast %460 : vector<1x2x32xf32> to vector<2x32xf32>
    %462 = arith.addf %459, %461 : vector<2x32xf32>
    %c1_353 = arith.constant 1 : index
    %c0_354 = arith.constant 0 : index
    %c0_355 = arith.constant 0 : index
    %463 = vector.load %arg1[%c1_353, %c0_354, %c0_355] : memref<3x4x32xbf16, #tpu.memory_space<vmem>>, vector<1x4x32xbf16>
    %464 = vector.shape_cast %463 : vector<1x4x32xbf16> to vector<4x32xbf16>
    %cst_356 = arith.constant dense<0.000000e+00> : vector<2x32xf32>
    %465 = tpu.matmul %455, %464, %cst_356 {dimension_numbers = #tpu.dot_dimension_numbers<[1], [0], [0], [1], [0, 0, 1, 1], [], []>} : vector<2x4xbf16>, vector<4x32xbf16>, vector<2x32xf32> -> vector<2x32xf32>
    %c1_357 = arith.constant 1 : index
    %c0_358 = arith.constant 0 : index
    %c0_359 = arith.constant 0 : index
    %466 = vector.load %arg3[%c1_357, %c0_358, %c0_359] : memref<3x2x32xf32, #tpu.memory_space<vmem>>, vector<1x2x32xf32>
    %467 = vector.shape_cast %466 : vector<1x2x32xf32> to vector<2x32xf32>
    %468 = arith.addf %465, %467 : vector<2x32xf32>
    %c2_360 = arith.constant 2 : index
    %c0_361 = arith.constant 0 : index
    %c0_362 = arith.constant 0 : index
    %469 = vector.load %arg1[%c2_360, %c0_361, %c0_362] : memref<3x4x32xbf16, #tpu.memory_space<vmem>>, vector<1x4x32xbf16>
    %470 = vector.shape_cast %469 : vector<1x4x32xbf16> to vector<4x32xbf16>
    %cst_363 = arith.constant dense<0.000000e+00> : vector<2x32xf32>
    %471 = tpu.matmul %455, %470, %cst_363 {dimension_numbers = #tpu.dot_dimension_numbers<[1], [0], [0], [1], [0, 0, 1, 1], [], []>} : vector<2x4xbf16>, vector<4x32xbf16>, vector<2x32xf32> -> vector<2x32xf32>
    %c2_364 = arith.constant 2 : index
    %c0_365 = arith.constant 0 : index
    %c0_366 = arith.constant 0 : index
    %472 = vector.load %arg3[%c2_364, %c0_365, %c0_366] : memref<3x2x32xf32, #tpu.memory_space<vmem>>, vector<1x2x32xf32>
    %473 = vector.shape_cast %472 : vector<1x2x32xf32> to vector<2x32xf32>
    %474 = arith.addf %471, %473 : vector<2x32xf32>
    %c0_367 = arith.constant 0 : index
    %c0_368 = arith.constant 0 : index
    %c0_369 = arith.constant 0 : index
    %475 = vector.load %arg2[%c0_367, %c0_368, %c0_369] : memref<3x32x32xbf16, #tpu.memory_space<vmem>>, vector<1x32x32xbf16>
    %476 = vector.shape_cast %475 : vector<1x32x32xbf16> to vector<32x32xbf16>
    %cst_370 = arith.constant dense<0.000000e+00> : vector<2x32xf32>
    %477 = tpu.matmul %456, %476, %cst_370 {dimension_numbers = #tpu.dot_dimension_numbers<[1], [0], [0], [1], [0, 0, 1, 1], [], []>} : vector<2x32xbf16>, vector<32x32xbf16>, vector<2x32xf32> -> vector<2x32xf32>
    %c1_371 = arith.constant 1 : index
    %c0_372 = arith.constant 0 : index
    %c0_373 = arith.constant 0 : index
    %478 = vector.load %arg2[%c1_371, %c0_372, %c0_373] : memref<3x32x32xbf16, #tpu.memory_space<vmem>>, vector<1x32x32xbf16>
    %479 = vector.shape_cast %478 : vector<1x32x32xbf16> to vector<32x32xbf16>
    %cst_374 = arith.constant dense<0.000000e+00> : vector<2x32xf32>
    %480 = tpu.matmul %456, %479, %cst_374 {dimension_numbers = #tpu.dot_dimension_numbers<[1], [0], [0], [1], [0, 0, 1, 1], [], []>} : vector<2x32xbf16>, vector<32x32xbf16>, vector<2x32xf32> -> vector<2x32xf32>
    %c2_375 = arith.constant 2 : index
    %c0_376 = arith.constant 0 : index
    %c0_377 = arith.constant 0 : index
    %481 = vector.load %arg2[%c2_375, %c0_376, %c0_377] : memref<3x32x32xbf16, #tpu.memory_space<vmem>>, vector<1x32x32xbf16>
    %482 = vector.shape_cast %481 : vector<1x32x32xbf16> to vector<32x32xbf16>
    %cst_378 = arith.constant dense<0.000000e+00> : vector<2x32xf32>
    %483 = tpu.matmul %456, %482, %cst_378 {dimension_numbers = #tpu.dot_dimension_numbers<[1], [0], [0], [1], [0, 0, 1, 1], [], []>} : vector<2x32xbf16>, vector<32x32xbf16>, vector<2x32xf32> -> vector<2x32xf32>
    %484 = arith.addf %462, %477 : vector<2x32xf32>
    %485 = arith.negf %484 : vector<2x32xf32>
    %486 = math.exp %485 : vector<2x32xf32>
    %cst_379 = arith.constant 1.000000e+00 : f32
    %487 = vector.broadcast %cst_379 : f32 to vector<2x32xf32>
    %488 = arith.addf %487, %486 : vector<2x32xf32>
    %489 = arith.divf %487, %488 : vector<2x32xf32>
    %490 = arith.addf %468, %480 : vector<2x32xf32>
    %491 = arith.negf %490 : vector<2x32xf32>
    %492 = math.exp %491 : vector<2x32xf32>
    %cst_380 = arith.constant 1.000000e+00 : f32
    %493 = vector.broadcast %cst_380 : f32 to vector<2x32xf32>
    %494 = arith.addf %493, %492 : vector<2x32xf32>
    %495 = arith.divf %493, %494 : vector<2x32xf32>
    %c0_381 = arith.constant 0 : index
    %c0_382 = arith.constant 0 : index
    %496 = vector.load %arg4[%c0_381, %c0_382] : memref<2x32xf32, #tpu.memory_space<vmem>>, vector<2x32xf32>
    %497 = arith.addf %483, %496 : vector<2x32xf32>
    %498 = arith.mulf %489, %497 : vector<2x32xf32>
    %499 = arith.addf %474, %498 : vector<2x32xf32>
    %500 = math.tanh %499 : vector<2x32xf32>
    %501 = arith.subf %403, %500 : vector<2x32xf32>
    %502 = arith.mulf %495, %501 : vector<2x32xf32>
    %503 = arith.addf %500, %502 : vector<2x32xf32>
    %504 = arith.truncf %403 : vector<2x32xf32> to vector<2x32xbf16>
    %505 = arith.truncf %452 : vector<2x32xf32> to vector<2x32xbf16>
    %c0_383 = arith.constant 0 : index
    %c0_384 = arith.constant 0 : index
    %c0_385 = arith.constant 0 : index
    %506 = vector.load %arg5[%c0_383, %c0_384, %c0_385] : memref<3x32x32xbf16, #tpu.memory_space<vmem>>, vector<1x32x32xbf16>
    %507 = vector.shape_cast %506 : vector<1x32x32xbf16> to vector<32x32xbf16>
    %cst_386 = arith.constant dense<0.000000e+00> : vector<2x32xf32>
    %508 = tpu.matmul %504, %507, %cst_386 {dimension_numbers = #tpu.dot_dimension_numbers<[1], [0], [0], [1], [0, 0, 1, 1], [], []>} : vector<2x32xbf16>, vector<32x32xbf16>, vector<2x32xf32> -> vector<2x32xf32>
    %c0_387 = arith.constant 0 : index
    %c0_388 = arith.constant 0 : index
    %c0_389 = arith.constant 0 : index
    %509 = vector.load %arg7[%c0_387, %c0_388, %c0_389] : memref<3x2x32xf32, #tpu.memory_space<vmem>>, vector<1x2x32xf32>
    %510 = vector.shape_cast %509 : vector<1x2x32xf32> to vector<2x32xf32>
    %511 = arith.addf %508, %510 : vector<2x32xf32>
    %c1_390 = arith.constant 1 : index
    %c0_391 = arith.constant 0 : index
    %c0_392 = arith.constant 0 : index
    %512 = vector.load %arg5[%c1_390, %c0_391, %c0_392] : memref<3x32x32xbf16, #tpu.memory_space<vmem>>, vector<1x32x32xbf16>
    %513 = vector.shape_cast %512 : vector<1x32x32xbf16> to vector<32x32xbf16>
    %cst_393 = arith.constant dense<0.000000e+00> : vector<2x32xf32>
    %514 = tpu.matmul %504, %513, %cst_393 {dimension_numbers = #tpu.dot_dimension_numbers<[1], [0], [0], [1], [0, 0, 1, 1], [], []>} : vector<2x32xbf16>, vector<32x32xbf16>, vector<2x32xf32> -> vector<2x32xf32>
    %c1_394 = arith.constant 1 : index
    %c0_395 = arith.constant 0 : index
    %c0_396 = arith.constant 0 : index
    %515 = vector.load %arg7[%c1_394, %c0_395, %c0_396] : memref<3x2x32xf32, #tpu.memory_space<vmem>>, vector<1x2x32xf32>
    %516 = vector.shape_cast %515 : vector<1x2x32xf32> to vector<2x32xf32>
    %517 = arith.addf %514, %516 : vector<2x32xf32>
    %c2_397 = arith.constant 2 : index
    %c0_398 = arith.constant 0 : index
    %c0_399 = arith.constant 0 : index
    %518 = vector.load %arg5[%c2_397, %c0_398, %c0_399] : memref<3x32x32xbf16, #tpu.memory_space<vmem>>, vector<1x32x32xbf16>
    %519 = vector.shape_cast %518 : vector<1x32x32xbf16> to vector<32x32xbf16>
    %cst_400 = arith.constant dense<0.000000e+00> : vector<2x32xf32>
    %520 = tpu.matmul %504, %519, %cst_400 {dimension_numbers = #tpu.dot_dimension_numbers<[1], [0], [0], [1], [0, 0, 1, 1], [], []>} : vector<2x32xbf16>, vector<32x32xbf16>, vector<2x32xf32> -> vector<2x32xf32>
    %c2_401 = arith.constant 2 : index
    %c0_402 = arith.constant 0 : index
    %c0_403 = arith.constant 0 : index
    %521 = vector.load %arg7[%c2_401, %c0_402, %c0_403] : memref<3x2x32xf32, #tpu.memory_space<vmem>>, vector<1x2x32xf32>
    %522 = vector.shape_cast %521 : vector<1x2x32xf32> to vector<2x32xf32>
    %523 = arith.addf %520, %522 : vector<2x32xf32>
    %c0_404 = arith.constant 0 : index
    %c0_405 = arith.constant 0 : index
    %c0_406 = arith.constant 0 : index
    %524 = vector.load %arg6[%c0_404, %c0_405, %c0_406] : memref<3x32x32xbf16, #tpu.memory_space<vmem>>, vector<1x32x32xbf16>
    %525 = vector.shape_cast %524 : vector<1x32x32xbf16> to vector<32x32xbf16>
    %cst_407 = arith.constant dense<0.000000e+00> : vector<2x32xf32>
    %526 = tpu.matmul %505, %525, %cst_407 {dimension_numbers = #tpu.dot_dimension_numbers<[1], [0], [0], [1], [0, 0, 1, 1], [], []>} : vector<2x32xbf16>, vector<32x32xbf16>, vector<2x32xf32> -> vector<2x32xf32>
    %c1_408 = arith.constant 1 : index
    %c0_409 = arith.constant 0 : index
    %c0_410 = arith.constant 0 : index
    %527 = vector.load %arg6[%c1_408, %c0_409, %c0_410] : memref<3x32x32xbf16, #tpu.memory_space<vmem>>, vector<1x32x32xbf16>
    %528 = vector.shape_cast %527 : vector<1x32x32xbf16> to vector<32x32xbf16>
    %cst_411 = arith.constant dense<0.000000e+00> : vector<2x32xf32>
    %529 = tpu.matmul %505, %528, %cst_411 {dimension_numbers = #tpu.dot_dimension_numbers<[1], [0], [0], [1], [0, 0, 1, 1], [], []>} : vector<2x32xbf16>, vector<32x32xbf16>, vector<2x32xf32> -> vector<2x32xf32>
    %c2_412 = arith.constant 2 : index
    %c0_413 = arith.constant 0 : index
    %c0_414 = arith.constant 0 : index
    %530 = vector.load %arg6[%c2_412, %c0_413, %c0_414] : memref<3x32x32xbf16, #tpu.memory_space<vmem>>, vector<1x32x32xbf16>
    %531 = vector.shape_cast %530 : vector<1x32x32xbf16> to vector<32x32xbf16>
    %cst_415 = arith.constant dense<0.000000e+00> : vector<2x32xf32>
    %532 = tpu.matmul %505, %531, %cst_415 {dimension_numbers = #tpu.dot_dimension_numbers<[1], [0], [0], [1], [0, 0, 1, 1], [], []>} : vector<2x32xbf16>, vector<32x32xbf16>, vector<2x32xf32> -> vector<2x32xf32>
    %533 = arith.addf %511, %526 : vector<2x32xf32>
    %534 = arith.negf %533 : vector<2x32xf32>
    %535 = math.exp %534 : vector<2x32xf32>
    %cst_416 = arith.constant 1.000000e+00 : f32
    %536 = vector.broadcast %cst_416 : f32 to vector<2x32xf32>
    %537 = arith.addf %536, %535 : vector<2x32xf32>
    %538 = arith.divf %536, %537 : vector<2x32xf32>
    %539 = arith.addf %517, %529 : vector<2x32xf32>
    %540 = arith.negf %539 : vector<2x32xf32>
    %541 = math.exp %540 : vector<2x32xf32>
    %cst_417 = arith.constant 1.000000e+00 : f32
    %542 = vector.broadcast %cst_417 : f32 to vector<2x32xf32>
    %543 = arith.addf %542, %541 : vector<2x32xf32>
    %544 = arith.divf %542, %543 : vector<2x32xf32>
    %c0_418 = arith.constant 0 : index
    %c0_419 = arith.constant 0 : index
    %545 = vector.load %arg8[%c0_418, %c0_419] : memref<2x32xf32, #tpu.memory_space<vmem>>, vector<2x32xf32>
    %546 = arith.addf %532, %545 : vector<2x32xf32>
    %547 = arith.mulf %538, %546 : vector<2x32xf32>
    %548 = arith.addf %523, %547 : vector<2x32xf32>
    %549 = math.tanh %548 : vector<2x32xf32>
    %550 = arith.subf %452, %549 : vector<2x32xf32>
    %551 = arith.mulf %544, %550 : vector<2x32xf32>
    %552 = arith.addf %549, %551 : vector<2x32xf32>
    %c6 = arith.constant 6 : index
    %c0_420 = arith.constant 0 : index
    %c0_421 = arith.constant 0 : index
    %553 = vector.load %arg0[%c6, %c0_420, %c0_421] : memref<8x2x4xf32, #tpu.memory_space<vmem>>, vector<1x2x4xf32>
    %554 = vector.shape_cast %553 : vector<1x2x4xf32> to vector<2x4xf32>
    %555 = arith.truncf %554 : vector<2x4xf32> to vector<2x4xbf16>
    %556 = arith.truncf %503 : vector<2x32xf32> to vector<2x32xbf16>
    %c0_422 = arith.constant 0 : index
    %c0_423 = arith.constant 0 : index
    %c0_424 = arith.constant 0 : index
    %557 = vector.load %arg1[%c0_422, %c0_423, %c0_424] : memref<3x4x32xbf16, #tpu.memory_space<vmem>>, vector<1x4x32xbf16>
    %558 = vector.shape_cast %557 : vector<1x4x32xbf16> to vector<4x32xbf16>
    %cst_425 = arith.constant dense<0.000000e+00> : vector<2x32xf32>
    %559 = tpu.matmul %555, %558, %cst_425 {dimension_numbers = #tpu.dot_dimension_numbers<[1], [0], [0], [1], [0, 0, 1, 1], [], []>} : vector<2x4xbf16>, vector<4x32xbf16>, vector<2x32xf32> -> vector<2x32xf32>
    %c0_426 = arith.constant 0 : index
    %c0_427 = arith.constant 0 : index
    %c0_428 = arith.constant 0 : index
    %560 = vector.load %arg3[%c0_426, %c0_427, %c0_428] : memref<3x2x32xf32, #tpu.memory_space<vmem>>, vector<1x2x32xf32>
    %561 = vector.shape_cast %560 : vector<1x2x32xf32> to vector<2x32xf32>
    %562 = arith.addf %559, %561 : vector<2x32xf32>
    %c1_429 = arith.constant 1 : index
    %c0_430 = arith.constant 0 : index
    %c0_431 = arith.constant 0 : index
    %563 = vector.load %arg1[%c1_429, %c0_430, %c0_431] : memref<3x4x32xbf16, #tpu.memory_space<vmem>>, vector<1x4x32xbf16>
    %564 = vector.shape_cast %563 : vector<1x4x32xbf16> to vector<4x32xbf16>
    %cst_432 = arith.constant dense<0.000000e+00> : vector<2x32xf32>
    %565 = tpu.matmul %555, %564, %cst_432 {dimension_numbers = #tpu.dot_dimension_numbers<[1], [0], [0], [1], [0, 0, 1, 1], [], []>} : vector<2x4xbf16>, vector<4x32xbf16>, vector<2x32xf32> -> vector<2x32xf32>
    %c1_433 = arith.constant 1 : index
    %c0_434 = arith.constant 0 : index
    %c0_435 = arith.constant 0 : index
    %566 = vector.load %arg3[%c1_433, %c0_434, %c0_435] : memref<3x2x32xf32, #tpu.memory_space<vmem>>, vector<1x2x32xf32>
    %567 = vector.shape_cast %566 : vector<1x2x32xf32> to vector<2x32xf32>
    %568 = arith.addf %565, %567 : vector<2x32xf32>
    %c2_436 = arith.constant 2 : index
    %c0_437 = arith.constant 0 : index
    %c0_438 = arith.constant 0 : index
    %569 = vector.load %arg1[%c2_436, %c0_437, %c0_438] : memref<3x4x32xbf16, #tpu.memory_space<vmem>>, vector<1x4x32xbf16>
    %570 = vector.shape_cast %569 : vector<1x4x32xbf16> to vector<4x32xbf16>
    %cst_439 = arith.constant dense<0.000000e+00> : vector<2x32xf32>
    %571 = tpu.matmul %555, %570, %cst_439 {dimension_numbers = #tpu.dot_dimension_numbers<[1], [0], [0], [1], [0, 0, 1, 1], [], []>} : vector<2x4xbf16>, vector<4x32xbf16>, vector<2x32xf32> -> vector<2x32xf32>
    %c2_440 = arith.constant 2 : index
    %c0_441 = arith.constant 0 : index
    %c0_442 = arith.constant 0 : index
    %572 = vector.load %arg3[%c2_440, %c0_441, %c0_442] : memref<3x2x32xf32, #tpu.memory_space<vmem>>, vector<1x2x32xf32>
    %573 = vector.shape_cast %572 : vector<1x2x32xf32> to vector<2x32xf32>
    %574 = arith.addf %571, %573 : vector<2x32xf32>
    %c0_443 = arith.constant 0 : index
    %c0_444 = arith.constant 0 : index
    %c0_445 = arith.constant 0 : index
    %575 = vector.load %arg2[%c0_443, %c0_444, %c0_445] : memref<3x32x32xbf16, #tpu.memory_space<vmem>>, vector<1x32x32xbf16>
    %576 = vector.shape_cast %575 : vector<1x32x32xbf16> to vector<32x32xbf16>
    %cst_446 = arith.constant dense<0.000000e+00> : vector<2x32xf32>
    %577 = tpu.matmul %556, %576, %cst_446 {dimension_numbers = #tpu.dot_dimension_numbers<[1], [0], [0], [1], [0, 0, 1, 1], [], []>} : vector<2x32xbf16>, vector<32x32xbf16>, vector<2x32xf32> -> vector<2x32xf32>
    %c1_447 = arith.constant 1 : index
    %c0_448 = arith.constant 0 : index
    %c0_449 = arith.constant 0 : index
    %578 = vector.load %arg2[%c1_447, %c0_448, %c0_449] : memref<3x32x32xbf16, #tpu.memory_space<vmem>>, vector<1x32x32xbf16>
    %579 = vector.shape_cast %578 : vector<1x32x32xbf16> to vector<32x32xbf16>
    %cst_450 = arith.constant dense<0.000000e+00> : vector<2x32xf32>
    %580 = tpu.matmul %556, %579, %cst_450 {dimension_numbers = #tpu.dot_dimension_numbers<[1], [0], [0], [1], [0, 0, 1, 1], [], []>} : vector<2x32xbf16>, vector<32x32xbf16>, vector<2x32xf32> -> vector<2x32xf32>
    %c2_451 = arith.constant 2 : index
    %c0_452 = arith.constant 0 : index
    %c0_453 = arith.constant 0 : index
    %581 = vector.load %arg2[%c2_451, %c0_452, %c0_453] : memref<3x32x32xbf16, #tpu.memory_space<vmem>>, vector<1x32x32xbf16>
    %582 = vector.shape_cast %581 : vector<1x32x32xbf16> to vector<32x32xbf16>
    %cst_454 = arith.constant dense<0.000000e+00> : vector<2x32xf32>
    %583 = tpu.matmul %556, %582, %cst_454 {dimension_numbers = #tpu.dot_dimension_numbers<[1], [0], [0], [1], [0, 0, 1, 1], [], []>} : vector<2x32xbf16>, vector<32x32xbf16>, vector<2x32xf32> -> vector<2x32xf32>
    %584 = arith.addf %562, %577 : vector<2x32xf32>
    %585 = arith.negf %584 : vector<2x32xf32>
    %586 = math.exp %585 : vector<2x32xf32>
    %cst_455 = arith.constant 1.000000e+00 : f32
    %587 = vector.broadcast %cst_455 : f32 to vector<2x32xf32>
    %588 = arith.addf %587, %586 : vector<2x32xf32>
    %589 = arith.divf %587, %588 : vector<2x32xf32>
    %590 = arith.addf %568, %580 : vector<2x32xf32>
    %591 = arith.negf %590 : vector<2x32xf32>
    %592 = math.exp %591 : vector<2x32xf32>
    %cst_456 = arith.constant 1.000000e+00 : f32
    %593 = vector.broadcast %cst_456 : f32 to vector<2x32xf32>
    %594 = arith.addf %593, %592 : vector<2x32xf32>
    %595 = arith.divf %593, %594 : vector<2x32xf32>
    %c0_457 = arith.constant 0 : index
    %c0_458 = arith.constant 0 : index
    %596 = vector.load %arg4[%c0_457, %c0_458] : memref<2x32xf32, #tpu.memory_space<vmem>>, vector<2x32xf32>
    %597 = arith.addf %583, %596 : vector<2x32xf32>
    %598 = arith.mulf %589, %597 : vector<2x32xf32>
    %599 = arith.addf %574, %598 : vector<2x32xf32>
    %600 = math.tanh %599 : vector<2x32xf32>
    %601 = arith.subf %503, %600 : vector<2x32xf32>
    %602 = arith.mulf %595, %601 : vector<2x32xf32>
    %603 = arith.addf %600, %602 : vector<2x32xf32>
    %604 = arith.truncf %503 : vector<2x32xf32> to vector<2x32xbf16>
    %605 = arith.truncf %552 : vector<2x32xf32> to vector<2x32xbf16>
    %c0_459 = arith.constant 0 : index
    %c0_460 = arith.constant 0 : index
    %c0_461 = arith.constant 0 : index
    %606 = vector.load %arg5[%c0_459, %c0_460, %c0_461] : memref<3x32x32xbf16, #tpu.memory_space<vmem>>, vector<1x32x32xbf16>
    %607 = vector.shape_cast %606 : vector<1x32x32xbf16> to vector<32x32xbf16>
    %cst_462 = arith.constant dense<0.000000e+00> : vector<2x32xf32>
    %608 = tpu.matmul %604, %607, %cst_462 {dimension_numbers = #tpu.dot_dimension_numbers<[1], [0], [0], [1], [0, 0, 1, 1], [], []>} : vector<2x32xbf16>, vector<32x32xbf16>, vector<2x32xf32> -> vector<2x32xf32>
    %c0_463 = arith.constant 0 : index
    %c0_464 = arith.constant 0 : index
    %c0_465 = arith.constant 0 : index
    %609 = vector.load %arg7[%c0_463, %c0_464, %c0_465] : memref<3x2x32xf32, #tpu.memory_space<vmem>>, vector<1x2x32xf32>
    %610 = vector.shape_cast %609 : vector<1x2x32xf32> to vector<2x32xf32>
    %611 = arith.addf %608, %610 : vector<2x32xf32>
    %c1_466 = arith.constant 1 : index
    %c0_467 = arith.constant 0 : index
    %c0_468 = arith.constant 0 : index
    %612 = vector.load %arg5[%c1_466, %c0_467, %c0_468] : memref<3x32x32xbf16, #tpu.memory_space<vmem>>, vector<1x32x32xbf16>
    %613 = vector.shape_cast %612 : vector<1x32x32xbf16> to vector<32x32xbf16>
    %cst_469 = arith.constant dense<0.000000e+00> : vector<2x32xf32>
    %614 = tpu.matmul %604, %613, %cst_469 {dimension_numbers = #tpu.dot_dimension_numbers<[1], [0], [0], [1], [0, 0, 1, 1], [], []>} : vector<2x32xbf16>, vector<32x32xbf16>, vector<2x32xf32> -> vector<2x32xf32>
    %c1_470 = arith.constant 1 : index
    %c0_471 = arith.constant 0 : index
    %c0_472 = arith.constant 0 : index
    %615 = vector.load %arg7[%c1_470, %c0_471, %c0_472] : memref<3x2x32xf32, #tpu.memory_space<vmem>>, vector<1x2x32xf32>
    %616 = vector.shape_cast %615 : vector<1x2x32xf32> to vector<2x32xf32>
    %617 = arith.addf %614, %616 : vector<2x32xf32>
    %c2_473 = arith.constant 2 : index
    %c0_474 = arith.constant 0 : index
    %c0_475 = arith.constant 0 : index
    %618 = vector.load %arg5[%c2_473, %c0_474, %c0_475] : memref<3x32x32xbf16, #tpu.memory_space<vmem>>, vector<1x32x32xbf16>
    %619 = vector.shape_cast %618 : vector<1x32x32xbf16> to vector<32x32xbf16>
    %cst_476 = arith.constant dense<0.000000e+00> : vector<2x32xf32>
    %620 = tpu.matmul %604, %619, %cst_476 {dimension_numbers = #tpu.dot_dimension_numbers<[1], [0], [0], [1], [0, 0, 1, 1], [], []>} : vector<2x32xbf16>, vector<32x32xbf16>, vector<2x32xf32> -> vector<2x32xf32>
    %c2_477 = arith.constant 2 : index
    %c0_478 = arith.constant 0 : index
    %c0_479 = arith.constant 0 : index
    %621 = vector.load %arg7[%c2_477, %c0_478, %c0_479] : memref<3x2x32xf32, #tpu.memory_space<vmem>>, vector<1x2x32xf32>
    %622 = vector.shape_cast %621 : vector<1x2x32xf32> to vector<2x32xf32>
    %623 = arith.addf %620, %622 : vector<2x32xf32>
    %c0_480 = arith.constant 0 : index
    %c0_481 = arith.constant 0 : index
    %c0_482 = arith.constant 0 : index
    %624 = vector.load %arg6[%c0_480, %c0_481, %c0_482] : memref<3x32x32xbf16, #tpu.memory_space<vmem>>, vector<1x32x32xbf16>
    %625 = vector.shape_cast %624 : vector<1x32x32xbf16> to vector<32x32xbf16>
    %cst_483 = arith.constant dense<0.000000e+00> : vector<2x32xf32>
    %626 = tpu.matmul %605, %625, %cst_483 {dimension_numbers = #tpu.dot_dimension_numbers<[1], [0], [0], [1], [0, 0, 1, 1], [], []>} : vector<2x32xbf16>, vector<32x32xbf16>, vector<2x32xf32> -> vector<2x32xf32>
    %c1_484 = arith.constant 1 : index
    %c0_485 = arith.constant 0 : index
    %c0_486 = arith.constant 0 : index
    %627 = vector.load %arg6[%c1_484, %c0_485, %c0_486] : memref<3x32x32xbf16, #tpu.memory_space<vmem>>, vector<1x32x32xbf16>
    %628 = vector.shape_cast %627 : vector<1x32x32xbf16> to vector<32x32xbf16>
    %cst_487 = arith.constant dense<0.000000e+00> : vector<2x32xf32>
    %629 = tpu.matmul %605, %628, %cst_487 {dimension_numbers = #tpu.dot_dimension_numbers<[1], [0], [0], [1], [0, 0, 1, 1], [], []>} : vector<2x32xbf16>, vector<32x32xbf16>, vector<2x32xf32> -> vector<2x32xf32>
    %c2_488 = arith.constant 2 : index
    %c0_489 = arith.constant 0 : index
    %c0_490 = arith.constant 0 : index
    %630 = vector.load %arg6[%c2_488, %c0_489, %c0_490] : memref<3x32x32xbf16, #tpu.memory_space<vmem>>, vector<1x32x32xbf16>
    %631 = vector.shape_cast %630 : vector<1x32x32xbf16> to vector<32x32xbf16>
    %cst_491 = arith.constant dense<0.000000e+00> : vector<2x32xf32>
    %632 = tpu.matmul %605, %631, %cst_491 {dimension_numbers = #tpu.dot_dimension_numbers<[1], [0], [0], [1], [0, 0, 1, 1], [], []>} : vector<2x32xbf16>, vector<32x32xbf16>, vector<2x32xf32> -> vector<2x32xf32>
    %633 = arith.addf %611, %626 : vector<2x32xf32>
    %634 = arith.negf %633 : vector<2x32xf32>
    %635 = math.exp %634 : vector<2x32xf32>
    %cst_492 = arith.constant 1.000000e+00 : f32
    %636 = vector.broadcast %cst_492 : f32 to vector<2x32xf32>
    %637 = arith.addf %636, %635 : vector<2x32xf32>
    %638 = arith.divf %636, %637 : vector<2x32xf32>
    %639 = arith.addf %617, %629 : vector<2x32xf32>
    %640 = arith.negf %639 : vector<2x32xf32>
    %641 = math.exp %640 : vector<2x32xf32>
    %cst_493 = arith.constant 1.000000e+00 : f32
    %642 = vector.broadcast %cst_493 : f32 to vector<2x32xf32>
    %643 = arith.addf %642, %641 : vector<2x32xf32>
    %644 = arith.divf %642, %643 : vector<2x32xf32>
    %c0_494 = arith.constant 0 : index
    %c0_495 = arith.constant 0 : index
    %645 = vector.load %arg8[%c0_494, %c0_495] : memref<2x32xf32, #tpu.memory_space<vmem>>, vector<2x32xf32>
    %646 = arith.addf %632, %645 : vector<2x32xf32>
    %647 = arith.mulf %638, %646 : vector<2x32xf32>
    %648 = arith.addf %623, %647 : vector<2x32xf32>
    %649 = math.tanh %648 : vector<2x32xf32>
    %650 = arith.subf %552, %649 : vector<2x32xf32>
    %651 = arith.mulf %644, %650 : vector<2x32xf32>
    %652 = arith.addf %649, %651 : vector<2x32xf32>
    %c7 = arith.constant 7 : index
    %c0_496 = arith.constant 0 : index
    %c0_497 = arith.constant 0 : index
    %653 = vector.load %arg0[%c7, %c0_496, %c0_497] : memref<8x2x4xf32, #tpu.memory_space<vmem>>, vector<1x2x4xf32>
    %654 = vector.shape_cast %653 : vector<1x2x4xf32> to vector<2x4xf32>
    %655 = arith.truncf %654 : vector<2x4xf32> to vector<2x4xbf16>
    %656 = arith.truncf %603 : vector<2x32xf32> to vector<2x32xbf16>
    %c0_498 = arith.constant 0 : index
    %c0_499 = arith.constant 0 : index
    %c0_500 = arith.constant 0 : index
    %657 = vector.load %arg1[%c0_498, %c0_499, %c0_500] : memref<3x4x32xbf16, #tpu.memory_space<vmem>>, vector<1x4x32xbf16>
    %658 = vector.shape_cast %657 : vector<1x4x32xbf16> to vector<4x32xbf16>
    %cst_501 = arith.constant dense<0.000000e+00> : vector<2x32xf32>
    %659 = tpu.matmul %655, %658, %cst_501 {dimension_numbers = #tpu.dot_dimension_numbers<[1], [0], [0], [1], [0, 0, 1, 1], [], []>} : vector<2x4xbf16>, vector<4x32xbf16>, vector<2x32xf32> -> vector<2x32xf32>
    %c0_502 = arith.constant 0 : index
    %c0_503 = arith.constant 0 : index
    %c0_504 = arith.constant 0 : index
    %660 = vector.load %arg3[%c0_502, %c0_503, %c0_504] : memref<3x2x32xf32, #tpu.memory_space<vmem>>, vector<1x2x32xf32>
    %661 = vector.shape_cast %660 : vector<1x2x32xf32> to vector<2x32xf32>
    %662 = arith.addf %659, %661 : vector<2x32xf32>
    %c1_505 = arith.constant 1 : index
    %c0_506 = arith.constant 0 : index
    %c0_507 = arith.constant 0 : index
    %663 = vector.load %arg1[%c1_505, %c0_506, %c0_507] : memref<3x4x32xbf16, #tpu.memory_space<vmem>>, vector<1x4x32xbf16>
    %664 = vector.shape_cast %663 : vector<1x4x32xbf16> to vector<4x32xbf16>
    %cst_508 = arith.constant dense<0.000000e+00> : vector<2x32xf32>
    %665 = tpu.matmul %655, %664, %cst_508 {dimension_numbers = #tpu.dot_dimension_numbers<[1], [0], [0], [1], [0, 0, 1, 1], [], []>} : vector<2x4xbf16>, vector<4x32xbf16>, vector<2x32xf32> -> vector<2x32xf32>
    %c1_509 = arith.constant 1 : index
    %c0_510 = arith.constant 0 : index
    %c0_511 = arith.constant 0 : index
    %666 = vector.load %arg3[%c1_509, %c0_510, %c0_511] : memref<3x2x32xf32, #tpu.memory_space<vmem>>, vector<1x2x32xf32>
    %667 = vector.shape_cast %666 : vector<1x2x32xf32> to vector<2x32xf32>
    %668 = arith.addf %665, %667 : vector<2x32xf32>
    %c2_512 = arith.constant 2 : index
    %c0_513 = arith.constant 0 : index
    %c0_514 = arith.constant 0 : index
    %669 = vector.load %arg1[%c2_512, %c0_513, %c0_514] : memref<3x4x32xbf16, #tpu.memory_space<vmem>>, vector<1x4x32xbf16>
    %670 = vector.shape_cast %669 : vector<1x4x32xbf16> to vector<4x32xbf16>
    %cst_515 = arith.constant dense<0.000000e+00> : vector<2x32xf32>
    %671 = tpu.matmul %655, %670, %cst_515 {dimension_numbers = #tpu.dot_dimension_numbers<[1], [0], [0], [1], [0, 0, 1, 1], [], []>} : vector<2x4xbf16>, vector<4x32xbf16>, vector<2x32xf32> -> vector<2x32xf32>
    %c2_516 = arith.constant 2 : index
    %c0_517 = arith.constant 0 : index
    %c0_518 = arith.constant 0 : index
    %672 = vector.load %arg3[%c2_516, %c0_517, %c0_518] : memref<3x2x32xf32, #tpu.memory_space<vmem>>, vector<1x2x32xf32>
    %673 = vector.shape_cast %672 : vector<1x2x32xf32> to vector<2x32xf32>
    %674 = arith.addf %671, %673 : vector<2x32xf32>
    %c0_519 = arith.constant 0 : index
    %c0_520 = arith.constant 0 : index
    %c0_521 = arith.constant 0 : index
    %675 = vector.load %arg2[%c0_519, %c0_520, %c0_521] : memref<3x32x32xbf16, #tpu.memory_space<vmem>>, vector<1x32x32xbf16>
    %676 = vector.shape_cast %675 : vector<1x32x32xbf16> to vector<32x32xbf16>
    %cst_522 = arith.constant dense<0.000000e+00> : vector<2x32xf32>
    %677 = tpu.matmul %656, %676, %cst_522 {dimension_numbers = #tpu.dot_dimension_numbers<[1], [0], [0], [1], [0, 0, 1, 1], [], []>} : vector<2x32xbf16>, vector<32x32xbf16>, vector<2x32xf32> -> vector<2x32xf32>
    %c1_523 = arith.constant 1 : index
    %c0_524 = arith.constant 0 : index
    %c0_525 = arith.constant 0 : index
    %678 = vector.load %arg2[%c1_523, %c0_524, %c0_525] : memref<3x32x32xbf16, #tpu.memory_space<vmem>>, vector<1x32x32xbf16>
    %679 = vector.shape_cast %678 : vector<1x32x32xbf16> to vector<32x32xbf16>
    %cst_526 = arith.constant dense<0.000000e+00> : vector<2x32xf32>
    %680 = tpu.matmul %656, %679, %cst_526 {dimension_numbers = #tpu.dot_dimension_numbers<[1], [0], [0], [1], [0, 0, 1, 1], [], []>} : vector<2x32xbf16>, vector<32x32xbf16>, vector<2x32xf32> -> vector<2x32xf32>
    %c2_527 = arith.constant 2 : index
    %c0_528 = arith.constant 0 : index
    %c0_529 = arith.constant 0 : index
    %681 = vector.load %arg2[%c2_527, %c0_528, %c0_529] : memref<3x32x32xbf16, #tpu.memory_space<vmem>>, vector<1x32x32xbf16>
    %682 = vector.shape_cast %681 : vector<1x32x32xbf16> to vector<32x32xbf16>
    %cst_530 = arith.constant dense<0.000000e+00> : vector<2x32xf32>
    %683 = tpu.matmul %656, %682, %cst_530 {dimension_numbers = #tpu.dot_dimension_numbers<[1], [0], [0], [1], [0, 0, 1, 1], [], []>} : vector<2x32xbf16>, vector<32x32xbf16>, vector<2x32xf32> -> vector<2x32xf32>
    %684 = arith.addf %662, %677 : vector<2x32xf32>
    %685 = arith.negf %684 : vector<2x32xf32>
    %686 = math.exp %685 : vector<2x32xf32>
    %cst_531 = arith.constant 1.000000e+00 : f32
    %687 = vector.broadcast %cst_531 : f32 to vector<2x32xf32>
    %688 = arith.addf %687, %686 : vector<2x32xf32>
    %689 = arith.divf %687, %688 : vector<2x32xf32>
    %690 = arith.addf %668, %680 : vector<2x32xf32>
    %691 = arith.negf %690 : vector<2x32xf32>
    %692 = math.exp %691 : vector<2x32xf32>
    %cst_532 = arith.constant 1.000000e+00 : f32
    %693 = vector.broadcast %cst_532 : f32 to vector<2x32xf32>
    %694 = arith.addf %693, %692 : vector<2x32xf32>
    %695 = arith.divf %693, %694 : vector<2x32xf32>
    %c0_533 = arith.constant 0 : index
    %c0_534 = arith.constant 0 : index
    %696 = vector.load %arg4[%c0_533, %c0_534] : memref<2x32xf32, #tpu.memory_space<vmem>>, vector<2x32xf32>
    %697 = arith.addf %683, %696 : vector<2x32xf32>
    %698 = arith.mulf %689, %697 : vector<2x32xf32>
    %699 = arith.addf %674, %698 : vector<2x32xf32>
    %700 = math.tanh %699 : vector<2x32xf32>
    %701 = arith.subf %603, %700 : vector<2x32xf32>
    %702 = arith.mulf %695, %701 : vector<2x32xf32>
    %703 = arith.addf %700, %702 : vector<2x32xf32>
    %704 = arith.truncf %603 : vector<2x32xf32> to vector<2x32xbf16>
    %705 = arith.truncf %652 : vector<2x32xf32> to vector<2x32xbf16>
    %c0_535 = arith.constant 0 : index
    %c0_536 = arith.constant 0 : index
    %c0_537 = arith.constant 0 : index
    %706 = vector.load %arg5[%c0_535, %c0_536, %c0_537] : memref<3x32x32xbf16, #tpu.memory_space<vmem>>, vector<1x32x32xbf16>
    %707 = vector.shape_cast %706 : vector<1x32x32xbf16> to vector<32x32xbf16>
    %cst_538 = arith.constant dense<0.000000e+00> : vector<2x32xf32>
    %708 = tpu.matmul %704, %707, %cst_538 {dimension_numbers = #tpu.dot_dimension_numbers<[1], [0], [0], [1], [0, 0, 1, 1], [], []>} : vector<2x32xbf16>, vector<32x32xbf16>, vector<2x32xf32> -> vector<2x32xf32>
    %c0_539 = arith.constant 0 : index
    %c0_540 = arith.constant 0 : index
    %c0_541 = arith.constant 0 : index
    %709 = vector.load %arg7[%c0_539, %c0_540, %c0_541] : memref<3x2x32xf32, #tpu.memory_space<vmem>>, vector<1x2x32xf32>
    %710 = vector.shape_cast %709 : vector<1x2x32xf32> to vector<2x32xf32>
    %711 = arith.addf %708, %710 : vector<2x32xf32>
    %c1_542 = arith.constant 1 : index
    %c0_543 = arith.constant 0 : index
    %c0_544 = arith.constant 0 : index
    %712 = vector.load %arg5[%c1_542, %c0_543, %c0_544] : memref<3x32x32xbf16, #tpu.memory_space<vmem>>, vector<1x32x32xbf16>
    %713 = vector.shape_cast %712 : vector<1x32x32xbf16> to vector<32x32xbf16>
    %cst_545 = arith.constant dense<0.000000e+00> : vector<2x32xf32>
    %714 = tpu.matmul %704, %713, %cst_545 {dimension_numbers = #tpu.dot_dimension_numbers<[1], [0], [0], [1], [0, 0, 1, 1], [], []>} : vector<2x32xbf16>, vector<32x32xbf16>, vector<2x32xf32> -> vector<2x32xf32>
    %c1_546 = arith.constant 1 : index
    %c0_547 = arith.constant 0 : index
    %c0_548 = arith.constant 0 : index
    %715 = vector.load %arg7[%c1_546, %c0_547, %c0_548] : memref<3x2x32xf32, #tpu.memory_space<vmem>>, vector<1x2x32xf32>
    %716 = vector.shape_cast %715 : vector<1x2x32xf32> to vector<2x32xf32>
    %717 = arith.addf %714, %716 : vector<2x32xf32>
    %c2_549 = arith.constant 2 : index
    %c0_550 = arith.constant 0 : index
    %c0_551 = arith.constant 0 : index
    %718 = vector.load %arg5[%c2_549, %c0_550, %c0_551] : memref<3x32x32xbf16, #tpu.memory_space<vmem>>, vector<1x32x32xbf16>
    %719 = vector.shape_cast %718 : vector<1x32x32xbf16> to vector<32x32xbf16>
    %cst_552 = arith.constant dense<0.000000e+00> : vector<2x32xf32>
    %720 = tpu.matmul %704, %719, %cst_552 {dimension_numbers = #tpu.dot_dimension_numbers<[1], [0], [0], [1], [0, 0, 1, 1], [], []>} : vector<2x32xbf16>, vector<32x32xbf16>, vector<2x32xf32> -> vector<2x32xf32>
    %c2_553 = arith.constant 2 : index
    %c0_554 = arith.constant 0 : index
    %c0_555 = arith.constant 0 : index
    %721 = vector.load %arg7[%c2_553, %c0_554, %c0_555] : memref<3x2x32xf32, #tpu.memory_space<vmem>>, vector<1x2x32xf32>
    %722 = vector.shape_cast %721 : vector<1x2x32xf32> to vector<2x32xf32>
    %723 = arith.addf %720, %722 : vector<2x32xf32>
    %c0_556 = arith.constant 0 : index
    %c0_557 = arith.constant 0 : index
    %c0_558 = arith.constant 0 : index
    %724 = vector.load %arg6[%c0_556, %c0_557, %c0_558] : memref<3x32x32xbf16, #tpu.memory_space<vmem>>, vector<1x32x32xbf16>
    %725 = vector.shape_cast %724 : vector<1x32x32xbf16> to vector<32x32xbf16>
    %cst_559 = arith.constant dense<0.000000e+00> : vector<2x32xf32>
    %726 = tpu.matmul %705, %725, %cst_559 {dimension_numbers = #tpu.dot_dimension_numbers<[1], [0], [0], [1], [0, 0, 1, 1], [], []>} : vector<2x32xbf16>, vector<32x32xbf16>, vector<2x32xf32> -> vector<2x32xf32>
    %c1_560 = arith.constant 1 : index
    %c0_561 = arith.constant 0 : index
    %c0_562 = arith.constant 0 : index
    %727 = vector.load %arg6[%c1_560, %c0_561, %c0_562] : memref<3x32x32xbf16, #tpu.memory_space<vmem>>, vector<1x32x32xbf16>
    %728 = vector.shape_cast %727 : vector<1x32x32xbf16> to vector<32x32xbf16>
    %cst_563 = arith.constant dense<0.000000e+00> : vector<2x32xf32>
    %729 = tpu.matmul %705, %728, %cst_563 {dimension_numbers = #tpu.dot_dimension_numbers<[1], [0], [0], [1], [0, 0, 1, 1], [], []>} : vector<2x32xbf16>, vector<32x32xbf16>, vector<2x32xf32> -> vector<2x32xf32>
    %c2_564 = arith.constant 2 : index
    %c0_565 = arith.constant 0 : index
    %c0_566 = arith.constant 0 : index
    %730 = vector.load %arg6[%c2_564, %c0_565, %c0_566] : memref<3x32x32xbf16, #tpu.memory_space<vmem>>, vector<1x32x32xbf16>
    %731 = vector.shape_cast %730 : vector<1x32x32xbf16> to vector<32x32xbf16>
    %cst_567 = arith.constant dense<0.000000e+00> : vector<2x32xf32>
    %732 = tpu.matmul %705, %731, %cst_567 {dimension_numbers = #tpu.dot_dimension_numbers<[1], [0], [0], [1], [0, 0, 1, 1], [], []>} : vector<2x32xbf16>, vector<32x32xbf16>, vector<2x32xf32> -> vector<2x32xf32>
    %733 = arith.addf %711, %726 : vector<2x32xf32>
    %734 = arith.negf %733 : vector<2x32xf32>
    %735 = math.exp %734 : vector<2x32xf32>
    %cst_568 = arith.constant 1.000000e+00 : f32
    %736 = vector.broadcast %cst_568 : f32 to vector<2x32xf32>
    %737 = arith.addf %736, %735 : vector<2x32xf32>
    %738 = arith.divf %736, %737 : vector<2x32xf32>
    %739 = arith.addf %717, %729 : vector<2x32xf32>
    %740 = arith.negf %739 : vector<2x32xf32>
    %741 = math.exp %740 : vector<2x32xf32>
    %cst_569 = arith.constant 1.000000e+00 : f32
    %742 = vector.broadcast %cst_569 : f32 to vector<2x32xf32>
    %743 = arith.addf %742, %741 : vector<2x32xf32>
    %744 = arith.divf %742, %743 : vector<2x32xf32>
    %c0_570 = arith.constant 0 : index
    %c0_571 = arith.constant 0 : index
    %745 = vector.load %arg8[%c0_570, %c0_571] : memref<2x32xf32, #tpu.memory_space<vmem>>, vector<2x32xf32>
    %746 = arith.addf %732, %745 : vector<2x32xf32>
    %747 = arith.mulf %738, %746 : vector<2x32xf32>
    %748 = arith.addf %723, %747 : vector<2x32xf32>
    %749 = math.tanh %748 : vector<2x32xf32>
    %750 = arith.subf %652, %749 : vector<2x32xf32>
    %751 = arith.mulf %744, %750 : vector<2x32xf32>
    %752 = arith.addf %749, %751 : vector<2x32xf32>
    %753 = arith.truncf %703 : vector<2x32xf32> to vector<2x32xbf16>
    %754 = arith.truncf %752 : vector<2x32xf32> to vector<2x32xbf16>
    %c0_572 = arith.constant 0 : index
    %c0_573 = arith.constant 0 : index
    %c0_574 = arith.constant 0 : index
    %755 = vector.load %arg5[%c0_572, %c0_573, %c0_574] : memref<3x32x32xbf16, #tpu.memory_space<vmem>>, vector<1x32x32xbf16>
    %756 = vector.shape_cast %755 : vector<1x32x32xbf16> to vector<32x32xbf16>
    %cst_575 = arith.constant dense<0.000000e+00> : vector<2x32xf32>
    %757 = tpu.matmul %753, %756, %cst_575 {dimension_numbers = #tpu.dot_dimension_numbers<[1], [0], [0], [1], [0, 0, 1, 1], [], []>} : vector<2x32xbf16>, vector<32x32xbf16>, vector<2x32xf32> -> vector<2x32xf32>
    %c0_576 = arith.constant 0 : index
    %c0_577 = arith.constant 0 : index
    %c0_578 = arith.constant 0 : index
    %758 = vector.load %arg7[%c0_576, %c0_577, %c0_578] : memref<3x2x32xf32, #tpu.memory_space<vmem>>, vector<1x2x32xf32>
    %759 = vector.shape_cast %758 : vector<1x2x32xf32> to vector<2x32xf32>
    %760 = arith.addf %757, %759 : vector<2x32xf32>
    %c1_579 = arith.constant 1 : index
    %c0_580 = arith.constant 0 : index
    %c0_581 = arith.constant 0 : index
    %761 = vector.load %arg5[%c1_579, %c0_580, %c0_581] : memref<3x32x32xbf16, #tpu.memory_space<vmem>>, vector<1x32x32xbf16>
    %762 = vector.shape_cast %761 : vector<1x32x32xbf16> to vector<32x32xbf16>
    %cst_582 = arith.constant dense<0.000000e+00> : vector<2x32xf32>
    %763 = tpu.matmul %753, %762, %cst_582 {dimension_numbers = #tpu.dot_dimension_numbers<[1], [0], [0], [1], [0, 0, 1, 1], [], []>} : vector<2x32xbf16>, vector<32x32xbf16>, vector<2x32xf32> -> vector<2x32xf32>
    %c1_583 = arith.constant 1 : index
    %c0_584 = arith.constant 0 : index
    %c0_585 = arith.constant 0 : index
    %764 = vector.load %arg7[%c1_583, %c0_584, %c0_585] : memref<3x2x32xf32, #tpu.memory_space<vmem>>, vector<1x2x32xf32>
    %765 = vector.shape_cast %764 : vector<1x2x32xf32> to vector<2x32xf32>
    %766 = arith.addf %763, %765 : vector<2x32xf32>
    %c2_586 = arith.constant 2 : index
    %c0_587 = arith.constant 0 : index
    %c0_588 = arith.constant 0 : index
    %767 = vector.load %arg5[%c2_586, %c0_587, %c0_588] : memref<3x32x32xbf16, #tpu.memory_space<vmem>>, vector<1x32x32xbf16>
    %768 = vector.shape_cast %767 : vector<1x32x32xbf16> to vector<32x32xbf16>
    %cst_589 = arith.constant dense<0.000000e+00> : vector<2x32xf32>
    %769 = tpu.matmul %753, %768, %cst_589 {dimension_numbers = #tpu.dot_dimension_numbers<[1], [0], [0], [1], [0, 0, 1, 1], [], []>} : vector<2x32xbf16>, vector<32x32xbf16>, vector<2x32xf32> -> vector<2x32xf32>
    %c2_590 = arith.constant 2 : index
    %c0_591 = arith.constant 0 : index
    %c0_592 = arith.constant 0 : index
    %770 = vector.load %arg7[%c2_590, %c0_591, %c0_592] : memref<3x2x32xf32, #tpu.memory_space<vmem>>, vector<1x2x32xf32>
    %771 = vector.shape_cast %770 : vector<1x2x32xf32> to vector<2x32xf32>
    %772 = arith.addf %769, %771 : vector<2x32xf32>
    %c0_593 = arith.constant 0 : index
    %c0_594 = arith.constant 0 : index
    %c0_595 = arith.constant 0 : index
    %773 = vector.load %arg6[%c0_593, %c0_594, %c0_595] : memref<3x32x32xbf16, #tpu.memory_space<vmem>>, vector<1x32x32xbf16>
    %774 = vector.shape_cast %773 : vector<1x32x32xbf16> to vector<32x32xbf16>
    %cst_596 = arith.constant dense<0.000000e+00> : vector<2x32xf32>
    %775 = tpu.matmul %754, %774, %cst_596 {dimension_numbers = #tpu.dot_dimension_numbers<[1], [0], [0], [1], [0, 0, 1, 1], [], []>} : vector<2x32xbf16>, vector<32x32xbf16>, vector<2x32xf32> -> vector<2x32xf32>
    %c1_597 = arith.constant 1 : index
    %c0_598 = arith.constant 0 : index
    %c0_599 = arith.constant 0 : index
    %776 = vector.load %arg6[%c1_597, %c0_598, %c0_599] : memref<3x32x32xbf16, #tpu.memory_space<vmem>>, vector<1x32x32xbf16>
    %777 = vector.shape_cast %776 : vector<1x32x32xbf16> to vector<32x32xbf16>
    %cst_600 = arith.constant dense<0.000000e+00> : vector<2x32xf32>
    %778 = tpu.matmul %754, %777, %cst_600 {dimension_numbers = #tpu.dot_dimension_numbers<[1], [0], [0], [1], [0, 0, 1, 1], [], []>} : vector<2x32xbf16>, vector<32x32xbf16>, vector<2x32xf32> -> vector<2x32xf32>
    %c2_601 = arith.constant 2 : index
    %c0_602 = arith.constant 0 : index
    %c0_603 = arith.constant 0 : index
    %779 = vector.load %arg6[%c2_601, %c0_602, %c0_603] : memref<3x32x32xbf16, #tpu.memory_space<vmem>>, vector<1x32x32xbf16>
    %780 = vector.shape_cast %779 : vector<1x32x32xbf16> to vector<32x32xbf16>
    %cst_604 = arith.constant dense<0.000000e+00> : vector<2x32xf32>
    %781 = tpu.matmul %754, %780, %cst_604 {dimension_numbers = #tpu.dot_dimension_numbers<[1], [0], [0], [1], [0, 0, 1, 1], [], []>} : vector<2x32xbf16>, vector<32x32xbf16>, vector<2x32xf32> -> vector<2x32xf32>
    %782 = arith.addf %760, %775 : vector<2x32xf32>
    %783 = arith.negf %782 : vector<2x32xf32>
    %784 = math.exp %783 : vector<2x32xf32>
    %cst_605 = arith.constant 1.000000e+00 : f32
    %785 = vector.broadcast %cst_605 : f32 to vector<2x32xf32>
    %786 = arith.addf %785, %784 : vector<2x32xf32>
    %787 = arith.divf %785, %786 : vector<2x32xf32>
    %788 = arith.addf %766, %778 : vector<2x32xf32>
    %789 = arith.negf %788 : vector<2x32xf32>
    %790 = math.exp %789 : vector<2x32xf32>
    %cst_606 = arith.constant 1.000000e+00 : f32
    %791 = vector.broadcast %cst_606 : f32 to vector<2x32xf32>
    %792 = arith.addf %791, %790 : vector<2x32xf32>
    %793 = arith.divf %791, %792 : vector<2x32xf32>
    %c0_607 = arith.constant 0 : index
    %c0_608 = arith.constant 0 : index
    %794 = vector.load %arg8[%c0_607, %c0_608] : memref<2x32xf32, #tpu.memory_space<vmem>>, vector<2x32xf32>
    %795 = arith.addf %781, %794 : vector<2x32xf32>
    %796 = arith.mulf %787, %795 : vector<2x32xf32>
    %797 = arith.addf %772, %796 : vector<2x32xf32>
    %798 = math.tanh %797 : vector<2x32xf32>
    %799 = arith.subf %752, %798 : vector<2x32xf32>
    %800 = arith.mulf %793, %799 : vector<2x32xf32>
    %801 = arith.addf %798, %800 : vector<2x32xf32>
    %c0_609 = arith.constant 0 : index
    %c0_610 = arith.constant 0 : index
    %802 = vector.load %arg17[%c0_609, %c0_610] : memref<32x128xf32, #tpu.memory_space<vmem>>, vector<32x128xf32>
    %c0_611 = arith.constant 0 : index
    %c0_612 = arith.constant 0 : index
    %803 = vector.load %arg18[%c0_611, %c0_612] : memref<2x128xf32, #tpu.memory_space<vmem>>, vector<2x128xf32>
    %804 = arith.truncf %152 : vector<2x32xf32> to vector<2x32xbf16>
    %805 = arith.truncf %703 : vector<2x32xf32> to vector<2x32xbf16>
    %c0_613 = arith.constant 0 : index
    %c0_614 = arith.constant 0 : index
    %c0_615 = arith.constant 0 : index
    %806 = vector.load %arg9[%c0_613, %c0_614, %c0_615] : memref<3x32x32xbf16, #tpu.memory_space<vmem>>, vector<1x32x32xbf16>
    %807 = vector.shape_cast %806 : vector<1x32x32xbf16> to vector<32x32xbf16>
    %cst_616 = arith.constant dense<0.000000e+00> : vector<2x32xf32>
    %808 = tpu.matmul %804, %807, %cst_616 {dimension_numbers = #tpu.dot_dimension_numbers<[1], [0], [0], [1], [0, 0, 1, 1], [], []>} : vector<2x32xbf16>, vector<32x32xbf16>, vector<2x32xf32> -> vector<2x32xf32>
    %c0_617 = arith.constant 0 : index
    %c0_618 = arith.constant 0 : index
    %c0_619 = arith.constant 0 : index
    %809 = vector.load %arg11[%c0_617, %c0_618, %c0_619] : memref<3x2x32xf32, #tpu.memory_space<vmem>>, vector<1x2x32xf32>
    %810 = vector.shape_cast %809 : vector<1x2x32xf32> to vector<2x32xf32>
    %811 = arith.addf %808, %810 : vector<2x32xf32>
    %c1_620 = arith.constant 1 : index
    %c0_621 = arith.constant 0 : index
    %c0_622 = arith.constant 0 : index
    %812 = vector.load %arg9[%c1_620, %c0_621, %c0_622] : memref<3x32x32xbf16, #tpu.memory_space<vmem>>, vector<1x32x32xbf16>
    %813 = vector.shape_cast %812 : vector<1x32x32xbf16> to vector<32x32xbf16>
    %cst_623 = arith.constant dense<0.000000e+00> : vector<2x32xf32>
    %814 = tpu.matmul %804, %813, %cst_623 {dimension_numbers = #tpu.dot_dimension_numbers<[1], [0], [0], [1], [0, 0, 1, 1], [], []>} : vector<2x32xbf16>, vector<32x32xbf16>, vector<2x32xf32> -> vector<2x32xf32>
    %c1_624 = arith.constant 1 : index
    %c0_625 = arith.constant 0 : index
    %c0_626 = arith.constant 0 : index
    %815 = vector.load %arg11[%c1_624, %c0_625, %c0_626] : memref<3x2x32xf32, #tpu.memory_space<vmem>>, vector<1x2x32xf32>
    %816 = vector.shape_cast %815 : vector<1x2x32xf32> to vector<2x32xf32>
    %817 = arith.addf %814, %816 : vector<2x32xf32>
    %c2_627 = arith.constant 2 : index
    %c0_628 = arith.constant 0 : index
    %c0_629 = arith.constant 0 : index
    %818 = vector.load %arg9[%c2_627, %c0_628, %c0_629] : memref<3x32x32xbf16, #tpu.memory_space<vmem>>, vector<1x32x32xbf16>
    %819 = vector.shape_cast %818 : vector<1x32x32xbf16> to vector<32x32xbf16>
    %cst_630 = arith.constant dense<0.000000e+00> : vector<2x32xf32>
    %820 = tpu.matmul %804, %819, %cst_630 {dimension_numbers = #tpu.dot_dimension_numbers<[1], [0], [0], [1], [0, 0, 1, 1], [], []>} : vector<2x32xbf16>, vector<32x32xbf16>, vector<2x32xf32> -> vector<2x32xf32>
    %c2_631 = arith.constant 2 : index
    %c0_632 = arith.constant 0 : index
    %c0_633 = arith.constant 0 : index
    %821 = vector.load %arg11[%c2_631, %c0_632, %c0_633] : memref<3x2x32xf32, #tpu.memory_space<vmem>>, vector<1x2x32xf32>
    %822 = vector.shape_cast %821 : vector<1x2x32xf32> to vector<2x32xf32>
    %823 = arith.addf %820, %822 : vector<2x32xf32>
    %c0_634 = arith.constant 0 : index
    %c0_635 = arith.constant 0 : index
    %c0_636 = arith.constant 0 : index
    %824 = vector.load %arg10[%c0_634, %c0_635, %c0_636] : memref<3x32x32xbf16, #tpu.memory_space<vmem>>, vector<1x32x32xbf16>
    %825 = vector.shape_cast %824 : vector<1x32x32xbf16> to vector<32x32xbf16>
    %cst_637 = arith.constant dense<0.000000e+00> : vector<2x32xf32>
    %826 = tpu.matmul %805, %825, %cst_637 {dimension_numbers = #tpu.dot_dimension_numbers<[1], [0], [0], [1], [0, 0, 1, 1], [], []>} : vector<2x32xbf16>, vector<32x32xbf16>, vector<2x32xf32> -> vector<2x32xf32>
    %c1_638 = arith.constant 1 : index
    %c0_639 = arith.constant 0 : index
    %c0_640 = arith.constant 0 : index
    %827 = vector.load %arg10[%c1_638, %c0_639, %c0_640] : memref<3x32x32xbf16, #tpu.memory_space<vmem>>, vector<1x32x32xbf16>
    %828 = vector.shape_cast %827 : vector<1x32x32xbf16> to vector<32x32xbf16>
    %cst_641 = arith.constant dense<0.000000e+00> : vector<2x32xf32>
    %829 = tpu.matmul %805, %828, %cst_641 {dimension_numbers = #tpu.dot_dimension_numbers<[1], [0], [0], [1], [0, 0, 1, 1], [], []>} : vector<2x32xbf16>, vector<32x32xbf16>, vector<2x32xf32> -> vector<2x32xf32>
    %c2_642 = arith.constant 2 : index
    %c0_643 = arith.constant 0 : index
    %c0_644 = arith.constant 0 : index
    %830 = vector.load %arg10[%c2_642, %c0_643, %c0_644] : memref<3x32x32xbf16, #tpu.memory_space<vmem>>, vector<1x32x32xbf16>
    %831 = vector.shape_cast %830 : vector<1x32x32xbf16> to vector<32x32xbf16>
    %cst_645 = arith.constant dense<0.000000e+00> : vector<2x32xf32>
    %832 = tpu.matmul %805, %831, %cst_645 {dimension_numbers = #tpu.dot_dimension_numbers<[1], [0], [0], [1], [0, 0, 1, 1], [], []>} : vector<2x32xbf16>, vector<32x32xbf16>, vector<2x32xf32> -> vector<2x32xf32>
    %833 = arith.addf %811, %826 : vector<2x32xf32>
    %834 = arith.negf %833 : vector<2x32xf32>
    %835 = math.exp %834 : vector<2x32xf32>
    %cst_646 = arith.constant 1.000000e+00 : f32
    %836 = vector.broadcast %cst_646 : f32 to vector<2x32xf32>
    %837 = arith.addf %836, %835 : vector<2x32xf32>
    %838 = arith.divf %836, %837 : vector<2x32xf32>
    %839 = arith.addf %817, %829 : vector<2x32xf32>
    %840 = arith.negf %839 : vector<2x32xf32>
    %841 = math.exp %840 : vector<2x32xf32>
    %cst_647 = arith.constant 1.000000e+00 : f32
    %842 = vector.broadcast %cst_647 : f32 to vector<2x32xf32>
    %843 = arith.addf %842, %841 : vector<2x32xf32>
    %844 = arith.divf %842, %843 : vector<2x32xf32>
    %c0_648 = arith.constant 0 : index
    %c0_649 = arith.constant 0 : index
    %845 = vector.load %arg12[%c0_648, %c0_649] : memref<2x32xf32, #tpu.memory_space<vmem>>, vector<2x32xf32>
    %846 = arith.addf %832, %845 : vector<2x32xf32>
    %847 = arith.mulf %838, %846 : vector<2x32xf32>
    %848 = arith.addf %823, %847 : vector<2x32xf32>
    %849 = math.tanh %848 : vector<2x32xf32>
    %850 = arith.subf %703, %849 : vector<2x32xf32>
    %851 = arith.mulf %844, %850 : vector<2x32xf32>
    %852 = arith.addf %849, %851 : vector<2x32xf32>
    %853 = arith.truncf %252 : vector<2x32xf32> to vector<2x32xbf16>
    %854 = arith.truncf %852 : vector<2x32xf32> to vector<2x32xbf16>
    %c0_650 = arith.constant 0 : index
    %c0_651 = arith.constant 0 : index
    %c0_652 = arith.constant 0 : index
    %855 = vector.load %arg9[%c0_650, %c0_651, %c0_652] : memref<3x32x32xbf16, #tpu.memory_space<vmem>>, vector<1x32x32xbf16>
    %856 = vector.shape_cast %855 : vector<1x32x32xbf16> to vector<32x32xbf16>
    %cst_653 = arith.constant dense<0.000000e+00> : vector<2x32xf32>
    %857 = tpu.matmul %853, %856, %cst_653 {dimension_numbers = #tpu.dot_dimension_numbers<[1], [0], [0], [1], [0, 0, 1, 1], [], []>} : vector<2x32xbf16>, vector<32x32xbf16>, vector<2x32xf32> -> vector<2x32xf32>
    %c0_654 = arith.constant 0 : index
    %c0_655 = arith.constant 0 : index
    %c0_656 = arith.constant 0 : index
    %858 = vector.load %arg11[%c0_654, %c0_655, %c0_656] : memref<3x2x32xf32, #tpu.memory_space<vmem>>, vector<1x2x32xf32>
    %859 = vector.shape_cast %858 : vector<1x2x32xf32> to vector<2x32xf32>
    %860 = arith.addf %857, %859 : vector<2x32xf32>
    %c1_657 = arith.constant 1 : index
    %c0_658 = arith.constant 0 : index
    %c0_659 = arith.constant 0 : index
    %861 = vector.load %arg9[%c1_657, %c0_658, %c0_659] : memref<3x32x32xbf16, #tpu.memory_space<vmem>>, vector<1x32x32xbf16>
    %862 = vector.shape_cast %861 : vector<1x32x32xbf16> to vector<32x32xbf16>
    %cst_660 = arith.constant dense<0.000000e+00> : vector<2x32xf32>
    %863 = tpu.matmul %853, %862, %cst_660 {dimension_numbers = #tpu.dot_dimension_numbers<[1], [0], [0], [1], [0, 0, 1, 1], [], []>} : vector<2x32xbf16>, vector<32x32xbf16>, vector<2x32xf32> -> vector<2x32xf32>
    %c1_661 = arith.constant 1 : index
    %c0_662 = arith.constant 0 : index
    %c0_663 = arith.constant 0 : index
    %864 = vector.load %arg11[%c1_661, %c0_662, %c0_663] : memref<3x2x32xf32, #tpu.memory_space<vmem>>, vector<1x2x32xf32>
    %865 = vector.shape_cast %864 : vector<1x2x32xf32> to vector<2x32xf32>
    %866 = arith.addf %863, %865 : vector<2x32xf32>
    %c2_664 = arith.constant 2 : index
    %c0_665 = arith.constant 0 : index
    %c0_666 = arith.constant 0 : index
    %867 = vector.load %arg9[%c2_664, %c0_665, %c0_666] : memref<3x32x32xbf16, #tpu.memory_space<vmem>>, vector<1x32x32xbf16>
    %868 = vector.shape_cast %867 : vector<1x32x32xbf16> to vector<32x32xbf16>
    %cst_667 = arith.constant dense<0.000000e+00> : vector<2x32xf32>
    %869 = tpu.matmul %853, %868, %cst_667 {dimension_numbers = #tpu.dot_dimension_numbers<[1], [0], [0], [1], [0, 0, 1, 1], [], []>} : vector<2x32xbf16>, vector<32x32xbf16>, vector<2x32xf32> -> vector<2x32xf32>
    %c2_668 = arith.constant 2 : index
    %c0_669 = arith.constant 0 : index
    %c0_670 = arith.constant 0 : index
    %870 = vector.load %arg11[%c2_668, %c0_669, %c0_670] : memref<3x2x32xf32, #tpu.memory_space<vmem>>, vector<1x2x32xf32>
    %871 = vector.shape_cast %870 : vector<1x2x32xf32> to vector<2x32xf32>
    %872 = arith.addf %869, %871 : vector<2x32xf32>
    %c0_671 = arith.constant 0 : index
    %c0_672 = arith.constant 0 : index
    %c0_673 = arith.constant 0 : index
    %873 = vector.load %arg10[%c0_671, %c0_672, %c0_673] : memref<3x32x32xbf16, #tpu.memory_space<vmem>>, vector<1x32x32xbf16>
    %874 = vector.shape_cast %873 : vector<1x32x32xbf16> to vector<32x32xbf16>
    %cst_674 = arith.constant dense<0.000000e+00> : vector<2x32xf32>
    %875 = tpu.matmul %854, %874, %cst_674 {dimension_numbers = #tpu.dot_dimension_numbers<[1], [0], [0], [1], [0, 0, 1, 1], [], []>} : vector<2x32xbf16>, vector<32x32xbf16>, vector<2x32xf32> -> vector<2x32xf32>
    %c1_675 = arith.constant 1 : index
    %c0_676 = arith.constant 0 : index
    %c0_677 = arith.constant 0 : index
    %876 = vector.load %arg10[%c1_675, %c0_676, %c0_677] : memref<3x32x32xbf16, #tpu.memory_space<vmem>>, vector<1x32x32xbf16>
    %877 = vector.shape_cast %876 : vector<1x32x32xbf16> to vector<32x32xbf16>
    %cst_678 = arith.constant dense<0.000000e+00> : vector<2x32xf32>
    %878 = tpu.matmul %854, %877, %cst_678 {dimension_numbers = #tpu.dot_dimension_numbers<[1], [0], [0], [1], [0, 0, 1, 1], [], []>} : vector<2x32xbf16>, vector<32x32xbf16>, vector<2x32xf32> -> vector<2x32xf32>
    %c2_679 = arith.constant 2 : index
    %c0_680 = arith.constant 0 : index
    %c0_681 = arith.constant 0 : index
    %879 = vector.load %arg10[%c2_679, %c0_680, %c0_681] : memref<3x32x32xbf16, #tpu.memory_space<vmem>>, vector<1x32x32xbf16>
    %880 = vector.shape_cast %879 : vector<1x32x32xbf16> to vector<32x32xbf16>
    %cst_682 = arith.constant dense<0.000000e+00> : vector<2x32xf32>
    %881 = tpu.matmul %854, %880, %cst_682 {dimension_numbers = #tpu.dot_dimension_numbers<[1], [0], [0], [1], [0, 0, 1, 1], [], []>} : vector<2x32xbf16>, vector<32x32xbf16>, vector<2x32xf32> -> vector<2x32xf32>
    %882 = arith.addf %860, %875 : vector<2x32xf32>
    %883 = arith.negf %882 : vector<2x32xf32>
    %884 = math.exp %883 : vector<2x32xf32>
    %cst_683 = arith.constant 1.000000e+00 : f32
    %885 = vector.broadcast %cst_683 : f32 to vector<2x32xf32>
    %886 = arith.addf %885, %884 : vector<2x32xf32>
    %887 = arith.divf %885, %886 : vector<2x32xf32>
    %888 = arith.addf %866, %878 : vector<2x32xf32>
    %889 = arith.negf %888 : vector<2x32xf32>
    %890 = math.exp %889 : vector<2x32xf32>
    %cst_684 = arith.constant 1.000000e+00 : f32
    %891 = vector.broadcast %cst_684 : f32 to vector<2x32xf32>
    %892 = arith.addf %891, %890 : vector<2x32xf32>
    %893 = arith.divf %891, %892 : vector<2x32xf32>
    %c0_685 = arith.constant 0 : index
    %c0_686 = arith.constant 0 : index
    %894 = vector.load %arg12[%c0_685, %c0_686] : memref<2x32xf32, #tpu.memory_space<vmem>>, vector<2x32xf32>
    %895 = arith.addf %881, %894 : vector<2x32xf32>
    %896 = arith.mulf %887, %895 : vector<2x32xf32>
    %897 = arith.addf %872, %896 : vector<2x32xf32>
    %898 = math.tanh %897 : vector<2x32xf32>
    %899 = arith.subf %852, %898 : vector<2x32xf32>
    %900 = arith.mulf %893, %899 : vector<2x32xf32>
    %901 = arith.addf %898, %900 : vector<2x32xf32>
    %902 = arith.truncf %852 : vector<2x32xf32> to vector<2x32xbf16>
    %903 = arith.truncf %801 : vector<2x32xf32> to vector<2x32xbf16>
    %c0_687 = arith.constant 0 : index
    %c0_688 = arith.constant 0 : index
    %c0_689 = arith.constant 0 : index
    %904 = vector.load %arg13[%c0_687, %c0_688, %c0_689] : memref<3x32x32xbf16, #tpu.memory_space<vmem>>, vector<1x32x32xbf16>
    %905 = vector.shape_cast %904 : vector<1x32x32xbf16> to vector<32x32xbf16>
    %cst_690 = arith.constant dense<0.000000e+00> : vector<2x32xf32>
    %906 = tpu.matmul %902, %905, %cst_690 {dimension_numbers = #tpu.dot_dimension_numbers<[1], [0], [0], [1], [0, 0, 1, 1], [], []>} : vector<2x32xbf16>, vector<32x32xbf16>, vector<2x32xf32> -> vector<2x32xf32>
    %c0_691 = arith.constant 0 : index
    %c0_692 = arith.constant 0 : index
    %c0_693 = arith.constant 0 : index
    %907 = vector.load %arg15[%c0_691, %c0_692, %c0_693] : memref<3x2x32xf32, #tpu.memory_space<vmem>>, vector<1x2x32xf32>
    %908 = vector.shape_cast %907 : vector<1x2x32xf32> to vector<2x32xf32>
    %909 = arith.addf %906, %908 : vector<2x32xf32>
    %c1_694 = arith.constant 1 : index
    %c0_695 = arith.constant 0 : index
    %c0_696 = arith.constant 0 : index
    %910 = vector.load %arg13[%c1_694, %c0_695, %c0_696] : memref<3x32x32xbf16, #tpu.memory_space<vmem>>, vector<1x32x32xbf16>
    %911 = vector.shape_cast %910 : vector<1x32x32xbf16> to vector<32x32xbf16>
    %cst_697 = arith.constant dense<0.000000e+00> : vector<2x32xf32>
    %912 = tpu.matmul %902, %911, %cst_697 {dimension_numbers = #tpu.dot_dimension_numbers<[1], [0], [0], [1], [0, 0, 1, 1], [], []>} : vector<2x32xbf16>, vector<32x32xbf16>, vector<2x32xf32> -> vector<2x32xf32>
    %c1_698 = arith.constant 1 : index
    %c0_699 = arith.constant 0 : index
    %c0_700 = arith.constant 0 : index
    %913 = vector.load %arg15[%c1_698, %c0_699, %c0_700] : memref<3x2x32xf32, #tpu.memory_space<vmem>>, vector<1x2x32xf32>
    %914 = vector.shape_cast %913 : vector<1x2x32xf32> to vector<2x32xf32>
    %915 = arith.addf %912, %914 : vector<2x32xf32>
    %c2_701 = arith.constant 2 : index
    %c0_702 = arith.constant 0 : index
    %c0_703 = arith.constant 0 : index
    %916 = vector.load %arg13[%c2_701, %c0_702, %c0_703] : memref<3x32x32xbf16, #tpu.memory_space<vmem>>, vector<1x32x32xbf16>
    %917 = vector.shape_cast %916 : vector<1x32x32xbf16> to vector<32x32xbf16>
    %cst_704 = arith.constant dense<0.000000e+00> : vector<2x32xf32>
    %918 = tpu.matmul %902, %917, %cst_704 {dimension_numbers = #tpu.dot_dimension_numbers<[1], [0], [0], [1], [0, 0, 1, 1], [], []>} : vector<2x32xbf16>, vector<32x32xbf16>, vector<2x32xf32> -> vector<2x32xf32>
    %c2_705 = arith.constant 2 : index
    %c0_706 = arith.constant 0 : index
    %c0_707 = arith.constant 0 : index
    %919 = vector.load %arg15[%c2_705, %c0_706, %c0_707] : memref<3x2x32xf32, #tpu.memory_space<vmem>>, vector<1x2x32xf32>
    %920 = vector.shape_cast %919 : vector<1x2x32xf32> to vector<2x32xf32>
    %921 = arith.addf %918, %920 : vector<2x32xf32>
    %c0_708 = arith.constant 0 : index
    %c0_709 = arith.constant 0 : index
    %c0_710 = arith.constant 0 : index
    %922 = vector.load %arg14[%c0_708, %c0_709, %c0_710] : memref<3x32x32xbf16, #tpu.memory_space<vmem>>, vector<1x32x32xbf16>
    %923 = vector.shape_cast %922 : vector<1x32x32xbf16> to vector<32x32xbf16>
    %cst_711 = arith.constant dense<0.000000e+00> : vector<2x32xf32>
    %924 = tpu.matmul %903, %923, %cst_711 {dimension_numbers = #tpu.dot_dimension_numbers<[1], [0], [0], [1], [0, 0, 1, 1], [], []>} : vector<2x32xbf16>, vector<32x32xbf16>, vector<2x32xf32> -> vector<2x32xf32>
    %c1_712 = arith.constant 1 : index
    %c0_713 = arith.constant 0 : index
    %c0_714 = arith.constant 0 : index
    %925 = vector.load %arg14[%c1_712, %c0_713, %c0_714] : memref<3x32x32xbf16, #tpu.memory_space<vmem>>, vector<1x32x32xbf16>
    %926 = vector.shape_cast %925 : vector<1x32x32xbf16> to vector<32x32xbf16>
    %cst_715 = arith.constant dense<0.000000e+00> : vector<2x32xf32>
    %927 = tpu.matmul %903, %926, %cst_715 {dimension_numbers = #tpu.dot_dimension_numbers<[1], [0], [0], [1], [0, 0, 1, 1], [], []>} : vector<2x32xbf16>, vector<32x32xbf16>, vector<2x32xf32> -> vector<2x32xf32>
    %c2_716 = arith.constant 2 : index
    %c0_717 = arith.constant 0 : index
    %c0_718 = arith.constant 0 : index
    %928 = vector.load %arg14[%c2_716, %c0_717, %c0_718] : memref<3x32x32xbf16, #tpu.memory_space<vmem>>, vector<1x32x32xbf16>
    %929 = vector.shape_cast %928 : vector<1x32x32xbf16> to vector<32x32xbf16>
    %cst_719 = arith.constant dense<0.000000e+00> : vector<2x32xf32>
    %930 = tpu.matmul %903, %929, %cst_719 {dimension_numbers = #tpu.dot_dimension_numbers<[1], [0], [0], [1], [0, 0, 1, 1], [], []>} : vector<2x32xbf16>, vector<32x32xbf16>, vector<2x32xf32> -> vector<2x32xf32>
    %931 = arith.addf %909, %924 : vector<2x32xf32>
    %932 = arith.negf %931 : vector<2x32xf32>
    %933 = math.exp %932 : vector<2x32xf32>
    %cst_720 = arith.constant 1.000000e+00 : f32
    %934 = vector.broadcast %cst_720 : f32 to vector<2x32xf32>
    %935 = arith.addf %934, %933 : vector<2x32xf32>
    %936 = arith.divf %934, %935 : vector<2x32xf32>
    %937 = arith.addf %915, %927 : vector<2x32xf32>
    %938 = arith.negf %937 : vector<2x32xf32>
    %939 = math.exp %938 : vector<2x32xf32>
    %cst_721 = arith.constant 1.000000e+00 : f32
    %940 = vector.broadcast %cst_721 : f32 to vector<2x32xf32>
    %941 = arith.addf %940, %939 : vector<2x32xf32>
    %942 = arith.divf %940, %941 : vector<2x32xf32>
    %c0_722 = arith.constant 0 : index
    %c0_723 = arith.constant 0 : index
    %943 = vector.load %arg16[%c0_722, %c0_723] : memref<2x32xf32, #tpu.memory_space<vmem>>, vector<2x32xf32>
    %944 = arith.addf %930, %943 : vector<2x32xf32>
    %945 = arith.mulf %936, %944 : vector<2x32xf32>
    %946 = arith.addf %921, %945 : vector<2x32xf32>
    %947 = math.tanh %946 : vector<2x32xf32>
    %948 = arith.subf %801, %947 : vector<2x32xf32>
    %949 = arith.mulf %942, %948 : vector<2x32xf32>
    %950 = arith.addf %947, %949 : vector<2x32xf32>
    %cst_724 = arith.constant dense<0.000000e+00> : vector<2x128xf32>
    %951 = tpu.matmul %950, %802, %cst_724 {dimension_numbers = #tpu.dot_dimension_numbers<[1], [0], [0], [1], [0, 0, 1, 1], [], []>} : vector<2x32xf32>, vector<32x128xf32>, vector<2x128xf32> -> vector<2x128xf32>
    %952 = arith.addf %951, %803 : vector<2x128xf32>
    %c0_725 = arith.constant 0 : index
    %c0_726 = arith.constant 0 : index
    %c0_727 = arith.constant 0 : index
    %953 = vector.load %arg19[%c0_725, %c0_726, %c0_727] : memref<8x2x128xf32, #tpu.memory_space<vmem>>, vector<1x2x128xf32>
    %954 = vector.shape_cast %953 : vector<1x2x128xf32> to vector<2x128xf32>
    %955 = vector.shape_cast %952 : vector<2x128xf32> to vector<1x2x128xf32>
    tpu.vector_store %arg19[%c0_725, %c0_726, %c0_727], %955 {strides = array<i32>} : memref<8x2x128xf32, #tpu.memory_space<vmem>>, vector<1x2x128xf32>,
    %956 = arith.truncf %352 : vector<2x32xf32> to vector<2x32xbf16>
    %957 = arith.truncf %901 : vector<2x32xf32> to vector<2x32xbf16>
    %c0_728 = arith.constant 0 : index
    %c0_729 = arith.constant 0 : index
    %c0_730 = arith.constant 0 : index
    %958 = vector.load %arg9[%c0_728, %c0_729, %c0_730] : memref<3x32x32xbf16, #tpu.memory_space<vmem>>, vector<1x32x32xbf16>
    %959 = vector.shape_cast %958 : vector<1x32x32xbf16> to vector<32x32xbf16>
    %cst_731 = arith.constant dense<0.000000e+00> : vector<2x32xf32>
    %960 = tpu.matmul %956, %959, %cst_731 {dimension_numbers = #tpu.dot_dimension_numbers<[1], [0], [0], [1], [0, 0, 1, 1], [], []>} : vector<2x32xbf16>, vector<32x32xbf16>, vector<2x32xf32> -> vector<2x32xf32>
    %c0_732 = arith.constant 0 : index
    %c0_733 = arith.constant 0 : index
    %c0_734 = arith.constant 0 : index
    %961 = vector.load %arg11[%c0_732, %c0_733, %c0_734] : memref<3x2x32xf32, #tpu.memory_space<vmem>>, vector<1x2x32xf32>
    %962 = vector.shape_cast %961 : vector<1x2x32xf32> to vector<2x32xf32>
    %963 = arith.addf %960, %962 : vector<2x32xf32>
    %c1_735 = arith.constant 1 : index
    %c0_736 = arith.constant 0 : index
    %c0_737 = arith.constant 0 : index
    %964 = vector.load %arg9[%c1_735, %c0_736, %c0_737] : memref<3x32x32xbf16, #tpu.memory_space<vmem>>, vector<1x32x32xbf16>
    %965 = vector.shape_cast %964 : vector<1x32x32xbf16> to vector<32x32xbf16>
    %cst_738 = arith.constant dense<0.000000e+00> : vector<2x32xf32>
    %966 = tpu.matmul %956, %965, %cst_738 {dimension_numbers = #tpu.dot_dimension_numbers<[1], [0], [0], [1], [0, 0, 1, 1], [], []>} : vector<2x32xbf16>, vector<32x32xbf16>, vector<2x32xf32> -> vector<2x32xf32>
    %c1_739 = arith.constant 1 : index
    %c0_740 = arith.constant 0 : index
    %c0_741 = arith.constant 0 : index
    %967 = vector.load %arg11[%c1_739, %c0_740, %c0_741] : memref<3x2x32xf32, #tpu.memory_space<vmem>>, vector<1x2x32xf32>
    %968 = vector.shape_cast %967 : vector<1x2x32xf32> to vector<2x32xf32>
    %969 = arith.addf %966, %968 : vector<2x32xf32>
    %c2_742 = arith.constant 2 : index
    %c0_743 = arith.constant 0 : index
    %c0_744 = arith.constant 0 : index
    %970 = vector.load %arg9[%c2_742, %c0_743, %c0_744] : memref<3x32x32xbf16, #tpu.memory_space<vmem>>, vector<1x32x32xbf16>
    %971 = vector.shape_cast %970 : vector<1x32x32xbf16> to vector<32x32xbf16>
    %cst_745 = arith.constant dense<0.000000e+00> : vector<2x32xf32>
    %972 = tpu.matmul %956, %971, %cst_745 {dimension_numbers = #tpu.dot_dimension_numbers<[1], [0], [0], [1], [0, 0, 1, 1], [], []>} : vector<2x32xbf16>, vector<32x32xbf16>, vector<2x32xf32> -> vector<2x32xf32>
    %c2_746 = arith.constant 2 : index
    %c0_747 = arith.constant 0 : index
    %c0_748 = arith.constant 0 : index
    %973 = vector.load %arg11[%c2_746, %c0_747, %c0_748] : memref<3x2x32xf32, #tpu.memory_space<vmem>>, vector<1x2x32xf32>
    %974 = vector.shape_cast %973 : vector<1x2x32xf32> to vector<2x32xf32>
    %975 = arith.addf %972, %974 : vector<2x32xf32>
    %c0_749 = arith.constant 0 : index
    %c0_750 = arith.constant 0 : index
    %c0_751 = arith.constant 0 : index
    %976 = vector.load %arg10[%c0_749, %c0_750, %c0_751] : memref<3x32x32xbf16, #tpu.memory_space<vmem>>, vector<1x32x32xbf16>
    %977 = vector.shape_cast %976 : vector<1x32x32xbf16> to vector<32x32xbf16>
    %cst_752 = arith.constant dense<0.000000e+00> : vector<2x32xf32>
    %978 = tpu.matmul %957, %977, %cst_752 {dimension_numbers = #tpu.dot_dimension_numbers<[1], [0], [0], [1], [0, 0, 1, 1], [], []>} : vector<2x32xbf16>, vector<32x32xbf16>, vector<2x32xf32> -> vector<2x32xf32>
    %c1_753 = arith.constant 1 : index
    %c0_754 = arith.constant 0 : index
    %c0_755 = arith.constant 0 : index
    %979 = vector.load %arg10[%c1_753, %c0_754, %c0_755] : memref<3x32x32xbf16, #tpu.memory_space<vmem>>, vector<1x32x32xbf16>
    %980 = vector.shape_cast %979 : vector<1x32x32xbf16> to vector<32x32xbf16>
    %cst_756 = arith.constant dense<0.000000e+00> : vector<2x32xf32>
    %981 = tpu.matmul %957, %980, %cst_756 {dimension_numbers = #tpu.dot_dimension_numbers<[1], [0], [0], [1], [0, 0, 1, 1], [], []>} : vector<2x32xbf16>, vector<32x32xbf16>, vector<2x32xf32> -> vector<2x32xf32>
    %c2_757 = arith.constant 2 : index
    %c0_758 = arith.constant 0 : index
    %c0_759 = arith.constant 0 : index
    %982 = vector.load %arg10[%c2_757, %c0_758, %c0_759] : memref<3x32x32xbf16, #tpu.memory_space<vmem>>, vector<1x32x32xbf16>
    %983 = vector.shape_cast %982 : vector<1x32x32xbf16> to vector<32x32xbf16>
    %cst_760 = arith.constant dense<0.000000e+00> : vector<2x32xf32>
    %984 = tpu.matmul %957, %983, %cst_760 {dimension_numbers = #tpu.dot_dimension_numbers<[1], [0], [0], [1], [0, 0, 1, 1], [], []>} : vector<2x32xbf16>, vector<32x32xbf16>, vector<2x32xf32> -> vector<2x32xf32>
    %985 = arith.addf %963, %978 : vector<2x32xf32>
    %986 = arith.negf %985 : vector<2x32xf32>
    %987 = math.exp %986 : vector<2x32xf32>
    %cst_761 = arith.constant 1.000000e+00 : f32
    %988 = vector.broadcast %cst_761 : f32 to vector<2x32xf32>
    %989 = arith.addf %988, %987 : vector<2x32xf32>
    %990 = arith.divf %988, %989 : vector<2x32xf32>
    %991 = arith.addf %969, %981 : vector<2x32xf32>
    %992 = arith.negf %991 : vector<2x32xf32>
    %993 = math.exp %992 : vector<2x32xf32>
    %cst_762 = arith.constant 1.000000e+00 : f32
    %994 = vector.broadcast %cst_762 : f32 to vector<2x32xf32>
    %995 = arith.addf %994, %993 : vector<2x32xf32>
    %996 = arith.divf %994, %995 : vector<2x32xf32>
    %c0_763 = arith.constant 0 : index
    %c0_764 = arith.constant 0 : index
    %997 = vector.load %arg12[%c0_763, %c0_764] : memref<2x32xf32, #tpu.memory_space<vmem>>, vector<2x32xf32>
    %998 = arith.addf %984, %997 : vector<2x32xf32>
    %999 = arith.mulf %990, %998 : vector<2x32xf32>
    %1000 = arith.addf %975, %999 : vector<2x32xf32>
    %1001 = math.tanh %1000 : vector<2x32xf32>
    %1002 = arith.subf %901, %1001 : vector<2x32xf32>
    %1003 = arith.mulf %996, %1002 : vector<2x32xf32>
    %1004 = arith.addf %1001, %1003 : vector<2x32xf32>
    %1005 = arith.truncf %901 : vector<2x32xf32> to vector<2x32xbf16>
    %1006 = arith.truncf %950 : vector<2x32xf32> to vector<2x32xbf16>
    %c0_765 = arith.constant 0 : index
    %c0_766 = arith.constant 0 : index
    %c0_767 = arith.constant 0 : index
    %1007 = vector.load %arg13[%c0_765, %c0_766, %c0_767] : memref<3x32x32xbf16, #tpu.memory_space<vmem>>, vector<1x32x32xbf16>
    %1008 = vector.shape_cast %1007 : vector<1x32x32xbf16> to vector<32x32xbf16>
    %cst_768 = arith.constant dense<0.000000e+00> : vector<2x32xf32>
    %1009 = tpu.matmul %1005, %1008, %cst_768 {dimension_numbers = #tpu.dot_dimension_numbers<[1], [0], [0], [1], [0, 0, 1, 1], [], []>} : vector<2x32xbf16>, vector<32x32xbf16>, vector<2x32xf32> -> vector<2x32xf32>
    %c0_769 = arith.constant 0 : index
    %c0_770 = arith.constant 0 : index
    %c0_771 = arith.constant 0 : index
    %1010 = vector.load %arg15[%c0_769, %c0_770, %c0_771] : memref<3x2x32xf32, #tpu.memory_space<vmem>>, vector<1x2x32xf32>
    %1011 = vector.shape_cast %1010 : vector<1x2x32xf32> to vector<2x32xf32>
    %1012 = arith.addf %1009, %1011 : vector<2x32xf32>
    %c1_772 = arith.constant 1 : index
    %c0_773 = arith.constant 0 : index
    %c0_774 = arith.constant 0 : index
    %1013 = vector.load %arg13[%c1_772, %c0_773, %c0_774] : memref<3x32x32xbf16, #tpu.memory_space<vmem>>, vector<1x32x32xbf16>
    %1014 = vector.shape_cast %1013 : vector<1x32x32xbf16> to vector<32x32xbf16>
    %cst_775 = arith.constant dense<0.000000e+00> : vector<2x32xf32>
    %1015 = tpu.matmul %1005, %1014, %cst_775 {dimension_numbers = #tpu.dot_dimension_numbers<[1], [0], [0], [1], [0, 0, 1, 1], [], []>} : vector<2x32xbf16>, vector<32x32xbf16>, vector<2x32xf32> -> vector<2x32xf32>
    %c1_776 = arith.constant 1 : index
    %c0_777 = arith.constant 0 : index
    %c0_778 = arith.constant 0 : index
    %1016 = vector.load %arg15[%c1_776, %c0_777, %c0_778] : memref<3x2x32xf32, #tpu.memory_space<vmem>>, vector<1x2x32xf32>
    %1017 = vector.shape_cast %1016 : vector<1x2x32xf32> to vector<2x32xf32>
    %1018 = arith.addf %1015, %1017 : vector<2x32xf32>
    %c2_779 = arith.constant 2 : index
    %c0_780 = arith.constant 0 : index
    %c0_781 = arith.constant 0 : index
    %1019 = vector.load %arg13[%c2_779, %c0_780, %c0_781] : memref<3x32x32xbf16, #tpu.memory_space<vmem>>, vector<1x32x32xbf16>
    %1020 = vector.shape_cast %1019 : vector<1x32x32xbf16> to vector<32x32xbf16>
    %cst_782 = arith.constant dense<0.000000e+00> : vector<2x32xf32>
    %1021 = tpu.matmul %1005, %1020, %cst_782 {dimension_numbers = #tpu.dot_dimension_numbers<[1], [0], [0], [1], [0, 0, 1, 1], [], []>} : vector<2x32xbf16>, vector<32x32xbf16>, vector<2x32xf32> -> vector<2x32xf32>
    %c2_783 = arith.constant 2 : index
    %c0_784 = arith.constant 0 : index
    %c0_785 = arith.constant 0 : index
    %1022 = vector.load %arg15[%c2_783, %c0_784, %c0_785] : memref<3x2x32xf32, #tpu.memory_space<vmem>>, vector<1x2x32xf32>
    %1023 = vector.shape_cast %1022 : vector<1x2x32xf32> to vector<2x32xf32>
    %1024 = arith.addf %1021, %1023 : vector<2x32xf32>
    %c0_786 = arith.constant 0 : index
    %c0_787 = arith.constant 0 : index
    %c0_788 = arith.constant 0 : index
    %1025 = vector.load %arg14[%c0_786, %c0_787, %c0_788] : memref<3x32x32xbf16, #tpu.memory_space<vmem>>, vector<1x32x32xbf16>
    %1026 = vector.shape_cast %1025 : vector<1x32x32xbf16> to vector<32x32xbf16>
    %cst_789 = arith.constant dense<0.000000e+00> : vector<2x32xf32>
    %1027 = tpu.matmul %1006, %1026, %cst_789 {dimension_numbers = #tpu.dot_dimension_numbers<[1], [0], [0], [1], [0, 0, 1, 1], [], []>} : vector<2x32xbf16>, vector<32x32xbf16>, vector<2x32xf32> -> vector<2x32xf32>
    %c1_790 = arith.constant 1 : index
    %c0_791 = arith.constant 0 : index
    %c0_792 = arith.constant 0 : index
    %1028 = vector.load %arg14[%c1_790, %c0_791, %c0_792] : memref<3x32x32xbf16, #tpu.memory_space<vmem>>, vector<1x32x32xbf16>
    %1029 = vector.shape_cast %1028 : vector<1x32x32xbf16> to vector<32x32xbf16>
    %cst_793 = arith.constant dense<0.000000e+00> : vector<2x32xf32>
    %1030 = tpu.matmul %1006, %1029, %cst_793 {dimension_numbers = #tpu.dot_dimension_numbers<[1], [0], [0], [1], [0, 0, 1, 1], [], []>} : vector<2x32xbf16>, vector<32x32xbf16>, vector<2x32xf32> -> vector<2x32xf32>
    %c2_794 = arith.constant 2 : index
    %c0_795 = arith.constant 0 : index
    %c0_796 = arith.constant 0 : index
    %1031 = vector.load %arg14[%c2_794, %c0_795, %c0_796] : memref<3x32x32xbf16, #tpu.memory_space<vmem>>, vector<1x32x32xbf16>
    %1032 = vector.shape_cast %1031 : vector<1x32x32xbf16> to vector<32x32xbf16>
    %cst_797 = arith.constant dense<0.000000e+00> : vector<2x32xf32>
    %1033 = tpu.matmul %1006, %1032, %cst_797 {dimension_numbers = #tpu.dot_dimension_numbers<[1], [0], [0], [1], [0, 0, 1, 1], [], []>} : vector<2x32xbf16>, vector<32x32xbf16>, vector<2x32xf32> -> vector<2x32xf32>
    %1034 = arith.addf %1012, %1027 : vector<2x32xf32>
    %1035 = arith.negf %1034 : vector<2x32xf32>
    %1036 = math.exp %1035 : vector<2x32xf32>
    %cst_798 = arith.constant 1.000000e+00 : f32
    %1037 = vector.broadcast %cst_798 : f32 to vector<2x32xf32>
    %1038 = arith.addf %1037, %1036 : vector<2x32xf32>
    %1039 = arith.divf %1037, %1038 : vector<2x32xf32>
    %1040 = arith.addf %1018, %1030 : vector<2x32xf32>
    %1041 = arith.negf %1040 : vector<2x32xf32>
    %1042 = math.exp %1041 : vector<2x32xf32>
    %cst_799 = arith.constant 1.000000e+00 : f32
    %1043 = vector.broadcast %cst_799 : f32 to vector<2x32xf32>
    %1044 = arith.addf %1043, %1042 : vector<2x32xf32>
    %1045 = arith.divf %1043, %1044 : vector<2x32xf32>
    %c0_800 = arith.constant 0 : index
    %c0_801 = arith.constant 0 : index
    %1046 = vector.load %arg16[%c0_800, %c0_801] : memref<2x32xf32, #tpu.memory_space<vmem>>, vector<2x32xf32>
    %1047 = arith.addf %1033, %1046 : vector<2x32xf32>
    %1048 = arith.mulf %1039, %1047 : vector<2x32xf32>
    %1049 = arith.addf %1024, %1048 : vector<2x32xf32>
    %1050 = math.tanh %1049 : vector<2x32xf32>
    %1051 = arith.subf %950, %1050 : vector<2x32xf32>
    %1052 = arith.mulf %1045, %1051 : vector<2x32xf32>
    %1053 = arith.addf %1050, %1052 : vector<2x32xf32>
    %cst_802 = arith.constant dense<0.000000e+00> : vector<2x128xf32>
    %1054 = tpu.matmul %1053, %802, %cst_802 {dimension_numbers = #tpu.dot_dimension_numbers<[1], [0], [0], [1], [0, 0, 1, 1], [], []>} : vector<2x32xf32>, vector<32x128xf32>, vector<2x128xf32> -> vector<2x128xf32>
    %1055 = arith.addf %1054, %803 : vector<2x128xf32>
    %c1_803 = arith.constant 1 : index
    %c0_804 = arith.constant 0 : index
    %c0_805 = arith.constant 0 : index
    %1056 = vector.load %arg19[%c1_803, %c0_804, %c0_805] : memref<8x2x128xf32, #tpu.memory_space<vmem>>, vector<1x2x128xf32>
    %1057 = vector.shape_cast %1056 : vector<1x2x128xf32> to vector<2x128xf32>
    %1058 = vector.shape_cast %1055 : vector<2x128xf32> to vector<1x2x128xf32>
    tpu.vector_store %arg19[%c1_803, %c0_804, %c0_805], %1058 {strides = array<i32>} : memref<8x2x128xf32, #tpu.memory_space<vmem>>, vector<1x2x128xf32>,
    %1059 = arith.truncf %452 : vector<2x32xf32> to vector<2x32xbf16>
    %1060 = arith.truncf %1004 : vector<2x32xf32> to vector<2x32xbf16>
    %c0_806 = arith.constant 0 : index
    %c0_807 = arith.constant 0 : index
    %c0_808 = arith.constant 0 : index
    %1061 = vector.load %arg9[%c0_806, %c0_807, %c0_808] : memref<3x32x32xbf16, #tpu.memory_space<vmem>>, vector<1x32x32xbf16>
    %1062 = vector.shape_cast %1061 : vector<1x32x32xbf16> to vector<32x32xbf16>
    %cst_809 = arith.constant dense<0.000000e+00> : vector<2x32xf32>
    %1063 = tpu.matmul %1059, %1062, %cst_809 {dimension_numbers = #tpu.dot_dimension_numbers<[1], [0], [0], [1], [0, 0, 1, 1], [], []>} : vector<2x32xbf16>, vector<32x32xbf16>, vector<2x32xf32> -> vector<2x32xf32>
    %c0_810 = arith.constant 0 : index
    %c0_811 = arith.constant 0 : index
    %c0_812 = arith.constant 0 : index
    %1064 = vector.load %arg11[%c0_810, %c0_811, %c0_812] : memref<3x2x32xf32, #tpu.memory_space<vmem>>, vector<1x2x32xf32>
    %1065 = vector.shape_cast %1064 : vector<1x2x32xf32> to vector<2x32xf32>
    %1066 = arith.addf %1063, %1065 : vector<2x32xf32>
    %c1_813 = arith.constant 1 : index
    %c0_814 = arith.constant 0 : index
    %c0_815 = arith.constant 0 : index
    %1067 = vector.load %arg9[%c1_813, %c0_814, %c0_815] : memref<3x32x32xbf16, #tpu.memory_space<vmem>>, vector<1x32x32xbf16>
    %1068 = vector.shape_cast %1067 : vector<1x32x32xbf16> to vector<32x32xbf16>
    %cst_816 = arith.constant dense<0.000000e+00> : vector<2x32xf32>
    %1069 = tpu.matmul %1059, %1068, %cst_816 {dimension_numbers = #tpu.dot_dimension_numbers<[1], [0], [0], [1], [0, 0, 1, 1], [], []>} : vector<2x32xbf16>, vector<32x32xbf16>, vector<2x32xf32> -> vector<2x32xf32>
    %c1_817 = arith.constant 1 : index
    %c0_818 = arith.constant 0 : index
    %c0_819 = arith.constant 0 : index
    %1070 = vector.load %arg11[%c1_817, %c0_818, %c0_819] : memref<3x2x32xf32, #tpu.memory_space<vmem>>, vector<1x2x32xf32>
    %1071 = vector.shape_cast %1070 : vector<1x2x32xf32> to vector<2x32xf32>
    %1072 = arith.addf %1069, %1071 : vector<2x32xf32>
    %c2_820 = arith.constant 2 : index
    %c0_821 = arith.constant 0 : index
    %c0_822 = arith.constant 0 : index
    %1073 = vector.load %arg9[%c2_820, %c0_821, %c0_822] : memref<3x32x32xbf16, #tpu.memory_space<vmem>>, vector<1x32x32xbf16>
    %1074 = vector.shape_cast %1073 : vector<1x32x32xbf16> to vector<32x32xbf16>
    %cst_823 = arith.constant dense<0.000000e+00> : vector<2x32xf32>
    %1075 = tpu.matmul %1059, %1074, %cst_823 {dimension_numbers = #tpu.dot_dimension_numbers<[1], [0], [0], [1], [0, 0, 1, 1], [], []>} : vector<2x32xbf16>, vector<32x32xbf16>, vector<2x32xf32> -> vector<2x32xf32>
    %c2_824 = arith.constant 2 : index
    %c0_825 = arith.constant 0 : index
    %c0_826 = arith.constant 0 : index
    %1076 = vector.load %arg11[%c2_824, %c0_825, %c0_826] : memref<3x2x32xf32, #tpu.memory_space<vmem>>, vector<1x2x32xf32>
    %1077 = vector.shape_cast %1076 : vector<1x2x32xf32> to vector<2x32xf32>
    %1078 = arith.addf %1075, %1077 : vector<2x32xf32>
    %c0_827 = arith.constant 0 : index
    %c0_828 = arith.constant 0 : index
    %c0_829 = arith.constant 0 : index
    %1079 = vector.load %arg10[%c0_827, %c0_828, %c0_829] : memref<3x32x32xbf16, #tpu.memory_space<vmem>>, vector<1x32x32xbf16>
    %1080 = vector.shape_cast %1079 : vector<1x32x32xbf16> to vector<32x32xbf16>
    %cst_830 = arith.constant dense<0.000000e+00> : vector<2x32xf32>
    %1081 = tpu.matmul %1060, %1080, %cst_830 {dimension_numbers = #tpu.dot_dimension_numbers<[1], [0], [0], [1], [0, 0, 1, 1], [], []>} : vector<2x32xbf16>, vector<32x32xbf16>, vector<2x32xf32> -> vector<2x32xf32>
    %c1_831 = arith.constant 1 : index
    %c0_832 = arith.constant 0 : index
    %c0_833 = arith.constant 0 : index
    %1082 = vector.load %arg10[%c1_831, %c0_832, %c0_833] : memref<3x32x32xbf16, #tpu.memory_space<vmem>>, vector<1x32x32xbf16>
    %1083 = vector.shape_cast %1082 : vector<1x32x32xbf16> to vector<32x32xbf16>
    %cst_834 = arith.constant dense<0.000000e+00> : vector<2x32xf32>
    %1084 = tpu.matmul %1060, %1083, %cst_834 {dimension_numbers = #tpu.dot_dimension_numbers<[1], [0], [0], [1], [0, 0, 1, 1], [], []>} : vector<2x32xbf16>, vector<32x32xbf16>, vector<2x32xf32> -> vector<2x32xf32>
    %c2_835 = arith.constant 2 : index
    %c0_836 = arith.constant 0 : index
    %c0_837 = arith.constant 0 : index
    %1085 = vector.load %arg10[%c2_835, %c0_836, %c0_837] : memref<3x32x32xbf16, #tpu.memory_space<vmem>>, vector<1x32x32xbf16>
    %1086 = vector.shape_cast %1085 : vector<1x32x32xbf16> to vector<32x32xbf16>
    %cst_838 = arith.constant dense<0.000000e+00> : vector<2x32xf32>
    %1087 = tpu.matmul %1060, %1086, %cst_838 {dimension_numbers = #tpu.dot_dimension_numbers<[1], [0], [0], [1], [0, 0, 1, 1], [], []>} : vector<2x32xbf16>, vector<32x32xbf16>, vector<2x32xf32> -> vector<2x32xf32>
    %1088 = arith.addf %1066, %1081 : vector<2x32xf32>
    %1089 = arith.negf %1088 : vector<2x32xf32>
    %1090 = math.exp %1089 : vector<2x32xf32>
    %cst_839 = arith.constant 1.000000e+00 : f32
    %1091 = vector.broadcast %cst_839 : f32 to vector<2x32xf32>
    %1092 = arith.addf %1091, %1090 : vector<2x32xf32>
    %1093 = arith.divf %1091, %1092 : vector<2x32xf32>
    %1094 = arith.addf %1072, %1084 : vector<2x32xf32>
    %1095 = arith.negf %1094 : vector<2x32xf32>
    %1096 = math.exp %1095 : vector<2x32xf32>
    %cst_840 = arith.constant 1.000000e+00 : f32
    %1097 = vector.broadcast %cst_840 : f32 to vector<2x32xf32>
    %1098 = arith.addf %1097, %1096 : vector<2x32xf32>
    %1099 = arith.divf %1097, %1098 : vector<2x32xf32>
    %c0_841 = arith.constant 0 : index
    %c0_842 = arith.constant 0 : index
    %1100 = vector.load %arg12[%c0_841, %c0_842] : memref<2x32xf32, #tpu.memory_space<vmem>>, vector<2x32xf32>
    %1101 = arith.addf %1087, %1100 : vector<2x32xf32>
    %1102 = arith.mulf %1093, %1101 : vector<2x32xf32>
    %1103 = arith.addf %1078, %1102 : vector<2x32xf32>
    %1104 = math.tanh %1103 : vector<2x32xf32>
    %1105 = arith.subf %1004, %1104 : vector<2x32xf32>
    %1106 = arith.mulf %1099, %1105 : vector<2x32xf32>
    %1107 = arith.addf %1104, %1106 : vector<2x32xf32>
    %1108 = arith.truncf %1004 : vector<2x32xf32> to vector<2x32xbf16>
    %1109 = arith.truncf %1053 : vector<2x32xf32> to vector<2x32xbf16>
    %c0_843 = arith.constant 0 : index
    %c0_844 = arith.constant 0 : index
    %c0_845 = arith.constant 0 : index
    %1110 = vector.load %arg13[%c0_843, %c0_844, %c0_845] : memref<3x32x32xbf16, #tpu.memory_space<vmem>>, vector<1x32x32xbf16>
    %1111 = vector.shape_cast %1110 : vector<1x32x32xbf16> to vector<32x32xbf16>
    %cst_846 = arith.constant dense<0.000000e+00> : vector<2x32xf32>
    %1112 = tpu.matmul %1108, %1111, %cst_846 {dimension_numbers = #tpu.dot_dimension_numbers<[1], [0], [0], [1], [0, 0, 1, 1], [], []>} : vector<2x32xbf16>, vector<32x32xbf16>, vector<2x32xf32> -> vector<2x32xf32>
    %c0_847 = arith.constant 0 : index
    %c0_848 = arith.constant 0 : index
    %c0_849 = arith.constant 0 : index
    %1113 = vector.load %arg15[%c0_847, %c0_848, %c0_849] : memref<3x2x32xf32, #tpu.memory_space<vmem>>, vector<1x2x32xf32>
    %1114 = vector.shape_cast %1113 : vector<1x2x32xf32> to vector<2x32xf32>
    %1115 = arith.addf %1112, %1114 : vector<2x32xf32>
    %c1_850 = arith.constant 1 : index
    %c0_851 = arith.constant 0 : index
    %c0_852 = arith.constant 0 : index
    %1116 = vector.load %arg13[%c1_850, %c0_851, %c0_852] : memref<3x32x32xbf16, #tpu.memory_space<vmem>>, vector<1x32x32xbf16>
    %1117 = vector.shape_cast %1116 : vector<1x32x32xbf16> to vector<32x32xbf16>
    %cst_853 = arith.constant dense<0.000000e+00> : vector<2x32xf32>
    %1118 = tpu.matmul %1108, %1117, %cst_853 {dimension_numbers = #tpu.dot_dimension_numbers<[1], [0], [0], [1], [0, 0, 1, 1], [], []>} : vector<2x32xbf16>, vector<32x32xbf16>, vector<2x32xf32> -> vector<2x32xf32>
    %c1_854 = arith.constant 1 : index
    %c0_855 = arith.constant 0 : index
    %c0_856 = arith.constant 0 : index
    %1119 = vector.load %arg15[%c1_854, %c0_855, %c0_856] : memref<3x2x32xf32, #tpu.memory_space<vmem>>, vector<1x2x32xf32>
    %1120 = vector.shape_cast %1119 : vector<1x2x32xf32> to vector<2x32xf32>
    %1121 = arith.addf %1118, %1120 : vector<2x32xf32>
    %c2_857 = arith.constant 2 : index
    %c0_858 = arith.constant 0 : index
    %c0_859 = arith.constant 0 : index
    %1122 = vector.load %arg13[%c2_857, %c0_858, %c0_859] : memref<3x32x32xbf16, #tpu.memory_space<vmem>>, vector<1x32x32xbf16>
    %1123 = vector.shape_cast %1122 : vector<1x32x32xbf16> to vector<32x32xbf16>
    %cst_860 = arith.constant dense<0.000000e+00> : vector<2x32xf32>
    %1124 = tpu.matmul %1108, %1123, %cst_860 {dimension_numbers = #tpu.dot_dimension_numbers<[1], [0], [0], [1], [0, 0, 1, 1], [], []>} : vector<2x32xbf16>, vector<32x32xbf16>, vector<2x32xf32> -> vector<2x32xf32>
    %c2_861 = arith.constant 2 : index
    %c0_862 = arith.constant 0 : index
    %c0_863 = arith.constant 0 : index
    %1125 = vector.load %arg15[%c2_861, %c0_862, %c0_863] : memref<3x2x32xf32, #tpu.memory_space<vmem>>, vector<1x2x32xf32>
    %1126 = vector.shape_cast %1125 : vector<1x2x32xf32> to vector<2x32xf32>
    %1127 = arith.addf %1124, %1126 : vector<2x32xf32>
    %c0_864 = arith.constant 0 : index
    %c0_865 = arith.constant 0 : index
    %c0_866 = arith.constant 0 : index
    %1128 = vector.load %arg14[%c0_864, %c0_865, %c0_866] : memref<3x32x32xbf16, #tpu.memory_space<vmem>>, vector<1x32x32xbf16>
    %1129 = vector.shape_cast %1128 : vector<1x32x32xbf16> to vector<32x32xbf16>
    %cst_867 = arith.constant dense<0.000000e+00> : vector<2x32xf32>
    %1130 = tpu.matmul %1109, %1129, %cst_867 {dimension_numbers = #tpu.dot_dimension_numbers<[1], [0], [0], [1], [0, 0, 1, 1], [], []>} : vector<2x32xbf16>, vector<32x32xbf16>, vector<2x32xf32> -> vector<2x32xf32>
    %c1_868 = arith.constant 1 : index
    %c0_869 = arith.constant 0 : index
    %c0_870 = arith.constant 0 : index
    %1131 = vector.load %arg14[%c1_868, %c0_869, %c0_870] : memref<3x32x32xbf16, #tpu.memory_space<vmem>>, vector<1x32x32xbf16>
    %1132 = vector.shape_cast %1131 : vector<1x32x32xbf16> to vector<32x32xbf16>
    %cst_871 = arith.constant dense<0.000000e+00> : vector<2x32xf32>
    %1133 = tpu.matmul %1109, %1132, %cst_871 {dimension_numbers = #tpu.dot_dimension_numbers<[1], [0], [0], [1], [0, 0, 1, 1], [], []>} : vector<2x32xbf16>, vector<32x32xbf16>, vector<2x32xf32> -> vector<2x32xf32>
    %c2_872 = arith.constant 2 : index
    %c0_873 = arith.constant 0 : index
    %c0_874 = arith.constant 0 : index
    %1134 = vector.load %arg14[%c2_872, %c0_873, %c0_874] : memref<3x32x32xbf16, #tpu.memory_space<vmem>>, vector<1x32x32xbf16>
    %1135 = vector.shape_cast %1134 : vector<1x32x32xbf16> to vector<32x32xbf16>
    %cst_875 = arith.constant dense<0.000000e+00> : vector<2x32xf32>
    %1136 = tpu.matmul %1109, %1135, %cst_875 {dimension_numbers = #tpu.dot_dimension_numbers<[1], [0], [0], [1], [0, 0, 1, 1], [], []>} : vector<2x32xbf16>, vector<32x32xbf16>, vector<2x32xf32> -> vector<2x32xf32>
    %1137 = arith.addf %1115, %1130 : vector<2x32xf32>
    %1138 = arith.negf %1137 : vector<2x32xf32>
    %1139 = math.exp %1138 : vector<2x32xf32>
    %cst_876 = arith.constant 1.000000e+00 : f32
    %1140 = vector.broadcast %cst_876 : f32 to vector<2x32xf32>
    %1141 = arith.addf %1140, %1139 : vector<2x32xf32>
    %1142 = arith.divf %1140, %1141 : vector<2x32xf32>
    %1143 = arith.addf %1121, %1133 : vector<2x32xf32>
    %1144 = arith.negf %1143 : vector<2x32xf32>
    %1145 = math.exp %1144 : vector<2x32xf32>
    %cst_877 = arith.constant 1.000000e+00 : f32
    %1146 = vector.broadcast %cst_877 : f32 to vector<2x32xf32>
    %1147 = arith.addf %1146, %1145 : vector<2x32xf32>
    %1148 = arith.divf %1146, %1147 : vector<2x32xf32>
    %c0_878 = arith.constant 0 : index
    %c0_879 = arith.constant 0 : index
    %1149 = vector.load %arg16[%c0_878, %c0_879] : memref<2x32xf32, #tpu.memory_space<vmem>>, vector<2x32xf32>
    %1150 = arith.addf %1136, %1149 : vector<2x32xf32>
    %1151 = arith.mulf %1142, %1150 : vector<2x32xf32>
    %1152 = arith.addf %1127, %1151 : vector<2x32xf32>
    %1153 = math.tanh %1152 : vector<2x32xf32>
    %1154 = arith.subf %1053, %1153 : vector<2x32xf32>
    %1155 = arith.mulf %1148, %1154 : vector<2x32xf32>
    %1156 = arith.addf %1153, %1155 : vector<2x32xf32>
    %cst_880 = arith.constant dense<0.000000e+00> : vector<2x128xf32>
    %1157 = tpu.matmul %1156, %802, %cst_880 {dimension_numbers = #tpu.dot_dimension_numbers<[1], [0], [0], [1], [0, 0, 1, 1], [], []>} : vector<2x32xf32>, vector<32x128xf32>, vector<2x128xf32> -> vector<2x128xf32>
    %1158 = arith.addf %1157, %803 : vector<2x128xf32>
    %c2_881 = arith.constant 2 : index
    %c0_882 = arith.constant 0 : index
    %c0_883 = arith.constant 0 : index
    %1159 = vector.load %arg19[%c2_881, %c0_882, %c0_883] : memref<8x2x128xf32, #tpu.memory_space<vmem>>, vector<1x2x128xf32>
    %1160 = vector.shape_cast %1159 : vector<1x2x128xf32> to vector<2x128xf32>
    %1161 = vector.shape_cast %1158 : vector<2x128xf32> to vector<1x2x128xf32>
    tpu.vector_store %arg19[%c2_881, %c0_882, %c0_883], %1161 {strides = array<i32>} : memref<8x2x128xf32, #tpu.memory_space<vmem>>, vector<1x2x128xf32>,
    %1162 = arith.truncf %552 : vector<2x32xf32> to vector<2x32xbf16>
    %1163 = arith.truncf %1107 : vector<2x32xf32> to vector<2x32xbf16>
    %c0_884 = arith.constant 0 : index
    %c0_885 = arith.constant 0 : index
    %c0_886 = arith.constant 0 : index
    %1164 = vector.load %arg9[%c0_884, %c0_885, %c0_886] : memref<3x32x32xbf16, #tpu.memory_space<vmem>>, vector<1x32x32xbf16>
    %1165 = vector.shape_cast %1164 : vector<1x32x32xbf16> to vector<32x32xbf16>
    %cst_887 = arith.constant dense<0.000000e+00> : vector<2x32xf32>
    %1166 = tpu.matmul %1162, %1165, %cst_887 {dimension_numbers = #tpu.dot_dimension_numbers<[1], [0], [0], [1], [0, 0, 1, 1], [], []>} : vector<2x32xbf16>, vector<32x32xbf16>, vector<2x32xf32> -> vector<2x32xf32>
    %c0_888 = arith.constant 0 : index
    %c0_889 = arith.constant 0 : index
    %c0_890 = arith.constant 0 : index
    %1167 = vector.load %arg11[%c0_888, %c0_889, %c0_890] : memref<3x2x32xf32, #tpu.memory_space<vmem>>, vector<1x2x32xf32>
    %1168 = vector.shape_cast %1167 : vector<1x2x32xf32> to vector<2x32xf32>
    %1169 = arith.addf %1166, %1168 : vector<2x32xf32>
    %c1_891 = arith.constant 1 : index
    %c0_892 = arith.constant 0 : index
    %c0_893 = arith.constant 0 : index
    %1170 = vector.load %arg9[%c1_891, %c0_892, %c0_893] : memref<3x32x32xbf16, #tpu.memory_space<vmem>>, vector<1x32x32xbf16>
    %1171 = vector.shape_cast %1170 : vector<1x32x32xbf16> to vector<32x32xbf16>
    %cst_894 = arith.constant dense<0.000000e+00> : vector<2x32xf32>
    %1172 = tpu.matmul %1162, %1171, %cst_894 {dimension_numbers = #tpu.dot_dimension_numbers<[1], [0], [0], [1], [0, 0, 1, 1], [], []>} : vector<2x32xbf16>, vector<32x32xbf16>, vector<2x32xf32> -> vector<2x32xf32>
    %c1_895 = arith.constant 1 : index
    %c0_896 = arith.constant 0 : index
    %c0_897 = arith.constant 0 : index
    %1173 = vector.load %arg11[%c1_895, %c0_896, %c0_897] : memref<3x2x32xf32, #tpu.memory_space<vmem>>, vector<1x2x32xf32>
    %1174 = vector.shape_cast %1173 : vector<1x2x32xf32> to vector<2x32xf32>
    %1175 = arith.addf %1172, %1174 : vector<2x32xf32>
    %c2_898 = arith.constant 2 : index
    %c0_899 = arith.constant 0 : index
    %c0_900 = arith.constant 0 : index
    %1176 = vector.load %arg9[%c2_898, %c0_899, %c0_900] : memref<3x32x32xbf16, #tpu.memory_space<vmem>>, vector<1x32x32xbf16>
    %1177 = vector.shape_cast %1176 : vector<1x32x32xbf16> to vector<32x32xbf16>
    %cst_901 = arith.constant dense<0.000000e+00> : vector<2x32xf32>
    %1178 = tpu.matmul %1162, %1177, %cst_901 {dimension_numbers = #tpu.dot_dimension_numbers<[1], [0], [0], [1], [0, 0, 1, 1], [], []>} : vector<2x32xbf16>, vector<32x32xbf16>, vector<2x32xf32> -> vector<2x32xf32>
    %c2_902 = arith.constant 2 : index
    %c0_903 = arith.constant 0 : index
    %c0_904 = arith.constant 0 : index
    %1179 = vector.load %arg11[%c2_902, %c0_903, %c0_904] : memref<3x2x32xf32, #tpu.memory_space<vmem>>, vector<1x2x32xf32>
    %1180 = vector.shape_cast %1179 : vector<1x2x32xf32> to vector<2x32xf32>
    %1181 = arith.addf %1178, %1180 : vector<2x32xf32>
    %c0_905 = arith.constant 0 : index
    %c0_906 = arith.constant 0 : index
    %c0_907 = arith.constant 0 : index
    %1182 = vector.load %arg10[%c0_905, %c0_906, %c0_907] : memref<3x32x32xbf16, #tpu.memory_space<vmem>>, vector<1x32x32xbf16>
    %1183 = vector.shape_cast %1182 : vector<1x32x32xbf16> to vector<32x32xbf16>
    %cst_908 = arith.constant dense<0.000000e+00> : vector<2x32xf32>
    %1184 = tpu.matmul %1163, %1183, %cst_908 {dimension_numbers = #tpu.dot_dimension_numbers<[1], [0], [0], [1], [0, 0, 1, 1], [], []>} : vector<2x32xbf16>, vector<32x32xbf16>, vector<2x32xf32> -> vector<2x32xf32>
    %c1_909 = arith.constant 1 : index
    %c0_910 = arith.constant 0 : index
    %c0_911 = arith.constant 0 : index
    %1185 = vector.load %arg10[%c1_909, %c0_910, %c0_911] : memref<3x32x32xbf16, #tpu.memory_space<vmem>>, vector<1x32x32xbf16>
    %1186 = vector.shape_cast %1185 : vector<1x32x32xbf16> to vector<32x32xbf16>
    %cst_912 = arith.constant dense<0.000000e+00> : vector<2x32xf32>
    %1187 = tpu.matmul %1163, %1186, %cst_912 {dimension_numbers = #tpu.dot_dimension_numbers<[1], [0], [0], [1], [0, 0, 1, 1], [], []>} : vector<2x32xbf16>, vector<32x32xbf16>, vector<2x32xf32> -> vector<2x32xf32>
    %c2_913 = arith.constant 2 : index
    %c0_914 = arith.constant 0 : index
    %c0_915 = arith.constant 0 : index
    %1188 = vector.load %arg10[%c2_913, %c0_914, %c0_915] : memref<3x32x32xbf16, #tpu.memory_space<vmem>>, vector<1x32x32xbf16>
    %1189 = vector.shape_cast %1188 : vector<1x32x32xbf16> to vector<32x32xbf16>
    %cst_916 = arith.constant dense<0.000000e+00> : vector<2x32xf32>
    %1190 = tpu.matmul %1163, %1189, %cst_916 {dimension_numbers = #tpu.dot_dimension_numbers<[1], [0], [0], [1], [0, 0, 1, 1], [], []>} : vector<2x32xbf16>, vector<32x32xbf16>, vector<2x32xf32> -> vector<2x32xf32>
    %1191 = arith.addf %1169, %1184 : vector<2x32xf32>
    %1192 = arith.negf %1191 : vector<2x32xf32>
    %1193 = math.exp %1192 : vector<2x32xf32>
    %cst_917 = arith.constant 1.000000e+00 : f32
    %1194 = vector.broadcast %cst_917 : f32 to vector<2x32xf32>
    %1195 = arith.addf %1194, %1193 : vector<2x32xf32>
    %1196 = arith.divf %1194, %1195 : vector<2x32xf32>
    %1197 = arith.addf %1175, %1187 : vector<2x32xf32>
    %1198 = arith.negf %1197 : vector<2x32xf32>
    %1199 = math.exp %1198 : vector<2x32xf32>
    %cst_918 = arith.constant 1.000000e+00 : f32
    %1200 = vector.broadcast %cst_918 : f32 to vector<2x32xf32>
    %1201 = arith.addf %1200, %1199 : vector<2x32xf32>
    %1202 = arith.divf %1200, %1201 : vector<2x32xf32>
    %c0_919 = arith.constant 0 : index
    %c0_920 = arith.constant 0 : index
    %1203 = vector.load %arg12[%c0_919, %c0_920] : memref<2x32xf32, #tpu.memory_space<vmem>>, vector<2x32xf32>
    %1204 = arith.addf %1190, %1203 : vector<2x32xf32>
    %1205 = arith.mulf %1196, %1204 : vector<2x32xf32>
    %1206 = arith.addf %1181, %1205 : vector<2x32xf32>
    %1207 = math.tanh %1206 : vector<2x32xf32>
    %1208 = arith.subf %1107, %1207 : vector<2x32xf32>
    %1209 = arith.mulf %1202, %1208 : vector<2x32xf32>
    %1210 = arith.addf %1207, %1209 : vector<2x32xf32>
    %1211 = arith.truncf %1107 : vector<2x32xf32> to vector<2x32xbf16>
    %1212 = arith.truncf %1156 : vector<2x32xf32> to vector<2x32xbf16>
    %c0_921 = arith.constant 0 : index
    %c0_922 = arith.constant 0 : index
    %c0_923 = arith.constant 0 : index
    %1213 = vector.load %arg13[%c0_921, %c0_922, %c0_923] : memref<3x32x32xbf16, #tpu.memory_space<vmem>>, vector<1x32x32xbf16>
    %1214 = vector.shape_cast %1213 : vector<1x32x32xbf16> to vector<32x32xbf16>
    %cst_924 = arith.constant dense<0.000000e+00> : vector<2x32xf32>
    %1215 = tpu.matmul %1211, %1214, %cst_924 {dimension_numbers = #tpu.dot_dimension_numbers<[1], [0], [0], [1], [0, 0, 1, 1], [], []>} : vector<2x32xbf16>, vector<32x32xbf16>, vector<2x32xf32> -> vector<2x32xf32>
    %c0_925 = arith.constant 0 : index
    %c0_926 = arith.constant 0 : index
    %c0_927 = arith.constant 0 : index
    %1216 = vector.load %arg15[%c0_925, %c0_926, %c0_927] : memref<3x2x32xf32, #tpu.memory_space<vmem>>, vector<1x2x32xf32>
    %1217 = vector.shape_cast %1216 : vector<1x2x32xf32> to vector<2x32xf32>
    %1218 = arith.addf %1215, %1217 : vector<2x32xf32>
    %c1_928 = arith.constant 1 : index
    %c0_929 = arith.constant 0 : index
    %c0_930 = arith.constant 0 : index
    %1219 = vector.load %arg13[%c1_928, %c0_929, %c0_930] : memref<3x32x32xbf16, #tpu.memory_space<vmem>>, vector<1x32x32xbf16>
    %1220 = vector.shape_cast %1219 : vector<1x32x32xbf16> to vector<32x32xbf16>
    %cst_931 = arith.constant dense<0.000000e+00> : vector<2x32xf32>
    %1221 = tpu.matmul %1211, %1220, %cst_931 {dimension_numbers = #tpu.dot_dimension_numbers<[1], [0], [0], [1], [0, 0, 1, 1], [], []>} : vector<2x32xbf16>, vector<32x32xbf16>, vector<2x32xf32> -> vector<2x32xf32>
    %c1_932 = arith.constant 1 : index
    %c0_933 = arith.constant 0 : index
    %c0_934 = arith.constant 0 : index
    %1222 = vector.load %arg15[%c1_932, %c0_933, %c0_934] : memref<3x2x32xf32, #tpu.memory_space<vmem>>, vector<1x2x32xf32>
    %1223 = vector.shape_cast %1222 : vector<1x2x32xf32> to vector<2x32xf32>
    %1224 = arith.addf %1221, %1223 : vector<2x32xf32>
    %c2_935 = arith.constant 2 : index
    %c0_936 = arith.constant 0 : index
    %c0_937 = arith.constant 0 : index
    %1225 = vector.load %arg13[%c2_935, %c0_936, %c0_937] : memref<3x32x32xbf16, #tpu.memory_space<vmem>>, vector<1x32x32xbf16>
    %1226 = vector.shape_cast %1225 : vector<1x32x32xbf16> to vector<32x32xbf16>
    %cst_938 = arith.constant dense<0.000000e+00> : vector<2x32xf32>
    %1227 = tpu.matmul %1211, %1226, %cst_938 {dimension_numbers = #tpu.dot_dimension_numbers<[1], [0], [0], [1], [0, 0, 1, 1], [], []>} : vector<2x32xbf16>, vector<32x32xbf16>, vector<2x32xf32> -> vector<2x32xf32>
    %c2_939 = arith.constant 2 : index
    %c0_940 = arith.constant 0 : index
    %c0_941 = arith.constant 0 : index
    %1228 = vector.load %arg15[%c2_939, %c0_940, %c0_941] : memref<3x2x32xf32, #tpu.memory_space<vmem>>, vector<1x2x32xf32>
    %1229 = vector.shape_cast %1228 : vector<1x2x32xf32> to vector<2x32xf32>
    %1230 = arith.addf %1227, %1229 : vector<2x32xf32>
    %c0_942 = arith.constant 0 : index
    %c0_943 = arith.constant 0 : index
    %c0_944 = arith.constant 0 : index
    %1231 = vector.load %arg14[%c0_942, %c0_943, %c0_944] : memref<3x32x32xbf16, #tpu.memory_space<vmem>>, vector<1x32x32xbf16>
    %1232 = vector.shape_cast %1231 : vector<1x32x32xbf16> to vector<32x32xbf16>
    %cst_945 = arith.constant dense<0.000000e+00> : vector<2x32xf32>
    %1233 = tpu.matmul %1212, %1232, %cst_945 {dimension_numbers = #tpu.dot_dimension_numbers<[1], [0], [0], [1], [0, 0, 1, 1], [], []>} : vector<2x32xbf16>, vector<32x32xbf16>, vector<2x32xf32> -> vector<2x32xf32>
    %c1_946 = arith.constant 1 : index
    %c0_947 = arith.constant 0 : index
    %c0_948 = arith.constant 0 : index
    %1234 = vector.load %arg14[%c1_946, %c0_947, %c0_948] : memref<3x32x32xbf16, #tpu.memory_space<vmem>>, vector<1x32x32xbf16>
    %1235 = vector.shape_cast %1234 : vector<1x32x32xbf16> to vector<32x32xbf16>
    %cst_949 = arith.constant dense<0.000000e+00> : vector<2x32xf32>
    %1236 = tpu.matmul %1212, %1235, %cst_949 {dimension_numbers = #tpu.dot_dimension_numbers<[1], [0], [0], [1], [0, 0, 1, 1], [], []>} : vector<2x32xbf16>, vector<32x32xbf16>, vector<2x32xf32> -> vector<2x32xf32>
    %c2_950 = arith.constant 2 : index
    %c0_951 = arith.constant 0 : index
    %c0_952 = arith.constant 0 : index
    %1237 = vector.load %arg14[%c2_950, %c0_951, %c0_952] : memref<3x32x32xbf16, #tpu.memory_space<vmem>>, vector<1x32x32xbf16>
    %1238 = vector.shape_cast %1237 : vector<1x32x32xbf16> to vector<32x32xbf16>
    %cst_953 = arith.constant dense<0.000000e+00> : vector<2x32xf32>
    %1239 = tpu.matmul %1212, %1238, %cst_953 {dimension_numbers = #tpu.dot_dimension_numbers<[1], [0], [0], [1], [0, 0, 1, 1], [], []>} : vector<2x32xbf16>, vector<32x32xbf16>, vector<2x32xf32> -> vector<2x32xf32>
    %1240 = arith.addf %1218, %1233 : vector<2x32xf32>
    %1241 = arith.negf %1240 : vector<2x32xf32>
    %1242 = math.exp %1241 : vector<2x32xf32>
    %cst_954 = arith.constant 1.000000e+00 : f32
    %1243 = vector.broadcast %cst_954 : f32 to vector<2x32xf32>
    %1244 = arith.addf %1243, %1242 : vector<2x32xf32>
    %1245 = arith.divf %1243, %1244 : vector<2x32xf32>
    %1246 = arith.addf %1224, %1236 : vector<2x32xf32>
    %1247 = arith.negf %1246 : vector<2x32xf32>
    %1248 = math.exp %1247 : vector<2x32xf32>
    %cst_955 = arith.constant 1.000000e+00 : f32
    %1249 = vector.broadcast %cst_955 : f32 to vector<2x32xf32>
    %1250 = arith.addf %1249, %1248 : vector<2x32xf32>
    %1251 = arith.divf %1249, %1250 : vector<2x32xf32>
    %c0_956 = arith.constant 0 : index
    %c0_957 = arith.constant 0 : index
    %1252 = vector.load %arg16[%c0_956, %c0_957] : memref<2x32xf32, #tpu.memory_space<vmem>>, vector<2x32xf32>
    %1253 = arith.addf %1239, %1252 : vector<2x32xf32>
    %1254 = arith.mulf %1245, %1253 : vector<2x32xf32>
    %1255 = arith.addf %1230, %1254 : vector<2x32xf32>
    %1256 = math.tanh %1255 : vector<2x32xf32>
    %1257 = arith.subf %1156, %1256 : vector<2x32xf32>
    %1258 = arith.mulf %1251, %1257 : vector<2x32xf32>
    %1259 = arith.addf %1256, %1258 : vector<2x32xf32>
    %cst_958 = arith.constant dense<0.000000e+00> : vector<2x128xf32>
    %1260 = tpu.matmul %1259, %802, %cst_958 {dimension_numbers = #tpu.dot_dimension_numbers<[1], [0], [0], [1], [0, 0, 1, 1], [], []>} : vector<2x32xf32>, vector<32x128xf32>, vector<2x128xf32> -> vector<2x128xf32>
    %1261 = arith.addf %1260, %803 : vector<2x128xf32>
    %c3_959 = arith.constant 3 : index
    %c0_960 = arith.constant 0 : index
    %c0_961 = arith.constant 0 : index
    %1262 = vector.load %arg19[%c3_959, %c0_960, %c0_961] : memref<8x2x128xf32, #tpu.memory_space<vmem>>, vector<1x2x128xf32>
    %1263 = vector.shape_cast %1262 : vector<1x2x128xf32> to vector<2x128xf32>
    %1264 = vector.shape_cast %1261 : vector<2x128xf32> to vector<1x2x128xf32>
    tpu.vector_store %arg19[%c3_959, %c0_960, %c0_961], %1264 {strides = array<i32>} : memref<8x2x128xf32, #tpu.memory_space<vmem>>, vector<1x2x128xf32>,
    %1265 = arith.truncf %652 : vector<2x32xf32> to vector<2x32xbf16>
    %1266 = arith.truncf %1210 : vector<2x32xf32> to vector<2x32xbf16>
    %c0_962 = arith.constant 0 : index
    %c0_963 = arith.constant 0 : index
    %c0_964 = arith.constant 0 : index
    %1267 = vector.load %arg9[%c0_962, %c0_963, %c0_964] : memref<3x32x32xbf16, #tpu.memory_space<vmem>>, vector<1x32x32xbf16>
    %1268 = vector.shape_cast %1267 : vector<1x32x32xbf16> to vector<32x32xbf16>
    %cst_965 = arith.constant dense<0.000000e+00> : vector<2x32xf32>
    %1269 = tpu.matmul %1265, %1268, %cst_965 {dimension_numbers = #tpu.dot_dimension_numbers<[1], [0], [0], [1], [0, 0, 1, 1], [], []>} : vector<2x32xbf16>, vector<32x32xbf16>, vector<2x32xf32> -> vector<2x32xf32>
    %c0_966 = arith.constant 0 : index
    %c0_967 = arith.constant 0 : index
    %c0_968 = arith.constant 0 : index
    %1270 = vector.load %arg11[%c0_966, %c0_967, %c0_968] : memref<3x2x32xf32, #tpu.memory_space<vmem>>, vector<1x2x32xf32>
    %1271 = vector.shape_cast %1270 : vector<1x2x32xf32> to vector<2x32xf32>
    %1272 = arith.addf %1269, %1271 : vector<2x32xf32>
    %c1_969 = arith.constant 1 : index
    %c0_970 = arith.constant 0 : index
    %c0_971 = arith.constant 0 : index
    %1273 = vector.load %arg9[%c1_969, %c0_970, %c0_971] : memref<3x32x32xbf16, #tpu.memory_space<vmem>>, vector<1x32x32xbf16>
    %1274 = vector.shape_cast %1273 : vector<1x32x32xbf16> to vector<32x32xbf16>
    %cst_972 = arith.constant dense<0.000000e+00> : vector<2x32xf32>
    %1275 = tpu.matmul %1265, %1274, %cst_972 {dimension_numbers = #tpu.dot_dimension_numbers<[1], [0], [0], [1], [0, 0, 1, 1], [], []>} : vector<2x32xbf16>, vector<32x32xbf16>, vector<2x32xf32> -> vector<2x32xf32>
    %c1_973 = arith.constant 1 : index
    %c0_974 = arith.constant 0 : index
    %c0_975 = arith.constant 0 : index
    %1276 = vector.load %arg11[%c1_973, %c0_974, %c0_975] : memref<3x2x32xf32, #tpu.memory_space<vmem>>, vector<1x2x32xf32>
    %1277 = vector.shape_cast %1276 : vector<1x2x32xf32> to vector<2x32xf32>
    %1278 = arith.addf %1275, %1277 : vector<2x32xf32>
    %c2_976 = arith.constant 2 : index
    %c0_977 = arith.constant 0 : index
    %c0_978 = arith.constant 0 : index
    %1279 = vector.load %arg9[%c2_976, %c0_977, %c0_978] : memref<3x32x32xbf16, #tpu.memory_space<vmem>>, vector<1x32x32xbf16>
    %1280 = vector.shape_cast %1279 : vector<1x32x32xbf16> to vector<32x32xbf16>
    %cst_979 = arith.constant dense<0.000000e+00> : vector<2x32xf32>
    %1281 = tpu.matmul %1265, %1280, %cst_979 {dimension_numbers = #tpu.dot_dimension_numbers<[1], [0], [0], [1], [0, 0, 1, 1], [], []>} : vector<2x32xbf16>, vector<32x32xbf16>, vector<2x32xf32> -> vector<2x32xf32>
    %c2_980 = arith.constant 2 : index
    %c0_981 = arith.constant 0 : index
    %c0_982 = arith.constant 0 : index
    %1282 = vector.load %arg11[%c2_980, %c0_981, %c0_982] : memref<3x2x32xf32, #tpu.memory_space<vmem>>, vector<1x2x32xf32>
    %1283 = vector.shape_cast %1282 : vector<1x2x32xf32> to vector<2x32xf32>
    %1284 = arith.addf %1281, %1283 : vector<2x32xf32>
    %c0_983 = arith.constant 0 : index
    %c0_984 = arith.constant 0 : index
    %c0_985 = arith.constant 0 : index
    %1285 = vector.load %arg10[%c0_983, %c0_984, %c0_985] : memref<3x32x32xbf16, #tpu.memory_space<vmem>>, vector<1x32x32xbf16>
    %1286 = vector.shape_cast %1285 : vector<1x32x32xbf16> to vector<32x32xbf16>
    %cst_986 = arith.constant dense<0.000000e+00> : vector<2x32xf32>
    %1287 = tpu.matmul %1266, %1286, %cst_986 {dimension_numbers = #tpu.dot_dimension_numbers<[1], [0], [0], [1], [0, 0, 1, 1], [], []>} : vector<2x32xbf16>, vector<32x32xbf16>, vector<2x32xf32> -> vector<2x32xf32>
    %c1_987 = arith.constant 1 : index
    %c0_988 = arith.constant 0 : index
    %c0_989 = arith.constant 0 : index
    %1288 = vector.load %arg10[%c1_987, %c0_988, %c0_989] : memref<3x32x32xbf16, #tpu.memory_space<vmem>>, vector<1x32x32xbf16>
    %1289 = vector.shape_cast %1288 : vector<1x32x32xbf16> to vector<32x32xbf16>
    %cst_990 = arith.constant dense<0.000000e+00> : vector<2x32xf32>
    %1290 = tpu.matmul %1266, %1289, %cst_990 {dimension_numbers = #tpu.dot_dimension_numbers<[1], [0], [0], [1], [0, 0, 1, 1], [], []>} : vector<2x32xbf16>, vector<32x32xbf16>, vector<2x32xf32> -> vector<2x32xf32>
    %c2_991 = arith.constant 2 : index
    %c0_992 = arith.constant 0 : index
    %c0_993 = arith.constant 0 : index
    %1291 = vector.load %arg10[%c2_991, %c0_992, %c0_993] : memref<3x32x32xbf16, #tpu.memory_space<vmem>>, vector<1x32x32xbf16>
    %1292 = vector.shape_cast %1291 : vector<1x32x32xbf16> to vector<32x32xbf16>
    %cst_994 = arith.constant dense<0.000000e+00> : vector<2x32xf32>
    %1293 = tpu.matmul %1266, %1292, %cst_994 {dimension_numbers = #tpu.dot_dimension_numbers<[1], [0], [0], [1], [0, 0, 1, 1], [], []>} : vector<2x32xbf16>, vector<32x32xbf16>, vector<2x32xf32> -> vector<2x32xf32>
    %1294 = arith.addf %1272, %1287 : vector<2x32xf32>
    %1295 = arith.negf %1294 : vector<2x32xf32>
    %1296 = math.exp %1295 : vector<2x32xf32>
    %cst_995 = arith.constant 1.000000e+00 : f32
    %1297 = vector.broadcast %cst_995 : f32 to vector<2x32xf32>
    %1298 = arith.addf %1297, %1296 : vector<2x32xf32>
    %1299 = arith.divf %1297, %1298 : vector<2x32xf32>
    %1300 = arith.addf %1278, %1290 : vector<2x32xf32>
    %1301 = arith.negf %1300 : vector<2x32xf32>
    %1302 = math.exp %1301 : vector<2x32xf32>
    %cst_996 = arith.constant 1.000000e+00 : f32
    %1303 = vector.broadcast %cst_996 : f32 to vector<2x32xf32>
    %1304 = arith.addf %1303, %1302 : vector<2x32xf32>
    %1305 = arith.divf %1303, %1304 : vector<2x32xf32>
    %c0_997 = arith.constant 0 : index
    %c0_998 = arith.constant 0 : index
    %1306 = vector.load %arg12[%c0_997, %c0_998] : memref<2x32xf32, #tpu.memory_space<vmem>>, vector<2x32xf32>
    %1307 = arith.addf %1293, %1306 : vector<2x32xf32>
    %1308 = arith.mulf %1299, %1307 : vector<2x32xf32>
    %1309 = arith.addf %1284, %1308 : vector<2x32xf32>
    %1310 = math.tanh %1309 : vector<2x32xf32>
    %1311 = arith.subf %1210, %1310 : vector<2x32xf32>
    %1312 = arith.mulf %1305, %1311 : vector<2x32xf32>
    %1313 = arith.addf %1310, %1312 : vector<2x32xf32>
    %1314 = arith.truncf %1210 : vector<2x32xf32> to vector<2x32xbf16>
    %1315 = arith.truncf %1259 : vector<2x32xf32> to vector<2x32xbf16>
    %c0_999 = arith.constant 0 : index
    %c0_1000 = arith.constant 0 : index
    %c0_1001 = arith.constant 0 : index
    %1316 = vector.load %arg13[%c0_999, %c0_1000, %c0_1001] : memref<3x32x32xbf16, #tpu.memory_space<vmem>>, vector<1x32x32xbf16>
    %1317 = vector.shape_cast %1316 : vector<1x32x32xbf16> to vector<32x32xbf16>
    %cst_1002 = arith.constant dense<0.000000e+00> : vector<2x32xf32>
    %1318 = tpu.matmul %1314, %1317, %cst_1002 {dimension_numbers = #tpu.dot_dimension_numbers<[1], [0], [0], [1], [0, 0, 1, 1], [], []>} : vector<2x32xbf16>, vector<32x32xbf16>, vector<2x32xf32> -> vector<2x32xf32>
    %c0_1003 = arith.constant 0 : index
    %c0_1004 = arith.constant 0 : index
    %c0_1005 = arith.constant 0 : index
    %1319 = vector.load %arg15[%c0_1003, %c0_1004, %c0_1005] : memref<3x2x32xf32, #tpu.memory_space<vmem>>, vector<1x2x32xf32>
    %1320 = vector.shape_cast %1319 : vector<1x2x32xf32> to vector<2x32xf32>
    %1321 = arith.addf %1318, %1320 : vector<2x32xf32>
    %c1_1006 = arith.constant 1 : index
    %c0_1007 = arith.constant 0 : index
    %c0_1008 = arith.constant 0 : index
    %1322 = vector.load %arg13[%c1_1006, %c0_1007, %c0_1008] : memref<3x32x32xbf16, #tpu.memory_space<vmem>>, vector<1x32x32xbf16>
    %1323 = vector.shape_cast %1322 : vector<1x32x32xbf16> to vector<32x32xbf16>
    %cst_1009 = arith.constant dense<0.000000e+00> : vector<2x32xf32>
    %1324 = tpu.matmul %1314, %1323, %cst_1009 {dimension_numbers = #tpu.dot_dimension_numbers<[1], [0], [0], [1], [0, 0, 1, 1], [], []>} : vector<2x32xbf16>, vector<32x32xbf16>, vector<2x32xf32> -> vector<2x32xf32>
    %c1_1010 = arith.constant 1 : index
    %c0_1011 = arith.constant 0 : index
    %c0_1012 = arith.constant 0 : index
    %1325 = vector.load %arg15[%c1_1010, %c0_1011, %c0_1012] : memref<3x2x32xf32, #tpu.memory_space<vmem>>, vector<1x2x32xf32>
    %1326 = vector.shape_cast %1325 : vector<1x2x32xf32> to vector<2x32xf32>
    %1327 = arith.addf %1324, %1326 : vector<2x32xf32>
    %c2_1013 = arith.constant 2 : index
    %c0_1014 = arith.constant 0 : index
    %c0_1015 = arith.constant 0 : index
    %1328 = vector.load %arg13[%c2_1013, %c0_1014, %c0_1015] : memref<3x32x32xbf16, #tpu.memory_space<vmem>>, vector<1x32x32xbf16>
    %1329 = vector.shape_cast %1328 : vector<1x32x32xbf16> to vector<32x32xbf16>
    %cst_1016 = arith.constant dense<0.000000e+00> : vector<2x32xf32>
    %1330 = tpu.matmul %1314, %1329, %cst_1016 {dimension_numbers = #tpu.dot_dimension_numbers<[1], [0], [0], [1], [0, 0, 1, 1], [], []>} : vector<2x32xbf16>, vector<32x32xbf16>, vector<2x32xf32> -> vector<2x32xf32>
    %c2_1017 = arith.constant 2 : index
    %c0_1018 = arith.constant 0 : index
    %c0_1019 = arith.constant 0 : index
    %1331 = vector.load %arg15[%c2_1017, %c0_1018, %c0_1019] : memref<3x2x32xf32, #tpu.memory_space<vmem>>, vector<1x2x32xf32>
    %1332 = vector.shape_cast %1331 : vector<1x2x32xf32> to vector<2x32xf32>
    %1333 = arith.addf %1330, %1332 : vector<2x32xf32>
    %c0_1020 = arith.constant 0 : index
    %c0_1021 = arith.constant 0 : index
    %c0_1022 = arith.constant 0 : index
    %1334 = vector.load %arg14[%c0_1020, %c0_1021, %c0_1022] : memref<3x32x32xbf16, #tpu.memory_space<vmem>>, vector<1x32x32xbf16>
    %1335 = vector.shape_cast %1334 : vector<1x32x32xbf16> to vector<32x32xbf16>
    %cst_1023 = arith.constant dense<0.000000e+00> : vector<2x32xf32>
    %1336 = tpu.matmul %1315, %1335, %cst_1023 {dimension_numbers = #tpu.dot_dimension_numbers<[1], [0], [0], [1], [0, 0, 1, 1], [], []>} : vector<2x32xbf16>, vector<32x32xbf16>, vector<2x32xf32> -> vector<2x32xf32>
    %c1_1024 = arith.constant 1 : index
    %c0_1025 = arith.constant 0 : index
    %c0_1026 = arith.constant 0 : index
    %1337 = vector.load %arg14[%c1_1024, %c0_1025, %c0_1026] : memref<3x32x32xbf16, #tpu.memory_space<vmem>>, vector<1x32x32xbf16>
    %1338 = vector.shape_cast %1337 : vector<1x32x32xbf16> to vector<32x32xbf16>
    %cst_1027 = arith.constant dense<0.000000e+00> : vector<2x32xf32>
    %1339 = tpu.matmul %1315, %1338, %cst_1027 {dimension_numbers = #tpu.dot_dimension_numbers<[1], [0], [0], [1], [0, 0, 1, 1], [], []>} : vector<2x32xbf16>, vector<32x32xbf16>, vector<2x32xf32> -> vector<2x32xf32>
    %c2_1028 = arith.constant 2 : index
    %c0_1029 = arith.constant 0 : index
    %c0_1030 = arith.constant 0 : index
    %1340 = vector.load %arg14[%c2_1028, %c0_1029, %c0_1030] : memref<3x32x32xbf16, #tpu.memory_space<vmem>>, vector<1x32x32xbf16>
    %1341 = vector.shape_cast %1340 : vector<1x32x32xbf16> to vector<32x32xbf16>
    %cst_1031 = arith.constant dense<0.000000e+00> : vector<2x32xf32>
    %1342 = tpu.matmul %1315, %1341, %cst_1031 {dimension_numbers = #tpu.dot_dimension_numbers<[1], [0], [0], [1], [0, 0, 1, 1], [], []>} : vector<2x32xbf16>, vector<32x32xbf16>, vector<2x32xf32> -> vector<2x32xf32>
    %1343 = arith.addf %1321, %1336 : vector<2x32xf32>
    %1344 = arith.negf %1343 : vector<2x32xf32>
    %1345 = math.exp %1344 : vector<2x32xf32>
    %cst_1032 = arith.constant 1.000000e+00 : f32
    %1346 = vector.broadcast %cst_1032 : f32 to vector<2x32xf32>
    %1347 = arith.addf %1346, %1345 : vector<2x32xf32>
    %1348 = arith.divf %1346, %1347 : vector<2x32xf32>
    %1349 = arith.addf %1327, %1339 : vector<2x32xf32>
    %1350 = arith.negf %1349 : vector<2x32xf32>
    %1351 = math.exp %1350 : vector<2x32xf32>
    %cst_1033 = arith.constant 1.000000e+00 : f32
    %1352 = vector.broadcast %cst_1033 : f32 to vector<2x32xf32>
    %1353 = arith.addf %1352, %1351 : vector<2x32xf32>
    %1354 = arith.divf %1352, %1353 : vector<2x32xf32>
    %c0_1034 = arith.constant 0 : index
    %c0_1035 = arith.constant 0 : index
    %1355 = vector.load %arg16[%c0_1034, %c0_1035] : memref<2x32xf32, #tpu.memory_space<vmem>>, vector<2x32xf32>
    %1356 = arith.addf %1342, %1355 : vector<2x32xf32>
    %1357 = arith.mulf %1348, %1356 : vector<2x32xf32>
    %1358 = arith.addf %1333, %1357 : vector<2x32xf32>
    %1359 = math.tanh %1358 : vector<2x32xf32>
    %1360 = arith.subf %1259, %1359 : vector<2x32xf32>
    %1361 = arith.mulf %1354, %1360 : vector<2x32xf32>
    %1362 = arith.addf %1359, %1361 : vector<2x32xf32>
    %cst_1036 = arith.constant dense<0.000000e+00> : vector<2x128xf32>
    %1363 = tpu.matmul %1362, %802, %cst_1036 {dimension_numbers = #tpu.dot_dimension_numbers<[1], [0], [0], [1], [0, 0, 1, 1], [], []>} : vector<2x32xf32>, vector<32x128xf32>, vector<2x128xf32> -> vector<2x128xf32>
    %1364 = arith.addf %1363, %803 : vector<2x128xf32>
    %c4_1037 = arith.constant 4 : index
    %c0_1038 = arith.constant 0 : index
    %c0_1039 = arith.constant 0 : index
    %1365 = vector.load %arg19[%c4_1037, %c0_1038, %c0_1039] : memref<8x2x128xf32, #tpu.memory_space<vmem>>, vector<1x2x128xf32>
    %1366 = vector.shape_cast %1365 : vector<1x2x128xf32> to vector<2x128xf32>
    %1367 = vector.shape_cast %1364 : vector<2x128xf32> to vector<1x2x128xf32>
    tpu.vector_store %arg19[%c4_1037, %c0_1038, %c0_1039], %1367 {strides = array<i32>} : memref<8x2x128xf32, #tpu.memory_space<vmem>>, vector<1x2x128xf32>,
    %1368 = arith.truncf %752 : vector<2x32xf32> to vector<2x32xbf16>
    %1369 = arith.truncf %1313 : vector<2x32xf32> to vector<2x32xbf16>
    %c0_1040 = arith.constant 0 : index
    %c0_1041 = arith.constant 0 : index
    %c0_1042 = arith.constant 0 : index
    %1370 = vector.load %arg9[%c0_1040, %c0_1041, %c0_1042] : memref<3x32x32xbf16, #tpu.memory_space<vmem>>, vector<1x32x32xbf16>
    %1371 = vector.shape_cast %1370 : vector<1x32x32xbf16> to vector<32x32xbf16>
    %cst_1043 = arith.constant dense<0.000000e+00> : vector<2x32xf32>
    %1372 = tpu.matmul %1368, %1371, %cst_1043 {dimension_numbers = #tpu.dot_dimension_numbers<[1], [0], [0], [1], [0, 0, 1, 1], [], []>} : vector<2x32xbf16>, vector<32x32xbf16>, vector<2x32xf32> -> vector<2x32xf32>
    %c0_1044 = arith.constant 0 : index
    %c0_1045 = arith.constant 0 : index
    %c0_1046 = arith.constant 0 : index
    %1373 = vector.load %arg11[%c0_1044, %c0_1045, %c0_1046] : memref<3x2x32xf32, #tpu.memory_space<vmem>>, vector<1x2x32xf32>
    %1374 = vector.shape_cast %1373 : vector<1x2x32xf32> to vector<2x32xf32>
    %1375 = arith.addf %1372, %1374 : vector<2x32xf32>
    %c1_1047 = arith.constant 1 : index
    %c0_1048 = arith.constant 0 : index
    %c0_1049 = arith.constant 0 : index
    %1376 = vector.load %arg9[%c1_1047, %c0_1048, %c0_1049] : memref<3x32x32xbf16, #tpu.memory_space<vmem>>, vector<1x32x32xbf16>
    %1377 = vector.shape_cast %1376 : vector<1x32x32xbf16> to vector<32x32xbf16>
    %cst_1050 = arith.constant dense<0.000000e+00> : vector<2x32xf32>
    %1378 = tpu.matmul %1368, %1377, %cst_1050 {dimension_numbers = #tpu.dot_dimension_numbers<[1], [0], [0], [1], [0, 0, 1, 1], [], []>} : vector<2x32xbf16>, vector<32x32xbf16>, vector<2x32xf32> -> vector<2x32xf32>
    %c1_1051 = arith.constant 1 : index
    %c0_1052 = arith.constant 0 : index
    %c0_1053 = arith.constant 0 : index
    %1379 = vector.load %arg11[%c1_1051, %c0_1052, %c0_1053] : memref<3x2x32xf32, #tpu.memory_space<vmem>>, vector<1x2x32xf32>
    %1380 = vector.shape_cast %1379 : vector<1x2x32xf32> to vector<2x32xf32>
    %1381 = arith.addf %1378, %1380 : vector<2x32xf32>
    %c2_1054 = arith.constant 2 : index
    %c0_1055 = arith.constant 0 : index
    %c0_1056 = arith.constant 0 : index
    %1382 = vector.load %arg9[%c2_1054, %c0_1055, %c0_1056] : memref<3x32x32xbf16, #tpu.memory_space<vmem>>, vector<1x32x32xbf16>
    %1383 = vector.shape_cast %1382 : vector<1x32x32xbf16> to vector<32x32xbf16>
    %cst_1057 = arith.constant dense<0.000000e+00> : vector<2x32xf32>
    %1384 = tpu.matmul %1368, %1383, %cst_1057 {dimension_numbers = #tpu.dot_dimension_numbers<[1], [0], [0], [1], [0, 0, 1, 1], [], []>} : vector<2x32xbf16>, vector<32x32xbf16>, vector<2x32xf32> -> vector<2x32xf32>
    %c2_1058 = arith.constant 2 : index
    %c0_1059 = arith.constant 0 : index
    %c0_1060 = arith.constant 0 : index
    %1385 = vector.load %arg11[%c2_1058, %c0_1059, %c0_1060] : memref<3x2x32xf32, #tpu.memory_space<vmem>>, vector<1x2x32xf32>
    %1386 = vector.shape_cast %1385 : vector<1x2x32xf32> to vector<2x32xf32>
    %1387 = arith.addf %1384, %1386 : vector<2x32xf32>
    %c0_1061 = arith.constant 0 : index
    %c0_1062 = arith.constant 0 : index
    %c0_1063 = arith.constant 0 : index
    %1388 = vector.load %arg10[%c0_1061, %c0_1062, %c0_1063] : memref<3x32x32xbf16, #tpu.memory_space<vmem>>, vector<1x32x32xbf16>
    %1389 = vector.shape_cast %1388 : vector<1x32x32xbf16> to vector<32x32xbf16>
    %cst_1064 = arith.constant dense<0.000000e+00> : vector<2x32xf32>
    %1390 = tpu.matmul %1369, %1389, %cst_1064 {dimension_numbers = #tpu.dot_dimension_numbers<[1], [0], [0], [1], [0, 0, 1, 1], [], []>} : vector<2x32xbf16>, vector<32x32xbf16>, vector<2x32xf32> -> vector<2x32xf32>
    %c1_1065 = arith.constant 1 : index
    %c0_1066 = arith.constant 0 : index
    %c0_1067 = arith.constant 0 : index
    %1391 = vector.load %arg10[%c1_1065, %c0_1066, %c0_1067] : memref<3x32x32xbf16, #tpu.memory_space<vmem>>, vector<1x32x32xbf16>
    %1392 = vector.shape_cast %1391 : vector<1x32x32xbf16> to vector<32x32xbf16>
    %cst_1068 = arith.constant dense<0.000000e+00> : vector<2x32xf32>
    %1393 = tpu.matmul %1369, %1392, %cst_1068 {dimension_numbers = #tpu.dot_dimension_numbers<[1], [0], [0], [1], [0, 0, 1, 1], [], []>} : vector<2x32xbf16>, vector<32x32xbf16>, vector<2x32xf32> -> vector<2x32xf32>
    %c2_1069 = arith.constant 2 : index
    %c0_1070 = arith.constant 0 : index
    %c0_1071 = arith.constant 0 : index
    %1394 = vector.load %arg10[%c2_1069, %c0_1070, %c0_1071] : memref<3x32x32xbf16, #tpu.memory_space<vmem>>, vector<1x32x32xbf16>
    %1395 = vector.shape_cast %1394 : vector<1x32x32xbf16> to vector<32x32xbf16>
    %cst_1072 = arith.constant dense<0.000000e+00> : vector<2x32xf32>
    %1396 = tpu.matmul %1369, %1395, %cst_1072 {dimension_numbers = #tpu.dot_dimension_numbers<[1], [0], [0], [1], [0, 0, 1, 1], [], []>} : vector<2x32xbf16>, vector<32x32xbf16>, vector<2x32xf32> -> vector<2x32xf32>
    %1397 = arith.addf %1375, %1390 : vector<2x32xf32>
    %1398 = arith.negf %1397 : vector<2x32xf32>
    %1399 = math.exp %1398 : vector<2x32xf32>
    %cst_1073 = arith.constant 1.000000e+00 : f32
    %1400 = vector.broadcast %cst_1073 : f32 to vector<2x32xf32>
    %1401 = arith.addf %1400, %1399 : vector<2x32xf32>
    %1402 = arith.divf %1400, %1401 : vector<2x32xf32>
    %1403 = arith.addf %1381, %1393 : vector<2x32xf32>
    %1404 = arith.negf %1403 : vector<2x32xf32>
    %1405 = math.exp %1404 : vector<2x32xf32>
    %cst_1074 = arith.constant 1.000000e+00 : f32
    %1406 = vector.broadcast %cst_1074 : f32 to vector<2x32xf32>
    %1407 = arith.addf %1406, %1405 : vector<2x32xf32>
    %1408 = arith.divf %1406, %1407 : vector<2x32xf32>
    %c0_1075 = arith.constant 0 : index
    %c0_1076 = arith.constant 0 : index
    %1409 = vector.load %arg12[%c0_1075, %c0_1076] : memref<2x32xf32, #tpu.memory_space<vmem>>, vector<2x32xf32>
    %1410 = arith.addf %1396, %1409 : vector<2x32xf32>
    %1411 = arith.mulf %1402, %1410 : vector<2x32xf32>
    %1412 = arith.addf %1387, %1411 : vector<2x32xf32>
    %1413 = math.tanh %1412 : vector<2x32xf32>
    %1414 = arith.subf %1313, %1413 : vector<2x32xf32>
    %1415 = arith.mulf %1408, %1414 : vector<2x32xf32>
    %1416 = arith.addf %1413, %1415 : vector<2x32xf32>
    %1417 = arith.truncf %1313 : vector<2x32xf32> to vector<2x32xbf16>
    %1418 = arith.truncf %1362 : vector<2x32xf32> to vector<2x32xbf16>
    %c0_1077 = arith.constant 0 : index
    %c0_1078 = arith.constant 0 : index
    %c0_1079 = arith.constant 0 : index
    %1419 = vector.load %arg13[%c0_1077, %c0_1078, %c0_1079] : memref<3x32x32xbf16, #tpu.memory_space<vmem>>, vector<1x32x32xbf16>
    %1420 = vector.shape_cast %1419 : vector<1x32x32xbf16> to vector<32x32xbf16>
    %cst_1080 = arith.constant dense<0.000000e+00> : vector<2x32xf32>
    %1421 = tpu.matmul %1417, %1420, %cst_1080 {dimension_numbers = #tpu.dot_dimension_numbers<[1], [0], [0], [1], [0, 0, 1, 1], [], []>} : vector<2x32xbf16>, vector<32x32xbf16>, vector<2x32xf32> -> vector<2x32xf32>
    %c0_1081 = arith.constant 0 : index
    %c0_1082 = arith.constant 0 : index
    %c0_1083 = arith.constant 0 : index
    %1422 = vector.load %arg15[%c0_1081, %c0_1082, %c0_1083] : memref<3x2x32xf32, #tpu.memory_space<vmem>>, vector<1x2x32xf32>
    %1423 = vector.shape_cast %1422 : vector<1x2x32xf32> to vector<2x32xf32>
    %1424 = arith.addf %1421, %1423 : vector<2x32xf32>
    %c1_1084 = arith.constant 1 : index
    %c0_1085 = arith.constant 0 : index
    %c0_1086 = arith.constant 0 : index
    %1425 = vector.load %arg13[%c1_1084, %c0_1085, %c0_1086] : memref<3x32x32xbf16, #tpu.memory_space<vmem>>, vector<1x32x32xbf16>
    %1426 = vector.shape_cast %1425 : vector<1x32x32xbf16> to vector<32x32xbf16>
    %cst_1087 = arith.constant dense<0.000000e+00> : vector<2x32xf32>
    %1427 = tpu.matmul %1417, %1426, %cst_1087 {dimension_numbers = #tpu.dot_dimension_numbers<[1], [0], [0], [1], [0, 0, 1, 1], [], []>} : vector<2x32xbf16>, vector<32x32xbf16>, vector<2x32xf32> -> vector<2x32xf32>
    %c1_1088 = arith.constant 1 : index
    %c0_1089 = arith.constant 0 : index
    %c0_1090 = arith.constant 0 : index
    %1428 = vector.load %arg15[%c1_1088, %c0_1089, %c0_1090] : memref<3x2x32xf32, #tpu.memory_space<vmem>>, vector<1x2x32xf32>
    %1429 = vector.shape_cast %1428 : vector<1x2x32xf32> to vector<2x32xf32>
    %1430 = arith.addf %1427, %1429 : vector<2x32xf32>
    %c2_1091 = arith.constant 2 : index
    %c0_1092 = arith.constant 0 : index
    %c0_1093 = arith.constant 0 : index
    %1431 = vector.load %arg13[%c2_1091, %c0_1092, %c0_1093] : memref<3x32x32xbf16, #tpu.memory_space<vmem>>, vector<1x32x32xbf16>
    %1432 = vector.shape_cast %1431 : vector<1x32x32xbf16> to vector<32x32xbf16>
    %cst_1094 = arith.constant dense<0.000000e+00> : vector<2x32xf32>
    %1433 = tpu.matmul %1417, %1432, %cst_1094 {dimension_numbers = #tpu.dot_dimension_numbers<[1], [0], [0], [1], [0, 0, 1, 1], [], []>} : vector<2x32xbf16>, vector<32x32xbf16>, vector<2x32xf32> -> vector<2x32xf32>
    %c2_1095 = arith.constant 2 : index
    %c0_1096 = arith.constant 0 : index
    %c0_1097 = arith.constant 0 : index
    %1434 = vector.load %arg15[%c2_1095, %c0_1096, %c0_1097] : memref<3x2x32xf32, #tpu.memory_space<vmem>>, vector<1x2x32xf32>
    %1435 = vector.shape_cast %1434 : vector<1x2x32xf32> to vector<2x32xf32>
    %1436 = arith.addf %1433, %1435 : vector<2x32xf32>
    %c0_1098 = arith.constant 0 : index
    %c0_1099 = arith.constant 0 : index
    %c0_1100 = arith.constant 0 : index
    %1437 = vector.load %arg14[%c0_1098, %c0_1099, %c0_1100] : memref<3x32x32xbf16, #tpu.memory_space<vmem>>, vector<1x32x32xbf16>
    %1438 = vector.shape_cast %1437 : vector<1x32x32xbf16> to vector<32x32xbf16>
    %cst_1101 = arith.constant dense<0.000000e+00> : vector<2x32xf32>
    %1439 = tpu.matmul %1418, %1438, %cst_1101 {dimension_numbers = #tpu.dot_dimension_numbers<[1], [0], [0], [1], [0, 0, 1, 1], [], []>} : vector<2x32xbf16>, vector<32x32xbf16>, vector<2x32xf32> -> vector<2x32xf32>
    %c1_1102 = arith.constant 1 : index
    %c0_1103 = arith.constant 0 : index
    %c0_1104 = arith.constant 0 : index
    %1440 = vector.load %arg14[%c1_1102, %c0_1103, %c0_1104] : memref<3x32x32xbf16, #tpu.memory_space<vmem>>, vector<1x32x32xbf16>
    %1441 = vector.shape_cast %1440 : vector<1x32x32xbf16> to vector<32x32xbf16>
    %cst_1105 = arith.constant dense<0.000000e+00> : vector<2x32xf32>
    %1442 = tpu.matmul %1418, %1441, %cst_1105 {dimension_numbers = #tpu.dot_dimension_numbers<[1], [0], [0], [1], [0, 0, 1, 1], [], []>} : vector<2x32xbf16>, vector<32x32xbf16>, vector<2x32xf32> -> vector<2x32xf32>
    %c2_1106 = arith.constant 2 : index
    %c0_1107 = arith.constant 0 : index
    %c0_1108 = arith.constant 0 : index
    %1443 = vector.load %arg14[%c2_1106, %c0_1107, %c0_1108] : memref<3x32x32xbf16, #tpu.memory_space<vmem>>, vector<1x32x32xbf16>
    %1444 = vector.shape_cast %1443 : vector<1x32x32xbf16> to vector<32x32xbf16>
    %cst_1109 = arith.constant dense<0.000000e+00> : vector<2x32xf32>
    %1445 = tpu.matmul %1418, %1444, %cst_1109 {dimension_numbers = #tpu.dot_dimension_numbers<[1], [0], [0], [1], [0, 0, 1, 1], [], []>} : vector<2x32xbf16>, vector<32x32xbf16>, vector<2x32xf32> -> vector<2x32xf32>
    %1446 = arith.addf %1424, %1439 : vector<2x32xf32>
    %1447 = arith.negf %1446 : vector<2x32xf32>
    %1448 = math.exp %1447 : vector<2x32xf32>
    %cst_1110 = arith.constant 1.000000e+00 : f32
    %1449 = vector.broadcast %cst_1110 : f32 to vector<2x32xf32>
    %1450 = arith.addf %1449, %1448 : vector<2x32xf32>
    %1451 = arith.divf %1449, %1450 : vector<2x32xf32>
    %1452 = arith.addf %1430, %1442 : vector<2x32xf32>
    %1453 = arith.negf %1452 : vector<2x32xf32>
    %1454 = math.exp %1453 : vector<2x32xf32>
    %cst_1111 = arith.constant 1.000000e+00 : f32
    %1455 = vector.broadcast %cst_1111 : f32 to vector<2x32xf32>
    %1456 = arith.addf %1455, %1454 : vector<2x32xf32>
    %1457 = arith.divf %1455, %1456 : vector<2x32xf32>
    %c0_1112 = arith.constant 0 : index
    %c0_1113 = arith.constant 0 : index
    %1458 = vector.load %arg16[%c0_1112, %c0_1113] : memref<2x32xf32, #tpu.memory_space<vmem>>, vector<2x32xf32>
    %1459 = arith.addf %1445, %1458 : vector<2x32xf32>
    %1460 = arith.mulf %1451, %1459 : vector<2x32xf32>
    %1461 = arith.addf %1436, %1460 : vector<2x32xf32>
    %1462 = math.tanh %1461 : vector<2x32xf32>
    %1463 = arith.subf %1362, %1462 : vector<2x32xf32>
    %1464 = arith.mulf %1457, %1463 : vector<2x32xf32>
    %1465 = arith.addf %1462, %1464 : vector<2x32xf32>
    %cst_1114 = arith.constant dense<0.000000e+00> : vector<2x128xf32>
    %1466 = tpu.matmul %1465, %802, %cst_1114 {dimension_numbers = #tpu.dot_dimension_numbers<[1], [0], [0], [1], [0, 0, 1, 1], [], []>} : vector<2x32xf32>, vector<32x128xf32>, vector<2x128xf32> -> vector<2x128xf32>
    %1467 = arith.addf %1466, %803 : vector<2x128xf32>
    %c5_1115 = arith.constant 5 : index
    %c0_1116 = arith.constant 0 : index
    %c0_1117 = arith.constant 0 : index
    %1468 = vector.load %arg19[%c5_1115, %c0_1116, %c0_1117] : memref<8x2x128xf32, #tpu.memory_space<vmem>>, vector<1x2x128xf32>
    %1469 = vector.shape_cast %1468 : vector<1x2x128xf32> to vector<2x128xf32>
    %1470 = vector.shape_cast %1467 : vector<2x128xf32> to vector<1x2x128xf32>
    tpu.vector_store %arg19[%c5_1115, %c0_1116, %c0_1117], %1470 {strides = array<i32>} : memref<8x2x128xf32, #tpu.memory_space<vmem>>, vector<1x2x128xf32>,
    %1471 = arith.truncf %801 : vector<2x32xf32> to vector<2x32xbf16>
    %1472 = arith.truncf %1416 : vector<2x32xf32> to vector<2x32xbf16>
    %c0_1118 = arith.constant 0 : index
    %c0_1119 = arith.constant 0 : index
    %c0_1120 = arith.constant 0 : index
    %1473 = vector.load %arg9[%c0_1118, %c0_1119, %c0_1120] : memref<3x32x32xbf16, #tpu.memory_space<vmem>>, vector<1x32x32xbf16>
    %1474 = vector.shape_cast %1473 : vector<1x32x32xbf16> to vector<32x32xbf16>
    %cst_1121 = arith.constant dense<0.000000e+00> : vector<2x32xf32>
    %1475 = tpu.matmul %1471, %1474, %cst_1121 {dimension_numbers = #tpu.dot_dimension_numbers<[1], [0], [0], [1], [0, 0, 1, 1], [], []>} : vector<2x32xbf16>, vector<32x32xbf16>, vector<2x32xf32> -> vector<2x32xf32>
    %c0_1122 = arith.constant 0 : index
    %c0_1123 = arith.constant 0 : index
    %c0_1124 = arith.constant 0 : index
    %1476 = vector.load %arg11[%c0_1122, %c0_1123, %c0_1124] : memref<3x2x32xf32, #tpu.memory_space<vmem>>, vector<1x2x32xf32>
    %1477 = vector.shape_cast %1476 : vector<1x2x32xf32> to vector<2x32xf32>
    %1478 = arith.addf %1475, %1477 : vector<2x32xf32>
    %c1_1125 = arith.constant 1 : index
    %c0_1126 = arith.constant 0 : index
    %c0_1127 = arith.constant 0 : index
    %1479 = vector.load %arg9[%c1_1125, %c0_1126, %c0_1127] : memref<3x32x32xbf16, #tpu.memory_space<vmem>>, vector<1x32x32xbf16>
    %1480 = vector.shape_cast %1479 : vector<1x32x32xbf16> to vector<32x32xbf16>
    %cst_1128 = arith.constant dense<0.000000e+00> : vector<2x32xf32>
    %1481 = tpu.matmul %1471, %1480, %cst_1128 {dimension_numbers = #tpu.dot_dimension_numbers<[1], [0], [0], [1], [0, 0, 1, 1], [], []>} : vector<2x32xbf16>, vector<32x32xbf16>, vector<2x32xf32> -> vector<2x32xf32>
    %c1_1129 = arith.constant 1 : index
    %c0_1130 = arith.constant 0 : index
    %c0_1131 = arith.constant 0 : index
    %1482 = vector.load %arg11[%c1_1129, %c0_1130, %c0_1131] : memref<3x2x32xf32, #tpu.memory_space<vmem>>, vector<1x2x32xf32>
    %1483 = vector.shape_cast %1482 : vector<1x2x32xf32> to vector<2x32xf32>
    %1484 = arith.addf %1481, %1483 : vector<2x32xf32>
    %c2_1132 = arith.constant 2 : index
    %c0_1133 = arith.constant 0 : index
    %c0_1134 = arith.constant 0 : index
    %1485 = vector.load %arg9[%c2_1132, %c0_1133, %c0_1134] : memref<3x32x32xbf16, #tpu.memory_space<vmem>>, vector<1x32x32xbf16>
    %1486 = vector.shape_cast %1485 : vector<1x32x32xbf16> to vector<32x32xbf16>
    %cst_1135 = arith.constant dense<0.000000e+00> : vector<2x32xf32>
    %1487 = tpu.matmul %1471, %1486, %cst_1135 {dimension_numbers = #tpu.dot_dimension_numbers<[1], [0], [0], [1], [0, 0, 1, 1], [], []>} : vector<2x32xbf16>, vector<32x32xbf16>, vector<2x32xf32> -> vector<2x32xf32>
    %c2_1136 = arith.constant 2 : index
    %c0_1137 = arith.constant 0 : index
    %c0_1138 = arith.constant 0 : index
    %1488 = vector.load %arg11[%c2_1136, %c0_1137, %c0_1138] : memref<3x2x32xf32, #tpu.memory_space<vmem>>, vector<1x2x32xf32>
    %1489 = vector.shape_cast %1488 : vector<1x2x32xf32> to vector<2x32xf32>
    %1490 = arith.addf %1487, %1489 : vector<2x32xf32>
    %c0_1139 = arith.constant 0 : index
    %c0_1140 = arith.constant 0 : index
    %c0_1141 = arith.constant 0 : index
    %1491 = vector.load %arg10[%c0_1139, %c0_1140, %c0_1141] : memref<3x32x32xbf16, #tpu.memory_space<vmem>>, vector<1x32x32xbf16>
    %1492 = vector.shape_cast %1491 : vector<1x32x32xbf16> to vector<32x32xbf16>
    %cst_1142 = arith.constant dense<0.000000e+00> : vector<2x32xf32>
    %1493 = tpu.matmul %1472, %1492, %cst_1142 {dimension_numbers = #tpu.dot_dimension_numbers<[1], [0], [0], [1], [0, 0, 1, 1], [], []>} : vector<2x32xbf16>, vector<32x32xbf16>, vector<2x32xf32> -> vector<2x32xf32>
    %c1_1143 = arith.constant 1 : index
    %c0_1144 = arith.constant 0 : index
    %c0_1145 = arith.constant 0 : index
    %1494 = vector.load %arg10[%c1_1143, %c0_1144, %c0_1145] : memref<3x32x32xbf16, #tpu.memory_space<vmem>>, vector<1x32x32xbf16>
    %1495 = vector.shape_cast %1494 : vector<1x32x32xbf16> to vector<32x32xbf16>
    %cst_1146 = arith.constant dense<0.000000e+00> : vector<2x32xf32>
    %1496 = tpu.matmul %1472, %1495, %cst_1146 {dimension_numbers = #tpu.dot_dimension_numbers<[1], [0], [0], [1], [0, 0, 1, 1], [], []>} : vector<2x32xbf16>, vector<32x32xbf16>, vector<2x32xf32> -> vector<2x32xf32>
    %c2_1147 = arith.constant 2 : index
    %c0_1148 = arith.constant 0 : index
    %c0_1149 = arith.constant 0 : index
    %1497 = vector.load %arg10[%c2_1147, %c0_1148, %c0_1149] : memref<3x32x32xbf16, #tpu.memory_space<vmem>>, vector<1x32x32xbf16>
    %1498 = vector.shape_cast %1497 : vector<1x32x32xbf16> to vector<32x32xbf16>
    %cst_1150 = arith.constant dense<0.000000e+00> : vector<2x32xf32>
    %1499 = tpu.matmul %1472, %1498, %cst_1150 {dimension_numbers = #tpu.dot_dimension_numbers<[1], [0], [0], [1], [0, 0, 1, 1], [], []>} : vector<2x32xbf16>, vector<32x32xbf16>, vector<2x32xf32> -> vector<2x32xf32>
    %1500 = arith.addf %1478, %1493 : vector<2x32xf32>
    %1501 = arith.negf %1500 : vector<2x32xf32>
    %1502 = math.exp %1501 : vector<2x32xf32>
    %cst_1151 = arith.constant 1.000000e+00 : f32
    %1503 = vector.broadcast %cst_1151 : f32 to vector<2x32xf32>
    %1504 = arith.addf %1503, %1502 : vector<2x32xf32>
    %1505 = arith.divf %1503, %1504 : vector<2x32xf32>
    %1506 = arith.addf %1484, %1496 : vector<2x32xf32>
    %1507 = arith.negf %1506 : vector<2x32xf32>
    %1508 = math.exp %1507 : vector<2x32xf32>
    %cst_1152 = arith.constant 1.000000e+00 : f32
    %1509 = vector.broadcast %cst_1152 : f32 to vector<2x32xf32>
    %1510 = arith.addf %1509, %1508 : vector<2x32xf32>
    %1511 = arith.divf %1509, %1510 : vector<2x32xf32>
    %c0_1153 = arith.constant 0 : index
    %c0_1154 = arith.constant 0 : index
    %1512 = vector.load %arg12[%c0_1153, %c0_1154] : memref<2x32xf32, #tpu.memory_space<vmem>>, vector<2x32xf32>
    %1513 = arith.addf %1499, %1512 : vector<2x32xf32>
    %1514 = arith.mulf %1505, %1513 : vector<2x32xf32>
    %1515 = arith.addf %1490, %1514 : vector<2x32xf32>
    %1516 = math.tanh %1515 : vector<2x32xf32>
    %1517 = arith.subf %1416, %1516 : vector<2x32xf32>
    %1518 = arith.mulf %1511, %1517 : vector<2x32xf32>
    %1519 = arith.addf %1516, %1518 : vector<2x32xf32>
    %1520 = arith.truncf %1416 : vector<2x32xf32> to vector<2x32xbf16>
    %1521 = arith.truncf %1465 : vector<2x32xf32> to vector<2x32xbf16>
    %c0_1155 = arith.constant 0 : index
    %c0_1156 = arith.constant 0 : index
    %c0_1157 = arith.constant 0 : index
    %1522 = vector.load %arg13[%c0_1155, %c0_1156, %c0_1157] : memref<3x32x32xbf16, #tpu.memory_space<vmem>>, vector<1x32x32xbf16>
    %1523 = vector.shape_cast %1522 : vector<1x32x32xbf16> to vector<32x32xbf16>
    %cst_1158 = arith.constant dense<0.000000e+00> : vector<2x32xf32>
    %1524 = tpu.matmul %1520, %1523, %cst_1158 {dimension_numbers = #tpu.dot_dimension_numbers<[1], [0], [0], [1], [0, 0, 1, 1], [], []>} : vector<2x32xbf16>, vector<32x32xbf16>, vector<2x32xf32> -> vector<2x32xf32>
    %c0_1159 = arith.constant 0 : index
    %c0_1160 = arith.constant 0 : index
    %c0_1161 = arith.constant 0 : index
    %1525 = vector.load %arg15[%c0_1159, %c0_1160, %c0_1161] : memref<3x2x32xf32, #tpu.memory_space<vmem>>, vector<1x2x32xf32>
    %1526 = vector.shape_cast %1525 : vector<1x2x32xf32> to vector<2x32xf32>
    %1527 = arith.addf %1524, %1526 : vector<2x32xf32>
    %c1_1162 = arith.constant 1 : index
    %c0_1163 = arith.constant 0 : index
    %c0_1164 = arith.constant 0 : index
    %1528 = vector.load %arg13[%c1_1162, %c0_1163, %c0_1164] : memref<3x32x32xbf16, #tpu.memory_space<vmem>>, vector<1x32x32xbf16>
    %1529 = vector.shape_cast %1528 : vector<1x32x32xbf16> to vector<32x32xbf16>
    %cst_1165 = arith.constant dense<0.000000e+00> : vector<2x32xf32>
    %1530 = tpu.matmul %1520, %1529, %cst_1165 {dimension_numbers = #tpu.dot_dimension_numbers<[1], [0], [0], [1], [0, 0, 1, 1], [], []>} : vector<2x32xbf16>, vector<32x32xbf16>, vector<2x32xf32> -> vector<2x32xf32>
    %c1_1166 = arith.constant 1 : index
    %c0_1167 = arith.constant 0 : index
    %c0_1168 = arith.constant 0 : index
    %1531 = vector.load %arg15[%c1_1166, %c0_1167, %c0_1168] : memref<3x2x32xf32, #tpu.memory_space<vmem>>, vector<1x2x32xf32>
    %1532 = vector.shape_cast %1531 : vector<1x2x32xf32> to vector<2x32xf32>
    %1533 = arith.addf %1530, %1532 : vector<2x32xf32>
    %c2_1169 = arith.constant 2 : index
    %c0_1170 = arith.constant 0 : index
    %c0_1171 = arith.constant 0 : index
    %1534 = vector.load %arg13[%c2_1169, %c0_1170, %c0_1171] : memref<3x32x32xbf16, #tpu.memory_space<vmem>>, vector<1x32x32xbf16>
    %1535 = vector.shape_cast %1534 : vector<1x32x32xbf16> to vector<32x32xbf16>
    %cst_1172 = arith.constant dense<0.000000e+00> : vector<2x32xf32>
    %1536 = tpu.matmul %1520, %1535, %cst_1172 {dimension_numbers = #tpu.dot_dimension_numbers<[1], [0], [0], [1], [0, 0, 1, 1], [], []>} : vector<2x32xbf16>, vector<32x32xbf16>, vector<2x32xf32> -> vector<2x32xf32>
    %c2_1173 = arith.constant 2 : index
    %c0_1174 = arith.constant 0 : index
    %c0_1175 = arith.constant 0 : index
    %1537 = vector.load %arg15[%c2_1173, %c0_1174, %c0_1175] : memref<3x2x32xf32, #tpu.memory_space<vmem>>, vector<1x2x32xf32>
    %1538 = vector.shape_cast %1537 : vector<1x2x32xf32> to vector<2x32xf32>
    %1539 = arith.addf %1536, %1538 : vector<2x32xf32>
    %c0_1176 = arith.constant 0 : index
    %c0_1177 = arith.constant 0 : index
    %c0_1178 = arith.constant 0 : index
    %1540 = vector.load %arg14[%c0_1176, %c0_1177, %c0_1178] : memref<3x32x32xbf16, #tpu.memory_space<vmem>>, vector<1x32x32xbf16>
    %1541 = vector.shape_cast %1540 : vector<1x32x32xbf16> to vector<32x32xbf16>
    %cst_1179 = arith.constant dense<0.000000e+00> : vector<2x32xf32>
    %1542 = tpu.matmul %1521, %1541, %cst_1179 {dimension_numbers = #tpu.dot_dimension_numbers<[1], [0], [0], [1], [0, 0, 1, 1], [], []>} : vector<2x32xbf16>, vector<32x32xbf16>, vector<2x32xf32> -> vector<2x32xf32>
    %c1_1180 = arith.constant 1 : index
    %c0_1181 = arith.constant 0 : index
    %c0_1182 = arith.constant 0 : index
    %1543 = vector.load %arg14[%c1_1180, %c0_1181, %c0_1182] : memref<3x32x32xbf16, #tpu.memory_space<vmem>>, vector<1x32x32xbf16>
    %1544 = vector.shape_cast %1543 : vector<1x32x32xbf16> to vector<32x32xbf16>
    %cst_1183 = arith.constant dense<0.000000e+00> : vector<2x32xf32>
    %1545 = tpu.matmul %1521, %1544, %cst_1183 {dimension_numbers = #tpu.dot_dimension_numbers<[1], [0], [0], [1], [0, 0, 1, 1], [], []>} : vector<2x32xbf16>, vector<32x32xbf16>, vector<2x32xf32> -> vector<2x32xf32>
    %c2_1184 = arith.constant 2 : index
    %c0_1185 = arith.constant 0 : index
    %c0_1186 = arith.constant 0 : index
    %1546 = vector.load %arg14[%c2_1184, %c0_1185, %c0_1186] : memref<3x32x32xbf16, #tpu.memory_space<vmem>>, vector<1x32x32xbf16>
    %1547 = vector.shape_cast %1546 : vector<1x32x32xbf16> to vector<32x32xbf16>
    %cst_1187 = arith.constant dense<0.000000e+00> : vector<2x32xf32>
    %1548 = tpu.matmul %1521, %1547, %cst_1187 {dimension_numbers = #tpu.dot_dimension_numbers<[1], [0], [0], [1], [0, 0, 1, 1], [], []>} : vector<2x32xbf16>, vector<32x32xbf16>, vector<2x32xf32> -> vector<2x32xf32>
    %1549 = arith.addf %1527, %1542 : vector<2x32xf32>
    %1550 = arith.negf %1549 : vector<2x32xf32>
    %1551 = math.exp %1550 : vector<2x32xf32>
    %cst_1188 = arith.constant 1.000000e+00 : f32
    %1552 = vector.broadcast %cst_1188 : f32 to vector<2x32xf32>
    %1553 = arith.addf %1552, %1551 : vector<2x32xf32>
    %1554 = arith.divf %1552, %1553 : vector<2x32xf32>
    %1555 = arith.addf %1533, %1545 : vector<2x32xf32>
    %1556 = arith.negf %1555 : vector<2x32xf32>
    %1557 = math.exp %1556 : vector<2x32xf32>
    %cst_1189 = arith.constant 1.000000e+00 : f32
    %1558 = vector.broadcast %cst_1189 : f32 to vector<2x32xf32>
    %1559 = arith.addf %1558, %1557 : vector<2x32xf32>
    %1560 = arith.divf %1558, %1559 : vector<2x32xf32>
    %c0_1190 = arith.constant 0 : index
    %c0_1191 = arith.constant 0 : index
    %1561 = vector.load %arg16[%c0_1190, %c0_1191] : memref<2x32xf32, #tpu.memory_space<vmem>>, vector<2x32xf32>
    %1562 = arith.addf %1548, %1561 : vector<2x32xf32>
    %1563 = arith.mulf %1554, %1562 : vector<2x32xf32>
    %1564 = arith.addf %1539, %1563 : vector<2x32xf32>
    %1565 = math.tanh %1564 : vector<2x32xf32>
    %1566 = arith.subf %1465, %1565 : vector<2x32xf32>
    %1567 = arith.mulf %1560, %1566 : vector<2x32xf32>
    %1568 = arith.addf %1565, %1567 : vector<2x32xf32>
    %cst_1192 = arith.constant dense<0.000000e+00> : vector<2x128xf32>
    %1569 = tpu.matmul %1568, %802, %cst_1192 {dimension_numbers = #tpu.dot_dimension_numbers<[1], [0], [0], [1], [0, 0, 1, 1], [], []>} : vector<2x32xf32>, vector<32x128xf32>, vector<2x128xf32> -> vector<2x128xf32>
    %1570 = arith.addf %1569, %803 : vector<2x128xf32>
    %c6_1193 = arith.constant 6 : index
    %c0_1194 = arith.constant 0 : index
    %c0_1195 = arith.constant 0 : index
    %1571 = vector.load %arg19[%c6_1193, %c0_1194, %c0_1195] : memref<8x2x128xf32, #tpu.memory_space<vmem>>, vector<1x2x128xf32>
    %1572 = vector.shape_cast %1571 : vector<1x2x128xf32> to vector<2x128xf32>
    %1573 = vector.shape_cast %1570 : vector<2x128xf32> to vector<1x2x128xf32>
    tpu.vector_store %arg19[%c6_1193, %c0_1194, %c0_1195], %1573 {strides = array<i32>} : memref<8x2x128xf32, #tpu.memory_space<vmem>>, vector<1x2x128xf32>,
    %1574 = arith.truncf %1519 : vector<2x32xf32> to vector<2x32xbf16>
    %1575 = arith.truncf %1568 : vector<2x32xf32> to vector<2x32xbf16>
    %c0_1196 = arith.constant 0 : index
    %c0_1197 = arith.constant 0 : index
    %c0_1198 = arith.constant 0 : index
    %1576 = vector.load %arg13[%c0_1196, %c0_1197, %c0_1198] : memref<3x32x32xbf16, #tpu.memory_space<vmem>>, vector<1x32x32xbf16>
    %1577 = vector.shape_cast %1576 : vector<1x32x32xbf16> to vector<32x32xbf16>
    %cst_1199 = arith.constant dense<0.000000e+00> : vector<2x32xf32>
    %1578 = tpu.matmul %1574, %1577, %cst_1199 {dimension_numbers = #tpu.dot_dimension_numbers<[1], [0], [0], [1], [0, 0, 1, 1], [], []>} : vector<2x32xbf16>, vector<32x32xbf16>, vector<2x32xf32> -> vector<2x32xf32>
    %c0_1200 = arith.constant 0 : index
    %c0_1201 = arith.constant 0 : index
    %c0_1202 = arith.constant 0 : index
    %1579 = vector.load %arg15[%c0_1200, %c0_1201, %c0_1202] : memref<3x2x32xf32, #tpu.memory_space<vmem>>, vector<1x2x32xf32>
    %1580 = vector.shape_cast %1579 : vector<1x2x32xf32> to vector<2x32xf32>
    %1581 = arith.addf %1578, %1580 : vector<2x32xf32>
    %c1_1203 = arith.constant 1 : index
    %c0_1204 = arith.constant 0 : index
    %c0_1205 = arith.constant 0 : index
    %1582 = vector.load %arg13[%c1_1203, %c0_1204, %c0_1205] : memref<3x32x32xbf16, #tpu.memory_space<vmem>>, vector<1x32x32xbf16>
    %1583 = vector.shape_cast %1582 : vector<1x32x32xbf16> to vector<32x32xbf16>
    %cst_1206 = arith.constant dense<0.000000e+00> : vector<2x32xf32>
    %1584 = tpu.matmul %1574, %1583, %cst_1206 {dimension_numbers = #tpu.dot_dimension_numbers<[1], [0], [0], [1], [0, 0, 1, 1], [], []>} : vector<2x32xbf16>, vector<32x32xbf16>, vector<2x32xf32> -> vector<2x32xf32>
    %c1_1207 = arith.constant 1 : index
    %c0_1208 = arith.constant 0 : index
    %c0_1209 = arith.constant 0 : index
    %1585 = vector.load %arg15[%c1_1207, %c0_1208, %c0_1209] : memref<3x2x32xf32, #tpu.memory_space<vmem>>, vector<1x2x32xf32>
    %1586 = vector.shape_cast %1585 : vector<1x2x32xf32> to vector<2x32xf32>
    %1587 = arith.addf %1584, %1586 : vector<2x32xf32>
    %c2_1210 = arith.constant 2 : index
    %c0_1211 = arith.constant 0 : index
    %c0_1212 = arith.constant 0 : index
    %1588 = vector.load %arg13[%c2_1210, %c0_1211, %c0_1212] : memref<3x32x32xbf16, #tpu.memory_space<vmem>>, vector<1x32x32xbf16>
    %1589 = vector.shape_cast %1588 : vector<1x32x32xbf16> to vector<32x32xbf16>
    %cst_1213 = arith.constant dense<0.000000e+00> : vector<2x32xf32>
    %1590 = tpu.matmul %1574, %1589, %cst_1213 {dimension_numbers = #tpu.dot_dimension_numbers<[1], [0], [0], [1], [0, 0, 1, 1], [], []>} : vector<2x32xbf16>, vector<32x32xbf16>, vector<2x32xf32> -> vector<2x32xf32>
    %c2_1214 = arith.constant 2 : index
    %c0_1215 = arith.constant 0 : index
    %c0_1216 = arith.constant 0 : index
    %1591 = vector.load %arg15[%c2_1214, %c0_1215, %c0_1216] : memref<3x2x32xf32, #tpu.memory_space<vmem>>, vector<1x2x32xf32>
    %1592 = vector.shape_cast %1591 : vector<1x2x32xf32> to vector<2x32xf32>
    %1593 = arith.addf %1590, %1592 : vector<2x32xf32>
    %c0_1217 = arith.constant 0 : index
    %c0_1218 = arith.constant 0 : index
    %c0_1219 = arith.constant 0 : index
    %1594 = vector.load %arg14[%c0_1217, %c0_1218, %c0_1219] : memref<3x32x32xbf16, #tpu.memory_space<vmem>>, vector<1x32x32xbf16>
    %1595 = vector.shape_cast %1594 : vector<1x32x32xbf16> to vector<32x32xbf16>
    %cst_1220 = arith.constant dense<0.000000e+00> : vector<2x32xf32>
    %1596 = tpu.matmul %1575, %1595, %cst_1220 {dimension_numbers = #tpu.dot_dimension_numbers<[1], [0], [0], [1], [0, 0, 1, 1], [], []>} : vector<2x32xbf16>, vector<32x32xbf16>, vector<2x32xf32> -> vector<2x32xf32>
    %c1_1221 = arith.constant 1 : index
    %c0_1222 = arith.constant 0 : index
    %c0_1223 = arith.constant 0 : index
    %1597 = vector.load %arg14[%c1_1221, %c0_1222, %c0_1223] : memref<3x32x32xbf16, #tpu.memory_space<vmem>>, vector<1x32x32xbf16>
    %1598 = vector.shape_cast %1597 : vector<1x32x32xbf16> to vector<32x32xbf16>
    %cst_1224 = arith.constant dense<0.000000e+00> : vector<2x32xf32>
    %1599 = tpu.matmul %1575, %1598, %cst_1224 {dimension_numbers = #tpu.dot_dimension_numbers<[1], [0], [0], [1], [0, 0, 1, 1], [], []>} : vector<2x32xbf16>, vector<32x32xbf16>, vector<2x32xf32> -> vector<2x32xf32>
    %c2_1225 = arith.constant 2 : index
    %c0_1226 = arith.constant 0 : index
    %c0_1227 = arith.constant 0 : index
    %1600 = vector.load %arg14[%c2_1225, %c0_1226, %c0_1227] : memref<3x32x32xbf16, #tpu.memory_space<vmem>>, vector<1x32x32xbf16>
    %1601 = vector.shape_cast %1600 : vector<1x32x32xbf16> to vector<32x32xbf16>
    %cst_1228 = arith.constant dense<0.000000e+00> : vector<2x32xf32>
    %1602 = tpu.matmul %1575, %1601, %cst_1228 {dimension_numbers = #tpu.dot_dimension_numbers<[1], [0], [0], [1], [0, 0, 1, 1], [], []>} : vector<2x32xbf16>, vector<32x32xbf16>, vector<2x32xf32> -> vector<2x32xf32>
    %1603 = arith.addf %1581, %1596 : vector<2x32xf32>
    %1604 = arith.negf %1603 : vector<2x32xf32>
    %1605 = math.exp %1604 : vector<2x32xf32>
    %cst_1229 = arith.constant 1.000000e+00 : f32
    %1606 = vector.broadcast %cst_1229 : f32 to vector<2x32xf32>
    %1607 = arith.addf %1606, %1605 : vector<2x32xf32>
    %1608 = arith.divf %1606, %1607 : vector<2x32xf32>
    %1609 = arith.addf %1587, %1599 : vector<2x32xf32>
    %1610 = arith.negf %1609 : vector<2x32xf32>
    %1611 = math.exp %1610 : vector<2x32xf32>
    %cst_1230 = arith.constant 1.000000e+00 : f32
    %1612 = vector.broadcast %cst_1230 : f32 to vector<2x32xf32>
    %1613 = arith.addf %1612, %1611 : vector<2x32xf32>
    %1614 = arith.divf %1612, %1613 : vector<2x32xf32>
    %c0_1231 = arith.constant 0 : index
    %c0_1232 = arith.constant 0 : index
    %1615 = vector.load %arg16[%c0_1231, %c0_1232] : memref<2x32xf32, #tpu.memory_space<vmem>>, vector<2x32xf32>
    %1616 = arith.addf %1602, %1615 : vector<2x32xf32>
    %1617 = arith.mulf %1608, %1616 : vector<2x32xf32>
    %1618 = arith.addf %1593, %1617 : vector<2x32xf32>
    %1619 = math.tanh %1618 : vector<2x32xf32>
    %1620 = arith.subf %1568, %1619 : vector<2x32xf32>
    %1621 = arith.mulf %1614, %1620 : vector<2x32xf32>
    %1622 = arith.addf %1619, %1621 : vector<2x32xf32>
    %cst_1233 = arith.constant dense<0.000000e+00> : vector<2x128xf32>
    %1623 = tpu.matmul %1622, %802, %cst_1233 {dimension_numbers = #tpu.dot_dimension_numbers<[1], [0], [0], [1], [0, 0, 1, 1], [], []>} : vector<2x32xf32>, vector<32x128xf32>, vector<2x128xf32> -> vector<2x128xf32>
    %1624 = arith.addf %1623, %803 : vector<2x128xf32>
    %c7_1234 = arith.constant 7 : index
    %c0_1235 = arith.constant 0 : index
    %c0_1236 = arith.constant 0 : index
    %1625 = vector.load %arg19[%c7_1234, %c0_1235, %c0_1236] : memref<8x2x128xf32, #tpu.memory_space<vmem>>, vector<1x2x128xf32>
    %1626 = vector.shape_cast %1625 : vector<1x2x128xf32> to vector<2x128xf32>
    %1627 = vector.shape_cast %1624 : vector<2x128xf32> to vector<1x2x128xf32>
    tpu.vector_store %arg19[%c7_1234, %c0_1235, %c0_1236], %1627 {strides = array<i32>} : memref<8x2x128xf32, #tpu.memory_space<vmem>>, vector<1x2x128xf32>,
    return
  }
}

</mosaic_0001>

<bundles_post_ra>
// kernel: gruae_forward.1
= control target key start
LH: loop header
LB: loop body
LE: loop exit
PB: predicated region body
PF: predicated region fallthrough
CT: control target
= control target key end

     0   :  { %vm71_vm0 = vcmask 1041408   ;;  %v14728_v0 = vmov 0.0   ;;  %vm14729_vm1 = vmmov 0   ;;  %vm67_vm2 = vcmask 31744   ;;  %s17509_s1 = inlined_call_operand.vmem [shape: bf16[3,4,32], index: 1, kind: input, shape index: {}]   ;;  %s17510_s0 = inlined_call_operand.vmem [shape: f32[8,2,4], index: 0, kind: input, shape index: {}]   ;;  %s17511_s2 = inlined_call_operand.vmem [shape: bf16[3,32,32], index: 2, kind: input, shape index: {}]   ;;  %s17512_s5 = inlined_call_operand.vmem [shape: bf16[3,32,32], index: 5, kind: input, shape index: {}]   ;;  %s17513_s6 = inlined_call_operand.vmem [shape: bf16[3,32,32], index: 6, kind: input, shape index: {}]   ;;  %s17514_s3 = inlined_call_operand.vmem [shape: f32[3,2,32], index: 3, kind: input, shape index: {}]   ;;  %s17515_s4 = inlined_call_operand.vmem [shape: f32[2,32], index: 4, kind: input, shape index: {}]   ;;  %s17516_s7 = inlined_call_operand.vmem [shape: f32[3,2,32], index: 7, kind: input, shape index: {}]   ;;  %s17517_s8 = inlined_call_operand.vmem [shape: f32[2,32], index: 8, kind: input, shape index: {}]   ;;  %s17518_s9 = inlined_call_operand.vmem [shape: bf16[3,32,32], index: 9, kind: input, shape index: {}]   ;;  %s17519_s10 = inlined_call_operand.vmem [shape: bf16[3,32,32], index: 10, kind: input, shape index: {}]   ;;  %s17520_s13 = inlined_call_operand.vmem [shape: bf16[3,32,32], index: 13, kind: input, shape index: {}]   ;;  %s17521_s14 = inlined_call_operand.vmem [shape: bf16[3,32,32], index: 14, kind: input, shape index: {}]   ;;  %s17522_s11 = inlined_call_operand.vmem [shape: f32[3,2,32], index: 11, kind: input, shape index: {}]   ;;  %s17523_s12 = inlined_call_operand.vmem [shape: f32[2,32], index: 12, kind: input, shape index: {}]   ;;  %s17524_s17 = inlined_call_operand.vmem [shape: f32[32,128], index: 17, kind: input, shape index: {}]   ;;  %s17525_s15 = inlined_call_operand.vmem [shape: f32[3,2,32], index: 15, kind: input, shape index: {}]   ;;  %s17526_s16 = inlined_call_operand.vmem [shape: f32[2,32], index: 16, kind: input, shape index: {}]   ;;  %s17527_s18 = inlined_call_operand.vmem [shape: f32[2,128], index: 18, kind: input, shape index: {}]   ;;  %s17528_s19 = inlined_call_operand.vmem [shape: f32[8,2,128], index: 19, kind: output, shape index: {}]  }
   0x1   :  { %17533 = sst [smem:[#allocation2_spill]] %s17509_s1  ;;  %12218 = vmatprep.subr.bf16.mxu0 %v14728_v0  ;;  %12220 = vmatprep.mubr.msk.bf16.mxu0 %vm14729_vm1, %v14728_v0  ;;  %v14730_v14 = vmov 0   ;;  %v14954_v23 = vld [vmem:[%s17514_s3] sm:$0x3]  ;;  %v14960_v34 = vld [vmem:[%s17514_s3 + $0x2] sm:$0x3] }
   0x2   :  { %17534 = sst [smem:[#allocation3_spill]] %s17510_s0  ;;  %s17537_s20 = sld [smem:[#allocation2_spill]]  ;;  %12224 = vmatprep.subr.bf16.mxu1 %v14728_v0  ;;  %12226 = vmatprep.mubr.msk.bf16.mxu1 %vm14729_vm1, %v14728_v0  ;;  %v14966_v42 = vld [vmem:[%s17515_s4] sm:$0x3]  ;;  %v14972_v44 = vld [vmem:[%s17514_s3 + $0x4] sm:$0x3] }
   0x3   :  { %17535 = sst [smem:[#allocation4_spill]] %s17511_s2  ;;  %s17538_s22 = sld [smem:[#allocation3_spill]]  ;;  %vm225_vm3 = vcmask 261120   ;;  %v15038_v63 = vld [vmem:[%s17513_s6] sm:$0xff]  }
   0x4   :  { %17536 = sst [smem:[#allocation5_spill]] %s17512_s5  ;;  %s17539_s27 = sld [smem:[#allocation4_spill]] }
   0x5   :  { %s17540_s24 = sld [smem:[#allocation5_spill]] }
   0x8   :  { %v65_v1 = vld [vmem:[%s17537_s20] sm:$0x3]  ;;  %v10860_v3 = vld [vmem:[%s17537_s20 + $0x4] sm:$0x3]  ;;  %v10857_v6 = vld [vmem:[%s17537_s20 + $0x2] sm:$0x3] }
   0x9   :  { %v63_v2 = vld [vmem:[%s17538_s22] sm:$0x3]  ;;  %v14845_v4 = vsel %vm71_vm0, %v65_v1, 0  ;;  %v14855_v7 = vsel %vm71_vm0, %v10857_v6, 0  ;;  %v14859_v8 = vsel %vm71_vm0, %v10860_v3, 0  ;;  %v15043_v1 = vld [vmem:[%s17513_s6 + $0x10] sm:$0xff]  }
   0xa   :  { %v64_v5 = vpack.c.bf16 %v63_v2, %v63_v2  ;;  %12219 = vmatpush3.bf16.msra.mxu0 %v14845_v4  ;;  %12225 = vmatpush3.bf16.msra.mxu1 %v14855_v7  ;;  %v14866_v9 = vld [vmem:[%s17539_s27 + $0x10] sm:$0xff]   ;;  %v14878_v10 = vld [vmem:[%s17539_s27 + $0x18] sm:$0xff]   ;;  %v14886_v11 = vld [vmem:[%s17539_s27] sm:$0xff]  }
   0xb   :  { %12230 = vmatprep.subr.bf16.mxu0 %v14728_v0  ;;  %12244 = vmatprep.subr.bf16.mxu1 %v14728_v0  ;;  %v14895_v12 = vld [vmem:[%s17539_s27 + $0x8] sm:$0xff]   ;;  %v14903_v13 = vld [vmem:[%s17539_s27 + $0x20] sm:$0xff]   ;;  %v15004_v59 = vld [vmem:[%s17540_s24 + $0x10] sm:$0xff]  }
   0xc   :  { %v14911_v15 = vld [vmem:[%s17539_s27 + $0x28] sm:$0xff]   ;;  %v10879_v16 = vld [vmem:[%s17538_s22 + $0x2] sm:$0x3]  ;;  %v15020_v61 = vld [vmem:[%s17540_s24 + $0x18] sm:$0xff]  }
   0xd   :  { %12221 = vmatmul.mubr.msk.bf16.vlgmr.msra.gmra.mrb[0].mxu0 %vm67_vm2, %v64_v5  ;;  %12227 = vmatmul.mubr.msk.bf16.vlgmr.msra.gmra.mrb[0].mxu1 %vm67_vm2, %v64_v5  ;;  %v406_v17 = vpack.c.bf16 %v10879_v16, %v10879_v16  ;;  %v14980_v56 = vld [vmem:[%s17540_s24] sm:$0xff]   ;;  %v14991_v58 = vld [vmem:[%s17540_s24 + $0x8] sm:$0xff]   ;;  %v15059_v3 = vld [vmem:[%s17513_s6 + $0x18] sm:$0xff]  }
   0xe   :  { %12231 = vmatpush3.bf16.msra.mxu0 %v14859_v8  ;;  %12232 = vmatprep.mubr.msk.bf16.mxu0 %vm14729_vm1, %v14728_v0  ;;  %v15009_v60 = vld [vmem:[%s17540_s24 + $0x20] sm:$0xff]   ;;  %v15025_v62 = vld [vmem:[%s17540_s24 + $0x28] sm:$0xff]  }
   0xf   :  { %12236 = vmatprep.subr.bf16.mxu0 %v14728_v0  ;;  %12245 = vmatpush3.bf16.msra.mxu1 %v14866_v9  ;;  %v15053_v2 = vld [vmem:[%s17513_s6 + $0x8] sm:$0xff]  }
  0x10   :  { %12248 = vmatprep.mubr.msk.bf16.mxu1 %vm14729_vm1, %v14728_v0  ;;  %12246 = vmatprep.subr.bf16.mxu1 %v14728_v0  ;;  %v15086_v6 = vld [vmem:[%s17513_s6 + $0x28] sm:$0xff]  }
  0x13   :  { %12247 = vmatpush3.bf16.msra.mxu1 %v14878_v10 }
  0x14   :  { %12252 = vmatprep.subr.bf16.mxu1 %v14728_v0 }
  0x15   :  { %12233 = vmatmul.mubr.msk.bf16.vlgmr.msra.gmra.mrb[4].mxu0 %vm67_vm2, %v64_v5  ;;  %v15075_v5 = vld [vmem:[%s17513_s6 + $0x20] sm:$0xff]  }
  0x16   :  { %12237 = vmatpush3.bf16.msra.mxu0 %v14886_v11  ;;  %12240 = vmatprep.mubr.msk.bf16.mxu0 %vm14729_vm1, %v14728_v0 }
  0x17   :  { %12238 = vmatprep.subr.bf16.mxu0 %v14728_v0 }
  0x19   :  { %12249 = vmatmul.mubr.bf16.vlgmr.msra.gmra.mrb[0].mxu1 %v14730_v14 }
  0x1a   :  { %12239 = vmatpush3.bf16.msra.mxu0 %v14895_v12  ;;  %12253 = vmatpush3.bf16.msra.mxu1 %v14903_v13 }
  0x1b   :  { %12256 = vmatprep.mubr.msk.bf16.mxu1 %vm14729_vm1, %v14728_v0  ;;  %12254 = vmatprep.subr.bf16.mxu1 %v14728_v0 }
  0x1c   :  { %12260 = vmatprep.subr.bf16.mxu0 %v14728_v0 }
  0x1d   :  { %12241 = vmatmul.mubr.bf16.vlgmr.msra.gmra.mrb[0].mxu0 %v14730_v14 }
  0x1e   :  { %12261 = vmatpush3.bf16.msra.mxu0 %v14845_v4  ;;  %12262 = vmatprep.mubr.msk.bf16.mxu0 %vm14729_vm1, %v14728_v0 }
  0x1f   :  { %12255 = vmatpush3.bf16.msra.mxu1 %v14911_v15  ;;  %12272 = vmatprep.subr.bf16.mxu0 %v14728_v0 }
  0x20   :  { %12266 = vmatprep.subr.bf16.mxu1 %v14728_v0 }
  0x22   :  { %12257 = vmatmul.mubr.bf16.vlgmr.msra.gmra.mrb[4].mxu1 %v14730_v14 }
  0x23   :  { %12267 = vmatpush3.bf16.msra.mxu1 %v14855_v7  ;;  %12268 = vmatprep.mubr.msk.bf16.mxu1 %vm14729_vm1, %v14728_v0 }
  0x24   :  { %12286 = vmatprep.subr.bf16.mxu1 %v14728_v0 }
  0x25   :  { %12263 = vmatmul.mubr.msk.bf16.vlgmr.msra.gmra.mrb[8].mxu0 %vm67_vm2, %v406_v17 }
  0x26   :  { %12273 = vmatpush3.bf16.msra.mxu0 %v14859_v8  ;;  %12274 = vmatprep.mubr.msk.bf16.mxu0 %vm14729_vm1, %v14728_v0 }
  0x27   :  { %12278 = vmatprep.subr.bf16.mxu0 %v14728_v0 }
  0x2a   :  { %12269 = vmatmul.mubr.msk.bf16.vlgmr.msra.gmra.mrb[8].mxu1 %vm67_vm2, %v406_v17 }
  0x2b   :  { %12287 = vmatpush3.bf16.msra.mxu1 %v14866_v9  ;;  %12290 = vmatprep.mubr.msk.bf16.mxu1 %vm14729_vm1, %v14728_v0 }
  0x2c   :  { %12288 = vmatprep.subr.bf16.mxu1 %v14728_v0 }
  0x2d   :  { %12275 = vmatmul.mubr.msk.bf16.vlgmr.msra.gmra.mrb[12].mxu0 %vm67_vm2, %v406_v17 }
  0x2e   :  { %12279 = vmatpush3.bf16.msra.mxu0 %v14886_v11  ;;  %12282 = vmatprep.mubr.msk.bf16.mxu0 %vm14729_vm1, %v14728_v0 }
  0x2f   :  { %12289 = vmatpush3.bf16.msra.mxu1 %v14878_v10  ;;  %12280 = vmatprep.subr.bf16.mxu0 %v14728_v0 }
  0x30   :  { %12294 = vmatprep.subr.bf16.mxu1 %v14728_v0 }
  0x32   :  { %12281 = vmatpush3.bf16.msra.mxu0 %v14895_v12 }
  0x33   :  { %12302 = vmatprep.subr.bf16.mxu0 %v14728_v0 }
  0xe8   :  { %v203_v18 = vpop.f32.mrb[4].mxu0 }
  0xe9   :  { %v12234_v19 = vpop.f32.mrb[5].mxu0  ;;  %v204_v47 = vadd.f32 %v14972_v44, %v203_v18 }
  0xea   :  { %v206_v20 = vpop.f32.mrb[6].mxu0 }
  0xeb   :  { %v12235_v21 = vpop.f32.mrb[7].mxu0  ;;  %v10923_v20 = vld [vmem:[%s17538_s22 + $0x4] sm:$0x3] }
  0xec   :  { %v320_v22 = vpop.f32.mrb[0].mxu1  ;;  %v1042_v21 = vpack.c.bf16 %v10923_v20, %v10923_v20 }
  0xed   :  { %v12250_v24 = vpop.f32.mrb[1].mxu1  ;;  %v13843_v38 = vadd.f32 %v14960_v34, %v320_v22 }
  0xee   :  { %v323_v25 = vpop.f32.mrb[2].mxu1 }
  0xef   :  { %v12251_v27 = vpop.f32.mrb[3].mxu1  ;;  %v10876_v39 = vmul.f32 -1.442695, %v13843_v38 }
  0xf0   :  { %v263_v26 = vpop.f32.mrb[0].mxu0 }
  0xf1   :  { %v13842_v28 = vadd.f32 %v263_v26, %v14954_v23  ;;  %v12242_v29 = vpop.f32.mrb[1].mxu0 }
  0xf2   :  { %v266_v30 = vpop.f32.mrb[2].mxu0 }
  0xf3   :  { %v10875_v31 = vmul.f32 -1.442695, %v13842_v28  ;;  %v12243_v32 = vpop.f32.mrb[3].mxu0 }
  0xf5   :  { %14364 = vpow2.f32 %v10875_v31  ;;  %v392_v33 = vpop.f32.mrb[4].mxu1 }
  0xf6   :  { %v12258_v35 = vpop.f32.mrb[5].mxu1  ;;  %14366 = vpow2.f32 %v10876_v39  ;;  %v393_v43 = vadd.f32 %v392_v33, %v14966_v42 }
  0xf7   :  { %v395_v36 = vpop.f32.mrb[6].mxu1 }
  0xf8   :  { %v12259_v37 = vpop.f32.mrb[7].mxu1 }
  0xff   :  { %v14365_v40 = vpop.eup %14364 }
 0x100   :  { %v335_v41 = vadd.f32 1.0, %v14365_v40  ;;  %v14367_v45 = vpop.eup %14366  ;;  %v525_v16 = vpop.f32.mrb[12].mxu0 }
 0x101   :  { %v342_v49 = vadd.f32 1.0, %v14367_v45  ;;  %v12276_v17 = vpop.f32.mrb[13].mxu0 }
 0x102   :  { %14368 = vrcp.f32 %v335_v41  ;;  %v528_v18 = vpop.f32.mrb[14].mxu0 }
 0x103   :  { %v12277_v19 = vpop.f32.mrb[15].mxu0 }
 0x104   :  { %v526_v19 = vadd.f32 %v14972_v44, %v525_v16 }
 0x10c   :  { %v14369_v46 = vpop.eup %14368 }
 0x10d   :  { %v398_v48 = vmul.f32 %v14369_v46, %v393_v43 }
 0x10f   :  { %v399_v50 = vadd.f32 %v398_v48, %v204_v47  ;;  %v15125_v47 = vld [vmem:[%s17516_s7] sm:$0x3] }
 0x111   :  { %14370 = vtanh.f32 %v399_v50 }
 0x112   :  { %14372 = vrcp.f32 %v342_v49 }
 0x11b   :  { %v14371_v51 = vpop.eup %14370 }
 0x11c   :  { %v401_v52 = vsub.f32 0.0, %v14371_v51  ;;  %v14373_v53 = vpop.eup %14372 }
 0x11e   :  { %v402_v54 = vmul.f32 %v14373_v53, %v401_v52 }
 0x120   :  { %v14975_v55 = vadd.f32 %v14371_v51, %v402_v54 }
 0x122   :  { %v407_v57 = vpack.c.bf16 %v14975_v55, %v14975_v55 }
 0x124   :  { %12283 = vmatmul.mubr.msk.bf16.vlgmr.msra.gmra.mrb[8].mxu0 %vm225_vm3, %v407_v57  ;;  %12291 = vmatmul.mubr.msk.bf16.vlgmr.msra.gmra.mrb[8].mxu1 %vm225_vm3, %v407_v57 }
 0x125   :  { %12295 = vmatpush3.bf16.msra.mxu1 %v14903_v13  ;;  %12303 = vmatpush3.bf16.msra.mxu0 %v14980_v56 }
 0x126   :  { %12296 = vmatprep.subr.bf16.mxu1 %v14728_v0  ;;  %12304 = vmatprep.subr.bf16.mxu0 %v14728_v0 }
 0x127   :  { %12298 = vmatprep.mubr.msk.bf16.mxu1 %vm14729_vm1, %v14728_v0  ;;  %12306 = vmatprep.mubr.msk.bf16.mxu0 %vm14729_vm1, %v14728_v0 }
 0x129   :  { %12297 = vmatpush3.bf16.msra.mxu1 %v14911_v15  ;;  %12305 = vmatpush3.bf16.msra.mxu0 %v14991_v58 }
 0x12a   :  { %12310 = vmatprep.subr.bf16.mxu1 %v14728_v0  ;;  %12318 = vmatprep.subr.bf16.mxu0 %v14728_v0 }
 0x12c   :  { %12299 = vmatmul.mubr.msk.bf16.vlgmr.msra.gmra.mrb[12].mxu1 %vm225_vm3, %v407_v57  ;;  %12307 = vmatmul.mubr.msk.bf16.vlgmr.msra.gmra.mrb[16].mxu0 %vm225_vm3, %v407_v57 }
 0x12d   :  { %12311 = vmatpush3.bf16.msra.mxu1 %v15004_v59  ;;  %12319 = vmatpush3.bf16.msra.mxu0 %v15009_v60 }
 0x12e   :  { %12312 = vmatprep.subr.bf16.mxu1 %v14728_v0  ;;  %12320 = vmatprep.subr.bf16.mxu0 %v14728_v0 }
 0x12f   :  { %12314 = vmatprep.mubr.msk.bf16.mxu1 %vm14729_vm1, %v14728_v0  ;;  %12322 = vmatprep.mubr.msk.bf16.mxu0 %vm14729_vm1, %v14728_v0 }
 0x131   :  { %12313 = vmatpush3.bf16.msra.mxu1 %v15020_v61  ;;  %12321 = vmatpush3.bf16.msra.mxu0 %v15025_v62 }
 0x132   :  { %12326 = vmatprep.subr.bf16.mxu0 %v14728_v0  ;;  %12334 = vmatprep.subr.bf16.mxu1 %v14728_v0 }
 0x134   :  { %12315 = vmatmul.mubr.msk.bf16.vlgmr.msra.gmra.mrb[16].mxu1 %vm225_vm3, %v407_v57  ;;  %12323 = vmatmul.mubr.msk.bf16.vlgmr.msra.gmra.mrb[20].mxu0 %vm225_vm3, %v407_v57 }
 0x135   :  { %12327 = vmatpush3.bf16.msra.mxu0 %v15038_v63  ;;  %12335 = vmatpush3.bf16.msra.mxu1 %v15043_v1 }
 0x136   :  { %12328 = vmatprep.subr.bf16.mxu0 %v14728_v0  ;;  %12330 = vmatprep.mubr.msk.bf16.mxu0 %vm14729_vm1, %v14728_v0 }
 0x137   :  { %12336 = vmatprep.subr.bf16.mxu1 %v14728_v0  ;;  %12338 = vmatprep.mubr.msk.bf16.mxu1 %vm14729_vm1, %v14728_v0 }
 0x139   :  { %12329 = vmatpush3.bf16.msra.mxu0 %v15053_v2  ;;  %12337 = vmatpush3.bf16.msra.mxu1 %v15059_v3 }
 0x13a   :  { %12342 = vmatprep.subr.bf16.mxu1 %v14728_v0  ;;  %12350 = vmatprep.subr.bf16.mxu0 %v14728_v0 }
 0x13c   :  { %12331 = vmatmul.mubr.bf16.vlgmr.msra.gmra.mrb[16].mxu0 %v14730_v14 }
 0x13d   :  { %12351 = vmatpush3.bf16.msra.mxu0 %v14845_v4  ;;  %12352 = vmatprep.mubr.msk.bf16.mxu0 %vm14729_vm1, %v14728_v0 }
 0x13e   :  { %12362 = vmatprep.subr.bf16.mxu0 %v14728_v0 }
 0x140   :  { %12339 = vmatmul.mubr.bf16.vlgmr.msra.gmra.mrb[16].mxu1 %v14730_v14 }
 0x141   :  { %12343 = vmatpush3.bf16.msra.mxu1 %v15075_v5  ;;  %12346 = vmatprep.mubr.msk.bf16.mxu1 %vm14729_vm1, %v14728_v0 }
 0x142   :  { %12344 = vmatprep.subr.bf16.mxu1 %v14728_v0 }
 0x144   :  { %12353 = vmatmul.mubr.msk.bf16.vlgmr.msra.gmra.mrb[24].mxu0 %vm67_vm2, %v1042_v21 }
 0x145   :  { %12345 = vmatpush3.bf16.msra.mxu1 %v15086_v6  ;;  %12363 = vmatpush3.bf16.msra.mxu0 %v14859_v8 }
 0x146   :  { %12356 = vmatprep.subr.bf16.mxu1 %v14728_v0  ;;  %12364 = vmatprep.mubr.msk.bf16.mxu0 %vm14729_vm1, %v14728_v0 }
 0x147   :  { %12368 = vmatprep.subr.bf16.mxu0 %v14728_v0 }
 0x148   :  { %12347 = vmatmul.mubr.bf16.vlgmr.msra.gmra.mrb[20].mxu1 %v14730_v14 }
 0x149   :  { %12357 = vmatpush3.bf16.msra.mxu1 %v14855_v7  ;;  %12358 = vmatprep.mubr.msk.bf16.mxu1 %vm14729_vm1, %v14728_v0 }
 0x14a   :  { %12376 = vmatprep.subr.bf16.mxu1 %v14728_v0 }
 0x14c   :  { %12365 = vmatmul.mubr.msk.bf16.vlgmr.msra.gmra.mrb[28].mxu0 %vm67_vm2, %v1042_v21 }
 0x14d   :  { %12369 = vmatpush3.bf16.msra.mxu0 %v14886_v11  ;;  %12372 = vmatprep.mubr.msk.bf16.mxu0 %vm14729_vm1, %v14728_v0 }
 0x14e   :  { %12370 = vmatprep.subr.bf16.mxu0 %v14728_v0 }
 0x150   :  { %12359 = vmatmul.mubr.msk.bf16.vlgmr.msra.gmra.mrb[24].mxu1 %vm67_vm2, %v1042_v21 }
 0x151   :  { %12377 = vmatpush3.bf16.msra.mxu1 %v14866_v9  ;;  %12380 = vmatprep.mubr.msk.bf16.mxu1 %vm14729_vm1, %v14728_v0 }
 0x152   :  { %12378 = vmatprep.subr.bf16.mxu1 %v14728_v0  ;;  %12371 = vmatpush3.bf16.msra.mxu0 %v14895_v12 }
 0x153   :  { %12392 = vmatprep.subr.bf16.mxu0 %v14728_v0 }
 0x155   :  { %12379 = vmatpush3.bf16.msra.mxu1 %v14878_v10 }
 0x156   :  { %12384 = vmatprep.subr.bf16.mxu1 %v14728_v0 }
 0x1f7   :  { %v568_v14 = vpop.f32.mrb[8].mxu0  ;;  %v608_v22 = vpop.f32.mrb[8].mxu1 }
 0x1f8   :  { %v13844_v24 = vadd.f32 %v568_v14, %v14954_v23  ;;  %v12284_v25 = vpop.f32.mrb[9].mxu0  ;;  %v12292_v26 = vpop.f32.mrb[9].mxu1  ;;  %v13845_v33 = vadd.f32 %v14960_v34, %v608_v22  ;;  %v15133_v14 = vld [vmem:[%s17516_s7 + $0x2] sm:$0x3] }
 0x1f9   :  { %v571_v27 = vpop.f32.mrb[10].mxu0  ;;  %v611_v28 = vpop.f32.mrb[10].mxu1 }
 0x1fa   :  { %v10885_v29 = vmul.f32 -1.442695, %v13844_v24  ;;  %v12285_v30 = vpop.f32.mrb[11].mxu0  ;;  %v12293_v31 = vpop.f32.mrb[11].mxu1  ;;  %v10886_v38 = vmul.f32 -1.442695, %v13845_v33 }
 0x1fc   :  { %14374 = vpow2.f32 %v10885_v29 }
 0x1fd   :  { %14376 = vpow2.f32 %v10886_v38 }
 0x1ff   :  { %v662_v32 = vpop.f32.mrb[12].mxu1 }
 0x200   :  { %v12300_v35 = vpop.f32.mrb[13].mxu1  ;;  %v663_v53 = vadd.f32 %v662_v32, %v14966_v42 }
 0x201   :  { %v665_v36 = vpop.f32.mrb[14].mxu1 }
 0x202   :  { %v12301_v37 = vpop.f32.mrb[15].mxu1 }
 0x206   :  { %v14375_v39 = vpop.eup %14374 }
 0x207   :  { %v618_v40 = vadd.f32 1.0, %v14375_v39  ;;  %v843_v41 = vpop.f32.mrb[20].mxu0  ;;  %v14377_v52 = vpop.eup %14376  ;;  %v15140_v39 = vld [vmem:[%s17517_s8] sm:$0x3] }
 0x208   :  { %v12324_v43 = vpop.f32.mrb[21].mxu0  ;;  %v625_v24 = vadd.f32 1.0, %v14377_v52 }
 0x209   :  { %14378 = vrcp.f32 %v618_v40  ;;  %v846_v45 = vpop.f32.mrb[22].mxu0 }
 0x20a   :  { %v12325_v46 = vpop.f32.mrb[23].mxu0  ;;  %v15148_v45 = vld [vmem:[%s17516_s7 + $0x4] sm:$0x3] }
 0x20f   :  { %v899_v48 = vpop.f32.mrb[16].mxu0 }
 0x210   :  { %v13846_v49 = vadd.f32 %v899_v48, %v15125_v47  ;;  %v12332_v50 = vpop.f32.mrb[17].mxu0 }
 0x211   :  { %v902_v51 = vpop.f32.mrb[18].mxu0 }
 0x212   :  { %v10919_v54 = vmul.f32 -1.442695, %v13846_v49  ;;  %v12333_v57 = vpop.f32.mrb[19].mxu0  ;;  %v844_v49 = vadd.f32 %v15148_v45, %v843_v41 }
 0x213   :  { %v14379_v17 = vpop.eup %14378  ;;  %v956_v18 = vpop.f32.mrb[16].mxu1 }
 0x214   :  { %v668_v20 = vmul.f32 %v14379_v17, %v663_v53  ;;  %14380 = vpow2.f32 %v10919_v54  ;;  %v12340_v21 = vpop.f32.mrb[17].mxu1  ;;  %v13847_v27 = vadd.f32 %v15133_v14, %v956_v18 }
 0x215   :  { %v959_v22 = vpop.f32.mrb[18].mxu1 }
 0x216   :  { %v669_v25 = vadd.f32 %v668_v20, %v526_v19  ;;  %v12341_v26 = vpop.f32.mrb[19].mxu1  ;;  %v10920_v29 = vmul.f32 -1.442695, %v13847_v27 }
 0x218   :  { %14382 = vtanh.f32 %v669_v25 }
 0x219   :  { %14384 = vrcp.f32 %v625_v24  ;;  %v10940_v24 = vld [vmem:[%s17538_s22 + $0x6] sm:$0x3] }
 0x21a   :  { %14386 = vpow2.f32 %v10920_v29  ;;  %v1576_v25 = vpack.c.bf16 %v10940_v24, %v10940_v24 }
 0x21b   :  { %v1028_v28 = vpop.f32.mrb[20].mxu1 }
 0x21c   :  { %v12348_v30 = vpop.f32.mrb[21].mxu1  ;;  %v1029_v43 = vadd.f32 %v1028_v28, %v15140_v39 }
 0x21d   :  { %v1031_v16 = vpop.f32.mrb[22].mxu1 }
 0x21e   :  { %v14381_v31 = vpop.eup %14380  ;;  %v12349_v32 = vpop.f32.mrb[23].mxu1 }
 0x21f   :  { %v971_v33 = vadd.f32 1.0, %v14381_v31  ;;  %v1161_v19 = vpop.f32.mrb[28].mxu0 }
 0x220   :  { %v12366_v20 = vpop.f32.mrb[29].mxu0 }
 0x221   :  { %14388 = vrcp.f32 %v971_v33  ;;  %v1164_v21 = vpop.f32.mrb[30].mxu0 }
 0x222   :  { %v14383_v35 = vpop.eup %14382  ;;  %v12367_v22 = vpop.f32.mrb[31].mxu0 }
 0x223   :  { %v671_v36 = vsub.f32 %v14975_v55, %v14383_v35  ;;  %v14385_v37 = vpop.eup %14384 }
 0x224   :  { %v14387_v55 = vpop.eup %14386 }
 0x225   :  { %v672_v38 = vmul.f32 %v14385_v37, %v671_v36  ;;  %v978_v51 = vadd.f32 1.0, %v14387_v55 }
 0x227   :  { %v15142_v40 = vadd.f32 %v14383_v35, %v672_v38 }
 0x229   :  { %v1043_v46 = vpack.c.bf16 %v15142_v40, %v15142_v40 }
 0x22b   :  { %v14389_v48 = vpop.eup %14388  ;;  %12373 = vmatmul.mubr.msk.bf16.vlgmr.msra.gmra.mrb[24].mxu0 %vm225_vm3, %v1043_v46  ;;  %12381 = vmatmul.mubr.msk.bf16.vlgmr.msra.gmra.mrb[24].mxu1 %vm225_vm3, %v1043_v46 }
 0x22c   :  { %v1034_v50 = vmul.f32 %v14389_v48, %v1029_v43  ;;  %12385 = vmatpush3.bf16.msra.mxu1 %v14903_v13  ;;  %12393 = vmatpush3.bf16.msra.mxu0 %v14980_v56 }
 0x22d   :  { %12386 = vmatprep.subr.bf16.mxu1 %v14728_v0  ;;  %12394 = vmatprep.subr.bf16.mxu0 %v14728_v0 }
 0x22e   :  { %v1035_v52 = vadd.f32 %v1034_v50, %v844_v49  ;;  %12388 = vmatprep.mubr.msk.bf16.mxu1 %vm14729_vm1, %v14728_v0  ;;  %12396 = vmatprep.mubr.msk.bf16.mxu0 %vm14729_vm1, %v14728_v0 }
 0x230   :  { %14390 = vtanh.f32 %v1035_v52  ;;  %12387 = vmatpush3.bf16.msra.mxu1 %v14911_v15  ;;  %12395 = vmatpush3.bf16.msra.mxu0 %v14991_v58 }
 0x231   :  { %12400 = vmatprep.subr.bf16.mxu1 %v14728_v0  ;;  %12408 = vmatprep.subr.bf16.mxu0 %v14728_v0  ;;  %14392 = vrcp.f32 %v978_v51 }
 0x233   :  { %12389 = vmatmul.mubr.msk.bf16.vlgmr.msra.gmra.mrb[28].mxu1 %vm225_vm3, %v1043_v46  ;;  %12397 = vmatmul.mubr.msk.bf16.vlgmr.msra.gmra.mrb[32].mxu0 %vm225_vm3, %v1043_v46 }
 0x234   :  { %12401 = vmatpush3.bf16.msra.mxu1 %v15004_v59  ;;  %12409 = vmatpush3.bf16.msra.mxu0 %v15009_v60 }
 0x235   :  { %12402 = vmatprep.subr.bf16.mxu1 %v14728_v0  ;;  %12410 = vmatprep.subr.bf16.mxu0 %v14728_v0 }
 0x236   :  { %12404 = vmatprep.mubr.msk.bf16.mxu1 %vm14729_vm1, %v14728_v0  ;;  %12412 = vmatprep.mubr.msk.bf16.mxu0 %vm14729_vm1, %v14728_v0 }
 0x238   :  { %12403 = vmatpush3.bf16.msra.mxu1 %v15020_v61  ;;  %12411 = vmatpush3.bf16.msra.mxu0 %v15025_v62 }
 0x239   :  { %12416 = vmatprep.subr.bf16.mxu0 %v14728_v0  ;;  %12424 = vmatprep.subr.bf16.mxu1 %v14728_v0 }
 0x23a   :  { %v14391_v41 = vpop.eup %14390 }
 0x23b   :  { %v1037_v53 = vsub.f32 0.0, %v14391_v41  ;;  %12405 = vmatmul.mubr.msk.bf16.vlgmr.msra.gmra.mrb[32].mxu1 %vm225_vm3, %v1043_v46  ;;  %12413 = vmatmul.mubr.msk.bf16.vlgmr.msra.gmra.mrb[36].mxu0 %vm225_vm3, %v1043_v46  ;;  %v14393_v54 = vpop.eup %14392 }
 0x23c   :  { %12417 = vmatpush3.bf16.msra.mxu0 %v15038_v63  ;;  %12425 = vmatpush3.bf16.msra.mxu1 %v15043_v1 }
 0x23d   :  { %v1038_v57 = vmul.f32 %v14393_v54, %v1037_v53  ;;  %12418 = vmatprep.subr.bf16.mxu0 %v14728_v0  ;;  %12420 = vmatprep.mubr.msk.bf16.mxu0 %vm14729_vm1, %v14728_v0 }
 0x23e   :  { %12426 = vmatprep.subr.bf16.mxu1 %v14728_v0  ;;  %12428 = vmatprep.mubr.msk.bf16.mxu1 %vm14729_vm1, %v14728_v0 }
 0x23f   :  { %v15191_v17 = vadd.f32 %v14391_v41, %v1038_v57 }
 0x240   :  { %12419 = vmatpush3.bf16.msra.mxu0 %v15053_v2  ;;  %12427 = vmatpush3.bf16.msra.mxu1 %v15059_v3 }
 0x241   :  { %v15197_v18 = vpack.c.bf16 %v15191_v17, %v15191_v17  ;;  %12432 = vmatprep.subr.bf16.mxu1 %v14728_v0  ;;  %12440 = vmatprep.subr.bf16.mxu0 %v14728_v0 }
 0x243   :  { %12421 = vmatmul.mubr.msk.bf16.vlgmr.msra.gmra.mrb[32].mxu0 %vm225_vm3, %v15197_v18 }
 0x244   :  { %12441 = vmatpush3.bf16.msra.mxu0 %v14845_v4  ;;  %12442 = vmatprep.mubr.msk.bf16.mxu0 %vm14729_vm1, %v14728_v0 }
 0x245   :  { %12452 = vmatprep.subr.bf16.mxu0 %v14728_v0 }
 0x247   :  { %12429 = vmatmul.mubr.msk.bf16.vlgmr.msra.gmra.mrb[32].mxu1 %vm225_vm3, %v15197_v18 }
 0x248   :  { %12433 = vmatpush3.bf16.msra.mxu1 %v15075_v5  ;;  %12436 = vmatprep.mubr.msk.bf16.mxu1 %vm14729_vm1, %v14728_v0 }
 0x249   :  { %12434 = vmatprep.subr.bf16.mxu1 %v14728_v0 }
 0x24b   :  { %12443 = vmatmul.mubr.msk.bf16.vlgmr.msra.gmra.mrb[40].mxu0 %vm67_vm2, %v1576_v25 }
 0x24c   :  { %12435 = vmatpush3.bf16.msra.mxu1 %v15086_v6  ;;  %12453 = vmatpush3.bf16.msra.mxu0 %v14859_v8 }
 0x24d   :  { %12446 = vmatprep.subr.bf16.mxu1 %v14728_v0  ;;  %12454 = vmatprep.mubr.msk.bf16.mxu0 %vm14729_vm1, %v14728_v0 }
 0x24e   :  { %12458 = vmatprep.subr.bf16.mxu0 %v14728_v0 }
 0x24f   :  { %12437 = vmatmul.mubr.msk.bf16.vlgmr.msra.gmra.mrb[36].mxu1 %vm225_vm3, %v15197_v18 }
 0x250   :  { %12447 = vmatpush3.bf16.msra.mxu1 %v14855_v7  ;;  %12448 = vmatprep.mubr.msk.bf16.mxu1 %vm14729_vm1, %v14728_v0 }
 0x251   :  { %12466 = vmatprep.subr.bf16.mxu1 %v14728_v0 }
 0x253   :  { %12455 = vmatmul.mubr.msk.bf16.vlgmr.msra.gmra.mrb[44].mxu0 %vm67_vm2, %v1576_v25 }
 0x254   :  { %12459 = vmatpush3.bf16.msra.mxu0 %v14886_v11  ;;  %12462 = vmatprep.mubr.msk.bf16.mxu0 %vm14729_vm1, %v14728_v0 }
 0x255   :  { %12460 = vmatprep.subr.bf16.mxu0 %v14728_v0 }
 0x257   :  { %12449 = vmatmul.mubr.msk.bf16.vlgmr.msra.gmra.mrb[40].mxu1 %vm67_vm2, %v1576_v25 }
 0x258   :  { %12467 = vmatpush3.bf16.msra.mxu1 %v14866_v9  ;;  %12470 = vmatprep.mubr.msk.bf16.mxu1 %vm14729_vm1, %v14728_v0 }
 0x259   :  { %12468 = vmatprep.subr.bf16.mxu1 %v14728_v0  ;;  %12461 = vmatpush3.bf16.msra.mxu0 %v14895_v12 }
 0x25a   :  { %12482 = vmatprep.subr.bf16.mxu0 %v14728_v0 }
 0x25c   :  { %12469 = vmatpush3.bf16.msra.mxu1 %v14878_v10 }
 0x25d   :  { %12474 = vmatprep.subr.bf16.mxu1 %v14728_v0 }
 0x2fe   :  { %v1204_v26 = vpop.f32.mrb[24].mxu0  ;;  %v1244_v27 = vpop.f32.mrb[24].mxu1 }
 0x2ff   :  { %v13848_v28 = vadd.f32 %v1204_v26, %v14954_v23  ;;  %v12374_v29 = vpop.f32.mrb[25].mxu0  ;;  %v12382_v30 = vpop.f32.mrb[25].mxu1  ;;  %v13849_v37 = vadd.f32 %v14960_v34, %v1244_v27 }
 0x300   :  { %v1207_v16 = vpop.f32.mrb[26].mxu0  ;;  %v1247_v31 = vpop.f32.mrb[26].mxu1 }
 0x301   :  { %v10929_v32 = vmul.f32 -1.442695, %v13848_v28  ;;  %v12375_v33 = vpop.f32.mrb[27].mxu0  ;;  %v12383_v35 = vpop.f32.mrb[27].mxu1  ;;  %v10930_v55 = vmul.f32 -1.442695, %v13849_v37  ;;  %v1162_v28 = vadd.f32 %v14972_v44, %v1161_v19 }
 0x303   :  { %14394 = vpow2.f32 %v10929_v32 }
 0x304   :  { %14396 = vpow2.f32 %v10930_v55 }
 0x306   :  { %v1298_v36 = vpop.f32.mrb[28].mxu1 }
 0x307   :  { %v12390_v38 = vpop.f32.mrb[29].mxu1  ;;  %v1299_v22 = vadd.f32 %v1298_v36, %v14966_v42 }
 0x308   :  { %v1301_v43 = vpop.f32.mrb[30].mxu1 }
 0x309   :  { %v12391_v46 = vpop.f32.mrb[31].mxu1 }
 0x30d   :  { %v14395_v48 = vpop.eup %14394 }
 0x30e   :  { %v1254_v49 = vadd.f32 1.0, %v14395_v48  ;;  %v1425_v50 = vpop.f32.mrb[36].mxu0  ;;  %v14397_v21 = vpop.eup %14396 }
 0x30f   :  { %v12414_v51 = vpop.f32.mrb[37].mxu0  ;;  %v1261_v31 = vadd.f32 1.0, %v14397_v21  ;;  %v1426_v21 = vadd.f32 %v15148_v45, %v1425_v50 }
 0x310   :  { %14398 = vrcp.f32 %v1254_v49  ;;  %v1428_v52 = vpop.f32.mrb[38].mxu0 }
 0x311   :  { %v12415_v41 = vpop.f32.mrb[39].mxu0 }
 0x316   :  { %v1468_v53 = vpop.f32.mrb[32].mxu0 }
 0x317   :  { %v13850_v54 = vadd.f32 %v1468_v53, %v15125_v47  ;;  %v12422_v57 = vpop.f32.mrb[33].mxu0 }
 0x318   :  { %v1471_v20 = vpop.f32.mrb[34].mxu0 }
 0x319   :  { %v10937_v24 = vmul.f32 -1.442695, %v13850_v54  ;;  %v12423_v25 = vpop.f32.mrb[35].mxu0 }
 0x31a   :  { %v14399_v26 = vpop.eup %14398  ;;  %v1508_v27 = vpop.f32.mrb[32].mxu1 }
 0x31b   :  { %v1304_v29 = vmul.f32 %v14399_v26, %v1299_v22  ;;  %14400 = vpow2.f32 %v10937_v24  ;;  %v12430_v30 = vpop.f32.mrb[33].mxu1  ;;  %v13851_v35 = vadd.f32 %v15133_v14, %v1508_v27 }
 0x31c   :  { %v1511_v16 = vpop.f32.mrb[34].mxu1 }
 0x31d   :  { %v1305_v32 = vadd.f32 %v1304_v29, %v1162_v28  ;;  %v12431_v33 = vpop.f32.mrb[35].mxu1  ;;  %v10938_v38 = vmul.f32 -1.442695, %v13851_v35  ;;  %v10957_v16 = vld [vmem:[%s17538_s22 + $0x8] sm:$0x3] }
 0x31f   :  { %14402 = vtanh.f32 %v1305_v32 }
 0x320   :  { %14404 = vrcp.f32 %v1261_v31  ;;  %v2110_v31 = vpack.c.bf16 %v10957_v16, %v10957_v16 }
 0x321   :  { %14406 = vpow2.f32 %v10938_v38 }
 0x322   :  { %v1562_v37 = vpop.f32.mrb[36].mxu1 }
 0x323   :  { %v12438_v36 = vpop.f32.mrb[37].mxu1  ;;  %v1563_v57 = vadd.f32 %v1562_v37, %v15140_v39 }
 0x324   :  { %v1565_v43 = vpop.f32.mrb[38].mxu1 }
 0x325   :  { %v14401_v46 = vpop.eup %14400  ;;  %v12439_v55 = vpop.f32.mrb[39].mxu1 }
 0x326   :  { %v1518_v48 = vadd.f32 1.0, %v14401_v46  ;;  %v1695_v27 = vpop.f32.mrb[44].mxu0 }
 0x327   :  { %v12456_v28 = vpop.f32.mrb[45].mxu0 }
 0x328   :  { %14408 = vrcp.f32 %v1518_v48  ;;  %v1698_v29 = vpop.f32.mrb[46].mxu0  ;;  %v1696_v28 = vadd.f32 %v14972_v44, %v1695_v27 }
 0x329   :  { %v14403_v19 = vpop.eup %14402  ;;  %v12457_v30 = vpop.f32.mrb[47].mxu0 }
 0x32a   :  { %v1307_v49 = vsub.f32 %v15142_v40, %v14403_v19  ;;  %v14405_v51 = vpop.eup %14404 }
 0x32b   :  { %v14407_v54 = vpop.eup %14406 }
 0x32c   :  { %v1308_v52 = vmul.f32 %v14405_v51, %v1307_v49  ;;  %v1525_v40 = vadd.f32 1.0, %v14407_v54 }
 0x32e   :  { %v15250_v41 = vadd.f32 %v14403_v19, %v1308_v52 }
 0x330   :  { %v1577_v53 = vpack.c.bf16 %v15250_v41, %v15250_v41 }
 0x332   :  { %v14409_v20 = vpop.eup %14408  ;;  %12463 = vmatmul.mubr.msk.bf16.vlgmr.msra.gmra.mrb[40].mxu0 %vm225_vm3, %v1577_v53  ;;  %12471 = vmatmul.mubr.msk.bf16.vlgmr.msra.gmra.mrb[40].mxu1 %vm225_vm3, %v1577_v53 }
 0x333   :  { %v1568_v22 = vmul.f32 %v14409_v20, %v1563_v57  ;;  %12475 = vmatpush3.bf16.msra.mxu1 %v14903_v13  ;;  %12483 = vmatpush3.bf16.msra.mxu0 %v14980_v56 }
 0x334   :  { %12476 = vmatprep.subr.bf16.mxu1 %v14728_v0  ;;  %12484 = vmatprep.subr.bf16.mxu0 %v14728_v0 }
 0x335   :  { %v1569_v24 = vadd.f32 %v1568_v22, %v1426_v21  ;;  %12478 = vmatprep.mubr.msk.bf16.mxu1 %vm14729_vm1, %v14728_v0  ;;  %12486 = vmatprep.mubr.msk.bf16.mxu0 %vm14729_vm1, %v14728_v0 }
 0x337   :  { %14410 = vtanh.f32 %v1569_v24  ;;  %12477 = vmatpush3.bf16.msra.mxu1 %v14911_v15  ;;  %12485 = vmatpush3.bf16.msra.mxu0 %v14991_v58 }
 0x338   :  { %12490 = vmatprep.subr.bf16.mxu1 %v14728_v0  ;;  %12498 = vmatprep.subr.bf16.mxu0 %v14728_v0  ;;  %14412 = vrcp.f32 %v1525_v40 }
 0x33a   :  { %12479 = vmatmul.mubr.msk.bf16.vlgmr.msra.gmra.mrb[44].mxu1 %vm225_vm3, %v1577_v53  ;;  %12487 = vmatmul.mubr.msk.bf16.vlgmr.msra.gmra.mrb[48].mxu0 %vm225_vm3, %v1577_v53 }
 0x33b   :  { %12491 = vmatpush3.bf16.msra.mxu1 %v15004_v59  ;;  %12499 = vmatpush3.bf16.msra.mxu0 %v15009_v60 }
 0x33c   :  { %12492 = vmatprep.subr.bf16.mxu1 %v14728_v0  ;;  %12500 = vmatprep.subr.bf16.mxu0 %v14728_v0 }
 0x33d   :  { %12494 = vmatprep.mubr.msk.bf16.mxu1 %vm14729_vm1, %v14728_v0  ;;  %12502 = vmatprep.mubr.msk.bf16.mxu0 %vm14729_vm1, %v14728_v0 }
 0x33f   :  { %12493 = vmatpush3.bf16.msra.mxu1 %v15020_v61  ;;  %12501 = vmatpush3.bf16.msra.mxu0 %v15025_v62 }
 0x340   :  { %12506 = vmatprep.subr.bf16.mxu0 %v14728_v0  ;;  %12514 = vmatprep.subr.bf16.mxu1 %v14728_v0 }
 0x341   :  { %v14411_v13 = vpop.eup %14410 }
 0x342   :  { %v1571_v15 = vsub.f32 %v15191_v17, %v14411_v13  ;;  %12495 = vmatmul.mubr.msk.bf16.vlgmr.msra.gmra.mrb[48].mxu1 %vm225_vm3, %v1577_v53  ;;  %12503 = vmatmul.mubr.msk.bf16.vlgmr.msra.gmra.mrb[52].mxu0 %vm225_vm3, %v1577_v53  ;;  %v14413_v50 = vpop.eup %14412 }
 0x343   :  { %12507 = vmatpush3.bf16.msra.mxu0 %v15038_v63  ;;  %12515 = vmatpush3.bf16.msra.mxu1 %v15043_v1 }
 0x344   :  { %v1572_v25 = vmul.f32 %v14413_v50, %v1571_v15  ;;  %12508 = vmatprep.subr.bf16.mxu0 %v14728_v0  ;;  %12510 = vmatprep.mubr.msk.bf16.mxu0 %vm14729_vm1, %v14728_v0 }
 0x345   :  { %12516 = vmatprep.subr.bf16.mxu1 %v14728_v0  ;;  %12518 = vmatprep.mubr.msk.bf16.mxu1 %vm14729_vm1, %v14728_v0 }
 0x346   :  { %v15295_v17 = vadd.f32 %v14411_v13, %v1572_v25 }
 0x347   :  { %12509 = vmatpush3.bf16.msra.mxu0 %v15053_v2  ;;  %12517 = vmatpush3.bf16.msra.mxu1 %v15059_v3 }
 0x348   :  { %v15301_v26 = vpack.c.bf16 %v15295_v17, %v15295_v17  ;;  %12522 = vmatprep.subr.bf16.mxu1 %v14728_v0  ;;  %12530 = vmatprep.subr.bf16.mxu0 %v14728_v0 }
 0x34a   :  { %12511 = vmatmul.mubr.msk.bf16.vlgmr.msra.gmra.mrb[48].mxu0 %vm225_vm3, %v15301_v26 }
 0x34b   :  { %12531 = vmatpush3.bf16.msra.mxu0 %v14845_v4  ;;  %12532 = vmatprep.mubr.msk.bf16.mxu0 %vm14729_vm1, %v14728_v0 }
 0x34c   :  { %12542 = vmatprep.subr.bf16.mxu0 %v14728_v0 }
 0x34e   :  { %12519 = vmatmul.mubr.msk.bf16.vlgmr.msra.gmra.mrb[48].mxu1 %vm225_vm3, %v15301_v26 }
 0x34f   :  { %12523 = vmatpush3.bf16.msra.mxu1 %v15075_v5  ;;  %12526 = vmatprep.mubr.msk.bf16.mxu1 %vm14729_vm1, %v14728_v0 }
 0x350   :  { %12524 = vmatprep.subr.bf16.mxu1 %v14728_v0 }
 0x352   :  { %12533 = vmatmul.mubr.msk.bf16.vlgmr.msra.gmra.mrb[56].mxu0 %vm67_vm2, %v2110_v31 }
 0x353   :  { %12525 = vmatpush3.bf16.msra.mxu1 %v15086_v6  ;;  %12543 = vmatpush3.bf16.msra.mxu0 %v14859_v8 }
 0x354   :  { %12536 = vmatprep.subr.bf16.mxu1 %v14728_v0  ;;  %12544 = vmatprep.mubr.msk.bf16.mxu0 %vm14729_vm1, %v14728_v0 }
 0x355   :  { %12548 = vmatprep.subr.bf16.mxu0 %v14728_v0 }
 0x356   :  { %12527 = vmatmul.mubr.msk.bf16.vlgmr.msra.gmra.mrb[52].mxu1 %vm225_vm3, %v15301_v26 }
 0x357   :  { %12537 = vmatpush3.bf16.msra.mxu1 %v14855_v7  ;;  %12538 = vmatprep.mubr.msk.bf16.mxu1 %vm14729_vm1, %v14728_v0 }
 0x358   :  { %12556 = vmatprep.subr.bf16.mxu1 %v14728_v0 }
 0x35a   :  { %12545 = vmatmul.mubr.msk.bf16.vlgmr.msra.gmra.mrb[60].mxu0 %vm67_vm2, %v2110_v31 }
 0x35b   :  { %12549 = vmatpush3.bf16.msra.mxu0 %v14886_v11  ;;  %12552 = vmatprep.mubr.msk.bf16.mxu0 %vm14729_vm1, %v14728_v0 }
 0x35c   :  { %12550 = vmatprep.subr.bf16.mxu0 %v14728_v0 }
 0x35e   :  { %12539 = vmatmul.mubr.msk.bf16.vlgmr.msra.gmra.mrb[56].mxu1 %vm67_vm2, %v2110_v31 }
 0x35f   :  { %12557 = vmatpush3.bf16.msra.mxu1 %v14866_v9  ;;  %12560 = vmatprep.mubr.msk.bf16.mxu1 %vm14729_vm1, %v14728_v0 }
 0x360   :  { %12558 = vmatprep.subr.bf16.mxu1 %v14728_v0  ;;  %12551 = vmatpush3.bf16.msra.mxu0 %v14895_v12 }
 0x361   :  { %12572 = vmatprep.subr.bf16.mxu0 %v14728_v0 }
 0x363   :  { %12559 = vmatpush3.bf16.msra.mxu1 %v14878_v10 }
 0x364   :  { %12564 = vmatprep.subr.bf16.mxu1 %v14728_v0 }
 0x405   :  { %v1738_v9 = vpop.f32.mrb[40].mxu0  ;;  %v1778_v32 = vpop.f32.mrb[40].mxu1 }
 0x406   :  { %v13852_v33 = vadd.f32 %v1738_v9, %v14954_v23  ;;  %v12464_v10 = vpop.f32.mrb[41].mxu0  ;;  %v12472_v35 = vpop.f32.mrb[41].mxu1  ;;  %v13853_v55 = vadd.f32 %v14960_v34, %v1778_v32 }
 0x407   :  { %v1741_v37 = vpop.f32.mrb[42].mxu0  ;;  %v1781_v38 = vpop.f32.mrb[42].mxu1 }
 0x408   :  { %v10946_v36 = vmul.f32 -1.442695, %v13852_v33  ;;  %v12465_v43 = vpop.f32.mrb[43].mxu0  ;;  %v12473_v11 = vpop.f32.mrb[43].mxu1  ;;  %v10947_v49 = vmul.f32 -1.442695, %v13853_v55 }
 0x40a   :  { %14414 = vpow2.f32 %v10946_v36 }
 0x40b   :  { %14416 = vpow2.f32 %v10947_v49 }
 0x40d   :  { %v1832_v46 = vpop.f32.mrb[44].mxu1 }
 0x40e   :  { %v12480_v48 = vpop.f32.mrb[45].mxu1  ;;  %v1833_v34 = vadd.f32 %v1832_v46, %v14966_v42 }
 0x40f   :  { %v1835_v19 = vpop.f32.mrb[46].mxu1 }
 0x410   :  { %v12481_v12 = vpop.f32.mrb[47].mxu1 }
 0x414   :  { %v14415_v51 = vpop.eup %14414 }
 0x415   :  { %v1788_v52 = vadd.f32 1.0, %v14415_v51  ;;  %v1959_v53 = vpop.f32.mrb[52].mxu0  ;;  %v14417_v24 = vpop.eup %14416 }
 0x416   :  { %v12504_v23 = vpop.f32.mrb[53].mxu0  ;;  %v1795_v31 = vadd.f32 1.0, %v14417_v24  ;;  %v1960_v51 = vadd.f32 %v15148_v45, %v1959_v53  ;;  %v15378_v53 = vld [vmem:[%s17539_s27 + $0x28] sm:$0xff]   ;;  %v15486_v24 = vld [vmem:[%s17514_s3] sm:$0x3] }
 0x417   :  { %14418 = vrcp.f32 %v1788_v52  ;;  %v1962_v54 = vpop.f32.mrb[54].mxu0 }
 0x418   :  { %v12505_v57 = vpop.f32.mrb[55].mxu0 }
 0x419   :  { %v15462_v57 = vld [vmem:[%s17539_s27 + $0x18] sm:$0xff]  }
 0x41d   :  { %v2002_v20 = vpop.f32.mrb[48].mxu0 }
 0x41e   :  { %v13854_v21 = vadd.f32 %v2002_v20, %v15125_v47  ;;  %v12512_v22 = vpop.f32.mrb[49].mxu0  ;;  %v15470_v20 = vld [vmem:[%s17539_s27] sm:$0xff]  }
 0x41f   :  { %v2005_v40 = vpop.f32.mrb[50].mxu0 }
 0x420   :  { %v10954_v13 = vmul.f32 -1.442695, %v13854_v21  ;;  %v12513_v15 = vpop.f32.mrb[51].mxu0  ;;  %v15479_v21 = vld [vmem:[%s17539_s27 + $0x8] sm:$0xff]  }
 0x421   :  { %v14419_v50 = vpop.eup %14418  ;;  %v2042_v25 = vpop.f32.mrb[48].mxu1 }
 0x422   :  { %v1838_v29 = vmul.f32 %v14419_v50, %v1833_v34  ;;  %14420 = vpow2.f32 %v10954_v13  ;;  %v12520_v30 = vpop.f32.mrb[49].mxu1  ;;  %v13855_v33 = vadd.f32 %v15133_v14, %v2042_v25 }
 0x423   :  { %v2045_v16 = vpop.f32.mrb[50].mxu1 }
 0x424   :  { %v1839_v9 = vadd.f32 %v1838_v29, %v1696_v28  ;;  %v12521_v32 = vpop.f32.mrb[51].mxu1  ;;  %v10955_v35 = vmul.f32 -1.442695, %v13855_v33 }
 0x426   :  { %14422 = vtanh.f32 %v1839_v9 }
 0x427   :  { %14424 = vrcp.f32 %v1795_v31  ;;  %v15492_v31 = vld [vmem:[%s17514_s3 + $0x2] sm:$0x3] }
 0x428   :  { %14426 = vpow2.f32 %v10955_v35 }
 0x429   :  { %v2096_v10 = vpop.f32.mrb[52].mxu1 }
 0x42a   :  { %v12528_v42 = vpop.f32.mrb[53].mxu1  ;;  %v2097_v12 = vadd.f32 %v2096_v10, %v15140_v39 }
 0x42b   :  { %v2099_v37 = vpop.f32.mrb[54].mxu1 }
 0x42c   :  { %v14421_v38 = vpop.eup %14420  ;;  %v12529_v36 = vpop.f32.mrb[55].mxu1 }
 0x42d   :  { %v2052_v43 = vadd.f32 1.0, %v14421_v38 }
 0x42f   :  { %14428 = vrcp.f32 %v2052_v43 }
 0x430   :  { %v14423_v44 = vpop.eup %14422 }
 0x431   :  { %v1841_v27 = vsub.f32 %v15250_v41, %v14423_v44  ;;  %v14425_v11 = vpop.eup %14424  ;;  %v15365_v41 = vld [vmem:[%s17539_s27 + $0x20] sm:$0xff]  }
 0x432   :  { %v14427_v19 = vpop.eup %14426 }
 0x433   :  { %v1842_v46 = vmul.f32 %v14425_v11, %v1841_v27  ;;  %v2059_v23 = vadd.f32 1.0, %v14427_v19 }
 0x435   :  { %v15354_v55 = vadd.f32 %v14423_v44, %v1842_v46 }
 0x437   :  { %v2111_v48 = vpack.c.bf16 %v15354_v55, %v15354_v55 }
 0x439   :  { %v14429_v49 = vpop.eup %14428  ;;  %12553 = vmatmul.mubr.msk.bf16.vlgmr.msra.gmra.mrb[56].mxu0 %vm225_vm3, %v2111_v48  ;;  %12561 = vmatmul.mubr.msk.bf16.vlgmr.msra.gmra.mrb[56].mxu1 %vm225_vm3, %v2111_v48 }
 0x43a   :  { %v2102_v52 = vmul.f32 %v14429_v49, %v2097_v12  ;;  %12565 = vmatpush3.bf16.msra.mxu1 %v15365_v41  ;;  %12573 = vmatpush3.bf16.msra.mxu0 %v14980_v56  ;;  %v15499_v12 = vld [vmem:[%s17515_s4] sm:$0x3] }
 0x43b   :  { %12566 = vmatprep.subr.bf16.mxu1 %v14728_v0  ;;  %12574 = vmatprep.subr.bf16.mxu0 %v14728_v0 }
 0x43c   :  { %v2103_v54 = vadd.f32 %v2102_v52, %v1960_v51  ;;  %12568 = vmatprep.mubr.msk.bf16.mxu1 %vm14729_vm1, %v14728_v0  ;;  %12576 = vmatprep.mubr.msk.bf16.mxu0 %vm14729_vm1, %v14728_v0 }
 0x43e   :  { %14430 = vtanh.f32 %v2103_v54  ;;  %12567 = vmatpush3.bf16.msra.mxu1 %v15378_v53  ;;  %12575 = vmatpush3.bf16.msra.mxu0 %v14991_v58 }
 0x43f   :  { %12580 = vmatprep.subr.bf16.mxu1 %v14728_v0  ;;  %12588 = vmatprep.subr.bf16.mxu0 %v14728_v0  ;;  %14432 = vrcp.f32 %v2059_v23 }
 0x441   :  { %12569 = vmatmul.mubr.msk.bf16.vlgmr.msra.gmra.mrb[60].mxu1 %vm225_vm3, %v2111_v48  ;;  %12577 = vmatmul.mubr.msk.bf16.vlgmr.msra.gmra.mrb[64].mxu0 %vm225_vm3, %v2111_v48 }
 0x442   :  { %12581 = vmatpush3.bf16.msra.mxu1 %v15004_v59  ;;  %12589 = vmatpush3.bf16.msra.mxu0 %v15009_v60 }
 0x443   :  { %12582 = vmatprep.subr.bf16.mxu1 %v14728_v0  ;;  %12590 = vmatprep.subr.bf16.mxu0 %v14728_v0 }
 0x444   :  { %12584 = vmatprep.mubr.msk.bf16.mxu1 %vm14729_vm1, %v14728_v0  ;;  %12592 = vmatprep.mubr.msk.bf16.mxu0 %vm14729_vm1, %v14728_v0 }
 0x446   :  { %12583 = vmatpush3.bf16.msra.mxu1 %v15020_v61  ;;  %12591 = vmatpush3.bf16.msra.mxu0 %v15025_v62 }
 0x447   :  { %12596 = vmatprep.subr.bf16.mxu0 %v14728_v0  ;;  %12604 = vmatprep.subr.bf16.mxu1 %v14728_v0 }
 0x448   :  { %v14431_v56 = vpop.eup %14430 }
 0x449   :  { %v2105_v58 = vsub.f32 %v15295_v17, %v14431_v56  ;;  %12585 = vmatmul.mubr.msk.bf16.vlgmr.msra.gmra.mrb[64].mxu1 %vm225_vm3, %v2111_v48  ;;  %12593 = vmatmul.mubr.msk.bf16.vlgmr.msra.gmra.mrb[68].mxu0 %vm225_vm3, %v2111_v48  ;;  %v14433_v59 = vpop.eup %14432  ;;  %v15453_v17 = vld [vmem:[%s17539_s27 + $0x10] sm:$0xff]  }
 0x44a   :  { %12597 = vmatpush3.bf16.msra.mxu0 %v15038_v63  ;;  %12605 = vmatpush3.bf16.msra.mxu1 %v15043_v1  ;;  %v15439_v63 = vpop.f32.mrb[60].mxu0 }
 0x44b   :  { %v2106_v60 = vmul.f32 %v14433_v59, %v2105_v58  ;;  %12598 = vmatprep.subr.bf16.mxu0 %v14728_v0  ;;  %12600 = vmatprep.mubr.msk.bf16.mxu0 %vm14729_vm1, %v14728_v0  ;;  %v12546_v1 = vpop.f32.mrb[61].mxu0 }
 0x44c   :  { %12606 = vmatprep.subr.bf16.mxu1 %v14728_v0  ;;  %12608 = vmatprep.mubr.msk.bf16.mxu1 %vm14729_vm1, %v14728_v0 }
 0x44d   :  { %v15409_v61 = vadd.f32 %v14431_v56, %v2106_v60  ;;  %v15505_v56 = vld [vmem:[%s17514_s3 + $0x4] sm:$0x3] }
 0x44e   :  { %12599 = vmatpush3.bf16.msra.mxu0 %v15053_v2  ;;  %12607 = vmatpush3.bf16.msra.mxu1 %v15059_v3  ;;  %v2232_v2 = vpop.f32.mrb[62].mxu0 }
 0x44f   :  { %v15415_v62 = vpack.c.bf16 %v15409_v61, %v15409_v61  ;;  %12612 = vmatprep.subr.bf16.mxu1 %v14728_v0  ;;  %12620 = vmatprep.subr.bf16.mxu0 %v14728_v0  ;;  %v12547_v3 = vpop.f32.mrb[63].mxu0 }
 0x451   :  { %12601 = vmatmul.mubr.msk.bf16.vlgmr.msra.gmra.mrb[64].mxu0 %vm225_vm3, %v15415_v62 }
 0x452   :  { %12621 = vmatpush3.bf16.msra.mxu0 %v14845_v4  ;;  %12622 = vmatprep.mubr.msk.bf16.mxu0 %vm14729_vm1, %v14728_v0 }
 0x453   :  { %12632 = vmatprep.subr.bf16.mxu0 %v14728_v0 }
 0x455   :  { %12609 = vmatmul.mubr.msk.bf16.vlgmr.msra.gmra.mrb[64].mxu1 %vm225_vm3, %v15415_v62 }
 0x456   :  { %12613 = vmatpush3.bf16.msra.mxu1 %v15075_v5  ;;  %12616 = vmatprep.mubr.msk.bf16.mxu1 %vm14729_vm1, %v14728_v0  ;;  %v10974_v5 = vld [vmem:[%s17538_s22 + $0xa] sm:$0x3] }
 0x457   :  { %12614 = vmatprep.subr.bf16.mxu1 %v14728_v0 }
 0x45a   :  { %12615 = vmatpush3.bf16.msra.mxu1 %v15086_v6  ;;  %v2644_v6 = vpack.c.bf16 %v10974_v5, %v10974_v5 }
 0x45b   :  { %12626 = vmatprep.subr.bf16.mxu1 %v14728_v0 }
 0x45c   :  { %12623 = vmatmul.mubr.msk.bf16.vlgmr.msra.gmra.mrb[72].mxu0 %vm67_vm2, %v2644_v6 }
 0x45d   :  { %12617 = vmatmul.mubr.msk.bf16.vlgmr.msra.gmra.mrb[68].mxu1 %vm225_vm3, %v15415_v62  ;;  %12633 = vmatpush3.bf16.msra.mxu0 %v14859_v8 }
 0x45e   :  { %12627 = vmatpush3.bf16.msra.mxu1 %v14855_v7  ;;  %12628 = vmatprep.mubr.msk.bf16.mxu1 %vm14729_vm1, %v14728_v0 }
 0x45f   :  { %12646 = vmatprep.subr.bf16.mxu1 %v14728_v0  ;;  %12634 = vmatprep.mubr.msk.bf16.mxu0 %vm14729_vm1, %v14728_v0 }
 0x460   :  { %12638 = vmatprep.subr.bf16.mxu0 %v14728_v0 }
 0x464   :  { %12635 = vmatmul.mubr.msk.bf16.vlgmr.msra.gmra.mrb[76].mxu0 %vm67_vm2, %v2644_v6 }
 0x465   :  { %12629 = vmatmul.mubr.msk.bf16.vlgmr.msra.gmra.mrb[72].mxu1 %vm67_vm2, %v2644_v6  ;;  %12639 = vmatpush3.bf16.msra.mxu0 %v15470_v20 }
 0x466   :  { %12647 = vmatpush3.bf16.msra.mxu1 %v15453_v17  ;;  %12650 = vmatprep.mubr.msk.bf16.mxu1 %vm14729_vm1, %v14728_v0 }
 0x467   :  { %12648 = vmatprep.subr.bf16.mxu1 %v14728_v0  ;;  %12642 = vmatprep.mubr.msk.bf16.mxu0 %vm14729_vm1, %v14728_v0 }
 0x468   :  { %12640 = vmatprep.subr.bf16.mxu0 %v14728_v0 }
 0x469   :  { %12641 = vmatpush3.bf16.msra.mxu0 %v15479_v21 }
 0x46a   :  { %12649 = vmatpush3.bf16.msra.mxu1 %v15462_v57  ;;  %12662 = vmatprep.subr.bf16.mxu0 %v14728_v0 }
 0x46b   :  { %12654 = vmatprep.subr.bf16.mxu1 %v14728_v0 }
 0x50c   :  { %v2272_v22 = vpop.f32.mrb[56].mxu0  ;;  %v2312_v40 = vpop.f32.mrb[56].mxu1 }
 0x50d   :  { %v13856_v34 = vadd.f32 %v15486_v24, %v2272_v22  ;;  %v12554_v13 = vpop.f32.mrb[57].mxu0  ;;  %v12562_v15 = vpop.f32.mrb[57].mxu1  ;;  %v13857_v9 = vadd.f32 %v15492_v31, %v2312_v40 }
 0x50e   :  { %v2275_v50 = vpop.f32.mrb[58].mxu0  ;;  %v2315_v25 = vpop.f32.mrb[58].mxu1 }
 0x50f   :  { %v10963_v28 = vmul.f32 -1.442695, %v13856_v34  ;;  %v12555_v29 = vpop.f32.mrb[59].mxu0  ;;  %v12563_v30 = vpop.f32.mrb[59].mxu1  ;;  %v10964_v35 = vmul.f32 -1.442695, %v13857_v9 }
 0x511   :  { %14434 = vpow2.f32 %v10963_v28 }
 0x512   :  { %14436 = vpow2.f32 %v10964_v35 }
 0x514   :  { %v2366_v16 = vpop.f32.mrb[60].mxu1 }
 0x515   :  { %v12570_v32 = vpop.f32.mrb[61].mxu1  ;;  %v2367_v49 = vadd.f32 %v15499_v12, %v2366_v16 }
 0x516   :  { %v2369_v33 = vpop.f32.mrb[62].mxu1 }
 0x517   :  { %v12571_v10 = vpop.f32.mrb[63].mxu1 }
 0x51b   :  { %v14435_v42 = vpop.eup %14434 }
 0x51c   :  { %v2322_v37 = vadd.f32 1.0, %v14435_v42  ;;  %v2493_v38 = vpop.f32.mrb[68].mxu0  ;;  %v14437_v19 = vpop.eup %14436  ;;  %v15546_v42 = vld [vmem:[%s17540_s24 + $0x10] sm:$0xff]  }
 0x51d   :  { %v12594_v36 = vpop.f32.mrb[69].mxu0  ;;  %v2329_v1 = vadd.f32 1.0, %v14437_v19  ;;  %v2494_v33 = vadd.f32 %v15148_v45, %v2493_v38  ;;  %v15536_v45 = vld [vmem:[%s17540_s24 + $0x8] sm:$0xff]   ;;  %v15564_v38 = vld [vmem:[%s17540_s24 + $0x18] sm:$0xff]  }
 0x51e   :  { %14438 = vrcp.f32 %v2322_v37  ;;  %v2496_v43 = vpop.f32.mrb[70].mxu0  ;;  %v15552_v37 = vld [vmem:[%s17540_s24 + $0x20] sm:$0xff]   ;;  %v15570_v36 = vld [vmem:[%s17540_s24 + $0x28] sm:$0xff]  }
 0x51f   :  { %v12595_v44 = vpop.f32.mrb[71].mxu0  ;;  %v15601_v19 = vld [vmem:[%s17513_s6 + $0x8] sm:$0xff]  }
 0x524   :  { %v2536_v27 = vpop.f32.mrb[64].mxu0 }
 0x525   :  { %v13858_v11 = vadd.f32 %v2536_v27, %v15125_v47  ;;  %v12602_v46 = vpop.f32.mrb[65].mxu0  ;;  %v2230_v47 = vadd.f32 %v15505_v56, %v15439_v63 }
 0x526   :  { %v2539_v48 = vpop.f32.mrb[66].mxu0  ;;  %v15587_v46 = vld [vmem:[%s17513_s6 + $0x10] sm:$0xff]  }
 0x527   :  { %v10971_v51 = vmul.f32 -1.442695, %v13858_v11  ;;  %v12603_v52 = vpop.f32.mrb[67].mxu0  ;;  %v15581_v11 = vld [vmem:[%s17513_s6] sm:$0xff]  }
 0x528   :  { %v14439_v23 = vpop.eup %14438  ;;  %v2576_v54 = vpop.f32.mrb[64].mxu1  ;;  %v15627_v52 = vld [vmem:[%s17513_s6 + $0x20] sm:$0xff]  }
 0x529   :  { %v2372_v58 = vmul.f32 %v14439_v23, %v2367_v49  ;;  %14440 = vpow2.f32 %v10971_v51  ;;  %v12610_v59 = vpop.f32.mrb[65].mxu1  ;;  %v13859_v5 = vadd.f32 %v15133_v14, %v2576_v54  ;;  %v15607_v49 = vld [vmem:[%s17513_s6 + $0x18] sm:$0xff]   ;;  %v15636_v23 = vld [vmem:[%s17513_s6 + $0x28] sm:$0xff]  }
 0x52a   :  { %v2579_v60 = vpop.f32.mrb[66].mxu1 }
 0x52b   :  { %v2373_v2 = vadd.f32 %v2372_v58, %v2230_v47  ;;  %v12611_v3 = vpop.f32.mrb[67].mxu1  ;;  %v10972_v22 = vmul.f32 -1.442695, %v13859_v5  ;;  %v10991_v60 = vld [vmem:[%s17538_s22 + $0xc] sm:$0x3] }
 0x52d   :  { %14442 = vtanh.f32 %v2373_v2 }
 0x52e   :  { %14444 = vrcp.f32 %v2329_v1  ;;  %v3178_v1 = vpack.c.bf16 %v10991_v60, %v10991_v60 }
 0x52f   :  { %14446 = vpow2.f32 %v10972_v22 }
 0x530   :  { %v2630_v6 = vpop.f32.mrb[68].mxu1 }
 0x531   :  { %v12618_v40 = vpop.f32.mrb[69].mxu1  ;;  %v2631_v9 = vadd.f32 %v2630_v6, %v15140_v39 }
 0x532   :  { %v2633_v34 = vpop.f32.mrb[70].mxu1 }
 0x533   :  { %v14441_v13 = vpop.eup %14440  ;;  %v12619_v15 = vpop.f32.mrb[71].mxu1 }
 0x534   :  { %v2586_v50 = vadd.f32 1.0, %v14441_v13 }
 0x536   :  { %14448 = vrcp.f32 %v2586_v50 }
 0x537   :  { %v14443_v63 = vpop.eup %14442  ;;  %v2763_v54 = vpop.f32.mrb[76].mxu0 }
 0x538   :  { %v2375_v25 = vsub.f32 %v15354_v55, %v14443_v63  ;;  %v14445_v28 = vpop.eup %14444  ;;  %v15523_v55 = vld [vmem:[%s17540_s24] sm:$0xff]   ;;  %v12636_v47 = vpop.f32.mrb[77].mxu0 }
 0x539   :  { %v14447_v16 = vpop.eup %14446  ;;  %v2766_v58 = vpop.f32.mrb[78].mxu0 }
 0x53a   :  { %v2376_v29 = vmul.f32 %v14445_v28, %v2375_v25  ;;  %v2593_v39 = vadd.f32 1.0, %v14447_v16  ;;  %v12637_v59 = vpop.f32.mrb[79].mxu0 }
 0x53c   :  { %v15511_v30 = vadd.f32 %v14443_v63, %v2376_v29 }
 0x53e   :  { %v2645_v14 = vpack.c.bf16 %v15511_v30, %v15511_v30 }
 0x540   :  { %v14449_v32 = vpop.eup %14448  ;;  %12643 = vmatmul.mubr.msk.bf16.vlgmr.msra.gmra.mrb[72].mxu0 %vm225_vm3, %v2645_v14  ;;  %12651 = vmatmul.mubr.msk.bf16.vlgmr.msra.gmra.mrb[72].mxu1 %vm225_vm3, %v2645_v14 }
 0x541   :  { %v2636_v10 = vmul.f32 %v14449_v32, %v2631_v9  ;;  %12655 = vmatpush3.bf16.msra.mxu1 %v15365_v41  ;;  %12663 = vmatpush3.bf16.msra.mxu0 %v15523_v55 }
 0x542   :  { %12656 = vmatprep.subr.bf16.mxu1 %v14728_v0  ;;  %12664 = vmatprep.subr.bf16.mxu0 %v14728_v0 }
 0x543   :  { %v2637_v35 = vadd.f32 %v2636_v10, %v2494_v33  ;;  %12658 = vmatprep.mubr.msk.bf16.mxu1 %vm14729_vm1, %v14728_v0  ;;  %12666 = vmatprep.mubr.msk.bf16.mxu0 %vm14729_vm1, %v14728_v0 }
 0x545   :  { %14450 = vtanh.f32 %v2637_v35  ;;  %12657 = vmatpush3.bf16.msra.mxu1 %v15378_v53  ;;  %12665 = vmatpush3.bf16.msra.mxu0 %v15536_v45 }
 0x546   :  { %12670 = vmatprep.subr.bf16.mxu1 %v14728_v0  ;;  %12678 = vmatprep.subr.bf16.mxu0 %v14728_v0  ;;  %14452 = vrcp.f32 %v2593_v39 }
 0x548   :  { %12659 = vmatmul.mubr.msk.bf16.vlgmr.msra.gmra.mrb[76].mxu1 %vm225_vm3, %v2645_v14  ;;  %12667 = vmatmul.mubr.msk.bf16.vlgmr.msra.gmra.mrb[80].mxu0 %vm225_vm3, %v2645_v14 }
 0x549   :  { %12671 = vmatpush3.bf16.msra.mxu1 %v15546_v42  ;;  %12679 = vmatpush3.bf16.msra.mxu0 %v15552_v37 }
 0x54a   :  { %12672 = vmatprep.subr.bf16.mxu1 %v14728_v0  ;;  %12680 = vmatprep.subr.bf16.mxu0 %v14728_v0 }
 0x54b   :  { %12674 = vmatprep.mubr.msk.bf16.mxu1 %vm14729_vm1, %v14728_v0  ;;  %12682 = vmatprep.mubr.msk.bf16.mxu0 %vm14729_vm1, %v14728_v0 }
 0x54d   :  { %12673 = vmatpush3.bf16.msra.mxu1 %v15564_v38  ;;  %12681 = vmatpush3.bf16.msra.mxu0 %v15570_v36 }
 0x54e   :  { %12686 = vmatprep.subr.bf16.mxu0 %v14728_v0  ;;  %12694 = vmatprep.subr.bf16.mxu1 %v14728_v0 }
 0x54f   :  { %v14451_v43 = vpop.eup %14450 }
 0x550   :  { %v2639_v44 = vsub.f32 %v15409_v61, %v14451_v43  ;;  %12675 = vmatmul.mubr.msk.bf16.vlgmr.msra.gmra.mrb[80].mxu1 %vm225_vm3, %v2645_v14  ;;  %12683 = vmatmul.mubr.msk.bf16.vlgmr.msra.gmra.mrb[84].mxu0 %vm225_vm3, %v2645_v14  ;;  %v14453_v27 = vpop.eup %14452 }
 0x551   :  { %12687 = vmatpush3.bf16.msra.mxu0 %v15581_v11  ;;  %12695 = vmatpush3.bf16.msra.mxu1 %v15587_v46 }
 0x552   :  { %v2640_v61 = vmul.f32 %v14453_v27, %v2639_v44  ;;  %12688 = vmatprep.subr.bf16.mxu0 %v14728_v0  ;;  %12690 = vmatprep.mubr.msk.bf16.mxu0 %vm14729_vm1, %v14728_v0  ;;  %v15673_v44 = vld [vmem:[%s17516_s7] sm:$0x3] }
 0x553   :  { %12696 = vmatprep.subr.bf16.mxu1 %v14728_v0  ;;  %12698 = vmatprep.mubr.msk.bf16.mxu1 %vm14729_vm1, %v14728_v0 }
 0x554   :  { %v15596_v48 = vadd.f32 %v14451_v43, %v2640_v61 }
 0x555   :  { %12689 = vmatpush3.bf16.msra.mxu0 %v15601_v19  ;;  %12697 = vmatpush3.bf16.msra.mxu1 %v15607_v49 }
 0x556   :  { %v15612_v51 = vpack.c.bf16 %v15596_v48, %v15596_v48  ;;  %12702 = vmatprep.subr.bf16.mxu1 %v14728_v0  ;;  %12710 = vmatprep.subr.bf16.mxu0 %v14728_v0 }
 0x558   :  { %12691 = vmatmul.mubr.msk.bf16.vlgmr.msra.gmra.mrb[80].mxu0 %vm225_vm3, %v15612_v51 }
 0x559   :  { %12711 = vmatpush3.bf16.msra.mxu0 %v14845_v4  ;;  %12712 = vmatprep.mubr.msk.bf16.mxu0 %vm14729_vm1, %v14728_v0 }
 0x55a   :  { %12722 = vmatprep.subr.bf16.mxu0 %v14728_v0 }
 0x55c   :  { %12699 = vmatmul.mubr.msk.bf16.vlgmr.msra.gmra.mrb[80].mxu1 %vm225_vm3, %v15612_v51 }
 0x55d   :  { %12703 = vmatpush3.bf16.msra.mxu1 %v15627_v52  ;;  %12706 = vmatprep.mubr.msk.bf16.mxu1 %vm14729_vm1, %v14728_v0 }
 0x55e   :  { %12704 = vmatprep.subr.bf16.mxu1 %v14728_v0 }
 0x560   :  { %12713 = vmatmul.mubr.msk.bf16.vlgmr.msra.gmra.mrb[88].mxu0 %vm67_vm2, %v3178_v1 }
 0x561   :  { %12705 = vmatpush3.bf16.msra.mxu1 %v15636_v23  ;;  %12723 = vmatpush3.bf16.msra.mxu0 %v14859_v8 }
 0x562   :  { %12716 = vmatprep.subr.bf16.mxu1 %v14728_v0  ;;  %12724 = vmatprep.mubr.msk.bf16.mxu0 %vm14729_vm1, %v14728_v0 }
 0x563   :  { %12728 = vmatprep.subr.bf16.mxu0 %v14728_v0 }
 0x564   :  { %12707 = vmatmul.mubr.msk.bf16.vlgmr.msra.gmra.mrb[84].mxu1 %vm225_vm3, %v15612_v51 }
 0x565   :  { %12717 = vmatpush3.bf16.msra.mxu1 %v14855_v7  ;;  %12718 = vmatprep.mubr.msk.bf16.mxu1 %vm14729_vm1, %v14728_v0 }
 0x566   :  { %12736 = vmatprep.subr.bf16.mxu1 %v14728_v0 }
 0x568   :  { %12725 = vmatmul.mubr.msk.bf16.vlgmr.msra.gmra.mrb[92].mxu0 %vm67_vm2, %v3178_v1 }
 0x569   :  { %12729 = vmatpush3.bf16.msra.mxu0 %v15470_v20  ;;  %12732 = vmatprep.mubr.msk.bf16.mxu0 %vm14729_vm1, %v14728_v0 }
 0x56a   :  { %12730 = vmatprep.subr.bf16.mxu0 %v14728_v0 }
 0x56c   :  { %12719 = vmatmul.mubr.msk.bf16.vlgmr.msra.gmra.mrb[88].mxu1 %vm67_vm2, %v3178_v1 }
 0x56d   :  { %12737 = vmatpush3.bf16.msra.mxu1 %v15453_v17  ;;  %12740 = vmatprep.mubr.msk.bf16.mxu1 %vm14729_vm1, %v14728_v0 }
 0x56e   :  { %12738 = vmatprep.subr.bf16.mxu1 %v14728_v0  ;;  %12731 = vmatpush3.bf16.msra.mxu0 %v15479_v21 }
 0x56f   :  { %12752 = vmatprep.subr.bf16.mxu0 %v14728_v0 }
 0x571   :  { %12739 = vmatpush3.bf16.msra.mxu1 %v15462_v57 }
 0x572   :  { %12744 = vmatprep.subr.bf16.mxu1 %v14728_v0 }
 0x613   :  { %v2806_v2 = vpop.f32.mrb[72].mxu0  ;;  %v2846_v3 = vpop.f32.mrb[72].mxu1 }
 0x614   :  { %v13860_v5 = vadd.f32 %v15486_v24, %v2806_v2  ;;  %v12644_v6 = vpop.f32.mrb[73].mxu0  ;;  %v12652_v22 = vpop.f32.mrb[73].mxu1  ;;  %v13861_v25 = vadd.f32 %v15492_v31, %v2846_v3 }
 0x615   :  { %v2809_v40 = vpop.f32.mrb[74].mxu0  ;;  %v2849_v34 = vpop.f32.mrb[74].mxu1 }
 0x616   :  { %v10980_v13 = vmul.f32 -1.442695, %v13860_v5  ;;  %v12645_v15 = vpop.f32.mrb[75].mxu0  ;;  %v12653_v50 = vpop.f32.mrb[75].mxu1  ;;  %v10981_v16 = vmul.f32 -1.442695, %v13861_v25  ;;  %v2764_v5 = vadd.f32 %v15505_v56, %v2763_v54 }
 0x617   :  { %v15681_v50 = vld [vmem:[%s17516_s7 + $0x2] sm:$0x3] }
 0x618   :  { %14454 = vpow2.f32 %v10980_v13 }
 0x619   :  { %14456 = vpow2.f32 %v10981_v16 }
 0x61b   :  { %v2900_v63 = vpop.f32.mrb[76].mxu1 }
 0x61c   :  { %v12660_v28 = vpop.f32.mrb[77].mxu1  ;;  %v2901_v59 = vadd.f32 %v15499_v12, %v2900_v63 }
 0x61d   :  { %v2903_v29 = vpop.f32.mrb[78].mxu1 }
 0x61e   :  { %v12661_v14 = vpop.f32.mrb[79].mxu1 }
 0x622   :  { %v14455_v9 = vpop.eup %14454 }
 0x623   :  { %v2856_v32 = vadd.f32 1.0, %v14455_v9  ;;  %v3027_v33 = vpop.f32.mrb[84].mxu0  ;;  %v14457_v58 = vpop.eup %14456 }
 0x624   :  { %v12684_v10 = vpop.f32.mrb[85].mxu0  ;;  %v2863_v34 = vadd.f32 1.0, %v14457_v58 }
 0x625   :  { %14458 = vrcp.f32 %v2856_v32  ;;  %v3030_v39 = vpop.f32.mrb[86].mxu0 }
 0x626   :  { %v12685_v35 = vpop.f32.mrb[87].mxu0 }
 0x62b   :  { %v3070_v43 = vpop.f32.mrb[80].mxu0 }
 0x62c   :  { %v13862_v27 = vadd.f32 %v15673_v44, %v3070_v43  ;;  %v12692_v61 = vpop.f32.mrb[81].mxu0 }
 0x62d   :  { %v3073_v47 = vpop.f32.mrb[82].mxu0 }
 0x62e   :  { %v10988_v60 = vmul.f32 -1.442695, %v13862_v27  ;;  %v12693_v1 = vpop.f32.mrb[83].mxu0  ;;  %v15692_v47 = vld [vmem:[%s17517_s8] sm:$0x3] }
 0x62f   :  { %v14459_v2 = vpop.eup %14458  ;;  %v3110_v3 = vpop.f32.mrb[80].mxu1 }
 0x630   :  { %v2906_v6 = vmul.f32 %v14459_v2, %v2901_v59  ;;  %14460 = vpow2.f32 %v10988_v60  ;;  %v12700_v22 = vpop.f32.mrb[81].mxu1  ;;  %v13863_v63 = vadd.f32 %v15681_v50, %v3110_v3 }
 0x631   :  { %v3113_v40 = vpop.f32.mrb[82].mxu1 }
 0x632   :  { %v2907_v13 = vadd.f32 %v2906_v6, %v2764_v5  ;;  %v12701_v15 = vpop.f32.mrb[83].mxu1  ;;  %v10989_v28 = vmul.f32 -1.442695, %v13863_v63  ;;  %v11008_v63 = vld [vmem:[%s17538_s22 + $0xe] sm:$0x3] }
 0x634   :  { %14462 = vtanh.f32 %v2907_v13 }
 0x635   :  { %14464 = vrcp.f32 %v2863_v34 }
 0x636   :  { %14466 = vpow2.f32 %v10989_v28 }
 0x637   :  { %v3164_v25 = vpop.f32.mrb[84].mxu1 }
 0x638   :  { %v12708_v29 = vpop.f32.mrb[85].mxu1  ;;  %v3165_v58 = vadd.f32 %v15692_v47, %v3164_v25  ;;  %v3712_v25 = vpack.c.bf16 %v11008_v63, %v11008_v63 }
 0x639   :  { %v3167_v54 = vpop.f32.mrb[86].mxu1 }
 0x63a   :  { %v14461_v14 = vpop.eup %14460  ;;  %v12709_v16 = vpop.f32.mrb[87].mxu1 }
 0x63b   :  { %v3120_v9 = vadd.f32 1.0, %v14461_v14 }
 0x63d   :  { %14468 = vrcp.f32 %v3120_v9 }
 0x63e   :  { %v14463_v32 = vpop.eup %14462 }
 0x63f   :  { %v2909_v10 = vsub.f32 %v15511_v30, %v14463_v32  ;;  %v14465_v39 = vpop.eup %14464  ;;  %v15700_v30 = vld [vmem:[%s17516_s7 + $0x4] sm:$0x3] }
 0x640   :  { %v14467_v61 = vpop.eup %14466  ;;  %v3028_v60 = vadd.f32 %v15700_v30, %v3027_v33 }
 0x641   :  { %v2910_v35 = vmul.f32 %v14465_v39, %v2909_v10  ;;  %v3127_v2 = vadd.f32 1.0, %v14467_v61 }
 0x643   :  { %v15685_v43 = vadd.f32 %v14463_v32, %v2910_v35 }
 0x645   :  { %v3179_v27 = vpack.c.bf16 %v15685_v43, %v15685_v43 }
 0x647   :  { %v14469_v59 = vpop.eup %14468  ;;  %12733 = vmatmul.mubr.msk.bf16.vlgmr.msra.gmra.mrb[88].mxu0 %vm225_vm3, %v3179_v27  ;;  %12741 = vmatmul.mubr.msk.bf16.vlgmr.msra.gmra.mrb[88].mxu1 %vm225_vm3, %v3179_v27 }
 0x648   :  { %v3170_v1 = vmul.f32 %v14469_v59, %v3165_v58  ;;  %12745 = vmatpush3.bf16.msra.mxu1 %v15365_v41  ;;  %12753 = vmatpush3.bf16.msra.mxu0 %v15523_v55 }
 0x649   :  { %12746 = vmatprep.subr.bf16.mxu1 %v14728_v0  ;;  %12754 = vmatprep.subr.bf16.mxu0 %v14728_v0 }
 0x64a   :  { %v3171_v3 = vadd.f32 %v3170_v1, %v3028_v60  ;;  %12748 = vmatprep.mubr.msk.bf16.mxu1 %vm14729_vm1, %v14728_v0  ;;  %12756 = vmatprep.mubr.msk.bf16.mxu0 %vm14729_vm1, %v14728_v0 }
 0x64c   :  { %14470 = vtanh.f32 %v3171_v3  ;;  %12747 = vmatpush3.bf16.msra.mxu1 %v15378_v53  ;;  %12755 = vmatpush3.bf16.msra.mxu0 %v15536_v45 }
 0x64d   :  { %12760 = vmatprep.subr.bf16.mxu1 %v14728_v0  ;;  %12768 = vmatprep.subr.bf16.mxu0 %v14728_v0  ;;  %14472 = vrcp.f32 %v3127_v2 }
 0x64f   :  { %12749 = vmatmul.mubr.msk.bf16.vlgmr.msra.gmra.mrb[92].mxu1 %vm225_vm3, %v3179_v27  ;;  %12757 = vmatmul.mubr.msk.bf16.vlgmr.msra.gmra.mrb[96].mxu0 %vm225_vm3, %v3179_v27 }
 0x650   :  { %12761 = vmatpush3.bf16.msra.mxu1 %v15546_v42  ;;  %12769 = vmatpush3.bf16.msra.mxu0 %v15552_v37 }
 0x651   :  { %12762 = vmatprep.subr.bf16.mxu1 %v14728_v0  ;;  %12770 = vmatprep.subr.bf16.mxu0 %v14728_v0 }
 0x652   :  { %12764 = vmatprep.mubr.msk.bf16.mxu1 %vm14729_vm1, %v14728_v0  ;;  %12772 = vmatprep.mubr.msk.bf16.mxu0 %vm14729_vm1, %v14728_v0 }
 0x654   :  { %12763 = vmatpush3.bf16.msra.mxu1 %v15564_v38  ;;  %12771 = vmatpush3.bf16.msra.mxu0 %v15570_v36 }
 0x655   :  { %12776 = vmatprep.subr.bf16.mxu0 %v14728_v0  ;;  %12784 = vmatprep.subr.bf16.mxu1 %v14728_v0 }
 0x656   :  { %v14471_v33 = vpop.eup %14470 }
 0x657   :  { %v3173_v5 = vsub.f32 %v15596_v48, %v14471_v33  ;;  %12765 = vmatmul.mubr.msk.bf16.vlgmr.msra.gmra.mrb[96].mxu1 %vm225_vm3, %v3179_v27  ;;  %12773 = vmatmul.mubr.msk.bf16.vlgmr.msra.gmra.mrb[100].mxu0 %vm225_vm3, %v3179_v27  ;;  %v14473_v6 = vpop.eup %14472 }
 0x658   :  { %12777 = vmatpush3.bf16.msra.mxu0 %v15581_v11  ;;  %12785 = vmatpush3.bf16.msra.mxu1 %v15587_v46 }
 0x659   :  { %v3174_v22 = vmul.f32 %v14473_v6, %v3173_v5  ;;  %12778 = vmatprep.subr.bf16.mxu0 %v14728_v0  ;;  %12780 = vmatprep.mubr.msk.bf16.mxu0 %vm14729_vm1, %v14728_v0 }
 0x65a   :  { %12786 = vmatprep.subr.bf16.mxu1 %v14728_v0  ;;  %12788 = vmatprep.mubr.msk.bf16.mxu1 %vm14729_vm1, %v14728_v0 }
 0x65b   :  { %v15740_v48 = vadd.f32 %v14471_v33, %v3174_v22 }
 0x65c   :  { %12779 = vmatpush3.bf16.msra.mxu0 %v15601_v19  ;;  %12787 = vmatpush3.bf16.msra.mxu1 %v15607_v49 }
 0x65d   :  { %v15746_v40 = vpack.c.bf16 %v15740_v48, %v15740_v48  ;;  %12792 = vmatprep.subr.bf16.mxu1 %v14728_v0  ;;  %12800 = vmatprep.subr.bf16.mxu0 %v14728_v0 }
 0x65f   :  { %12781 = vmatmul.mubr.msk.bf16.vlgmr.msra.gmra.mrb[96].mxu0 %vm225_vm3, %v15746_v40 }
 0x660   :  { %12801 = vmatpush3.bf16.msra.mxu0 %v14845_v4  ;;  %12802 = vmatprep.mubr.msk.bf16.mxu0 %vm14729_vm1, %v14728_v0  ;;  %v3297_v4 = vpop.f32.mrb[92].mxu0 }
 0x661   :  { %12812 = vmatprep.subr.bf16.mxu0 %v14728_v0  ;;  %v12726_v34 = vpop.f32.mrb[93].mxu0 }
 0x662   :  { %v3300_v13 = vpop.f32.mrb[94].mxu0 }
 0x663   :  { %12789 = vmatmul.mubr.msk.bf16.vlgmr.msra.gmra.mrb[96].mxu1 %vm225_vm3, %v15746_v40  ;;  %v12727_v15 = vpop.f32.mrb[95].mxu0 }
 0x664   :  { %12793 = vmatpush3.bf16.msra.mxu1 %v15627_v52  ;;  %12796 = vmatprep.mubr.msk.bf16.mxu1 %vm14729_vm1, %v14728_v0  ;;  %v3298_v15 = vadd.f32 %v15505_v56, %v3297_v4 }
 0x665   :  { %12794 = vmatprep.subr.bf16.mxu1 %v14728_v0 }
 0x667   :  { %12803 = vmatmul.mubr.msk.bf16.vlgmr.msra.gmra.mrb[104].mxu0 %vm67_vm2, %v3712_v25 }
 0x668   :  { %12795 = vmatpush3.bf16.msra.mxu1 %v15636_v23  ;;  %12813 = vmatpush3.bf16.msra.mxu0 %v14859_v8 }
 0x669   :  { %12806 = vmatprep.subr.bf16.mxu1 %v14728_v0  ;;  %12814 = vmatprep.mubr.msk.bf16.mxu0 %vm14729_vm1, %v14728_v0 }
 0x66a   :  { %12818 = vmatprep.subr.bf16.mxu0 %v14728_v0 }
 0x66b   :  { %12797 = vmatmul.mubr.msk.bf16.vlgmr.msra.gmra.mrb[100].mxu1 %vm225_vm3, %v15746_v40 }
 0x66c   :  { %12807 = vmatpush3.bf16.msra.mxu1 %v14855_v7  ;;  %12808 = vmatprep.mubr.msk.bf16.mxu1 %vm14729_vm1, %v14728_v0 }
 0x66d   :  { %12826 = vmatprep.subr.bf16.mxu1 %v14728_v0 }
 0x66f   :  { %12815 = vmatmul.mubr.msk.bf16.vlgmr.msra.gmra.mrb[108].mxu0 %vm67_vm2, %v3712_v25 }
 0x670   :  { %12819 = vmatpush3.bf16.msra.mxu0 %v15470_v20  ;;  %12822 = vmatprep.mubr.msk.bf16.mxu0 %vm14729_vm1, %v14728_v0 }
 0x671   :  { %12820 = vmatprep.subr.bf16.mxu0 %v14728_v0 }
 0x673   :  { %12809 = vmatmul.mubr.msk.bf16.vlgmr.msra.gmra.mrb[104].mxu1 %vm67_vm2, %v3712_v25 }
 0x674   :  { %12827 = vmatpush3.bf16.msra.mxu1 %v15453_v17  ;;  %12830 = vmatprep.mubr.msk.bf16.mxu1 %vm14729_vm1, %v14728_v0 }
 0x675   :  { %12828 = vmatprep.subr.bf16.mxu1 %v14728_v0  ;;  %12821 = vmatpush3.bf16.msra.mxu0 %v15479_v21 }
 0x676   :  { %12842 = vmatprep.subr.bf16.mxu0 %v14728_v0 }
 0x678   :  { %12829 = vmatpush3.bf16.msra.mxu1 %v15462_v57 }
 0x679   :  { %12834 = vmatprep.subr.bf16.mxu1 %v14728_v0 }
 0x71a   :  { %v3340_v7 = vpop.f32.mrb[88].mxu0  ;;  %v3380_v8 = vpop.f32.mrb[88].mxu1 }
 0x71b   :  { %v13864_v17 = vadd.f32 %v15486_v24, %v3340_v7  ;;  %v12734_v57 = vpop.f32.mrb[89].mxu0  ;;  %v12742_v28 = vpop.f32.mrb[89].mxu1  ;;  %v13865_v32 = vadd.f32 %v15492_v31, %v3380_v8 }
 0x71c   :  { %v3343_v29 = vpop.f32.mrb[90].mxu0  ;;  %v3383_v54 = vpop.f32.mrb[90].mxu1 }
 0x71d   :  { %v10997_v14 = vmul.f32 -1.442695, %v13864_v17  ;;  %v12735_v16 = vpop.f32.mrb[91].mxu0  ;;  %v12743_v20 = vpop.f32.mrb[91].mxu1  ;;  %v10998_v35 = vmul.f32 -1.442695, %v13865_v32 }
 0x71f   :  { %14474 = vpow2.f32 %v10997_v14 }
 0x720   :  { %14476 = vpow2.f32 %v10998_v35 }
 0x722   :  { %v3434_v9 = vpop.f32.mrb[92].mxu1 }
 0x723   :  { %v12750_v10 = vpop.f32.mrb[93].mxu1  ;;  %v3435_v31 = vadd.f32 %v15499_v12, %v3434_v9 }
 0x724   :  { %v3437_v39 = vpop.f32.mrb[94].mxu1 }
 0x725   :  { %v12751_v21 = vpop.f32.mrb[95].mxu1 }
 0x729   :  { %v14475_v27 = vpop.eup %14474 }
 0x72a   :  { %v3390_v61 = vadd.f32 1.0, %v14475_v27  ;;  %v3561_v58 = vpop.f32.mrb[100].mxu0  ;;  %v14477_v5 = vpop.eup %14476 }
 0x72b   :  { %v12774_v24 = vpop.f32.mrb[101].mxu0  ;;  %v3397_v8 = vadd.f32 1.0, %v14477_v5 }
 0x72c   :  { %14478 = vrcp.f32 %v3390_v61  ;;  %v3564_v59 = vpop.f32.mrb[102].mxu0  ;;  %v3562_v24 = vadd.f32 %v15700_v30, %v3561_v58 }
 0x72d   :  { %v12775_v60 = vpop.f32.mrb[103].mxu0 }
 0x732   :  { %v3604_v1 = vpop.f32.mrb[96].mxu0 }
 0x733   :  { %v13866_v2 = vadd.f32 %v15673_v44, %v3604_v1  ;;  %v12782_v3 = vpop.f32.mrb[97].mxu0 }
 0x734   :  { %v3607_v33 = vpop.f32.mrb[98].mxu0 }
 0x735   :  { %v11005_v6 = vmul.f32 -1.442695, %v13866_v2  ;;  %v12783_v22 = vpop.f32.mrb[99].mxu0 }
 0x736   :  { %v14479_v34 = vpop.eup %14478  ;;  %v3644_v13 = vpop.f32.mrb[96].mxu1 }
 0x737   :  { %v3440_v63 = vmul.f32 %v14479_v34, %v3435_v31  ;;  %14480 = vpow2.f32 %v11005_v6  ;;  %v12790_v25 = vpop.f32.mrb[97].mxu1  ;;  %v13867_v28 = vadd.f32 %v15681_v50, %v3644_v13  ;;  %v14711_v6 = vld [vmem:[%s17514_s3 + $0x2] sm:$0x3] }
 0x738   :  { %v3647_v7 = vpop.f32.mrb[98].mxu1 }
 0x739   :  { %v3441_v17 = vadd.f32 %v3440_v63, %v3298_v15  ;;  %v12791_v57 = vpop.f32.mrb[99].mxu1  ;;  %v11006_v54 = vmul.f32 -1.442695, %v13867_v28 }
 0x73b   :  { %14482 = vtanh.f32 %v3441_v17 }
 0x73c   :  { %14484 = vrcp.f32 %v3397_v8 }
 0x73d   :  { %14486 = vpow2.f32 %v11006_v54 }
 0x73e   :  { %v3698_v29 = vpop.f32.mrb[100].mxu1 }
 0x73f   :  { %v12798_v12 = vpop.f32.mrb[101].mxu1  ;;  %v3699_v27 = vadd.f32 %v15692_v47, %v3698_v29 }
 0x740   :  { %v3701_v14 = vpop.f32.mrb[102].mxu1 }
 0x741   :  { %v14481_v16 = vpop.eup %14480  ;;  %v12799_v20 = vpop.f32.mrb[103].mxu1 }
 0x742   :  { %v3654_v9 = vadd.f32 1.0, %v14481_v16  ;;  %v14712_v20 = vld [vmem:[%s17515_s4] sm:$0x3] }
 0x744   :  { %14488 = vrcp.f32 %v3654_v9 }
 0x745   :  { %v14483_v56 = vpop.eup %14482 }
 0x746   :  { %v3443_v4 = vsub.f32 %v15685_v43, %v14483_v56  ;;  %v14485_v32 = vpop.eup %14484 }
 0x747   :  { %v14487_v35 = vpop.eup %14486 }
 0x748   :  { %v3444_v10 = vmul.f32 %v14485_v32, %v3443_v4  ;;  %v3661_v43 = vadd.f32 1.0, %v14487_v35 }
 0x74a   :  { %v15799_v39 = vadd.f32 %v14483_v56, %v3444_v10 }
 0x74c   :  { %v3713_v21 = vpack.c.bf16 %v15799_v39, %v15799_v39 }
 0x74e   :  { %v14489_v61 = vpop.eup %14488  ;;  %12823 = vmatmul.mubr.msk.bf16.vlgmr.msra.gmra.mrb[104].mxu0 %vm225_vm3, %v3713_v21  ;;  %12831 = vmatmul.mubr.msk.bf16.vlgmr.msra.gmra.mrb[104].mxu1 %vm225_vm3, %v3713_v21 }
 0x74f   :  { %v3704_v59 = vmul.f32 %v14489_v61, %v3699_v27  ;;  %12835 = vmatpush3.bf16.msra.mxu1 %v15365_v41  ;;  %12843 = vmatpush3.bf16.msra.mxu0 %v15523_v55 }
 0x750   :  { %12836 = vmatprep.subr.bf16.mxu1 %v14728_v0  ;;  %12844 = vmatprep.subr.bf16.mxu0 %v14728_v0 }
 0x751   :  { %v3705_v60 = vadd.f32 %v3704_v59, %v3562_v24  ;;  %12838 = vmatprep.mubr.msk.bf16.mxu1 %vm14729_vm1, %v14728_v0  ;;  %12846 = vmatprep.mubr.msk.bf16.mxu0 %vm14729_vm1, %v14728_v0 }
 0x753   :  { %14490 = vtanh.f32 %v3705_v60  ;;  %12837 = vmatpush3.bf16.msra.mxu1 %v15378_v53  ;;  %12845 = vmatpush3.bf16.msra.mxu0 %v15536_v45 }
 0x754   :  { %12850 = vmatprep.subr.bf16.mxu1 %v14728_v0  ;;  %12858 = vmatprep.subr.bf16.mxu0 %v14728_v0  ;;  %14492 = vrcp.f32 %v3661_v43 }
 0x756   :  { %12839 = vmatmul.mubr.msk.bf16.vlgmr.msra.gmra.mrb[108].mxu1 %vm225_vm3, %v3713_v21  ;;  %12847 = vmatmul.mubr.msk.bf16.vlgmr.msra.gmra.mrb[112].mxu0 %vm225_vm3, %v3713_v21 }
 0x757   :  { %12851 = vmatpush3.bf16.msra.mxu1 %v15546_v42  ;;  %12859 = vmatpush3.bf16.msra.mxu0 %v15552_v37 }
 0x758   :  { %12852 = vmatprep.subr.bf16.mxu1 %v14728_v0  ;;  %12860 = vmatprep.subr.bf16.mxu0 %v14728_v0 }
 0x759   :  { %12854 = vmatprep.mubr.msk.bf16.mxu1 %vm14729_vm1, %v14728_v0  ;;  %12862 = vmatprep.mubr.msk.bf16.mxu0 %vm14729_vm1, %v14728_v0 }
 0x75b   :  { %12853 = vmatpush3.bf16.msra.mxu1 %v15564_v38  ;;  %12861 = vmatpush3.bf16.msra.mxu0 %v15570_v36 }
 0x75c   :  { %12866 = vmatprep.subr.bf16.mxu0 %v14728_v0  ;;  %12874 = vmatprep.subr.bf16.mxu1 %v14728_v0 }
 0x75d   :  { %v14491_v41 = vpop.eup %14490 }
 0x75e   :  { %v3707_v53 = vsub.f32 %v15740_v48, %v14491_v41  ;;  %12855 = vmatmul.mubr.msk.bf16.vlgmr.msra.gmra.mrb[112].mxu1 %vm225_vm3, %v3713_v21  ;;  %12863 = vmatmul.mubr.msk.bf16.vlgmr.msra.gmra.mrb[116].mxu0 %vm225_vm3, %v3713_v21  ;;  %v14493_v37 = vpop.eup %14492  ;;  %v14713_v21 = vld [vmem:[%s17514_s3 + $0x4] sm:$0x3] }
 0x75f   :  { %12867 = vmatpush3.bf16.msra.mxu0 %v15581_v11  ;;  %12875 = vmatpush3.bf16.msra.mxu1 %v15587_v46 }
 0x760   :  { %v3708_v58 = vmul.f32 %v14493_v37, %v3707_v53  ;;  %12868 = vmatprep.subr.bf16.mxu0 %v14728_v0  ;;  %12870 = vmatprep.mubr.msk.bf16.mxu0 %vm14729_vm1, %v14728_v0 }
 0x761   :  { %12876 = vmatprep.subr.bf16.mxu1 %v14728_v0  ;;  %12878 = vmatprep.mubr.msk.bf16.mxu1 %vm14729_vm1, %v14728_v0 }
 0x762   :  { %v15844_v36 = vadd.f32 %v14491_v41, %v3708_v58 }
 0x763   :  { %12869 = vmatpush3.bf16.msra.mxu0 %v15601_v19  ;;  %12877 = vmatpush3.bf16.msra.mxu1 %v15607_v49 }
 0x764   :  { %v15850_v11 = vpack.c.bf16 %v15844_v36, %v15844_v36  ;;  %12882 = vmatprep.subr.bf16.mxu1 %v14728_v0  ;;  %12890 = vmatprep.subr.bf16.mxu0 %v14728_v0 }
 0x766   :  { %12871 = vmatmul.mubr.msk.bf16.vlgmr.msra.gmra.mrb[112].mxu0 %vm225_vm3, %v15850_v11 }
 0x767   :  { %12891 = vmatpush3.bf16.msra.mxu0 %v15523_v55  ;;  %12894 = vmatprep.mubr.msk.bf16.mxu0 %vm14729_vm1, %v14728_v0  ;;  %v3831_v55 = vpop.f32.mrb[108].mxu0 }
 0x768   :  { %12892 = vmatprep.subr.bf16.mxu0 %v14728_v0  ;;  %v3832_v35 = vadd.f32 %v14713_v21, %v3831_v55 }
 0x76a   :  { %12879 = vmatmul.mubr.msk.bf16.vlgmr.msra.gmra.mrb[112].mxu1 %vm225_vm3, %v15850_v11 }
 0x76b   :  { %12883 = vmatpush3.bf16.msra.mxu1 %v15627_v52  ;;  %12886 = vmatprep.mubr.msk.bf16.mxu1 %vm14729_vm1, %v14728_v0 }
 0x76c   :  { %12884 = vmatprep.subr.bf16.mxu1 %v14728_v0  ;;  %12893 = vmatpush3.bf16.msra.mxu0 %v15536_v45  ;;  %v12816_v45 = vpop.f32.mrb[109].mxu0 }
 0x76d   :  { %12906 = vmatprep.subr.bf16.mxu0 %v14728_v0  ;;  %v3834_v46 = vpop.f32.mrb[110].mxu0 }
 0x76e   :  { %v12817_v19 = vpop.f32.mrb[111].mxu0 }
 0x76f   :  { %12885 = vmatpush3.bf16.msra.mxu1 %v15636_v23  ;;  %v14710_v23 = vld [vmem:[%s17514_s3] sm:$0x3] }
 0x770   :  { %12898 = vmatprep.subr.bf16.mxu1 %v14728_v0 }
 0x772   :  { %12887 = vmatmul.mubr.msk.bf16.vlgmr.msra.gmra.mrb[116].mxu1 %vm225_vm3, %v15850_v11 }
 0x773   :  { %12899 = vmatpush3.bf16.msra.mxu1 %v15546_v42  ;;  %12902 = vmatprep.mubr.msk.bf16.mxu1 %vm14729_vm1, %v14728_v0 }
 0x774   :  { %12900 = vmatprep.subr.bf16.mxu1 %v14728_v0 }
 0x777   :  { %12901 = vmatpush3.bf16.msra.mxu1 %v15564_v38 }
 0x778   :  { %12922 = vmatprep.subr.bf16.mxu1 %v14728_v0 }
 0x821   :  { %v3874_v49 = vpop.f32.mrb[104].mxu0  ;;  %v3914_v52 = vpop.f32.mrb[104].mxu1 }
 0x822   :  { %v13868_v42 = vadd.f32 %v14710_v23, %v3874_v49  ;;  %v12824_v48 = vpop.f32.mrb[105].mxu0  ;;  %v12832_v1 = vpop.f32.mrb[105].mxu1  ;;  %v13869_v22 = vadd.f32 %v14711_v6, %v3914_v52  ;;  %v14718_v6 = vld [vmem:[%s17513_s6] sm:$0xff]  }
 0x823   :  { %v3877_v2 = vpop.f32.mrb[106].mxu0  ;;  %v3917_v3 = vpop.f32.mrb[106].mxu1 }
 0x824   :  { %v11014_v33 = vmul.f32 -1.442695, %v13868_v42  ;;  %v12825_v5 = vpop.f32.mrb[107].mxu0  ;;  %v12833_v38 = vpop.f32.mrb[107].mxu1  ;;  %v11015_v63 = vmul.f32 -1.442695, %v13869_v22 }
 0x825   :  { %v14719_v22 = vld [vmem:[%s17513_s6 + $0x8] sm:$0xff]  }
 0x826   :  { %14494 = vpow2.f32 %v11014_v33  ;;  %v14714_v33 = vld [vmem:[%s17540_s24 + $0x20] sm:$0xff]  }
 0x827   :  { %14496 = vpow2.f32 %v11015_v63 }
 0x829   :  { %v3968_v31 = vpop.f32.mrb[108].mxu1 }
 0x82a   :  { %v12840_v34 = vpop.f32.mrb[109].mxu1  ;;  %v3969_v9 = vadd.f32 %v14712_v20, %v3968_v31  ;;  %v14717_v31 = vld [vmem:[%s17513_s6 + $0x18] sm:$0xff]   ;;  %v14191_v20 = vld [vmem:[%s17519_s10 + $0x8] sm:$0xff]  }
 0x82b   :  { %v3971_v13 = vpop.f32.mrb[110].mxu1 }
 0x82c   :  { %v12841_v15 = vpop.f32.mrb[111].mxu1 }
 0x830   :  { %v14495_v25 = vpop.eup %14494 }
 0x831   :  { %v3924_v7 = vadd.f32 1.0, %v14495_v25  ;;  %v4095_v8 = vpop.f32.mrb[116].mxu0  ;;  %v14497_v16 = vpop.eup %14496 }
 0x832   :  { %v12864_v17 = vpop.f32.mrb[117].mxu0  ;;  %v3931_v24 = vadd.f32 1.0, %v14497_v16  ;;  %v14192_v16 = vld [vmem:[%s17519_s10 + $0x10] sm:$0xff]  }
 0x833   :  { %14498 = vrcp.f32 %v3924_v7  ;;  %v4098_v57 = vpop.f32.mrb[118].mxu0  ;;  %v14184_v7 = vld [vmem:[%s17518_s9] sm:$0xff]   ;;  %v14185_v17 = vld [vmem:[%s17518_s9 + $0x8] sm:$0xff]  }
 0x834   :  { %v12865_v28 = vpop.f32.mrb[119].mxu0  ;;  %v14721_v57 = vld [vmem:[%s17513_s6 + $0x28] sm:$0xff]  }
 0x835   :  { %v14186_v28 = vld [vmem:[%s17518_s9 + $0x10] sm:$0xff]  }
 0x839   :  { %v4138_v29 = vpop.f32.mrb[112].mxu0 }
 0x83a   :  { %v13870_v54 = vadd.f32 %v15673_v44, %v4138_v29  ;;  %v12872_v12 = vpop.f32.mrb[113].mxu0  ;;  %v14187_v29 = vld [vmem:[%s17518_s9 + $0x20] sm:$0xff]  }
 0x83b   :  { %v4141_v14 = vpop.f32.mrb[114].mxu0  ;;  %v14189_v12 = vld [vmem:[%s17518_s9 + $0x28] sm:$0xff]  }
 0x83c   :  { %v11022_v56 = vmul.f32 -1.442695, %v13870_v54  ;;  %v12873_v4 = vpop.f32.mrb[115].mxu0  ;;  %v14188_v54 = vld [vmem:[%s17518_s9 + $0x18] sm:$0xff]   ;;  %v14190_v14 = vld [vmem:[%s17519_s10] sm:$0xff]  }
 0x83d   :  { %v14499_v32 = vpop.eup %14498  ;;  %v4178_v10 = vpop.f32.mrb[112].mxu1 }
 0x83e   :  { %v3974_v27 = vmul.f32 %v14499_v32, %v3969_v9  ;;  %14500 = vpow2.f32 %v11022_v56  ;;  %v12880_v44 = vpop.f32.mrb[113].mxu1  ;;  %v13871_v60 = vadd.f32 %v15681_v50, %v4178_v10  ;;  %v14193_v9 = vld [vmem:[%s17519_s10 + $0x18] sm:$0xff]   ;;  %v16032_v56 = vld [vmem:[%s17519_s10 + $0x28] sm:$0xff]  }
 0x83f   :  { %v4181_v61 = vpop.f32.mrb[114].mxu1 }
 0x840   :  { %v3975_v59 = vadd.f32 %v3974_v27, %v3832_v35  ;;  %v12881_v43 = vpop.f32.mrb[115].mxu1  ;;  %v11023_v53 = vmul.f32 -1.442695, %v13871_v60  ;;  %v14723_v61 = vld [vmem:[%s17516_s7 + $0x2] sm:$0x3] }
 0x842   :  { %14502 = vtanh.f32 %v3975_v59 }
 0x843   :  { %14504 = vrcp.f32 %v3931_v24 }
 0x844   :  { %14506 = vpow2.f32 %v11023_v53 }
 0x845   :  { %v4232_v41 = vpop.f32.mrb[116].mxu1 }
 0x846   :  { %v12888_v37 = vpop.f32.mrb[117].mxu1  ;;  %v4233_v1 = vadd.f32 %v15692_v47, %v4232_v41  ;;  %v14715_v47 = vld [vmem:[%s17513_s6 + $0x10] sm:$0xff]  }
 0x847   :  { %v4235_v58 = vpop.f32.mrb[118].mxu1 }
 0x848   :  { %v14501_v45 = vpop.eup %14500  ;;  %v12889_v46 = vpop.f32.mrb[119].mxu1 }
 0x849   :  { %v4188_v19 = vadd.f32 1.0, %v14501_v45 }
 0x84b   :  { %14508 = vrcp.f32 %v4188_v19 }
 0x84c   :  { %v14503_v55 = vpop.eup %14502 }
 0x84d   :  { %v3977_v49 = vsub.f32 %v15799_v39, %v14503_v55  ;;  %v14505_v52 = vpop.eup %14504  ;;  %v4096_v39 = vadd.f32 %v15700_v30, %v4095_v8  ;;  %v14716_v30 = vld [vmem:[%s17540_s24 + $0x28] sm:$0xff]  }
 0x84e   :  { %v14507_v48 = vpop.eup %14506 }
 0x84f   :  { %v3978_v23 = vmul.f32 %v14505_v52, %v3977_v49  ;;  %v4195_v5 = vadd.f32 1.0, %v14507_v48 }
 0x851   :  { %v15893_v42 = vadd.f32 %v14503_v55, %v3978_v23 }
 0x853   :  { %v15897_v50 = vpack.c.bf16 %v15893_v42, %v15893_v42 }
 0x855   :  { %v14509_v2 = vpop.eup %14508  ;;  %12895 = vmatmul.mubr.msk.bf16.vlgmr.msra.gmra.mrb[120].mxu0 %vm225_vm3, %v15897_v50  ;;  %12903 = vmatmul.mubr.msk.bf16.vlgmr.msra.gmra.mrb[120].mxu1 %vm225_vm3, %v15897_v50 }
 0x856   :  { %v4238_v3 = vmul.f32 %v14509_v2, %v4233_v1  ;;  %12907 = vmatpush3.bf16.msra.mxu0 %v14714_v33  ;;  %12910 = vmatprep.mubr.msk.bf16.mxu0 %vm14729_vm1, %v14728_v0 }
 0x857   :  { %12908 = vmatprep.subr.bf16.mxu0 %v14728_v0  ;;  %12923 = vmatpush3.bf16.msra.mxu1 %v14715_v47 }
 0x858   :  { %v4239_v38 = vadd.f32 %v4238_v3, %v4096_v39  ;;  %12924 = vmatprep.subr.bf16.mxu1 %v14728_v0  ;;  %12926 = vmatprep.mubr.msk.bf16.mxu1 %vm14729_vm1, %v14728_v0  ;;  %v16073_v39 = vld [vmem:[%s17522_s11] sm:$0x3] }
 0x85a   :  { %14510 = vtanh.f32 %v4239_v38  ;;  %12909 = vmatpush3.bf16.msra.mxu0 %v14716_v30  ;;  %v14724_v30 = vld [vmem:[%s17517_s8] sm:$0x3] }
 0x85b   :  { %12914 = vmatprep.subr.bf16.mxu0 %v14728_v0  ;;  %12925 = vmatpush3.bf16.msra.mxu1 %v14717_v31  ;;  %14512 = vrcp.f32 %v4195_v5 }
 0x85c   :  { %12930 = vmatprep.subr.bf16.mxu1 %v14728_v0 }
 0x85d   :  { %12911 = vmatmul.mubr.msk.bf16.vlgmr.msra.gmra.mrb[124].mxu0 %vm225_vm3, %v15897_v50 }
 0x85e   :  { %12915 = vmatpush3.bf16.msra.mxu0 %v14718_v6  ;;  %12918 = vmatprep.mubr.msk.bf16.mxu0 %vm14729_vm1, %v14728_v0 }
 0x85f   :  { %12916 = vmatprep.subr.bf16.mxu0 %v14728_v0 }
 0x862   :  { %12917 = vmatpush3.bf16.msra.mxu0 %v14719_v22 }
 0x863   :  { %12938 = vmatprep.subr.bf16.mxu0 %v14728_v0 }
 0x864   :  { %v14511_v34 = vpop.eup %14510 }
 0x865   :  { %v4241_v13 = vsub.f32 %v15844_v36, %v14511_v34  ;;  %v14513_v15 = vpop.eup %14512  ;;  %v14720_v36 = vld [vmem:[%s17513_s6 + $0x20] sm:$0xff]  }
 0x867   :  { %v4242_v63 = vmul.f32 %v14513_v15, %v4241_v13  ;;  %v14725_v15 = vld [vmem:[%s17516_s7 + $0x4] sm:$0x3] }
 0x869   :  { %v15938_v25 = vadd.f32 %v14511_v34, %v4242_v63 }
 0x86b   :  { %v15945_v8 = vpack.c.bf16 %v15938_v25, %v15938_v25 }
 0x86d   :  { %12919 = vmatmul.mubr.msk.bf16.vlgmr.msra.gmra.mrb[120].mxu0 %vm225_vm3, %v15945_v8  ;;  %12927 = vmatmul.mubr.msk.bf16.vlgmr.msra.gmra.mrb[120].mxu1 %vm225_vm3, %v15945_v8 }
 0x86e   :  { %12931 = vmatpush3.bf16.msra.mxu1 %v14720_v36  ;;  %12939 = vmatpush3.bf16.msra.mxu0 %v14184_v7 }
 0x86f   :  { %12932 = vmatprep.subr.bf16.mxu1 %v14728_v0  ;;  %12940 = vmatprep.subr.bf16.mxu0 %v14728_v0 }
 0x870   :  { %12934 = vmatprep.mubr.msk.bf16.mxu1 %vm14729_vm1, %v14728_v0  ;;  %12942 = vmatprep.mubr.msk.bf16.mxu0 %vm14729_vm1, %v14728_v0 }
 0x872   :  { %12933 = vmatpush3.bf16.msra.mxu1 %v14721_v57  ;;  %12941 = vmatpush3.bf16.msra.mxu0 %v14185_v17 }
 0x873   :  { %12946 = vmatprep.subr.bf16.mxu1 %v14728_v0  ;;  %12954 = vmatprep.subr.bf16.mxu0 %v14728_v0 }
 0x875   :  { %12935 = vmatmul.mubr.msk.bf16.vlgmr.msra.gmra.mrb[124].mxu1 %vm225_vm3, %v15945_v8  ;;  %12943 = vmatmul.mubr.msk.bf16.vlgmr.msra.gmra.mrb[128].mxu0 %vm225_vm3, %v15197_v18 }
 0x876   :  { %12947 = vmatpush3.bf16.msra.mxu1 %v14186_v28  ;;  %12955 = vmatpush3.bf16.msra.mxu0 %v14187_v29 }
 0x877   :  { %12948 = vmatprep.subr.bf16.mxu1 %v14728_v0  ;;  %12956 = vmatprep.subr.bf16.mxu0 %v14728_v0 }
 0x878   :  { %12950 = vmatprep.mubr.msk.bf16.mxu1 %vm14729_vm1, %v14728_v0  ;;  %12958 = vmatprep.mubr.msk.bf16.mxu0 %vm14729_vm1, %v14728_v0 }
 0x87a   :  { %12949 = vmatpush3.bf16.msra.mxu1 %v14188_v54  ;;  %12957 = vmatpush3.bf16.msra.mxu0 %v14189_v12 }
 0x87b   :  { %12962 = vmatprep.subr.bf16.mxu0 %v14728_v0  ;;  %12970 = vmatprep.subr.bf16.mxu1 %v14728_v0 }
 0x87d   :  { %12951 = vmatmul.mubr.msk.bf16.vlgmr.msra.gmra.mrb[128].mxu1 %vm225_vm3, %v15197_v18  ;;  %12959 = vmatmul.mubr.msk.bf16.vlgmr.msra.gmra.mrb[132].mxu0 %vm225_vm3, %v15197_v18  ;;  %v16021_v18 = vld [vmem:[%s17519_s10 + $0x20] sm:$0xff]  }
 0x87e   :  { %12963 = vmatpush3.bf16.msra.mxu0 %v14190_v14  ;;  %12971 = vmatpush3.bf16.msra.mxu1 %v14192_v16 }
 0x87f   :  { %12964 = vmatprep.subr.bf16.mxu0 %v14728_v0  ;;  %12966 = vmatprep.mubr.msk.bf16.mxu0 %vm14729_vm1, %v14728_v0 }
 0x880   :  { %12972 = vmatprep.subr.bf16.mxu1 %v14728_v0  ;;  %12974 = vmatprep.mubr.msk.bf16.mxu1 %vm14729_vm1, %v14728_v0 }
 0x882   :  { %12965 = vmatpush3.bf16.msra.mxu0 %v14191_v20  ;;  %12973 = vmatpush3.bf16.msra.mxu1 %v14193_v9 }
 0x883   :  { %12986 = vmatprep.subr.bf16.mxu0 %v14728_v0  ;;  %12978 = vmatprep.subr.bf16.mxu1 %v14728_v0 }
 0x885   :  { %12967 = vmatmul.mubr.msk.bf16.vlgmr.msra.gmra.mrb[128].mxu0 %vm225_vm3, %v15897_v50 }
 0x886   :  { %12987 = vmatpush3.bf16.msra.mxu0 %v14184_v7  ;;  %12990 = vmatprep.mubr.msk.bf16.mxu0 %vm14729_vm1, %v14728_v0 }
 0x887   :  { %12988 = vmatprep.subr.bf16.mxu0 %v14728_v0 }
 0x889   :  { %12975 = vmatmul.mubr.msk.bf16.vlgmr.msra.gmra.mrb[128].mxu1 %vm225_vm3, %v15897_v50 }
 0x88a   :  { %12979 = vmatpush3.bf16.msra.mxu1 %v16021_v18  ;;  %12989 = vmatpush3.bf16.msra.mxu0 %v14185_v17  ;;  %v16085_v17 = vld [vmem:[%s17522_s11 + $0x2] sm:$0x3] }
 0x88b   :  { %12980 = vmatprep.subr.bf16.mxu1 %v14728_v0  ;;  %13002 = vmatprep.subr.bf16.mxu0 %v14728_v0 }
 0x88c   :  { %12982 = vmatprep.mubr.msk.bf16.mxu1 %vm14729_vm1, %v14728_v0 }
 0x88d   :  { %12991 = vmatmul.mubr.msk.bf16.vlgmr.msra.gmra.mrb[136].mxu0 %vm225_vm3, %v15301_v26 }
 0x88e   :  { %12981 = vmatpush3.bf16.msra.mxu1 %v16032_v56  ;;  %13003 = vmatpush3.bf16.msra.mxu0 %v14187_v29 }
 0x88f   :  { %12994 = vmatprep.subr.bf16.mxu1 %v14728_v0  ;;  %13004 = vmatprep.subr.bf16.mxu0 %v14728_v0 }
 0x890   :  { %13006 = vmatprep.mubr.msk.bf16.mxu0 %vm14729_vm1, %v14728_v0 }
 0x891   :  { %12983 = vmatmul.mubr.msk.bf16.vlgmr.msra.gmra.mrb[132].mxu1 %vm225_vm3, %v15897_v50 }
 0x892   :  { %12995 = vmatpush3.bf16.msra.mxu1 %v14186_v28  ;;  %13005 = vmatpush3.bf16.msra.mxu0 %v14189_v12 }
 0x893   :  { %12996 = vmatprep.subr.bf16.mxu1 %v14728_v0  ;;  %12998 = vmatprep.mubr.msk.bf16.mxu1 %vm14729_vm1, %v14728_v0 }
 0x894   :  { %13010 = vmatprep.subr.bf16.mxu0 %v14728_v0 }
 0x895   :  { %13007 = vmatmul.mubr.msk.bf16.vlgmr.msra.gmra.mrb[140].mxu0 %vm225_vm3, %v15301_v26 }
 0x896   :  { %12997 = vmatpush3.bf16.msra.mxu1 %v14188_v54  ;;  %13011 = vmatpush3.bf16.msra.mxu0 %v14190_v14 }
 0x897   :  { %13018 = vmatprep.subr.bf16.mxu1 %v14728_v0  ;;  %13012 = vmatprep.subr.bf16.mxu0 %v14728_v0 }
 0x898   :  { %13014 = vmatprep.mubr.msk.bf16.mxu0 %vm14729_vm1, %v14728_v0 }
 0x899   :  { %12999 = vmatmul.mubr.msk.bf16.vlgmr.msra.gmra.mrb[136].mxu1 %vm225_vm3, %v15301_v26  ;;  %v14722_v26 = vld [vmem:[%s17516_s7] sm:$0x3] }
 0x89a   :  { %13019 = vmatpush3.bf16.msra.mxu1 %v14192_v16  ;;  %13013 = vmatpush3.bf16.msra.mxu0 %v14191_v20 }
 0x89b   :  { %13020 = vmatprep.subr.bf16.mxu1 %v14728_v0  ;;  %13022 = vmatprep.mubr.msk.bf16.mxu1 %vm14729_vm1, %v14728_v0 }
 0x89c   :  { %13034 = vmatprep.subr.bf16.mxu0 %v14728_v0 }
 0x89e   :  { %13021 = vmatpush3.bf16.msra.mxu1 %v14193_v9 }
 0x89f   :  { %13026 = vmatprep.subr.bf16.mxu1 %v14728_v0 }
 0x930   :  { %v4363_v4 = vpop.f32.mrb[124].mxu0 }
 0x931   :  { %v12912_v32 = vpop.f32.mrb[125].mxu0  ;;  %v4364_v63 = vadd.f32 %v14725_v15, %v4363_v4  ;;  %v14210_v15 = vld [vmem:[%s17518_s9 + $0x20] sm:$0xff]  }
 0x932   :  { %v4366_v10 = vpop.f32.mrb[126].mxu0 }
 0x933   :  { %v12913_v21 = vpop.f32.mrb[127].mxu0  ;;  %v11048_v10 = vld [vmem:[%s17522_s11 + $0x4] sm:$0x3] }
 0x940   :  { %v4406_v35 = vpop.f32.mrb[120].mxu0  ;;  %v4446_v27 = vpop.f32.mrb[120].mxu1 }
 0x941   :  { %v13872_v44 = vadd.f32 %v14722_v26, %v4406_v35  ;;  %v13873_v24 = vadd.f32 %v14723_v61, %v4446_v27  ;;  %v12920_v59 = vpop.f32.mrb[121].mxu0  ;;  %v12928_v43 = vpop.f32.mrb[121].mxu1 }
 0x942   :  { %v4409_v60 = vpop.f32.mrb[122].mxu0  ;;  %v4449_v41 = vpop.f32.mrb[122].mxu1 }
 0x943   :  { %v11030_v53 = vmul.f32 -1.442695, %v13872_v44  ;;  %v11031_v37 = vmul.f32 -1.442695, %v13873_v24  ;;  %v12921_v58 = vpop.f32.mrb[123].mxu0  ;;  %v12929_v45 = vpop.f32.mrb[123].mxu1 }
 0x945   :  { %14514 = vpow2.f32 %v11030_v53  ;;  %v16099_v53 = vld [vmem:[%s17523_s12] sm:$0x3] }
 0x946   :  { %14516 = vpow2.f32 %v11031_v37 }
 0x948   :  { %v4500_v46 = vpop.f32.mrb[124].mxu1 }
 0x949   :  { %v12936_v19 = vpop.f32.mrb[125].mxu1  ;;  %v4501_v31 = vadd.f32 %v14724_v30, %v4500_v46  ;;  %v14205_v30 = vld [vmem:[%s17521_s14 + $0x18] sm:$0xff]  }
 0x94a   :  { %v4503_v55 = vpop.f32.mrb[126].mxu1 }
 0x94b   :  { %v12937_v49 = vpop.f32.mrb[127].mxu1 }
 0x94f   :  { %v14515_v52 = vpop.eup %14514 }
 0x950   :  { %v4456_v23 = vadd.f32 1.0, %v14515_v52  ;;  %v4686_v50 = vpop.f32.mrb[132].mxu0  ;;  %v14517_v38 = vpop.eup %14516 }
 0x951   :  { %v12960_v48 = vpop.f32.mrb[133].mxu0  ;;  %v4463_v28 = vadd.f32 1.0, %v14517_v38  ;;  %v4687_v46 = vadd.f32 %v11048_v10, %v4686_v50  ;;  %v14199_v50 = vld [vmem:[%s17520_s13 + $0x20] sm:$0xff]   ;;  %v14203_v38 = vld [vmem:[%s17521_s14 + $0x8] sm:$0xff]  }
 0x952   :  { %14518 = vrcp.f32 %v4456_v23  ;;  %v4689_v1 = vpop.f32.mrb[134].mxu0 }
 0x953   :  { %v12961_v2 = vpop.f32.mrb[135].mxu0 }
 0x954   :  { %v14196_v2 = vld [vmem:[%s17520_s13] sm:$0xff]  }
 0x958   :  { %v4742_v3 = vpop.f32.mrb[128].mxu0 }
 0x959   :  { %v13874_v33 = vadd.f32 %v4742_v3, %v16073_v39  ;;  %v12968_v47 = vpop.f32.mrb[129].mxu0 }
 0x95a   :  { %v4745_v5 = vpop.f32.mrb[130].mxu0  ;;  %v14202_v47 = vld [vmem:[%s17521_s14] sm:$0xff]  }
 0x95b   :  { %v11066_v6 = vmul.f32 -1.442695, %v13874_v33  ;;  %v12969_v22 = vpop.f32.mrb[131].mxu0  ;;  %v14201_v33 = vld [vmem:[%s17520_s13 + $0x28] sm:$0xff]   ;;  %v14204_v5 = vld [vmem:[%s17521_s14 + $0x10] sm:$0xff]  }
 0x95c   :  { %v14519_v34 = vpop.eup %14518  ;;  %v4799_v13 = vpop.f32.mrb[128].mxu1  ;;  %v14207_v22 = vld [vmem:[%s17521_s14 + $0x28] sm:$0xff]  }
 0x95d   :  { %v4506_v7 = vmul.f32 %v14519_v34, %v4501_v31  ;;  %14520 = vpow2.f32 %v11066_v6  ;;  %v12976_v36 = vpop.f32.mrb[129].mxu1  ;;  %v13875_v12 = vadd.f32 %v16085_v17, %v4799_v13  ;;  %v14206_v6 = vld [vmem:[%s17521_s14 + $0x20] sm:$0xff]   ;;  %v14209_v13 = vld [vmem:[%s17518_s9 + $0x8] sm:$0xff]  }
 0x95e   :  { %v4802_v57 = vpop.f32.mrb[130].mxu1  ;;  %v14208_v34 = vld [vmem:[%s17518_s9] sm:$0xff]   ;;  %v14213_v36 = vld [vmem:[%s17519_s10 + $0x8] sm:$0xff]  }
 0x95f   :  { %v4507_v29 = vadd.f32 %v4506_v7, %v4364_v63  ;;  %v12977_v54 = vpop.f32.mrb[131].mxu1  ;;  %v11067_v16 = vmul.f32 -1.442695, %v13875_v12  ;;  %v14211_v63 = vld [vmem:[%s17518_s9 + $0x28] sm:$0xff]   ;;  %v14212_v7 = vld [vmem:[%s17519_s10] sm:$0xff]   ;;  %v14731_v57 = vmov 0.0|0.0  }
 0x960   :  { %v4514_v12 = vld [vmem:[%s17524_s17 + $0x10] sm:$0xff] }
 0x961   :  { %14522 = vtanh.f32 %v4507_v29  ;;  %v4513_v29 = vld [vmem:[%s17524_s17 + $0x8] sm:$0xff] }
 0x962   :  { %14524 = vrcp.f32 %v4463_v28  ;;  %v4512_v28 = vld [vmem:[%s17524_s17] sm:$0xff] }
 0x963   :  { %14526 = vpow2.f32 %v11067_v16  ;;  %v16231_v54 = vpack.c.bf16 %v4513_v29, %v4512_v28 }
 0x964   :  { %v4871_v14 = vpop.f32.mrb[132].mxu1 }
 0x965   :  { %v12984_v20 = vpop.f32.mrb[133].mxu1  ;;  %v4872_v58 = vadd.f32 %v4871_v14, %v16099_v53  ;;  %v4515_v14 = vld [vmem:[%s17524_s17 + $0x18] sm:$0xff] }
 0x966   :  { %v4874_v9 = vpop.f32.mrb[134].mxu1  ;;  %v16241_v16 = vpack.c.bf16 %v4515_v14, %v4514_v12 }
 0x967   :  { %v14521_v4 = vpop.eup %14520  ;;  %v12985_v32 = vpop.f32.mrb[135].mxu1 }
 0x968   :  { %v4814_v21 = vadd.f32 1.0, %v14521_v4  ;;  %v4998_v35 = vpop.f32.mrb[140].mxu0 }
 0x969   :  { %v16091_v27 = vadd.f32 %v11048_v10, %v4998_v35  ;;  %v13008_v26 = vpop.f32.mrb[141].mxu0 }
 0x96a   :  { %14528 = vrcp.f32 %v4814_v21  ;;  %v5001_v44 = vpop.f32.mrb[142].mxu0 }
 0x96b   :  { %v14523_v61 = vpop.eup %14522  ;;  %v13009_v24 = vpop.f32.mrb[143].mxu0 }
 0x96c   :  { %v4509_v59 = vsub.f32 %v15938_v25, %v14523_v61  ;;  %v14525_v43 = vpop.eup %14524 }
 0x96d   :  { %v14527_v37 = vpop.eup %14526 }
 0x96e   :  { %v4510_v60 = vmul.f32 %v14525_v43, %v4509_v59  ;;  %v4821_v55 = vadd.f32 1.0, %v14527_v37 }
 0x970   :  { %v16094_v41 = vadd.f32 %v14523_v61, %v4510_v60 }
 0x972   :  { %v16169_v31 = vpack.c.bf16 %v16094_v41, %v16094_v41 }
 0x974   :  { %v14529_v45 = vpop.eup %14528 }
 0x975   :  { %v4877_v19 = vmul.f32 %v14529_v45, %v4872_v58 }
 0x977   :  { %v4878_v49 = vadd.f32 %v4877_v19, %v4687_v46 }
 0x979   :  { %14530 = vtanh.f32 %v4878_v49 }
 0x97a   :  { %14532 = vrcp.f32 %v4821_v55 }
 0x983   :  { %v14531_v25 = vpop.eup %14530 }
 0x984   :  { %v4880_v52 = vsub.f32 %v15893_v42, %v14531_v25  ;;  %v14533_v23 = vpop.eup %14532  ;;  %v14197_v42 = vld [vmem:[%s17520_s13 + $0x8] sm:$0xff]  }
 0x986   :  { %v4881_v48 = vmul.f32 %v14533_v23, %v4880_v52 }
 0x988   :  { %v16103_v1 = vadd.f32 %v14531_v25, %v4881_v48  ;;  %v5152_v25 = vld [vmem:[%s17525_s15] sm:$0x3] }
 0x98a   :  { %v4883_v3 = vpack.c.bf16 %v16103_v1, %v16103_v1 }
 0x98c   :  { %13015 = vmatmul.mubr.msk.bf16.vlgmr.msra.gmra.mrb[136].mxu0 %vm225_vm3, %v4883_v3  ;;  %13023 = vmatmul.mubr.msk.bf16.vlgmr.msra.gmra.mrb[136].mxu1 %vm225_vm3, %v4883_v3 }
 0x98d   :  { %13027 = vmatpush3.bf16.msra.mxu1 %v16021_v18  ;;  %13035 = vmatpush3.bf16.msra.mxu0 %v14196_v2  ;;  %v14198_v18 = vld [vmem:[%s17520_s13 + $0x10] sm:$0xff]  }
 0x98e   :  { %13028 = vmatprep.subr.bf16.mxu1 %v14728_v0  ;;  %13036 = vmatprep.subr.bf16.mxu0 %v14728_v0 }
 0x98f   :  { %13030 = vmatprep.mubr.msk.bf16.mxu1 %vm14729_vm1, %v14728_v0  ;;  %13038 = vmatprep.mubr.msk.bf16.mxu0 %vm14729_vm1, %v14728_v0 }
 0x991   :  { %13029 = vmatpush3.bf16.msra.mxu1 %v16032_v56  ;;  %13037 = vmatpush3.bf16.msra.mxu0 %v14197_v42  ;;  %v14200_v56 = vld [vmem:[%s17520_s13 + $0x18] sm:$0xff]  }
 0x992   :  { %13042 = vmatprep.subr.bf16.mxu1 %v14728_v0  ;;  %13050 = vmatprep.subr.bf16.mxu0 %v14728_v0 }
 0x994   :  { %13031 = vmatmul.mubr.msk.bf16.vlgmr.msra.gmra.mrb[140].mxu1 %vm225_vm3, %v4883_v3  ;;  %13039 = vmatmul.mubr.msk.bf16.vlgmr.msra.gmra.mrb[144].mxu0 %vm225_vm3, %v4883_v3 }
 0x995   :  { %13043 = vmatpush3.bf16.msra.mxu1 %v14198_v18  ;;  %13051 = vmatpush3.bf16.msra.mxu0 %v14199_v50 }
 0x996   :  { %13044 = vmatprep.subr.bf16.mxu1 %v14728_v0  ;;  %13052 = vmatprep.subr.bf16.mxu0 %v14728_v0 }
 0x997   :  { %13046 = vmatprep.mubr.msk.bf16.mxu1 %vm14729_vm1, %v14728_v0  ;;  %13054 = vmatprep.mubr.msk.bf16.mxu0 %vm14729_vm1, %v14728_v0 }
 0x999   :  { %13045 = vmatpush3.bf16.msra.mxu1 %v14200_v56  ;;  %13053 = vmatpush3.bf16.msra.mxu0 %v14201_v33 }
 0x99a   :  { %13058 = vmatprep.subr.bf16.mxu0 %v14728_v0  ;;  %13066 = vmatprep.subr.bf16.mxu1 %v14728_v0 }
 0x99c   :  { %13047 = vmatmul.mubr.msk.bf16.vlgmr.msra.gmra.mrb[144].mxu1 %vm225_vm3, %v4883_v3  ;;  %13055 = vmatmul.mubr.msk.bf16.vlgmr.msra.gmra.mrb[148].mxu0 %vm225_vm3, %v4883_v3 }
 0x99d   :  { %13059 = vmatpush3.bf16.msra.mxu0 %v14202_v47  ;;  %13067 = vmatpush3.bf16.msra.mxu1 %v14204_v5  ;;  %v11086_v5 = vld [vmem:[%s17525_s15 + $0x2] sm:$0x3] }
 0x99e   :  { %13060 = vmatprep.subr.bf16.mxu0 %v14728_v0  ;;  %13062 = vmatprep.mubr.msk.bf16.mxu0 %vm14729_vm1, %v14728_v0 }
 0x99f   :  { %13068 = vmatprep.subr.bf16.mxu1 %v14728_v0  ;;  %13070 = vmatprep.mubr.msk.bf16.mxu1 %vm14729_vm1, %v14728_v0 }
 0x9a1   :  { %13061 = vmatpush3.bf16.msra.mxu0 %v14203_v38  ;;  %13069 = vmatpush3.bf16.msra.mxu1 %v14205_v30 }
 0x9a2   :  { %13074 = vmatprep.subr.bf16.mxu1 %v14728_v0  ;;  %13794 = vmatprep.subr.bf16.mxu0 %v14731_v57 }
 0x9a4   :  { %13063 = vmatmul.mubr.msk.bf16.vlgmr.msra.gmra.mrb[144].mxu0 %vm225_vm3, %v16169_v31 }
 0x9a5   :  { %13090 = vmatprep.mubr.msk.f32.mxu0 %vm14729_vm1, %v14728_v0  ;;  %13796 = vmatpush3.bf16.msra.mxu0 %v16231_v54 }
 0x9a6   :  { %13797 = vmatprep.subr.bf16.mxu0 %v14731_v57 }
 0x9a8   :  { %13071 = vmatmul.mubr.msk.bf16.vlgmr.msra.gmra.mrb[144].mxu1 %vm225_vm3, %v16169_v31 }
 0x9a9   :  { %13075 = vmatpush3.bf16.msra.mxu1 %v14206_v6  ;;  %13078 = vmatprep.mubr.msk.bf16.mxu1 %vm14729_vm1, %v14728_v0 }
 0x9aa   :  { %13076 = vmatprep.subr.bf16.mxu1 %v14728_v0  ;;  %13799 = vmatpush3.bf16.msra.mxu0 %v16241_v16 }
 0x9ab   :  { %13101 = vmatprep.subr.bf16.mxu0 %v14728_v0 }
 0x9ad   :  { %13077 = vmatpush3.bf16.msra.mxu1 %v14207_v22 }
 0x9ae   :  { %13093 = vmatprep.subr.bf16.mxu1 %v14728_v0 }
 0x9b0   :  { %13079 = vmatmul.mubr.msk.bf16.vlgmr.msra.gmra.mrb[148].mxu1 %vm225_vm3, %v16169_v31 }
 0x9b1   :  { %13094 = vmatpush3.bf16.msra.mxu1 %v14208_v34  ;;  %13097 = vmatprep.mubr.msk.bf16.mxu1 %vm14729_vm1, %v14728_v0 }
 0x9b2   :  { %13095 = vmatprep.subr.bf16.mxu1 %v14728_v0 }
 0x9b5   :  { %13096 = vmatpush3.bf16.msra.mxu1 %v14209_v13 }
 0x9b6   :  { %13109 = vmatprep.subr.bf16.mxu1 %v14728_v0 }
 0x9b8   :  { %13098 = vmatmul.mubr.msk.bf16.vlgmr.msra.gmra.mrb[152].mxu1 %vm225_vm3, %v15415_v62 }
 0x9b9   :  { %13110 = vmatpush3.bf16.msra.mxu1 %v14210_v15  ;;  %13113 = vmatprep.mubr.msk.bf16.mxu1 %vm14729_vm1, %v14728_v0 }
 0x9ba   :  { %13111 = vmatprep.subr.bf16.mxu1 %v14728_v0 }
 0x9bd   :  { %13112 = vmatpush3.bf16.msra.mxu1 %v14211_v63 }
 0x9be   :  { %13117 = vmatprep.subr.bf16.mxu1 %v14728_v0 }
 0x9c0   :  { %13114 = vmatmul.mubr.msk.bf16.vlgmr.msra.gmra.mrb[156].mxu1 %vm225_vm3, %v15415_v62 }
 0x9c1   :  { %13121 = vmatprep.mubr.msk.bf16.mxu1 %vm14729_vm1, %v14728_v0  ;;  %13118 = vmatpush3.bf16.msra.mxu1 %v14212_v7 }
 0x9c2   :  { %13119 = vmatprep.subr.bf16.mxu1 %v14728_v0 }
 0x9c5   :  { %13120 = vmatpush3.bf16.msra.mxu1 %v14213_v36 }
 0x9c6   :  { %13141 = vmatprep.subr.bf16.mxu1 %v14728_v0 }
 0xa5f   :  { %v5041_v20 = vpop.f32.mrb[136].mxu0  ;;  %v5081_v9 = vpop.f32.mrb[136].mxu1 }
 0xa60   :  { %v13876_v4 = vadd.f32 %v5041_v20, %v16073_v39  ;;  %v13016_v32 = vpop.f32.mrb[137].mxu0  ;;  %v13024_v10 = vpop.f32.mrb[137].mxu1  ;;  %v13877_v59 = vadd.f32 %v16085_v17, %v5081_v9 }
 0xa61   :  { %v5044_v21 = vpop.f32.mrb[138].mxu0  ;;  %v5084_v35 = vpop.f32.mrb[138].mxu1  ;;  %v11094_v32 = vld [vmem:[%s17525_s15 + $0x4] sm:$0x3] }
 0xa62   :  { %v11076_v26 = vmul.f32 -1.442695, %v13876_v4  ;;  %v13017_v44 = vpop.f32.mrb[139].mxu0  ;;  %v13025_v61 = vpop.f32.mrb[139].mxu1  ;;  %v11077_v58 = vmul.f32 -1.442695, %v13877_v59 }
 0xa63   :  { %v14214_v4 = vld [vmem:[%s17520_s13] sm:$0xff]   ;;  %v14215_v59 = vld [vmem:[%s17520_s13 + $0x8] sm:$0xff]  }
 0xa64   :  { %14534 = vpow2.f32 %v11076_v26 }
 0xa65   :  { %14536 = vpow2.f32 %v11077_v58 }
 0xa67   :  { %v5135_v24 = vpop.f32.mrb[140].mxu1 }
 0xa68   :  { %v13032_v43 = vpop.f32.mrb[141].mxu1  ;;  %v5136_v3 = vadd.f32 %v5135_v24, %v16099_v53 }
 0xa69   :  { %v5138_v60 = vpop.f32.mrb[142].mxu1 }
 0xa6a   :  { %v13033_v37 = vpop.f32.mrb[143].mxu1 }
 0xa6e   :  { %v14535_v45 = vpop.eup %14534 }
 0xa6f   :  { %v5091_v46 = vadd.f32 1.0, %v14535_v45  ;;  %v5317_v19 = vpop.f32.mrb[148].mxu0  ;;  %v14537_v2 = vpop.eup %14536  ;;  %v14216_v45 = vld [vmem:[%s17520_s13 + $0x20] sm:$0xff]  }
 0xa70   :  { %v13056_v39 = vpop.f32.mrb[149].mxu0  ;;  %v5098_v30 = vadd.f32 1.0, %v14537_v2  ;;  %v5318_v44 = vadd.f32 %v11094_v32, %v5317_v19  ;;  %v14218_v19 = vld [vmem:[%s17521_s14] sm:$0xff]   ;;  %v14222_v2 = vld [vmem:[%s17519_s10 + $0x10] sm:$0xff]  }
 0xa71   :  { %14538 = vrcp.f32 %v5091_v46  ;;  %v5320_v55 = vpop.f32.mrb[150].mxu0  ;;  %v14217_v46 = vld [vmem:[%s17520_s13 + $0x28] sm:$0xff]  }
 0xa72   :  { %v13057_v49 = vpop.f32.mrb[151].mxu0 }
 0xa77   :  { %v5376_v52 = vpop.f32.mrb[144].mxu0 }
 0xa78   :  { %v13878_v23 = vadd.f32 %v5376_v52, %v5152_v25  ;;  %v13064_v48 = vpop.f32.mrb[145].mxu0  ;;  %v14219_v25 = vld [vmem:[%s17521_s14 + $0x8] sm:$0xff]  }
 0xa79   :  { %v5379_v17 = vpop.f32.mrb[146].mxu0 }
 0xa7a   :  { %v11112_v42 = vmul.f32 -1.442695, %v13878_v23  ;;  %v13065_v18 = vpop.f32.mrb[147].mxu0  ;;  %v14220_v23 = vld [vmem:[%s17518_s9 + $0x10] sm:$0xff]   ;;  %v14221_v17 = vld [vmem:[%s17518_s9 + $0x18] sm:$0xff]  }
 0xa7b   :  { %v14539_v50 = vpop.eup %14538  ;;  %v5433_v56 = vpop.f32.mrb[144].mxu1  ;;  %v14226_v18 = vld [vmem:[%s17520_s13 + $0x10] sm:$0xff]  }
 0xa7c   :  { %v5141_v33 = vmul.f32 %v14539_v50, %v5136_v3  ;;  %14540 = vpow2.f32 %v11112_v42  ;;  %v13072_v47 = vpop.f32.mrb[145].mxu1  ;;  %v13879_v34 = vadd.f32 %v11086_v5, %v5433_v56  ;;  %v14223_v3 = vld [vmem:[%s17519_s10 + $0x18] sm:$0xff]   ;;  %v14224_v42 = vld [vmem:[%s17519_s10 + $0x20] sm:$0xff]   ;;  %v14228_v56 = vld [vmem:[%s17521_s14 + $0x10] sm:$0xff]  }
 0xa7d   :  { %v5436_v38 = vpop.f32.mrb[146].mxu1  ;;  %v14227_v50 = vld [vmem:[%s17520_s13 + $0x18] sm:$0xff]   ;;  %v14230_v47 = vld [vmem:[%s17521_s14 + $0x20] sm:$0xff]   ;;  %v14231_v5 = vld [vmem:[%s17521_s14 + $0x28] sm:$0xff]  }
 0xa7e   :  { %v5142_v6 = vadd.f32 %v5141_v33, %v16091_v27  ;;  %v13073_v22 = vpop.f32.mrb[147].mxu1  ;;  %v11113_v13 = vmul.f32 -1.442695, %v13879_v34  ;;  %v5458_v27 = vld [vmem:[%s17526_s16] sm:$0x3]  ;;  %v14229_v33 = vld [vmem:[%s17521_s14 + $0x18] sm:$0xff]  }
 0xa7f   :  { %v14232_v38 = vld [vmem:[%s17518_s9] sm:$0xff]   ;;  %v14235_v22 = vld [vmem:[%s17518_s9 + $0x28] sm:$0xff]  }
 0xa80   :  { %14542 = vtanh.f32 %v5142_v6  ;;  %v14234_v6 = vld [vmem:[%s17518_s9 + $0x20] sm:$0xff]  }
 0xa81   :  { %14544 = vrcp.f32 %v5098_v30  ;;  %v14233_v30 = vld [vmem:[%s17518_s9 + $0x8] sm:$0xff]   ;;  %v14236_v34 = vld [vmem:[%s17519_s10] sm:$0xff]  }
 0xa82   :  { %14546 = vpow2.f32 %v11113_v13 }
 0xa83   :  { %v5505_v53 = vpop.f32.mrb[148].mxu1 }
 0xa84   :  { %v13080_v15 = vpop.f32.mrb[149].mxu1  ;;  %v5506_v21 = vadd.f32 %v5505_v53, %v5458_v27  ;;  %v14237_v53 = vld [vmem:[%s17519_s10 + $0x8] sm:$0xff]   ;;  %v16432_v27 = vld [vmem:[%s17527_s18] sm:$0x3] }
 0xa85   :  { %v5508_v63 = vpop.f32.mrb[150].mxu1 }
 0xa86   :  { %v14541_v7 = vpop.eup %14540  ;;  %v13081_v36 = vpop.f32.mrb[151].mxu1 }
 0xa87   :  { %v5448_v28 = vadd.f32 1.0, %v14541_v7  ;;  %v5596_v36 = vld [vmem:[%s17522_s11] sm:$0x3] }
 0xa89   :  { %14548 = vrcp.f32 %v5448_v28 }
 0xa8a   :  { %v14543_v29 = vpop.eup %14542 }
 0xa8b   :  { %v5144_v12 = vsub.f32 %v16103_v1, %v14543_v29  ;;  %v14545_v14 = vpop.eup %14544 }
 0xa8c   :  { %v14547_v1 = vpop.eup %14546 }
 0xa8d   :  { %v5145_v20 = vmul.f32 %v14545_v14, %v5144_v12  ;;  %v5455_v60 = vadd.f32 1.0, %v14547_v1 }
 0xa8f   :  { %v16256_v9 = vadd.f32 %v14543_v29, %v5145_v20 }
 0xa91   :  { %v16269_v10 = vpack.c.bf16 %v16256_v9, %v16256_v9 }
 0xa93   :  { %v14549_v35 = vpop.eup %14548  ;;  %v16271_v26 = vpop.f32.mrb[156].mxu1  ;;  %13122 = vmatmul.mubr.msk.bf16.vlgmr.msra.gmra.mrb[152].mxu1 %vm225_vm3, %v16269_v10 }
 0xa94   :  { %v5511_v61 = vmul.f32 %v14549_v35, %v5506_v21  ;;  %v13115_v24 = vpop.f32.mrb[157].mxu1  ;;  %13142 = vmatpush3.bf16.msra.mxu1 %v14214_v4  ;;  %13145 = vmatprep.mubr.msk.bf16.mxu1 %vm14729_vm1, %v14728_v0 }
 0xa95   :  { %v5760_v43 = vpop.f32.mrb[158].mxu1  ;;  %13143 = vmatprep.subr.bf16.mxu1 %v14728_v0 }
 0xa96   :  { %v5512_v37 = vadd.f32 %v5511_v61, %v5318_v44  ;;  %v13116_v58 = vpop.f32.mrb[159].mxu1  ;;  %v11125_v43 = vld [vmem:[%s17522_s11 + $0x2] sm:$0x3] }
 0xa98   :  { %14550 = vtanh.f32 %v5512_v37  ;;  %13144 = vmatpush3.bf16.msra.mxu1 %v14215_v59 }
 0xa99   :  { %13157 = vmatprep.subr.bf16.mxu1 %v14728_v0  ;;  %14552 = vrcp.f32 %v5455_v60  ;;  %v5960_v60 = vld [vmem:[%s17525_s15] sm:$0x3] }
 0xa9b   :  { %13146 = vmatmul.mubr.msk.bf16.vlgmr.msra.gmra.mrb[160].mxu1 %vm225_vm3, %v16269_v10 }
 0xa9c   :  { %13158 = vmatpush3.bf16.msra.mxu1 %v14216_v45  ;;  %13161 = vmatprep.mubr.msk.bf16.mxu1 %vm14729_vm1, %v14728_v0 }
 0xa9d   :  { %13159 = vmatprep.subr.bf16.mxu1 %v14728_v0 }
 0xaa0   :  { %13160 = vmatpush3.bf16.msra.mxu1 %v14217_v46 }
 0xaa1   :  { %13165 = vmatprep.subr.bf16.mxu1 %v14728_v0 }
 0xaa2   :  { %v14551_v39 = vpop.eup %14550 }
 0xaa3   :  { %13162 = vmatmul.mubr.msk.bf16.vlgmr.msra.gmra.mrb[164].mxu1 %vm225_vm3, %v16269_v10  ;;  %v5514_v55 = vsub.f32 %v16094_v41, %v14551_v39  ;;  %v14553_v49 = vpop.eup %14552 }
 0xaa4   :  { %13166 = vmatpush3.bf16.msra.mxu1 %v14218_v19  ;;  %13169 = vmatprep.mubr.msk.bf16.mxu1 %vm14729_vm1, %v14728_v0 }
 0xaa5   :  { %13167 = vmatprep.subr.bf16.mxu1 %v14728_v0  ;;  %v5515_v52 = vmul.f32 %v14553_v49, %v5514_v55  ;;  %v5896_v49 = vld [vmem:[%s17523_s12] sm:$0x3] }
 0xaa7   :  { %v16309_v48 = vadd.f32 %v14551_v39, %v5515_v52  ;;  %v11133_v52 = vld [vmem:[%s17522_s11 + $0x4] sm:$0x3] }
 0xaa8   :  { %13168 = vmatpush3.bf16.msra.mxu1 %v14219_v25 }
 0xaa9   :  { %13091 = vmatmul.mubr.msk.f32.vlgmr.msra.gmra.mrb[152].mxu0 %vm225_vm3, %v16309_v48  ;;  %v5955_v41 = vpack.c.bf16 %v16309_v48, %v16309_v48  ;;  %13800 = vmatprep.subr.bf16.mxu1 %v14731_v57 }
 0xaaa   :  { %13102 = vmatpush3.bf16.msra.mxu0 %v14220_v23  ;;  %13105 = vmatprep.mubr.msk.bf16.mxu0 %vm14729_vm1, %v14728_v0 }
 0xaab   :  { %13170 = vmatmul.mubr.msk.bf16.vlgmr.msra.gmra.mrb[160].mxu1 %vm225_vm3, %v5955_v41  ;;  %13103 = vmatprep.subr.bf16.mxu0 %v14728_v0 }
 0xaac   :  { %13802 = vmatpush3.bf16.msra.mxu1 %v16231_v54  ;;  %13197 = vmatprep.mubr.msk.f32.mxu1 %vm14729_vm1, %v14728_v0 }
 0xaad   :  { %13803 = vmatprep.subr.bf16.mxu1 %v14731_v57 }
 0xaae   :  { %13104 = vmatpush3.bf16.msra.mxu0 %v14221_v17 }
 0xaaf   :  { %13125 = vmatprep.subr.bf16.mxu0 %v14728_v0 }
 0xab0   :  { %13805 = vmatpush3.bf16.msra.mxu1 %v16241_v16 }
 0xab1   :  { %13106 = vmatmul.mubr.msk.bf16.vlgmr.msra.gmra.mrb[156].mxu0 %vm225_vm3, %v15415_v62  ;;  %13208 = vmatprep.subr.bf16.mxu1 %v14728_v0  ;;  %v14225_v62 = vld [vmem:[%s17519_s10 + $0x28] sm:$0xff]  }
 0xab2   :  { %13126 = vmatpush3.bf16.msra.mxu0 %v14222_v2  ;;  %13129 = vmatprep.mubr.msk.bf16.mxu0 %vm14729_vm1, %v14728_v0 }
 0xab3   :  { %13127 = vmatprep.subr.bf16.mxu0 %v14728_v0 }
 0xab6   :  { %13128 = vmatpush3.bf16.msra.mxu0 %v14223_v3 }
 0xab7   :  { %13133 = vmatprep.subr.bf16.mxu0 %v14728_v0 }
 0xabd   :  { %13130 = vmatmul.mubr.msk.bf16.vlgmr.msra.gmra.mrb[156].mxu0 %vm225_vm3, %v16269_v10 }
 0xabe   :  { %13134 = vmatpush3.bf16.msra.mxu0 %v14224_v42  ;;  %13137 = vmatprep.mubr.msk.bf16.mxu0 %vm14729_vm1, %v14728_v0  ;;  %v5758_v42 = vadd.f32 %v11133_v52, %v16271_v26 }
 0xabf   :  { %13135 = vmatprep.subr.bf16.mxu0 %v14728_v0 }
 0xac2   :  { %13136 = vmatpush3.bf16.msra.mxu0 %v14225_v62 }
 0xac3   :  { %13149 = vmatprep.subr.bf16.mxu0 %v14728_v0 }
 0xac5   :  { %13138 = vmatmul.mubr.msk.bf16.vlgmr.msra.gmra.mrb[160].mxu0 %vm225_vm3, %v16269_v10 }
 0xac6   :  { %13150 = vmatpush3.bf16.msra.mxu0 %v14226_v18  ;;  %13153 = vmatprep.mubr.msk.bf16.mxu0 %vm14729_vm1, %v14728_v0 }
 0xac7   :  { %13151 = vmatprep.subr.bf16.mxu0 %v14728_v0 }
 0xaca   :  { %13152 = vmatpush3.bf16.msra.mxu0 %v14227_v50 }
 0xacb   :  { %13173 = vmatprep.subr.bf16.mxu0 %v14728_v0 }
 0xacd   :  { %13154 = vmatmul.mubr.msk.bf16.vlgmr.msra.gmra.mrb[164].mxu0 %vm225_vm3, %v16269_v10 }
 0xace   :  { %13174 = vmatpush3.bf16.msra.mxu0 %v14228_v56  ;;  %13177 = vmatprep.mubr.msk.bf16.mxu0 %vm14729_vm1, %v14728_v0 }
 0xacf   :  { %13175 = vmatprep.subr.bf16.mxu0 %v14728_v0 }
 0xad2   :  { %13176 = vmatpush3.bf16.msra.mxu0 %v14229_v33 }
 0xad3   :  { %13181 = vmatprep.subr.bf16.mxu0 %v14728_v0 }
 0xad9   :  { %13178 = vmatmul.mubr.msk.bf16.vlgmr.msra.gmra.mrb[164].mxu0 %vm225_vm3, %v5955_v41 }
 0xada   :  { %13182 = vmatpush3.bf16.msra.mxu0 %v14230_v47  ;;  %13185 = vmatprep.mubr.msk.bf16.mxu0 %vm14729_vm1, %v14728_v0 }
 0xadb   :  { %13183 = vmatprep.subr.bf16.mxu0 %v14728_v0 }
 0xade   :  { %13184 = vmatpush3.bf16.msra.mxu0 %v14231_v5 }
 0xadf   :  { %13200 = vmatprep.subr.bf16.mxu0 %v14728_v0 }
 0xae1   :  { %13186 = vmatmul.mubr.msk.bf16.vlgmr.msra.gmra.mrb[168].mxu0 %vm225_vm3, %v5955_v41 }
 0xae2   :  { %13201 = vmatpush3.bf16.msra.mxu0 %v14232_v38  ;;  %13204 = vmatprep.mubr.msk.bf16.mxu0 %vm14729_vm1, %v14728_v0 }
 0xae3   :  { %13202 = vmatprep.subr.bf16.mxu0 %v14728_v0 }
 0xae6   :  { %13203 = vmatpush3.bf16.msra.mxu0 %v14233_v30 }
 0xae7   :  { %13216 = vmatprep.subr.bf16.mxu0 %v14728_v0 }
 0xae9   :  { %13205 = vmatmul.mubr.msk.bf16.vlgmr.msra.gmra.mrb[172].mxu0 %vm225_vm3, %v15612_v51 }
 0xaea   :  { %13217 = vmatpush3.bf16.msra.mxu0 %v14234_v6  ;;  %13220 = vmatprep.mubr.msk.bf16.mxu0 %vm14729_vm1, %v14728_v0  ;;  %v11163_v6 = vld [vmem:[%s17525_s15 + $0x2] sm:$0x3] }
 0xaeb   :  { %13218 = vmatprep.subr.bf16.mxu0 %v14728_v0 }
 0xaee   :  { %13219 = vmatpush3.bf16.msra.mxu0 %v14235_v22 }
 0xaef   :  { %13224 = vmatprep.subr.bf16.mxu0 %v14728_v0 }
 0xaf1   :  { %13221 = vmatmul.mubr.msk.bf16.vlgmr.msra.gmra.mrb[176].mxu0 %vm225_vm3, %v15612_v51 }
 0xaf2   :  { %13228 = vmatprep.mubr.msk.bf16.mxu0 %vm14729_vm1, %v14728_v0  ;;  %13225 = vmatpush3.bf16.msra.mxu0 %v14236_v34 }
 0xaf3   :  { %13226 = vmatprep.subr.bf16.mxu0 %v14728_v0 }
 0xaf6   :  { %13227 = vmatpush3.bf16.msra.mxu0 %v14237_v53 }
 0xaf7   :  { %13248 = vmatprep.subr.bf16.mxu0 %v14728_v0 }
 0xb66   :  { %v5816_v13 = vpop.f32.mrb[152].mxu1 }
 0xb67   :  { %v13123_v15 = vpop.f32.mrb[153].mxu1  ;;  %v13880_v29 = vadd.f32 %v5816_v13, %v5596_v36 }
 0xb68   :  { %v5819_v63 = vpop.f32.mrb[154].mxu1 }
 0xb69   :  { %v13124_v7 = vpop.f32.mrb[155].mxu1  ;;  %v11151_v4 = vmul.f32 -1.442695, %v13880_v29  ;;  %v14238_v29 = vld [vmem:[%s17520_s13] sm:$0xff]  }
 0xb6b   :  { %14554 = vpow2.f32 %v11151_v4  ;;  %v14239_v4 = vld [vmem:[%s17520_s13 + $0x8] sm:$0xff]  }
 0xb75   :  { %v14555_v24 = vpop.eup %14554 }
 0xb76   :  { %v16427_v28 = vpop.f32.mrb[164].mxu1  ;;  %v5886_v59 = vadd.f32 1.0, %v14555_v24  ;;  %v14240_v24 = vld [vmem:[%s17520_s13 + $0x20] sm:$0xff]  }
 0xb77   :  { %v13163_v12 = vpop.f32.mrb[165].mxu1 }
 0xb78   :  { %v6124_v14 = vpop.f32.mrb[166].mxu1  ;;  %14556 = vrcp.f32 %v5886_v59  ;;  %v6260_v12 = vld [vmem:[%s17526_s16] sm:$0x3] }
 0xb79   :  { %v13164_v20 = vpop.f32.mrb[167].mxu1  ;;  %v11171_v14 = vld [vmem:[%s17525_s15 + $0x4] sm:$0x3] }
 0xb7c   :  { %v5586_v32 = vpop.f32.mrb[152].mxu0 }
 0xb7d   :  { %v5587_v10 = vadd.f32 %v5586_v32, %v16432_v27  ;;  %v13092_v1 = vpop.f32.mrb[153].mxu0 }
 0xb7e   :  { %v6180_v21 = vpop.f32.mrb[160].mxu1 }
 0xb7f   :  { %5590 = vst [vmem:[%s17528_s19] sm:$0x3] %v5587_v10  ;;  %v13171_v35 = vpop.f32.mrb[161].mxu1  ;;  %v13882_v19 = vadd.f32 %v6180_v21, %v5960_v60 }
 0xb80   :  { %v6183_v44 = vpop.f32.mrb[162].mxu1  ;;  %v6122_v35 = vadd.f32 %v11171_v14, %v16427_v28  ;;  %v14241_v28 = vld [vmem:[%s17520_s13 + $0x28] sm:$0xff]  }
 0xb81   :  { %v13172_v61 = vpop.f32.mrb[163].mxu1  ;;  %v11189_v25 = vmul.f32 -1.442695, %v13882_v19 }
 0xb82   :  { %v14557_v2 = vpop.eup %14556 }
 0xb90   :  { %v5872_v37 = vpop.f32.mrb[156].mxu0 }
 0xb91   :  { %v13881_v58 = vadd.f32 %v11125_v43, %v5872_v37  ;;  %v13131_v45 = vpop.f32.mrb[157].mxu0  ;;  %v14242_v37 = vld [vmem:[%s17521_s14] sm:$0xff]  }
 0xb92   :  { %v5875_v46 = vpop.f32.mrb[158].mxu0  ;;  %v14243_v45 = vld [vmem:[%s17521_s14 + $0x8] sm:$0xff]  }
 0xb93   :  { %v11152_v39 = vmul.f32 -1.442695, %v13881_v58  ;;  %v13132_v55 = vpop.f32.mrb[159].mxu0 }
 0xb95   :  { %14558 = vpow2.f32 %v11152_v39 }
 0xb96   :  { %14560 = vpow2.f32 %v11189_v25 }
 0xb98   :  { %v5943_v23 = vpop.f32.mrb[160].mxu0 }
 0xb99   :  { %v5944_v41 = vadd.f32 %v5943_v23, %v5896_v49  ;;  %v13139_v17 = vpop.f32.mrb[161].mxu0  ;;  %v14244_v23 = vld [vmem:[%s17518_s9 + $0x10] sm:$0xff]  }
 0xb9a   :  { %v5946_v3 = vpop.f32.mrb[162].mxu0 }
 0xb9b   :  { %v5949_v62 = vmul.f32 %v14557_v2, %v5944_v41  ;;  %v13140_v18 = vpop.f32.mrb[163].mxu0  ;;  %v14246_v2 = vld [vmem:[%s17519_s10 + $0x10] sm:$0xff]   ;;  %v14247_v3 = vld [vmem:[%s17519_s10 + $0x18] sm:$0xff]  }
 0xb9c   :  { %v14251_v18 = vld [vmem:[%s17520_s13 + $0x18] sm:$0xff]  }
 0xb9d   :  { %v5950_v50 = vadd.f32 %v5949_v62, %v5758_v42  ;;  %v14248_v42 = vld [vmem:[%s17519_s10 + $0x20] sm:$0xff]   ;;  %v14250_v62 = vld [vmem:[%s17520_s13 + $0x10] sm:$0xff]  }
 0xb9f   :  { %v14559_v56 = vpop.eup %14558  ;;  %14562 = vtanh.f32 %v5950_v50  ;;  %v14252_v50 = vld [vmem:[%s17521_s14 + $0x10] sm:$0xff]  }
 0xba0   :  { %v5893_v33 = vadd.f32 1.0, %v14559_v56  ;;  %v14561_v47 = vpop.eup %14560  ;;  %v14253_v56 = vld [vmem:[%s17521_s14 + $0x18] sm:$0xff]  }
 0xba1   :  { %v6250_v5 = vadd.f32 1.0, %v14561_v47  ;;  %v14255_v47 = vld [vmem:[%s17521_s14 + $0x28] sm:$0xff]  }
 0xba2   :  { %14564 = vrcp.f32 %v5893_v33  ;;  %v14254_v33 = vld [vmem:[%s17521_s14 + $0x20] sm:$0xff]  }
 0xba3   :  { %14566 = vrcp.f32 %v6250_v5  ;;  %v14256_v5 = vld [vmem:[%s17518_s9] sm:$0xff]  }
 0xba9   :  { %v14563_v38 = vpop.eup %14562 }
 0xbaa   :  { %v5952_v30 = vsub.f32 %v16256_v9, %v14563_v38 }
 0xbac   :  { %v14565_v22 = vpop.eup %14564  ;;  %v6236_v26 = vpop.f32.mrb[164].mxu0 }
 0xbad   :  { %v5953_v34 = vmul.f32 %v14565_v22, %v5952_v30  ;;  %v13883_v53 = vadd.f32 %v11163_v6, %v6236_v26  ;;  %v13179_v13 = vpop.f32.mrb[165].mxu0  ;;  %v14567_v1 = vpop.eup %14566  ;;  %v14258_v30 = vld [vmem:[%s17518_s9 + $0x20] sm:$0xff]   ;;  %v14259_v6 = vld [vmem:[%s17518_s9 + $0x28] sm:$0xff]  }
 0xbae   :  { %v6239_v15 = vpop.f32.mrb[166].mxu0  ;;  %v14260_v22 = vld [vmem:[%s17519_s10] sm:$0xff]   ;;  %v14261_v26 = vld [vmem:[%s17519_s10 + $0x8] sm:$0xff]  }
 0xbaf   :  { %v16455_v63 = vadd.f32 %v14563_v38, %v5953_v34  ;;  %v11190_v7 = vmul.f32 -1.442695, %v13883_v53  ;;  %v13180_v36 = vpop.f32.mrb[167].mxu0  ;;  %v14257_v38 = vld [vmem:[%s17518_s9 + $0x8] sm:$0xff]  }
 0xbb1   :  { %14568 = vpow2.f32 %v11190_v7  ;;  %v16462_v9 = vpack.c.bf16 %v16455_v63, %v16455_v63 }
 0xbb3   :  { %13229 = vmatmul.mubr.msk.bf16.vlgmr.msra.gmra.mrb[172].mxu0 %vm225_vm3, %v16462_v9 }
 0xbb4   :  { %v6307_v20 = vpop.f32.mrb[168].mxu0  ;;  %13249 = vmatpush3.bf16.msra.mxu0 %v14238_v29  ;;  %13252 = vmatprep.mubr.msk.bf16.mxu0 %vm14729_vm1, %v14728_v0  ;;  %v6399_v29 = vld [vmem:[%s17522_s11] sm:$0x3] }
 0xbb5   :  { %v6308_v32 = vadd.f32 %v6307_v20, %v6260_v12  ;;  %v13187_v10 = vpop.f32.mrb[169].mxu0  ;;  %13250 = vmatprep.subr.bf16.mxu0 %v14728_v0 }
 0xbb6   :  { %v6310_v21 = vpop.f32.mrb[170].mxu0 }
 0xbb7   :  { %v6313_v44 = vmul.f32 %v14567_v1, %v6308_v32  ;;  %v13188_v61 = vpop.f32.mrb[171].mxu0 }
 0xbb8   :  { %13251 = vmatpush3.bf16.msra.mxu0 %v14239_v4 }
 0xbb9   :  { %v6314_v59 = vadd.f32 %v6313_v44, %v6122_v35  ;;  %13264 = vmatprep.subr.bf16.mxu0 %v14728_v0 }
 0xbbb   :  { %v14569_v43 = vpop.eup %14568  ;;  %14570 = vtanh.f32 %v6314_v59  ;;  %13253 = vmatmul.mubr.msk.bf16.vlgmr.msra.gmra.mrb[180].mxu0 %vm225_vm3, %v16462_v9  ;;  %v11203_v59 = vld [vmem:[%s17522_s11 + $0x2] sm:$0x3] }
 0xbbc   :  { %v6257_v60 = vadd.f32 1.0, %v14569_v43  ;;  %13265 = vmatpush3.bf16.msra.mxu0 %v14240_v24  ;;  %13268 = vmatprep.mubr.msk.bf16.mxu0 %vm14729_vm1, %v14728_v0  ;;  %v6763_v43 = vld [vmem:[%s17525_s15] sm:$0x3] }
 0xbbd   :  { %13266 = vmatprep.subr.bf16.mxu0 %v14728_v0 }
 0xbbe   :  { %14572 = vrcp.f32 %v6257_v60 }
 0xbc0   :  { %13267 = vmatpush3.bf16.msra.mxu0 %v14241_v28 }
 0xbc1   :  { %13272 = vmatprep.subr.bf16.mxu0 %v14728_v0 }
 0xbc3   :  { %13269 = vmatmul.mubr.msk.bf16.vlgmr.msra.gmra.mrb[184].mxu0 %vm225_vm3, %v16462_v9 }
 0xbc4   :  { %v16497_v58 = vpop.f32.mrb[176].mxu0  ;;  %13273 = vmatpush3.bf16.msra.mxu0 %v14242_v37  ;;  %13276 = vmatprep.mubr.msk.bf16.mxu0 %vm14729_vm1, %v14728_v0 }
 0xbc5   :  { %v14571_v46 = vpop.eup %14570  ;;  %v13222_v19 = vpop.f32.mrb[177].mxu0  ;;  %13274 = vmatprep.subr.bf16.mxu0 %v14728_v0 }
 0xbc6   :  { %v6563_v39 = vpop.f32.mrb[178].mxu0  ;;  %v6316_v55 = vsub.f32 %v16309_v48, %v14571_v46  ;;  %v14245_v48 = vld [vmem:[%s17518_s9 + $0x18] sm:$0xff]  }
 0xbc7   :  { %v13223_v49 = vpop.f32.mrb[179].mxu0 }
 0xbc8   :  { %v14573_v25 = vpop.eup %14572  ;;  %13275 = vmatpush3.bf16.msra.mxu0 %v14243_v45 }
 0xbc9   :  { %v6317_v52 = vmul.f32 %v14573_v25, %v6316_v55  ;;  %13806 = vmatprep.subr.bf16.mxu0 %v14731_v57  ;;  %v6699_v55 = vld [vmem:[%s17523_s12] sm:$0x3]  ;;  %v11211_v25 = vld [vmem:[%s17522_s11 + $0x4] sm:$0x3] }
 0xbcb   :  { %v16510_v41 = vadd.f32 %v14571_v46, %v6317_v52 }
 0xbcd   :  { %13198 = vmatmul.mubr.msk.f32.vlgmr.msra.gmra.mrb[168].mxu1 %vm225_vm3, %v16510_v41  ;;  %v6758_v17 = vpack.c.bf16 %v16510_v41, %v16510_v41 }
 0xbce   :  { %13209 = vmatpush3.bf16.msra.mxu1 %v14244_v23  ;;  %13212 = vmatprep.mubr.msk.bf16.mxu1 %vm14729_vm1, %v14728_v0 }
 0xbcf   :  { %13277 = vmatmul.mubr.msk.bf16.vlgmr.msra.gmra.mrb[180].mxu0 %vm225_vm3, %v6758_v17  ;;  %13210 = vmatprep.subr.bf16.mxu1 %v14728_v0 }
 0xbd0   :  { %13808 = vmatpush3.bf16.msra.mxu0 %v16231_v54  ;;  %13304 = vmatprep.mubr.msk.f32.mxu0 %vm14729_vm1, %v14728_v0 }
 0xbd1   :  { %13809 = vmatprep.subr.bf16.mxu0 %v14731_v57 }
 0xbd2   :  { %13211 = vmatpush3.bf16.msra.mxu1 %v14245_v48 }
 0xbd3   :  { %13232 = vmatprep.subr.bf16.mxu1 %v14728_v0 }
 0xbd4   :  { %13811 = vmatpush3.bf16.msra.mxu0 %v16241_v16 }
 0xbd5   :  { %13213 = vmatmul.mubr.msk.bf16.vlgmr.msra.gmra.mrb[172].mxu1 %vm225_vm3, %v15612_v51  ;;  %13315 = vmatprep.subr.bf16.mxu0 %v14728_v0  ;;  %v14249_v51 = vld [vmem:[%s17519_s10 + $0x28] sm:$0xff]  }
 0xbd6   :  { %13233 = vmatpush3.bf16.msra.mxu1 %v14246_v2  ;;  %13236 = vmatprep.mubr.msk.bf16.mxu1 %vm14729_vm1, %v14728_v0 }
 0xbd7   :  { %13234 = vmatprep.subr.bf16.mxu1 %v14728_v0 }
 0xbda   :  { %13235 = vmatpush3.bf16.msra.mxu1 %v14247_v3  ;;  %v6561_v3 = vadd.f32 %v11211_v25, %v16497_v58  ;;  %v14268_v25 = vld [vmem:[%s17518_s9 + $0x10] sm:$0xff]  }
 0xbdb   :  { %13240 = vmatprep.subr.bf16.mxu1 %v14728_v0 }
 0xbe1   :  { %13237 = vmatmul.mubr.msk.bf16.vlgmr.msra.gmra.mrb[172].mxu1 %vm225_vm3, %v16462_v9 }
 0xbe2   :  { %13241 = vmatpush3.bf16.msra.mxu1 %v14248_v42  ;;  %13244 = vmatprep.mubr.msk.bf16.mxu1 %vm14729_vm1, %v14728_v0 }
 0xbe3   :  { %13242 = vmatprep.subr.bf16.mxu1 %v14728_v0 }
 0xbe6   :  { %13243 = vmatpush3.bf16.msra.mxu1 %v14249_v51 }
 0xbe7   :  { %13256 = vmatprep.subr.bf16.mxu1 %v14728_v0 }
 0xbe9   :  { %13245 = vmatmul.mubr.msk.bf16.vlgmr.msra.gmra.mrb[176].mxu1 %vm225_vm3, %v16462_v9 }
 0xbea   :  { %13257 = vmatpush3.bf16.msra.mxu1 %v14250_v62  ;;  %13260 = vmatprep.mubr.msk.bf16.mxu1 %vm14729_vm1, %v14728_v0 }
 0xbeb   :  { %13258 = vmatprep.subr.bf16.mxu1 %v14728_v0 }
 0xbee   :  { %13259 = vmatpush3.bf16.msra.mxu1 %v14251_v18 }
 0xbef   :  { %13280 = vmatprep.subr.bf16.mxu1 %v14728_v0 }
 0xbf1   :  { %13261 = vmatmul.mubr.msk.bf16.vlgmr.msra.gmra.mrb[180].mxu1 %vm225_vm3, %v16462_v9 }
 0xbf2   :  { %13281 = vmatpush3.bf16.msra.mxu1 %v14252_v50  ;;  %13284 = vmatprep.mubr.msk.bf16.mxu1 %vm14729_vm1, %v14728_v0 }
 0xbf3   :  { %13282 = vmatprep.subr.bf16.mxu1 %v14728_v0 }
 0xbf6   :  { %13283 = vmatpush3.bf16.msra.mxu1 %v14253_v56 }
 0xbf7   :  { %13288 = vmatprep.subr.bf16.mxu1 %v14728_v0 }
 0xbfd   :  { %13285 = vmatmul.mubr.msk.bf16.vlgmr.msra.gmra.mrb[180].mxu1 %vm225_vm3, %v6758_v17 }
 0xbfe   :  { %13289 = vmatpush3.bf16.msra.mxu1 %v14254_v33  ;;  %13292 = vmatprep.mubr.msk.bf16.mxu1 %vm14729_vm1, %v14728_v0 }
 0xbff   :  { %13290 = vmatprep.subr.bf16.mxu1 %v14728_v0 }
 0xc02   :  { %13291 = vmatpush3.bf16.msra.mxu1 %v14255_v47 }
 0xc03   :  { %13307 = vmatprep.subr.bf16.mxu1 %v14728_v0 }
 0xc05   :  { %13293 = vmatmul.mubr.msk.bf16.vlgmr.msra.gmra.mrb[184].mxu1 %vm225_vm3, %v6758_v17 }
 0xc06   :  { %13308 = vmatpush3.bf16.msra.mxu1 %v14256_v5  ;;  %13311 = vmatprep.mubr.msk.bf16.mxu1 %vm14729_vm1, %v14728_v0 }
 0xc07   :  { %13309 = vmatprep.subr.bf16.mxu1 %v14728_v0 }
 0xc0a   :  { %13310 = vmatpush3.bf16.msra.mxu1 %v14257_v38  ;;  %v11241_v38 = vld [vmem:[%s17525_s15 + $0x2] sm:$0x3] }
 0xc0b   :  { %13323 = vmatprep.subr.bf16.mxu1 %v14728_v0 }
 0xc0d   :  { %13312 = vmatmul.mubr.msk.bf16.vlgmr.msra.gmra.mrb[188].mxu1 %vm225_vm3, %v15746_v40 }
 0xc0e   :  { %13324 = vmatpush3.bf16.msra.mxu1 %v14258_v30  ;;  %13327 = vmatprep.mubr.msk.bf16.mxu1 %vm14729_vm1, %v14728_v0 }
 0xc0f   :  { %13325 = vmatprep.subr.bf16.mxu1 %v14728_v0 }
 0xc12   :  { %13326 = vmatpush3.bf16.msra.mxu1 %v14259_v6 }
 0xc13   :  { %13331 = vmatprep.subr.bf16.mxu1 %v14728_v0 }
 0xc15   :  { %13328 = vmatmul.mubr.msk.bf16.vlgmr.msra.gmra.mrb[192].mxu1 %vm225_vm3, %v15746_v40 }
 0xc16   :  { %13335 = vmatprep.mubr.msk.bf16.mxu1 %vm14729_vm1, %v14728_v0  ;;  %13332 = vmatpush3.bf16.msra.mxu1 %v14260_v22 }
 0xc17   :  { %13333 = vmatprep.subr.bf16.mxu1 %v14728_v0 }
 0xc1a   :  { %13334 = vmatpush3.bf16.msra.mxu1 %v14261_v26 }
 0xc1b   :  { %13355 = vmatprep.subr.bf16.mxu1 %v14728_v0 }
 0xc86   :  { %v6619_v34 = vpop.f32.mrb[172].mxu0 }
 0xc87   :  { %v13230_v53 = vpop.f32.mrb[173].mxu0  ;;  %v13884_v14 = vadd.f32 %v6619_v34, %v6399_v29  ;;  %v7063_v29 = vld [vmem:[%s17526_s16] sm:$0x3] }
 0xc88   :  { %v6622_v13 = vpop.f32.mrb[174].mxu0 }
 0xc89   :  { %v13231_v15 = vpop.f32.mrb[175].mxu0  ;;  %v11229_v20 = vmul.f32 -1.442695, %v13884_v14  ;;  %v14263_v14 = vld [vmem:[%s17520_s13 + $0x8] sm:$0xff]  }
 0xc8b   :  { %14574 = vpow2.f32 %v11229_v20 }
 0xc95   :  { %v14575_v61 = vpop.eup %14574 }
 0xc96   :  { %v16624_v7 = vpop.f32.mrb[184].mxu0  ;;  %v6689_v24 = vadd.f32 1.0, %v14575_v61 }
 0xc97   :  { %v13270_v36 = vpop.f32.mrb[185].mxu0 }
 0xc98   :  { %v6927_v9 = vpop.f32.mrb[186].mxu0  ;;  %14576 = vrcp.f32 %v6689_v24  ;;  %v14262_v36 = vld [vmem:[%s17520_s13] sm:$0xff]  }
 0xc99   :  { %v13271_v12 = vpop.f32.mrb[187].mxu0  ;;  %v11249_v9 = vld [vmem:[%s17525_s15 + $0x4] sm:$0x3] }
 0xca0   :  { %v6388_v4 = vpop.f32.mrb[168].mxu1 }
 0xca1   :  { %v6389_v32 = vadd.f32 %v6388_v4, %v16432_v27  ;;  %v13199_v10 = vpop.f32.mrb[169].mxu1 }
 0xca2   :  { %v6983_v1 = vpop.f32.mrb[180].mxu0  ;;  %v14577_v48 = vpop.eup %14576 }
 0xca3   :  { %11195 = vst [vmem:[%s17528_s19 + $0x2] sm:$0x3] %v6389_v32  ;;  %v13278_v21 = vpop.f32.mrb[181].mxu0  ;;  %v13886_v46 = vadd.f32 %v6983_v1, %v6763_v43  ;;  %v6925_v1 = vadd.f32 %v11249_v9, %v16624_v7  ;;  %v14265_v7 = vld [vmem:[%s17520_s13 + $0x28] sm:$0xff]   ;;  %v14266_v43 = vld [vmem:[%s17521_s14] sm:$0xff]  }
 0xca4   :  { %v6986_v35 = vpop.f32.mrb[182].mxu0 }
 0xca5   :  { %v13279_v44 = vpop.f32.mrb[183].mxu0  ;;  %v11267_v49 = vmul.f32 -1.442695, %v13886_v46 }
 0xca6   :  { %v14264_v44 = vld [vmem:[%s17520_s13 + $0x20] sm:$0xff]  }
 0xcb4   :  { %v6675_v60 = vpop.f32.mrb[172].mxu1 }
 0xcb5   :  { %v13885_v28 = vadd.f32 %v11203_v59, %v6675_v60  ;;  %v13238_v37 = vpop.f32.mrb[173].mxu1 }
 0xcb6   :  { %v6678_v45 = vpop.f32.mrb[174].mxu1 }
 0xcb7   :  { %v11230_v19 = vmul.f32 -1.442695, %v13885_v28  ;;  %v13239_v39 = vpop.f32.mrb[175].mxu1  ;;  %v14267_v28 = vld [vmem:[%s17521_s14 + $0x8] sm:$0xff]  }
 0xcb9   :  { %14578 = vpow2.f32 %v11230_v19 }
 0xcba   :  { %14580 = vpow2.f32 %v11267_v49 }
 0xcbc   :  { %v6746_v52 = vpop.f32.mrb[176].mxu1 }
 0xcbd   :  { %v6747_v23 = vadd.f32 %v6746_v52, %v6699_v55  ;;  %v13246_v17 = vpop.f32.mrb[177].mxu1 }
 0xcbe   :  { %v6749_v2 = vpop.f32.mrb[178].mxu1  ;;  %v14270_v17 = vld [vmem:[%s17519_s10 + $0x10] sm:$0xff]  }
 0xcbf   :  { %v6752_v42 = vmul.f32 %v14577_v48, %v6747_v23  ;;  %v13247_v51 = vpop.f32.mrb[179].mxu1  ;;  %v14271_v48 = vld [vmem:[%s17519_s10 + $0x18] sm:$0xff]   ;;  %v14272_v2 = vld [vmem:[%s17519_s10 + $0x20] sm:$0xff]  }
 0xcc0   :  { %v14276_v51 = vld [vmem:[%s17521_s14 + $0x10] sm:$0xff]  }
 0xcc1   :  { %v6753_v62 = vadd.f32 %v6752_v42, %v6561_v3  ;;  %v14274_v3 = vld [vmem:[%s17520_s13 + $0x10] sm:$0xff]   ;;  %v14275_v42 = vld [vmem:[%s17520_s13 + $0x18] sm:$0xff]  }
 0xcc3   :  { %v14579_v18 = vpop.eup %14578  ;;  %14582 = vtanh.f32 %v6753_v62  ;;  %v14277_v62 = vld [vmem:[%s17521_s14 + $0x18] sm:$0xff]  }
 0xcc4   :  { %v6696_v50 = vadd.f32 1.0, %v14579_v18  ;;  %v14581_v56 = vpop.eup %14580  ;;  %v14278_v18 = vld [vmem:[%s17521_s14 + $0x20] sm:$0xff]  }
 0xcc5   :  { %v7053_v33 = vadd.f32 1.0, %v14581_v56  ;;  %v14280_v56 = vld [vmem:[%s17518_s9] sm:$0xff]  }
 0xcc6   :  { %14584 = vrcp.f32 %v6696_v50  ;;  %v14279_v50 = vld [vmem:[%s17521_s14 + $0x28] sm:$0xff]  }
 0xcc7   :  { %14586 = vrcp.f32 %v7053_v33  ;;  %v14281_v33 = vld [vmem:[%s17518_s9 + $0x8] sm:$0xff]  }
 0xccd   :  { %v14583_v47 = vpop.eup %14582 }
 0xcce   :  { %v6755_v5 = vsub.f32 %v16455_v63, %v14583_v47 }
 0xcd0   :  { %v14585_v30 = vpop.eup %14584  ;;  %v7039_v58 = vpop.f32.mrb[180].mxu1 }
 0xcd1   :  { %v6756_v6 = vmul.f32 %v14585_v30, %v6755_v5  ;;  %v13887_v22 = vadd.f32 %v11241_v38, %v7039_v58  ;;  %v13286_v26 = vpop.f32.mrb[181].mxu1  ;;  %v14587_v32 = vpop.eup %14586  ;;  %v14283_v5 = vld [vmem:[%s17518_s9 + $0x28] sm:$0xff]   ;;  %v14284_v38 = vld [vmem:[%s17519_s10] sm:$0xff]  }
 0xcd2   :  { %v7042_v34 = vpop.f32.mrb[182].mxu1  ;;  %v14285_v30 = vld [vmem:[%s17519_s10 + $0x8] sm:$0xff]  }
 0xcd3   :  { %v16650_v53 = vadd.f32 %v14583_v47, %v6756_v6  ;;  %v11268_v13 = vmul.f32 -1.442695, %v13887_v22  ;;  %v13287_v15 = vpop.f32.mrb[183].mxu1  ;;  %v14282_v47 = vld [vmem:[%s17518_s9 + $0x20] sm:$0xff]  }
 0xcd4   :  { %v7202_v15 = vld [vmem:[%s17522_s11] sm:$0x3] }
 0xcd5   :  { %14588 = vpow2.f32 %v11268_v13  ;;  %v16657_v63 = vpack.c.bf16 %v16650_v53, %v16650_v53 }
 0xcd7   :  { %13336 = vmatmul.mubr.msk.bf16.vlgmr.msra.gmra.mrb[188].mxu1 %vm225_vm3, %v16657_v63 }
 0xcd8   :  { %v7110_v12 = vpop.f32.mrb[184].mxu1  ;;  %13356 = vmatpush3.bf16.msra.mxu1 %v14262_v36  ;;  %13359 = vmatprep.mubr.msk.bf16.mxu1 %vm14729_vm1, %v14728_v0 }
 0xcd9   :  { %v7111_v20 = vadd.f32 %v7110_v12, %v7063_v29  ;;  %v13294_v4 = vpop.f32.mrb[185].mxu1  ;;  %13357 = vmatprep.subr.bf16.mxu1 %v14728_v0 }
 0xcda   :  { %v7113_v10 = vpop.f32.mrb[186].mxu1 }
 0xcdb   :  { %v7116_v21 = vmul.f32 %v14587_v32, %v7111_v20  ;;  %v13295_v35 = vpop.f32.mrb[187].mxu1 }
 0xcdc   :  { %13358 = vmatpush3.bf16.msra.mxu1 %v14263_v14 }
 0xcdd   :  { %v7117_v61 = vadd.f32 %v7116_v21, %v6925_v1  ;;  %13371 = vmatprep.subr.bf16.mxu1 %v14728_v0 }
 0xcdf   :  { %v14589_v24 = vpop.eup %14588  ;;  %14590 = vtanh.f32 %v7117_v61  ;;  %13360 = vmatmul.mubr.msk.bf16.vlgmr.msra.gmra.mrb[196].mxu1 %vm225_vm3, %v16657_v63 }
 0xce0   :  { %v7060_v59 = vadd.f32 1.0, %v14589_v24  ;;  %13372 = vmatpush3.bf16.msra.mxu1 %v14264_v44  ;;  %13375 = vmatprep.mubr.msk.bf16.mxu1 %vm14729_vm1, %v14728_v0  ;;  %v11281_v44 = vld [vmem:[%s17522_s11 + $0x2] sm:$0x3] }
 0xce1   :  { %13373 = vmatprep.subr.bf16.mxu1 %v14728_v0 }
 0xce2   :  { %14592 = vrcp.f32 %v7060_v59 }
 0xce4   :  { %13374 = vmatpush3.bf16.msra.mxu1 %v14265_v7 }
 0xce5   :  { %13379 = vmatprep.subr.bf16.mxu1 %v14728_v0 }
 0xce7   :  { %13376 = vmatmul.mubr.msk.bf16.vlgmr.msra.gmra.mrb[200].mxu1 %vm225_vm3, %v16657_v63 }
 0xce8   :  { %v16692_v60 = vpop.f32.mrb[192].mxu1  ;;  %13380 = vmatpush3.bf16.msra.mxu1 %v14266_v43  ;;  %13383 = vmatprep.mubr.msk.bf16.mxu1 %vm14729_vm1, %v14728_v0 }
 0xce9   :  { %v14591_v37 = vpop.eup %14590  ;;  %v13329_v45 = vpop.f32.mrb[193].mxu1  ;;  %13381 = vmatprep.subr.bf16.mxu1 %v14728_v0 }
 0xcea   :  { %v7366_v46 = vpop.f32.mrb[194].mxu1  ;;  %v7119_v19 = vsub.f32 %v16510_v41, %v14591_v37  ;;  %v14269_v41 = vld [vmem:[%s17518_s9 + $0x18] sm:$0xff]   ;;  %v7502_v45 = vld [vmem:[%s17523_s12] sm:$0x3] }
 0xceb   :  { %v13330_v39 = vpop.f32.mrb[195].mxu1 }
 0xcec   :  { %v14593_v55 = vpop.eup %14592  ;;  %13382 = vmatpush3.bf16.msra.mxu1 %v14267_v28 }
 0xced   :  { %v7120_v49 = vmul.f32 %v14593_v55, %v7119_v19  ;;  %13812 = vmatprep.subr.bf16.mxu1 %v14731_v57  ;;  %v11289_v19 = vld [vmem:[%s17522_s11 + $0x4] sm:$0x3] }
 0xcef   :  { %v16705_v52 = vadd.f32 %v14591_v37, %v7120_v49 }
 0xcf1   :  { %13305 = vmatmul.mubr.msk.f32.vlgmr.msra.gmra.mrb[154].mxu0 %vm225_vm3, %v16705_v52  ;;  %v7561_v23 = vpack.c.bf16 %v16705_v52, %v16705_v52 }
 0xcf2   :  { %13316 = vmatpush3.bf16.msra.mxu0 %v14268_v25  ;;  %13319 = vmatprep.mubr.msk.bf16.mxu0 %vm14729_vm1, %v14728_v0 }
 0xcf3   :  { %13384 = vmatmul.mubr.msk.bf16.vlgmr.msra.gmra.mrb[196].mxu1 %vm225_vm3, %v7561_v23  ;;  %13317 = vmatprep.subr.bf16.mxu0 %v14728_v0 }
 0xcf4   :  { %13814 = vmatpush3.bf16.msra.mxu1 %v16231_v54  ;;  %13411 = vmatprep.mubr.msk.f32.mxu1 %vm14729_vm1, %v14728_v0 }
 0xcf5   :  { %13815 = vmatprep.subr.bf16.mxu1 %v14731_v57 }
 0xcf6   :  { %13318 = vmatpush3.bf16.msra.mxu0 %v14269_v41  ;;  %v7364_v41 = vadd.f32 %v11289_v19, %v16692_v60 }
 0xcf7   :  { %13339 = vmatprep.subr.bf16.mxu0 %v14728_v0 }
 0xcf8   :  { %13817 = vmatpush3.bf16.msra.mxu1 %v16241_v16 }
 0xcf9   :  { %13320 = vmatmul.mubr.msk.bf16.vlgmr.msra.gmra.mrb[188].mxu0 %vm225_vm3, %v15746_v40  ;;  %13422 = vmatprep.subr.bf16.mxu1 %v14728_v0  ;;  %v14273_v40 = vld [vmem:[%s17519_s10 + $0x28] sm:$0xff]  }
 0xcfa   :  { %13340 = vmatpush3.bf16.msra.mxu0 %v14270_v17  ;;  %13343 = vmatprep.mubr.msk.bf16.mxu0 %vm14729_vm1, %v14728_v0 }
 0xcfb   :  { %13341 = vmatprep.subr.bf16.mxu0 %v14728_v0 }
 0xcfe   :  { %13342 = vmatpush3.bf16.msra.mxu0 %v14271_v48 }
 0xcff   :  { %13347 = vmatprep.subr.bf16.mxu0 %v14728_v0 }
 0xd05   :  { %13344 = vmatmul.mubr.msk.bf16.vlgmr.msra.gmra.mrb[188].mxu0 %vm225_vm3, %v16657_v63 }
 0xd06   :  { %13348 = vmatpush3.bf16.msra.mxu0 %v14272_v2  ;;  %13351 = vmatprep.mubr.msk.bf16.mxu0 %vm14729_vm1, %v14728_v0 }
 0xd07   :  { %13349 = vmatprep.subr.bf16.mxu0 %v14728_v0 }
 0xd0a   :  { %13350 = vmatpush3.bf16.msra.mxu0 %v14273_v40 }
 0xd0b   :  { %13363 = vmatprep.subr.bf16.mxu0 %v14728_v0 }
 0xd0d   :  { %13352 = vmatmul.mubr.msk.bf16.vlgmr.msra.gmra.mrb[192].mxu0 %vm225_vm3, %v16657_v63 }
 0xd0e   :  { %13364 = vmatpush3.bf16.msra.mxu0 %v14274_v3  ;;  %13367 = vmatprep.mubr.msk.bf16.mxu0 %vm14729_vm1, %v14728_v0 }
 0xd0f   :  { %13365 = vmatprep.subr.bf16.mxu0 %v14728_v0 }
 0xd12   :  { %13366 = vmatpush3.bf16.msra.mxu0 %v14275_v42 }
 0xd13   :  { %13387 = vmatprep.subr.bf16.mxu0 %v14728_v0 }
 0xd15   :  { %13368 = vmatmul.mubr.msk.bf16.vlgmr.msra.gmra.mrb[196].mxu0 %vm225_vm3, %v16657_v63 }
 0xd16   :  { %13388 = vmatpush3.bf16.msra.mxu0 %v14276_v51  ;;  %13391 = vmatprep.mubr.msk.bf16.mxu0 %vm14729_vm1, %v14728_v0 }
 0xd17   :  { %13389 = vmatprep.subr.bf16.mxu0 %v14728_v0 }
 0xd1a   :  { %13390 = vmatpush3.bf16.msra.mxu0 %v14277_v62 }
 0xd1b   :  { %13395 = vmatprep.subr.bf16.mxu0 %v14728_v0 }
 0xd21   :  { %13392 = vmatmul.mubr.msk.bf16.vlgmr.msra.gmra.mrb[196].mxu0 %vm225_vm3, %v7561_v23 }
 0xd22   :  { %13396 = vmatpush3.bf16.msra.mxu0 %v14278_v18  ;;  %13399 = vmatprep.mubr.msk.bf16.mxu0 %vm14729_vm1, %v14728_v0 }
 0xd23   :  { %13397 = vmatprep.subr.bf16.mxu0 %v14728_v0 }
 0xd26   :  { %13398 = vmatpush3.bf16.msra.mxu0 %v14279_v50  ;;  %v11319_v50 = vld [vmem:[%s17525_s15 + $0x2] sm:$0x3] }
 0xd27   :  { %13414 = vmatprep.subr.bf16.mxu0 %v14728_v0 }
 0xd29   :  { %13400 = vmatmul.mubr.msk.bf16.vlgmr.msra.gmra.mrb[200].mxu0 %vm225_vm3, %v7561_v23 }
 0xd2a   :  { %13415 = vmatpush3.bf16.msra.mxu0 %v14280_v56  ;;  %13418 = vmatprep.mubr.msk.bf16.mxu0 %vm14729_vm1, %v14728_v0 }
 0xd2b   :  { %13416 = vmatprep.subr.bf16.mxu0 %v14728_v0 }
 0xd2e   :  { %13417 = vmatpush3.bf16.msra.mxu0 %v14281_v33 }
 0xd2f   :  { %13430 = vmatprep.subr.bf16.mxu0 %v14728_v0 }
 0xd31   :  { %13419 = vmatmul.mubr.msk.bf16.vlgmr.msra.gmra.mrb[204].mxu0 %vm225_vm3, %v15850_v11 }
 0xd32   :  { %13431 = vmatpush3.bf16.msra.mxu0 %v14282_v47  ;;  %13434 = vmatprep.mubr.msk.bf16.mxu0 %vm14729_vm1, %v14728_v0 }
 0xd33   :  { %13432 = vmatprep.subr.bf16.mxu0 %v14728_v0 }
 0xd36   :  { %13433 = vmatpush3.bf16.msra.mxu0 %v14283_v5 }
 0xd37   :  { %13438 = vmatprep.subr.bf16.mxu0 %v14728_v0 }
 0xd39   :  { %13435 = vmatmul.mubr.msk.bf16.vlgmr.msra.gmra.mrb[208].mxu0 %vm225_vm3, %v15850_v11 }
 0xd3a   :  { %13442 = vmatprep.mubr.msk.bf16.mxu0 %vm14729_vm1, %v14728_v0  ;;  %13439 = vmatpush3.bf16.msra.mxu0 %v14284_v38 }
 0xd3b   :  { %13440 = vmatprep.subr.bf16.mxu0 %v14728_v0 }
 0xd3e   :  { %13441 = vmatpush3.bf16.msra.mxu0 %v14285_v30 }
 0xd3f   :  { %13462 = vmatprep.subr.bf16.mxu0 %v14728_v0 }
 0xdaa   :  { %v7422_v58 = vpop.f32.mrb[188].mxu1 }
 0xdab   :  { %v13337_v6 = vpop.f32.mrb[189].mxu1  ;;  %v13888_v29 = vadd.f32 %v7422_v58, %v7202_v15 }
 0xdac   :  { %v7425_v22 = vpop.f32.mrb[190].mxu1 }
 0xdad   :  { %v13338_v26 = vpop.f32.mrb[191].mxu1  ;;  %v11307_v9 = vmul.f32 -1.442695, %v13888_v29  ;;  %v14286_v22 = vld [vmem:[%s17520_s13] sm:$0xff]  }
 0xdae   :  { %v7866_v26 = vld [vmem:[%s17526_s16] sm:$0x3] }
 0xdaf   :  { %14594 = vpow2.f32 %v11307_v9 }
 0xdb9   :  { %v14595_v21 = vpop.eup %14594 }
 0xdba   :  { %v16819_v34 = vpop.f32.mrb[200].mxu1  ;;  %v7492_v35 = vadd.f32 1.0, %v14595_v21 }
 0xdbb   :  { %v13377_v13 = vpop.f32.mrb[201].mxu1 }
 0xdbc   :  { %v7730_v36 = vpop.f32.mrb[202].mxu1  ;;  %14596 = vrcp.f32 %v7492_v35  ;;  %v11327_v13 = vld [vmem:[%s17525_s15 + $0x4] sm:$0x3] }
 0xdbd   :  { %v13378_v63 = vpop.f32.mrb[203].mxu1  ;;  %v14287_v36 = vld [vmem:[%s17520_s13 + $0x8] sm:$0xff]   ;;  %v14290_v35 = vld [vmem:[%s17521_s14] sm:$0xff]  }
 0xdc4   :  { %v7191_v12 = vpop.f32.mrb[154].mxu0 }
 0xdc5   :  { %v7192_v14 = vadd.f32 %v7191_v12, %v16432_v27  ;;  %v13306_v20 = vpop.f32.mrb[155].mxu0  ;;  %v7566_v27 = vld [vmem:[%s17525_s15] sm:$0x3] }
 0xdc6   :  { %v7786_v4 = vpop.f32.mrb[196].mxu1  ;;  %v14597_v25 = vpop.eup %14596 }
 0xdc7   :  { %11273 = vst [vmem:[%s17528_s19 + $0x4] sm:$0x3] %v7192_v14  ;;  %v13385_v32 = vpop.f32.mrb[197].mxu1  ;;  %v13890_v43 = vadd.f32 %v7786_v4, %v7566_v27  ;;  %v7728_v14 = vadd.f32 %v11327_v13, %v16819_v34  ;;  %v14289_v34 = vld [vmem:[%s17520_s13 + $0x28] sm:$0xff]   ;;  %v17022_v13 = vld [vmem:[%s17527_s18] sm:$0x3] }
 0xdc8   :  { %v7789_v10 = vpop.f32.mrb[198].mxu1  ;;  %v14288_v32 = vld [vmem:[%s17520_s13 + $0x20] sm:$0xff]   ;;  %v14291_v27 = vld [vmem:[%s17521_s14 + $0x8] sm:$0xff]  }
 0xdc9   :  { %v13386_v1 = vpop.f32.mrb[199].mxu1  ;;  %v11345_v46 = vmul.f32 -1.442695, %v13890_v43 }
 0xdd8   :  { %v7478_v61 = vpop.f32.mrb[188].mxu0 }
 0xdd9   :  { %v13889_v24 = vadd.f32 %v11281_v44, %v7478_v61  ;;  %v13345_v59 = vpop.f32.mrb[189].mxu0 }
 0xdda   :  { %v7481_v7 = vpop.f32.mrb[190].mxu0 }
 0xddb   :  { %v11308_v28 = vmul.f32 -1.442695, %v13889_v24  ;;  %v13346_v37 = vpop.f32.mrb[191].mxu0 }
 0xddd   :  { %14598 = vpow2.f32 %v11308_v28 }
 0xdde   :  { %14600 = vpow2.f32 %v11345_v46 }
 0xde0   :  { %v7549_v39 = vpop.f32.mrb[192].mxu0 }
 0xde1   :  { %v7550_v55 = vadd.f32 %v7549_v39, %v7502_v45  ;;  %v13353_v49 = vpop.f32.mrb[193].mxu0  ;;  %v14292_v45 = vld [vmem:[%s17518_s9 + $0x10] sm:$0xff]  }
 0xde2   :  { %v7552_v23 = vpop.f32.mrb[194].mxu0  ;;  %v14294_v39 = vld [vmem:[%s17519_s10 + $0x10] sm:$0xff]   ;;  %v14296_v49 = vld [vmem:[%s17519_s10 + $0x20] sm:$0xff]  }
 0xde3   :  { %v7555_v17 = vmul.f32 %v14597_v25, %v7550_v55  ;;  %v13354_v48 = vpop.f32.mrb[195].mxu0  ;;  %v14295_v55 = vld [vmem:[%s17519_s10 + $0x18] sm:$0xff]   ;;  %v14298_v25 = vld [vmem:[%s17520_s13 + $0x10] sm:$0xff]  }
 0xde4   :  { %v14299_v23 = vld [vmem:[%s17520_s13 + $0x18] sm:$0xff]   ;;  %v14302_v48 = vld [vmem:[%s17521_s14 + $0x20] sm:$0xff]  }
 0xde5   :  { %v7556_v2 = vadd.f32 %v7555_v17, %v7364_v41  ;;  %v14300_v41 = vld [vmem:[%s17521_s14 + $0x10] sm:$0xff]   ;;  %v14301_v17 = vld [vmem:[%s17521_s14 + $0x18] sm:$0xff]  }
 0xde7   :  { %v14599_v40 = vpop.eup %14598  ;;  %14602 = vtanh.f32 %v7556_v2  ;;  %v14303_v2 = vld [vmem:[%s17521_s14 + $0x28] sm:$0xff]  }
 0xde8   :  { %v7499_v3 = vadd.f32 1.0, %v14599_v40  ;;  %v14601_v42 = vpop.eup %14600  ;;  %v14304_v40 = vld [vmem:[%s17518_s9] sm:$0xff]  }
 0xde9   :  { %v7856_v51 = vadd.f32 1.0, %v14601_v42  ;;  %v14306_v42 = vld [vmem:[%s17518_s9 + $0x20] sm:$0xff]  }
 0xdea   :  { %14604 = vrcp.f32 %v7499_v3  ;;  %v14305_v3 = vld [vmem:[%s17518_s9 + $0x8] sm:$0xff]  }
 0xdeb   :  { %14606 = vrcp.f32 %v7856_v51  ;;  %v14307_v51 = vld [vmem:[%s17518_s9 + $0x28] sm:$0xff]  }
 0xdf1   :  { %v14603_v62 = vpop.eup %14602 }
 0xdf2   :  { %v7558_v18 = vsub.f32 %v16650_v53, %v14603_v62 }
 0xdf4   :  { %v14605_v56 = vpop.eup %14604  ;;  %v7842_v60 = vpop.f32.mrb[196].mxu0 }
 0xdf5   :  { %v7559_v33 = vmul.f32 %v14605_v56, %v7558_v18  ;;  %v13891_v47 = vadd.f32 %v11319_v50, %v7842_v60  ;;  %v13393_v5 = vpop.f32.mrb[197].mxu0  ;;  %v14607_v9 = vpop.eup %14606  ;;  %v14309_v18 = vld [vmem:[%s17519_s10 + $0x8] sm:$0xff]  }
 0xdf6   :  { %v7845_v38 = vpop.f32.mrb[198].mxu0 }
 0xdf7   :  { %v16845_v30 = vadd.f32 %v14603_v62, %v7559_v33  ;;  %v11346_v58 = vmul.f32 -1.442695, %v13891_v47  ;;  %v13394_v6 = vpop.f32.mrb[199].mxu0  ;;  %v14308_v62 = vld [vmem:[%s17519_s10] sm:$0xff]  }
 0xdf8   :  { %v8005_v38 = vld [vmem:[%s17522_s11] sm:$0x3] }
 0xdf9   :  { %14608 = vpow2.f32 %v11346_v58  ;;  %v16852_v53 = vpack.c.bf16 %v16845_v30, %v16845_v30 }
 0xdfb   :  { %13443 = vmatmul.mubr.msk.bf16.vlgmr.msra.gmra.mrb[204].mxu0 %vm225_vm3, %v16852_v53 }
 0xdfc   :  { %v7913_v15 = vpop.f32.mrb[200].mxu0  ;;  %13463 = vmatpush3.bf16.msra.mxu0 %v14286_v22  ;;  %13466 = vmatprep.mubr.msk.bf16.mxu0 %vm14729_vm1, %v14728_v0 }
 0xdfd   :  { %v7914_v63 = vadd.f32 %v7913_v15, %v7866_v26  ;;  %v13401_v29 = vpop.f32.mrb[201].mxu0  ;;  %13464 = vmatprep.subr.bf16.mxu0 %v14728_v0 }
 0xdfe   :  { %v7916_v12 = vpop.f32.mrb[202].mxu0 }
 0xdff   :  { %v7919_v20 = vmul.f32 %v14607_v9, %v7914_v63  ;;  %v13402_v4 = vpop.f32.mrb[203].mxu0 }
 0xe00   :  { %13465 = vmatpush3.bf16.msra.mxu0 %v14287_v36  ;;  %v11359_v4 = vld [vmem:[%s17522_s11 + $0x2] sm:$0x3] }
 0xe01   :  { %v7920_v10 = vadd.f32 %v7919_v20, %v7728_v14  ;;  %13478 = vmatprep.subr.bf16.mxu0 %v14728_v0 }
 0xe03   :  { %v14609_v1 = vpop.eup %14608  ;;  %14610 = vtanh.f32 %v7920_v10  ;;  %13467 = vmatmul.mubr.msk.bf16.vlgmr.msra.gmra.mrb[212].mxu0 %vm225_vm3, %v16852_v53 }
 0xe04   :  { %v7863_v21 = vadd.f32 1.0, %v14609_v1  ;;  %13479 = vmatpush3.bf16.msra.mxu0 %v14288_v32  ;;  %13482 = vmatprep.mubr.msk.bf16.mxu0 %vm14729_vm1, %v14728_v0  ;;  %v8369_v32 = vld [vmem:[%s17525_s15] sm:$0x3] }
 0xe05   :  { %13480 = vmatprep.subr.bf16.mxu0 %v14728_v0 }
 0xe06   :  { %14612 = vrcp.f32 %v7863_v21 }
 0xe08   :  { %13481 = vmatpush3.bf16.msra.mxu0 %v14289_v34 }
 0xe09   :  { %13486 = vmatprep.subr.bf16.mxu0 %v14728_v0 }
 0xe0b   :  { %13483 = vmatmul.mubr.msk.bf16.vlgmr.msra.gmra.mrb[216].mxu0 %vm225_vm3, %v16852_v53 }
 0xe0c   :  { %v16887_v44 = vpop.f32.mrb[208].mxu0  ;;  %13487 = vmatpush3.bf16.msra.mxu0 %v14290_v35  ;;  %13490 = vmatprep.mubr.msk.bf16.mxu0 %vm14729_vm1, %v14728_v0 }
 0xe0d   :  { %v14611_v61 = vpop.eup %14610  ;;  %v13436_v24 = vpop.f32.mrb[209].mxu0  ;;  %13488 = vmatprep.subr.bf16.mxu0 %v14728_v0 }
 0xe0e   :  { %v8169_v59 = vpop.f32.mrb[210].mxu0  ;;  %v7922_v7 = vsub.f32 %v16705_v52, %v14611_v61  ;;  %v14293_v52 = vld [vmem:[%s17518_s9 + $0x18] sm:$0xff]   ;;  %v8305_v24 = vld [vmem:[%s17523_s12] sm:$0x3] }
 0xe0f   :  { %v13437_v43 = vpop.f32.mrb[211].mxu0 }
 0xe10   :  { %v14613_v28 = vpop.eup %14612  ;;  %13489 = vmatpush3.bf16.msra.mxu0 %v14291_v27 }
 0xe11   :  { %v7923_v37 = vmul.f32 %v14613_v28, %v7922_v7  ;;  %13818 = vmatprep.subr.bf16.mxu0 %v14731_v57  ;;  %v11367_v7 = vld [vmem:[%s17522_s11 + $0x4] sm:$0x3] }
 0xe13   :  { %v16900_v46 = vadd.f32 %v14611_v61, %v7923_v37 }
 0xe15   :  { %13412 = vmatmul.mubr.msk.f32.vlgmr.msra.gmra.mrb[170].mxu1 %vm225_vm3, %v16900_v46  ;;  %v8364_v19 = vpack.c.bf16 %v16900_v46, %v16900_v46 }
 0xe16   :  { %13423 = vmatpush3.bf16.msra.mxu1 %v14292_v45  ;;  %13426 = vmatprep.mubr.msk.bf16.mxu1 %vm14729_vm1, %v14728_v0 }
 0xe17   :  { %13491 = vmatmul.mubr.msk.bf16.vlgmr.msra.gmra.mrb[212].mxu0 %vm225_vm3, %v8364_v19  ;;  %13424 = vmatprep.subr.bf16.mxu1 %v14728_v0 }
 0xe18   :  { %13820 = vmatpush3.bf16.msra.mxu0 %v16231_v54  ;;  %13518 = vmatprep.mubr.msk.f32.mxu0 %vm14729_vm1, %v14728_v0 }
 0xe19   :  { %13821 = vmatprep.subr.bf16.mxu0 %v14731_v57 }
 0xe1a   :  { %13425 = vmatpush3.bf16.msra.mxu1 %v14293_v52  ;;  %v8167_v52 = vadd.f32 %v11367_v7, %v16887_v44 }
 0xe1b   :  { %13446 = vmatprep.subr.bf16.mxu1 %v14728_v0 }
 0xe1c   :  { %13823 = vmatpush3.bf16.msra.mxu0 %v16241_v16 }
 0xe1d   :  { %13427 = vmatmul.mubr.msk.bf16.vlgmr.msra.gmra.mrb[204].mxu1 %vm225_vm3, %v15850_v11  ;;  %13529 = vmatprep.subr.bf16.mxu0 %v14728_v0  ;;  %v14297_v11 = vld [vmem:[%s17519_s10 + $0x28] sm:$0xff]  }
 0xe1e   :  { %13447 = vmatpush3.bf16.msra.mxu1 %v14294_v39  ;;  %13450 = vmatprep.mubr.msk.bf16.mxu1 %vm14729_vm1, %v14728_v0 }
 0xe1f   :  { %13448 = vmatprep.subr.bf16.mxu1 %v14728_v0 }
 0xe22   :  { %13449 = vmatpush3.bf16.msra.mxu1 %v14295_v55 }
 0xe23   :  { %13454 = vmatprep.subr.bf16.mxu1 %v14728_v0 }
 0xe29   :  { %13451 = vmatmul.mubr.msk.bf16.vlgmr.msra.gmra.mrb[204].mxu1 %vm225_vm3, %v16852_v53 }
 0xe2a   :  { %13455 = vmatpush3.bf16.msra.mxu1 %v14296_v49  ;;  %13458 = vmatprep.mubr.msk.bf16.mxu1 %vm14729_vm1, %v14728_v0 }
 0xe2b   :  { %13456 = vmatprep.subr.bf16.mxu1 %v14728_v0 }
 0xe2e   :  { %13457 = vmatpush3.bf16.msra.mxu1 %v14297_v11 }
 0xe2f   :  { %13470 = vmatprep.subr.bf16.mxu1 %v14728_v0 }
 0xe31   :  { %13459 = vmatmul.mubr.msk.bf16.vlgmr.msra.gmra.mrb[208].mxu1 %vm225_vm3, %v16852_v53 }
 0xe32   :  { %13471 = vmatpush3.bf16.msra.mxu1 %v14298_v25  ;;  %13474 = vmatprep.mubr.msk.bf16.mxu1 %vm14729_vm1, %v14728_v0 }
 0xe33   :  { %13472 = vmatprep.subr.bf16.mxu1 %v14728_v0 }
 0xe36   :  { %13473 = vmatpush3.bf16.msra.mxu1 %v14299_v23 }
 0xe37   :  { %13494 = vmatprep.subr.bf16.mxu1 %v14728_v0 }
 0xe39   :  { %13475 = vmatmul.mubr.msk.bf16.vlgmr.msra.gmra.mrb[212].mxu1 %vm225_vm3, %v16852_v53 }
 0xe3a   :  { %13495 = vmatpush3.bf16.msra.mxu1 %v14300_v41  ;;  %13498 = vmatprep.mubr.msk.bf16.mxu1 %vm14729_vm1, %v14728_v0 }
 0xe3b   :  { %13496 = vmatprep.subr.bf16.mxu1 %v14728_v0 }
 0xe3e   :  { %13497 = vmatpush3.bf16.msra.mxu1 %v14301_v17 }
 0xe3f   :  { %13502 = vmatprep.subr.bf16.mxu1 %v14728_v0 }
 0xe45   :  { %13499 = vmatmul.mubr.msk.bf16.vlgmr.msra.gmra.mrb[212].mxu1 %vm225_vm3, %v8364_v19 }
 0xe46   :  { %13503 = vmatpush3.bf16.msra.mxu1 %v14302_v48  ;;  %13506 = vmatprep.mubr.msk.bf16.mxu1 %vm14729_vm1, %v14728_v0 }
 0xe47   :  { %13504 = vmatprep.subr.bf16.mxu1 %v14728_v0 }
 0xe4a   :  { %13505 = vmatpush3.bf16.msra.mxu1 %v14303_v2  ;;  %v11397_v2 = vld [vmem:[%s17525_s15 + $0x2] sm:$0x3] }
 0xe4b   :  { %13521 = vmatprep.subr.bf16.mxu1 %v14728_v0 }
 0xe4d   :  { %13507 = vmatmul.mubr.msk.bf16.vlgmr.msra.gmra.mrb[216].mxu1 %vm225_vm3, %v8364_v19 }
 0xe4e   :  { %13522 = vmatpush3.bf16.msra.mxu1 %v14304_v40  ;;  %13525 = vmatprep.mubr.msk.bf16.mxu1 %vm14729_vm1, %v14728_v0 }
 0xe4f   :  { %13523 = vmatprep.subr.bf16.mxu1 %v14728_v0 }
 0xe52   :  { %13524 = vmatpush3.bf16.msra.mxu1 %v14305_v3 }
 0xe53   :  { %13537 = vmatprep.subr.bf16.mxu1 %v14728_v0 }
 0xe55   :  { %13526 = vmatmul.mubr.msk.bf16.vlgmr.msra.gmra.mrb[220].mxu1 %vm225_vm3, %v15945_v8 }
 0xe56   :  { %13538 = vmatpush3.bf16.msra.mxu1 %v14306_v42  ;;  %13541 = vmatprep.mubr.msk.bf16.mxu1 %vm14729_vm1, %v14728_v0 }
 0xe57   :  { %13539 = vmatprep.subr.bf16.mxu1 %v14728_v0 }
 0xe5a   :  { %13540 = vmatpush3.bf16.msra.mxu1 %v14307_v51 }
 0xe5b   :  { %13545 = vmatprep.subr.bf16.mxu1 %v14728_v0 }
 0xe5d   :  { %13542 = vmatmul.mubr.msk.bf16.vlgmr.msra.gmra.mrb[224].mxu1 %vm225_vm3, %v15945_v8 }
 0xe5e   :  { %13549 = vmatprep.mubr.msk.bf16.mxu1 %vm14729_vm1, %v14728_v0  ;;  %13546 = vmatpush3.bf16.msra.mxu1 %v14308_v62 }
 0xe5f   :  { %13547 = vmatprep.subr.bf16.mxu1 %v14728_v0 }
 0xe62   :  { %13548 = vmatpush3.bf16.msra.mxu1 %v14309_v18 }
 0xe63   :  { %13569 = vmatprep.subr.bf16.mxu1 %v14728_v0 }
 0xece   :  { %v8225_v50 = vpop.f32.mrb[204].mxu0 }
 0xecf   :  { %v13444_v56 = vpop.f32.mrb[205].mxu0  ;;  %v13892_v22 = vadd.f32 %v8225_v50, %v8005_v38 }
 0xed0   :  { %v8228_v60 = vpop.f32.mrb[206].mxu0 }
 0xed1   :  { %v13445_v33 = vpop.f32.mrb[207].mxu0  ;;  %v11385_v53 = vmul.f32 -1.442695, %v13892_v22  ;;  %v14310_v60 = vld [vmem:[%s17520_s13] sm:$0xff]  }
 0xed2   :  { %v8669_v33 = vld [vmem:[%s17526_s16] sm:$0x3] }
 0xed3   :  { %14614 = vpow2.f32 %v11385_v53 }
 0xedd   :  { %v14615_v14 = vpop.eup %14614 }
 0xede   :  { %v17014_v47 = vpop.f32.mrb[216].mxu0  ;;  %v8295_v20 = vadd.f32 1.0, %v14615_v14 }
 0xedf   :  { %v13484_v5 = vpop.f32.mrb[217].mxu0 }
 0xee0   :  { %v8533_v58 = vpop.f32.mrb[218].mxu0  ;;  %14616 = vrcp.f32 %v8295_v20  ;;  %v11405_v5 = vld [vmem:[%s17525_s15 + $0x4] sm:$0x3] }
 0xee1   :  { %v13485_v6 = vpop.f32.mrb[219].mxu0  ;;  %v14311_v58 = vld [vmem:[%s17520_s13 + $0x8] sm:$0xff]   ;;  %v14314_v20 = vld [vmem:[%s17521_s14] sm:$0xff]  }
 0xee8   :  { %v7994_v26 = vpop.f32.mrb[170].mxu1 }
 0xee9   :  { %v7995_v15 = vadd.f32 %v17022_v13, %v7994_v26  ;;  %v13413_v36 = vpop.f32.mrb[171].mxu1 }
 0xeea   :  { %v8589_v63 = vpop.f32.mrb[212].mxu0  ;;  %v14617_v45 = vpop.eup %14616 }
 0xeeb   :  { %11351 = vst [vmem:[%s17528_s19 + $0x6] sm:$0x3] %v7995_v15  ;;  %v13492_v29 = vpop.f32.mrb[213].mxu0  ;;  %v13894_v35 = vadd.f32 %v8589_v63, %v8369_v32  ;;  %v8531_v15 = vadd.f32 %v11405_v5, %v17014_v47  ;;  %v14313_v47 = vld [vmem:[%s17520_s13 + $0x28] sm:$0xff]  }
 0xeec   :  { %v8592_v9 = vpop.f32.mrb[214].mxu0  ;;  %v14312_v29 = vld [vmem:[%s17520_s13 + $0x20] sm:$0xff]   ;;  %v14315_v32 = vld [vmem:[%s17521_s14 + $0x8] sm:$0xff]  }
 0xeed   :  { %v13493_v12 = vpop.f32.mrb[215].mxu0  ;;  %v11423_v59 = vmul.f32 -1.442695, %v13894_v35 }
 0xefc   :  { %v8281_v10 = vpop.f32.mrb[204].mxu1 }
 0xefd   :  { %v13893_v1 = vadd.f32 %v11359_v4, %v8281_v10  ;;  %v13452_v21 = vpop.f32.mrb[205].mxu1 }
 0xefe   :  { %v8284_v34 = vpop.f32.mrb[206].mxu1 }
 0xeff   :  { %v11386_v27 = vmul.f32 -1.442695, %v13893_v1  ;;  %v13453_v61 = vpop.f32.mrb[207].mxu1 }
 0xf01   :  { %14618 = vpow2.f32 %v11386_v27 }
 0xf02   :  { %14620 = vpow2.f32 %v11423_v59 }
 0xf04   :  { %v8352_v43 = vpop.f32.mrb[208].mxu1 }
 0xf05   :  { %v8353_v28 = vadd.f32 %v8352_v43, %v8305_v24  ;;  %v13460_v37 = vpop.f32.mrb[209].mxu1  ;;  %v14316_v24 = vld [vmem:[%s17518_s9 + $0x10] sm:$0xff]  }
 0xf06   :  { %v8355_v19 = vpop.f32.mrb[210].mxu1  ;;  %v14318_v43 = vld [vmem:[%s17519_s10 + $0x10] sm:$0xff]   ;;  %v14320_v37 = vld [vmem:[%s17519_s10 + $0x20] sm:$0xff]  }
 0xf07   :  { %v8358_v39 = vmul.f32 %v14617_v45, %v8353_v28  ;;  %v13461_v55 = vpop.f32.mrb[211].mxu1  ;;  %v14319_v28 = vld [vmem:[%s17519_s10 + $0x18] sm:$0xff]   ;;  %v14322_v45 = vld [vmem:[%s17520_s13 + $0x10] sm:$0xff]  }
 0xf08   :  { %v14323_v19 = vld [vmem:[%s17520_s13 + $0x18] sm:$0xff]   ;;  %v14326_v55 = vld [vmem:[%s17521_s14 + $0x20] sm:$0xff]  }
 0xf09   :  { %v8359_v49 = vadd.f32 %v8358_v39, %v8167_v52  ;;  %v14324_v52 = vld [vmem:[%s17521_s14 + $0x10] sm:$0xff]   ;;  %v14325_v39 = vld [vmem:[%s17521_s14 + $0x18] sm:$0xff]  }
 0xf0b   :  { %v14619_v11 = vpop.eup %14618  ;;  %14622 = vtanh.f32 %v8359_v49  ;;  %v14327_v49 = vld [vmem:[%s17521_s14 + $0x28] sm:$0xff]  }
 0xf0c   :  { %v8302_v25 = vadd.f32 1.0, %v14619_v11  ;;  %v14621_v23 = vpop.eup %14620  ;;  %v14328_v11 = vld [vmem:[%s17518_s9] sm:$0xff]  }
 0xf0d   :  { %v8659_v41 = vadd.f32 1.0, %v14621_v23  ;;  %v14330_v23 = vld [vmem:[%s17518_s9 + $0x20] sm:$0xff]  }
 0xf0e   :  { %14624 = vrcp.f32 %v8302_v25  ;;  %v14329_v25 = vld [vmem:[%s17518_s9 + $0x8] sm:$0xff]  }
 0xf0f   :  { %14626 = vrcp.f32 %v8659_v41  ;;  %v14331_v41 = vld [vmem:[%s17518_s9 + $0x28] sm:$0xff]  }
 0xf15   :  { %v14623_v17 = vpop.eup %14622 }
 0xf16   :  { %v8361_v48 = vsub.f32 %v16845_v30, %v14623_v17 }
 0xf18   :  { %v14625_v40 = vpop.eup %14624  ;;  %v8645_v44 = vpop.f32.mrb[212].mxu1 }
 0xf19   :  { %v8362_v3 = vmul.f32 %v14625_v40, %v8361_v48  ;;  %v13895_v42 = vadd.f32 %v11397_v2, %v8645_v44  ;;  %v13500_v51 = vpop.f32.mrb[213].mxu1  ;;  %v14627_v53 = vpop.eup %14626  ;;  %v14333_v48 = vld [vmem:[%s17519_s10 + $0x8] sm:$0xff]  }
 0xf1a   :  { %v8648_v62 = vpop.f32.mrb[214].mxu1 }
 0xf1b   :  { %v17045_v18 = vadd.f32 %v14623_v17, %v8362_v3  ;;  %v11424_v50 = vmul.f32 -1.442695, %v13895_v42  ;;  %v13501_v56 = vpop.f32.mrb[215].mxu1  ;;  %v14332_v17 = vld [vmem:[%s17519_s10] sm:$0xff]  }
 0xf1c   :  { %v8808_v62 = vld [vmem:[%s17522_s11] sm:$0x3] }
 0xf1d   :  { %14628 = vpow2.f32 %v11424_v50  ;;  %v17052_v30 = vpack.c.bf16 %v17045_v18, %v17045_v18 }
 0xf1f   :  { %13550 = vmatmul.mubr.msk.bf16.vlgmr.msra.gmra.mrb[220].mxu1 %vm225_vm3, %v17052_v30 }
 0xf20   :  { %v8716_v38 = vpop.f32.mrb[216].mxu1  ;;  %13570 = vmatpush3.bf16.msra.mxu1 %v14310_v60  ;;  %13573 = vmatprep.mubr.msk.bf16.mxu1 %vm14729_vm1, %v14728_v0 }
 0xf21   :  { %v8717_v6 = vadd.f32 %v8716_v38, %v8669_v33  ;;  %v13508_v22 = vpop.f32.mrb[217].mxu1  ;;  %13571 = vmatprep.subr.bf16.mxu1 %v14728_v0 }
 0xf22   :  { %v8719_v26 = vpop.f32.mrb[218].mxu1 }
 0xf23   :  { %v8722_v36 = vmul.f32 %v14627_v53, %v8717_v6  ;;  %v13509_v63 = vpop.f32.mrb[219].mxu1 }
 0xf24   :  { %13572 = vmatpush3.bf16.msra.mxu1 %v14311_v58  ;;  %v9172_v63 = vld [vmem:[%s17525_s15] sm:$0x3] }
 0xf25   :  { %v8723_v9 = vadd.f32 %v8722_v36, %v8531_v15  ;;  %13585 = vmatprep.subr.bf16.mxu1 %v14728_v0  ;;  %v11437_v36 = vld [vmem:[%s17522_s11 + $0x2] sm:$0x3] }
 0xf27   :  { %v14629_v12 = vpop.eup %14628  ;;  %14630 = vtanh.f32 %v8723_v9  ;;  %13574 = vmatmul.mubr.msk.bf16.vlgmr.msra.gmra.mrb[228].mxu1 %vm225_vm3, %v17052_v30 }
 0xf28   :  { %v8666_v14 = vadd.f32 1.0, %v14629_v12  ;;  %13586 = vmatpush3.bf16.msra.mxu1 %v14312_v29  ;;  %13589 = vmatprep.mubr.msk.bf16.mxu1 %vm14729_vm1, %v14728_v0 }
 0xf29   :  { %13587 = vmatprep.subr.bf16.mxu1 %v14728_v0 }
 0xf2a   :  { %14632 = vrcp.f32 %v8666_v14 }
 0xf2c   :  { %13588 = vmatpush3.bf16.msra.mxu1 %v14313_v47 }
 0xf2d   :  { %13593 = vmatprep.subr.bf16.mxu1 %v14728_v0 }
 0xf2f   :  { %13590 = vmatmul.mubr.msk.bf16.vlgmr.msra.gmra.mrb[232].mxu1 %vm225_vm3, %v17052_v30 }
 0xf30   :  { %v17087_v4 = vpop.f32.mrb[224].mxu1  ;;  %13594 = vmatpush3.bf16.msra.mxu1 %v14314_v20  ;;  %13597 = vmatprep.mubr.msk.bf16.mxu1 %vm14729_vm1, %v14728_v0 }
 0xf31   :  { %v14631_v10 = vpop.eup %14630  ;;  %v13543_v1 = vpop.f32.mrb[225].mxu1  ;;  %13595 = vmatprep.subr.bf16.mxu1 %v14728_v0 }
 0xf32   :  { %v8972_v21 = vpop.f32.mrb[226].mxu1  ;;  %v8725_v34 = vsub.f32 %v16900_v46, %v14631_v10  ;;  %v14317_v46 = vld [vmem:[%s17518_s9 + $0x18] sm:$0xff]  }
 0xf33   :  { %v13544_v35 = vpop.f32.mrb[227].mxu1  ;;  %v11445_v21 = vld [vmem:[%s17522_s11 + $0x4] sm:$0x3] }
 0xf34   :  { %v14633_v27 = vpop.eup %14632  ;;  %13596 = vmatpush3.bf16.msra.mxu1 %v14315_v32 }
 0xf35   :  { %v8726_v61 = vmul.f32 %v14633_v27, %v8725_v34  ;;  %13824 = vmatprep.subr.bf16.mxu1 %v14731_v57 }
 0xf37   :  { %v17100_v59 = vadd.f32 %v14631_v10, %v8726_v61  ;;  %v9108_v10 = vld [vmem:[%s17523_s12] sm:$0x3] }
 0xf39   :  { %13519 = vmatmul.mubr.msk.f32.vlgmr.msra.gmra.mrb[220].mxu0 %vm225_vm3, %v17100_v59  ;;  %v9167_v7 = vpack.c.bf16 %v17100_v59, %v17100_v59 }
 0xf3a   :  { %13530 = vmatpush3.bf16.msra.mxu0 %v14316_v24  ;;  %13533 = vmatprep.mubr.msk.bf16.mxu0 %vm14729_vm1, %v14728_v0 }
 0xf3b   :  { %13598 = vmatmul.mubr.msk.bf16.vlgmr.msra.gmra.mrb[228].mxu1 %vm225_vm3, %v9167_v7  ;;  %13531 = vmatprep.subr.bf16.mxu0 %v14728_v0 }
 0xf3c   :  { %13826 = vmatpush3.bf16.msra.mxu1 %v16231_v54  ;;  %13625 = vmatprep.mubr.msk.f32.mxu1 %vm14729_vm1, %v14728_v0 }
 0xf3d   :  { %13827 = vmatprep.subr.bf16.mxu1 %v14731_v57 }
 0xf3e   :  { %13532 = vmatpush3.bf16.msra.mxu0 %v14317_v46 }
 0xf3f   :  { %13553 = vmatprep.subr.bf16.mxu0 %v14728_v0 }
 0xf40   :  { %13829 = vmatpush3.bf16.msra.mxu1 %v16241_v16 }
 0xf41   :  { %13534 = vmatmul.mubr.msk.bf16.vlgmr.msra.gmra.mrb[224].mxu0 %vm225_vm3, %v15945_v8  ;;  %13636 = vmatprep.subr.bf16.mxu1 %v14728_v0  ;;  %v14321_v8 = vld [vmem:[%s17519_s10 + $0x28] sm:$0xff]  }
 0xf42   :  { %13554 = vmatpush3.bf16.msra.mxu0 %v14318_v43  ;;  %13557 = vmatprep.mubr.msk.bf16.mxu0 %vm14729_vm1, %v14728_v0 }
 0xf43   :  { %13555 = vmatprep.subr.bf16.mxu0 %v14728_v0 }
 0xf46   :  { %13556 = vmatpush3.bf16.msra.mxu0 %v14319_v28 }
 0xf47   :  { %13561 = vmatprep.subr.bf16.mxu0 %v14728_v0 }
 0xf4d   :  { %13558 = vmatmul.mubr.msk.bf16.vlgmr.msra.gmra.mrb[224].mxu0 %vm225_vm3, %v17052_v30 }
 0xf4e   :  { %13562 = vmatpush3.bf16.msra.mxu0 %v14320_v37  ;;  %13565 = vmatprep.mubr.msk.bf16.mxu0 %vm14729_vm1, %v14728_v0 }
 0xf4f   :  { %13563 = vmatprep.subr.bf16.mxu0 %v14728_v0 }
 0xf52   :  { %13564 = vmatpush3.bf16.msra.mxu0 %v14321_v8 }
 0xf53   :  { %13577 = vmatprep.subr.bf16.mxu0 %v14728_v0 }
 0xf55   :  { %13566 = vmatmul.mubr.msk.bf16.vlgmr.msra.gmra.mrb[228].mxu0 %vm225_vm3, %v17052_v30 }
 0xf56   :  { %13578 = vmatpush3.bf16.msra.mxu0 %v14322_v45  ;;  %13581 = vmatprep.mubr.msk.bf16.mxu0 %vm14729_vm1, %v14728_v0 }
 0xf57   :  { %13579 = vmatprep.subr.bf16.mxu0 %v14728_v0 }
 0xf5a   :  { %13580 = vmatpush3.bf16.msra.mxu0 %v14323_v19 }
 0xf5b   :  { %13601 = vmatprep.subr.bf16.mxu0 %v14728_v0 }
 0xf5d   :  { %13582 = vmatmul.mubr.msk.bf16.vlgmr.msra.gmra.mrb[232].mxu0 %vm225_vm3, %v17052_v30 }
 0xf5e   :  { %13602 = vmatpush3.bf16.msra.mxu0 %v14324_v52  ;;  %13605 = vmatprep.mubr.msk.bf16.mxu0 %vm14729_vm1, %v14728_v0 }
 0xf5f   :  { %13603 = vmatprep.subr.bf16.mxu0 %v14728_v0 }
 0xf62   :  { %13604 = vmatpush3.bf16.msra.mxu0 %v14325_v39 }
 0xf63   :  { %13609 = vmatprep.subr.bf16.mxu0 %v14728_v0 }
 0xf69   :  { %13606 = vmatmul.mubr.msk.bf16.vlgmr.msra.gmra.mrb[232].mxu0 %vm225_vm3, %v9167_v7 }
 0xf6a   :  { %13610 = vmatpush3.bf16.msra.mxu0 %v14326_v55  ;;  %13613 = vmatprep.mubr.msk.bf16.mxu0 %vm14729_vm1, %v14728_v0  ;;  %v11475_v55 = vld [vmem:[%s17525_s15 + $0x2] sm:$0x3] }
 0xf6b   :  { %13611 = vmatprep.subr.bf16.mxu0 %v14728_v0 }
 0xf6e   :  { %13612 = vmatpush3.bf16.msra.mxu0 %v14327_v49 }
 0xf6f   :  { %13628 = vmatprep.subr.bf16.mxu0 %v14728_v0 }
 0xf71   :  { %13614 = vmatmul.mubr.msk.bf16.vlgmr.msra.gmra.mrb[236].mxu0 %vm225_vm3, %v9167_v7  ;;  %v8970_v7 = vadd.f32 %v11445_v21, %v17087_v4  ;;  %v14342_v21 = vld [vmem:[%s17519_s10 + $0x10] sm:$0xff]  }
 0xf72   :  { %13629 = vmatpush3.bf16.msra.mxu0 %v14328_v11  ;;  %13632 = vmatprep.mubr.msk.bf16.mxu0 %vm14729_vm1, %v14728_v0 }
 0xf73   :  { %13630 = vmatprep.subr.bf16.mxu0 %v14728_v0 }
 0xf76   :  { %13631 = vmatpush3.bf16.msra.mxu0 %v14329_v25 }
 0xf77   :  { %13644 = vmatprep.subr.bf16.mxu0 %v14728_v0 }
 0xf79   :  { %13633 = vmatmul.mubr.msk.bf16.vlgmr.msra.gmra.mrb[240].mxu0 %vm225_vm3, %v16169_v31 }
 0xf7a   :  { %13645 = vmatpush3.bf16.msra.mxu0 %v14330_v23  ;;  %13648 = vmatprep.mubr.msk.bf16.mxu0 %vm14729_vm1, %v14728_v0 }
 0xf7b   :  { %13646 = vmatprep.subr.bf16.mxu0 %v14728_v0 }
 0xf7e   :  { %13647 = vmatpush3.bf16.msra.mxu0 %v14331_v41 }
 0xf7f   :  { %13652 = vmatprep.subr.bf16.mxu0 %v14728_v0 }
 0xf81   :  { %13649 = vmatmul.mubr.msk.bf16.vlgmr.msra.gmra.mrb[244].mxu0 %vm225_vm3, %v16169_v31 }
 0xf82   :  { %13656 = vmatprep.mubr.msk.bf16.mxu0 %vm14729_vm1, %v14728_v0  ;;  %13653 = vmatpush3.bf16.msra.mxu0 %v14332_v17 }
 0xf83   :  { %13654 = vmatprep.subr.bf16.mxu0 %v14728_v0 }
 0xf86   :  { %13655 = vmatpush3.bf16.msra.mxu0 %v14333_v48 }
 0xf87   :  { %13676 = vmatprep.subr.bf16.mxu0 %v14728_v0 }
 0xff2   :  { %v9028_v2 = vpop.f32.mrb[220].mxu1 }
 0xff3   :  { %v13551_v40 = vpop.f32.mrb[221].mxu1  ;;  %v13896_v60 = vadd.f32 %v9028_v2, %v8808_v62  ;;  %v14335_v62 = vld [vmem:[%s17520_s13 + $0x8] sm:$0xff]  }
 0xff4   :  { %v9031_v44 = vpop.f32.mrb[222].mxu1  ;;  %v14334_v40 = vld [vmem:[%s17520_s13] sm:$0xff]  }
 0xff5   :  { %v13552_v3 = vpop.f32.mrb[223].mxu1  ;;  %v11463_v30 = vmul.f32 -1.442695, %v13896_v60  ;;  %v9472_v44 = vld [vmem:[%s17526_s16] sm:$0x3] }
 0xff6   :  { %v11483_v3 = vld [vmem:[%s17525_s15 + $0x4] sm:$0x3] }
 0xff7   :  { %14634 = vpow2.f32 %v11463_v30 }
0x1001   :  { %v14635_v26 = vpop.eup %14634 }
0x1002   :  { %v17214_v42 = vpop.f32.mrb[232].mxu1  ;;  %v9098_v15 = vadd.f32 1.0, %v14635_v26  ;;  %v14338_v26 = vld [vmem:[%s17521_s14] sm:$0xff]  }
0x1003   :  { %v13591_v51 = vpop.f32.mrb[233].mxu1 }
0x1004   :  { %v9336_v50 = vpop.f32.mrb[234].mxu1  ;;  %14636 = vrcp.f32 %v9098_v15 }
0x1005   :  { %v13592_v56 = vpop.f32.mrb[235].mxu1 }
0x100c   :  { %v8797_v33 = vpop.f32.mrb[220].mxu0 }
0x100d   :  { %v8798_v5 = vadd.f32 %v17022_v13, %v8797_v33  ;;  %v13520_v38 = vpop.f32.mrb[221].mxu0  ;;  %v9334_v33 = vadd.f32 %v11483_v3, %v17214_v42  ;;  %v14337_v42 = vld [vmem:[%s17520_s13 + $0x28] sm:$0xff]  }
0x100e   :  { %v9392_v58 = vpop.f32.mrb[228].mxu1  ;;  %v14637_v61 = vpop.eup %14636 }
0x100f   :  { %11429 = vst [vmem:[%s17528_s19 + $0x8] sm:$0x3] %v8798_v5  ;;  %v13599_v6 = vpop.f32.mrb[229].mxu1  ;;  %v13898_v47 = vadd.f32 %v9392_v58, %v9172_v63  ;;  %v14336_v58 = vld [vmem:[%s17520_s13 + $0x20] sm:$0xff]  }
0x1010   :  { %v9395_v22 = vpop.f32.mrb[230].mxu1 }
0x1011   :  { %v13600_v53 = vpop.f32.mrb[231].mxu1  ;;  %v11501_v1 = vmul.f32 -1.442695, %v13898_v47 }
0x1020   :  { %v9084_v29 = vpop.f32.mrb[224].mxu0 }
0x1021   :  { %v13897_v9 = vadd.f32 %v11437_v36, %v9084_v29  ;;  %v13559_v12 = vpop.f32.mrb[225].mxu0  ;;  %v14339_v36 = vld [vmem:[%s17521_s14 + $0x8] sm:$0xff]  }
0x1022   :  { %v9087_v14 = vpop.f32.mrb[226].mxu0 }
0x1023   :  { %v11464_v20 = vmul.f32 -1.442695, %v13897_v9  ;;  %v13560_v32 = vpop.f32.mrb[227].mxu0 }
0x1024   :  { %v14340_v32 = vld [vmem:[%s17518_s9 + $0x10] sm:$0xff]  }
0x1025   :  { %14638 = vpow2.f32 %v11464_v20 }
0x1026   :  { %14640 = vpow2.f32 %v11501_v1 }
0x1028   :  { %v9155_v34 = vpop.f32.mrb[228].mxu0 }
0x1029   :  { %v9156_v35 = vadd.f32 %v9155_v34, %v9108_v10  ;;  %v13567_v27 = vpop.f32.mrb[229].mxu0  ;;  %v14343_v34 = vld [vmem:[%s17519_s10 + $0x18] sm:$0xff]  }
0x102a   :  { %v9158_v24 = vpop.f32.mrb[230].mxu0  ;;  %v14346_v27 = vld [vmem:[%s17520_s13 + $0x10] sm:$0xff]  }
0x102b   :  { %v9161_v46 = vmul.f32 %v14637_v61, %v9156_v35  ;;  %v13568_v43 = vpop.f32.mrb[231].mxu0  ;;  %v14344_v35 = vld [vmem:[%s17519_s10 + $0x20] sm:$0xff]   ;;  %v14347_v61 = vld [vmem:[%s17520_s13 + $0x18] sm:$0xff]   ;;  %v14348_v24 = vld [vmem:[%s17521_s14 + $0x10] sm:$0xff]  }
0x102c   :  { %v14351_v43 = vld [vmem:[%s17521_s14 + $0x28] sm:$0xff]  }
0x102d   :  { %v9162_v28 = vadd.f32 %v9161_v46, %v8970_v7  ;;  %v14349_v7 = vld [vmem:[%s17521_s14 + $0x18] sm:$0xff]   ;;  %v14350_v46 = vld [vmem:[%s17521_s14 + $0x20] sm:$0xff]  }
0x102f   :  { %v14639_v37 = vpop.eup %14638  ;;  %14642 = vtanh.f32 %v9162_v28  ;;  %v14352_v28 = vld [vmem:[%s17520_s13] sm:$0xff]  }
0x1030   :  { %v9105_v8 = vadd.f32 1.0, %v14639_v37  ;;  %v14641_v45 = vpop.eup %14640  ;;  %v14353_v37 = vld [vmem:[%s17520_s13 + $0x8] sm:$0xff]  }
0x1031   :  { %v9462_v19 = vadd.f32 1.0, %v14641_v45 }
0x1032   :  { %14644 = vrcp.f32 %v9105_v8 }
0x1033   :  { %14646 = vrcp.f32 %v9462_v19 }
0x1039   :  { %v14643_v52 = vpop.eup %14642 }
0x103a   :  { %v9164_v39 = vsub.f32 %v17045_v18, %v14643_v52 }
0x103c   :  { %v14645_v49 = vpop.eup %14644  ;;  %v9448_v4 = vpop.f32.mrb[232].mxu0 }
0x103d   :  { %v9165_v11 = vmul.f32 %v14645_v49, %v9164_v39  ;;  %v13899_v25 = vadd.f32 %v11475_v55, %v9448_v4  ;;  %v13607_v23 = vpop.f32.mrb[233].mxu0  ;;  %v14647_v60 = vpop.eup %14646  ;;  %v9611_v49 = vld [vmem:[%s17522_s11] sm:$0x3] }
0x103e   :  { %v9451_v41 = vpop.f32.mrb[234].mxu0 }
0x103f   :  { %v17240_v17 = vadd.f32 %v14643_v52, %v9165_v11  ;;  %v11502_v48 = vmul.f32 -1.442695, %v13899_v25  ;;  %v13608_v2 = vpop.f32.mrb[235].mxu0 }
0x1041   :  { %14648 = vpow2.f32 %v11502_v48  ;;  %v17247_v18 = vpack.c.bf16 %v17240_v17, %v17240_v17 }
0x1043   :  { %13657 = vmatmul.mubr.msk.bf16.vlgmr.msra.gmra.mrb[240].mxu0 %vm225_vm3, %v17247_v18 }
0x1044   :  { %v9519_v51 = vpop.f32.mrb[236].mxu0  ;;  %13677 = vmatpush3.bf16.msra.mxu0 %v14334_v40  ;;  %13680 = vmatprep.mubr.msk.bf16.mxu0 %vm14729_vm1, %v14728_v0 }
0x1045   :  { %v9520_v50 = vadd.f32 %v9519_v51, %v9472_v44  ;;  %v13615_v56 = vpop.f32.mrb[237].mxu0  ;;  %13678 = vmatprep.subr.bf16.mxu0 %v14728_v0 }
0x1046   :  { %v9522_v30 = vpop.f32.mrb[238].mxu0  ;;  %v9975_v56 = vld [vmem:[%s17525_s15] sm:$0x3] }
0x1047   :  { %v9525_v5 = vmul.f32 %v14647_v60, %v9520_v50  ;;  %v13616_v38 = vpop.f32.mrb[239].mxu0  ;;  %v11515_v50 = vld [vmem:[%s17522_s11 + $0x2] sm:$0x3] }
0x1048   :  { %13679 = vmatpush3.bf16.msra.mxu0 %v14335_v62 }
0x1049   :  { %v9526_v6 = vadd.f32 %v9525_v5, %v9334_v33  ;;  %13692 = vmatprep.subr.bf16.mxu0 %v14728_v0 }
0x104b   :  { %v14649_v22 = vpop.eup %14648  ;;  %14650 = vtanh.f32 %v9526_v6  ;;  %13681 = vmatmul.mubr.msk.bf16.vlgmr.msra.gmra.mrb[248].mxu0 %vm225_vm3, %v17247_v18 }
0x104c   :  { %v9469_v53 = vadd.f32 1.0, %v14649_v22  ;;  %13693 = vmatpush3.bf16.msra.mxu0 %v14336_v58  ;;  %13696 = vmatprep.mubr.msk.bf16.mxu0 %vm14729_vm1, %v14728_v0  ;;  %v9911_v22 = vld [vmem:[%s17523_s12] sm:$0x3] }
0x104d   :  { %13694 = vmatprep.subr.bf16.mxu0 %v14728_v0 }
0x104e   :  { %14652 = vrcp.f32 %v9469_v53 }
0x1050   :  { %13695 = vmatpush3.bf16.msra.mxu0 %v14337_v42  ;;  %v11523_v42 = vld [vmem:[%s17522_s11 + $0x4] sm:$0x3] }
0x1051   :  { %13700 = vmatprep.subr.bf16.mxu0 %v14728_v0 }
0x1053   :  { %13697 = vmatmul.mubr.msk.bf16.vlgmr.msra.gmra.mrb[252].mxu0 %vm225_vm3, %v17247_v18 }
0x1054   :  { %v17282_v15 = vpop.f32.mrb[244].mxu0  ;;  %13701 = vmatpush3.bf16.msra.mxu0 %v14338_v26  ;;  %13704 = vmatprep.mubr.msk.bf16.mxu0 %vm14729_vm1, %v14728_v0 }
0x1055   :  { %v14651_v63 = vpop.eup %14650  ;;  %v13650_v29 = vpop.f32.mrb[245].mxu0  ;;  %13702 = vmatprep.subr.bf16.mxu0 %v14728_v0 }
0x1056   :  { %v9775_v9 = vpop.f32.mrb[246].mxu0  ;;  %v9528_v12 = vsub.f32 %v17100_v59, %v14651_v63  ;;  %v14341_v59 = vld [vmem:[%s17518_s9 + $0x18] sm:$0xff]  }
0x1057   :  { %v13651_v14 = vpop.f32.mrb[247].mxu0 }
0x1058   :  { %v14653_v47 = vpop.eup %14652  ;;  %13703 = vmatpush3.bf16.msra.mxu0 %v14339_v36 }
0x1059   :  { %v9529_v20 = vmul.f32 %v14653_v47, %v9528_v12  ;;  %13830 = vmatprep.subr.bf16.mxu0 %v14731_v57  ;;  %v9773_v12 = vadd.f32 %v11523_v42, %v17282_v15 }
0x105b   :  { %v17295_v10 = vadd.f32 %v14651_v63, %v9529_v20 }
0x105d   :  { %13626 = vmatmul.mubr.msk.f32.vlgmr.msra.gmra.mrb[236].mxu1 %vm225_vm3, %v17295_v10  ;;  %v9970_v1 = vpack.c.bf16 %v17295_v10, %v17295_v10 }
0x105e   :  { %13637 = vmatpush3.bf16.msra.mxu1 %v14340_v32  ;;  %13640 = vmatprep.mubr.msk.bf16.mxu1 %vm14729_vm1, %v14728_v0 }
0x105f   :  { %13705 = vmatmul.mubr.msk.bf16.vlgmr.msra.gmra.mrb[248].mxu0 %vm225_vm3, %v9970_v1  ;;  %13638 = vmatprep.subr.bf16.mxu1 %v14728_v0 }
0x1060   :  { %13832 = vmatpush3.bf16.msra.mxu0 %v16231_v54  ;;  %13732 = vmatprep.mubr.msk.f32.mxu0 %vm14729_vm1, %v14728_v0 }
0x1061   :  { %13833 = vmatprep.subr.bf16.mxu0 %v14731_v57 }
0x1062   :  { %13639 = vmatpush3.bf16.msra.mxu1 %v14341_v59 }
0x1063   :  { %13660 = vmatprep.subr.bf16.mxu1 %v14728_v0 }
0x1064   :  { %13835 = vmatpush3.bf16.msra.mxu0 %v16241_v16 }
0x1065   :  { %13641 = vmatmul.mubr.msk.bf16.vlgmr.msra.gmra.mrb[240].mxu1 %vm225_vm3, %v16169_v31  ;;  %13743 = vmatprep.subr.bf16.mxu0 %v14728_v0  ;;  %v14345_v31 = vld [vmem:[%s17519_s10 + $0x28] sm:$0xff]  }
0x1066   :  { %13661 = vmatpush3.bf16.msra.mxu1 %v14342_v21  ;;  %13664 = vmatprep.mubr.msk.bf16.mxu1 %vm14729_vm1, %v14728_v0 }
0x1067   :  { %13662 = vmatprep.subr.bf16.mxu1 %v14728_v0 }
0x106a   :  { %13663 = vmatpush3.bf16.msra.mxu1 %v14343_v34 }
0x106b   :  { %13668 = vmatprep.subr.bf16.mxu1 %v14728_v0 }
0x1071   :  { %13665 = vmatmul.mubr.msk.bf16.vlgmr.msra.gmra.mrb[240].mxu1 %vm225_vm3, %v17247_v18 }
0x1072   :  { %13669 = vmatpush3.bf16.msra.mxu1 %v14344_v35  ;;  %13672 = vmatprep.mubr.msk.bf16.mxu1 %vm14729_vm1, %v14728_v0 }
0x1073   :  { %13670 = vmatprep.subr.bf16.mxu1 %v14728_v0 }
0x1076   :  { %13671 = vmatpush3.bf16.msra.mxu1 %v14345_v31  ;;  %v11553_v31 = vld [vmem:[%s17525_s15 + $0x2] sm:$0x3] }
0x1077   :  { %13684 = vmatprep.subr.bf16.mxu1 %v14728_v0 }
0x1079   :  { %13673 = vmatmul.mubr.msk.bf16.vlgmr.msra.gmra.mrb[244].mxu1 %vm225_vm3, %v17247_v18 }
0x107a   :  { %13685 = vmatpush3.bf16.msra.mxu1 %v14346_v27  ;;  %13688 = vmatprep.mubr.msk.bf16.mxu1 %vm14729_vm1, %v14728_v0 }
0x107b   :  { %13686 = vmatprep.subr.bf16.mxu1 %v14728_v0 }
0x107e   :  { %13687 = vmatpush3.bf16.msra.mxu1 %v14347_v61 }
0x107f   :  { %13708 = vmatprep.subr.bf16.mxu1 %v14728_v0 }
0x1081   :  { %13689 = vmatmul.mubr.msk.bf16.vlgmr.msra.gmra.mrb[248].mxu1 %vm225_vm3, %v17247_v18 }
0x1082   :  { %13709 = vmatpush3.bf16.msra.mxu1 %v14348_v24  ;;  %13712 = vmatprep.mubr.msk.bf16.mxu1 %vm14729_vm1, %v14728_v0 }
0x1083   :  { %13710 = vmatprep.subr.bf16.mxu1 %v14728_v0 }
0x1086   :  { %13711 = vmatpush3.bf16.msra.mxu1 %v14349_v7 }
0x1087   :  { %13716 = vmatprep.subr.bf16.mxu1 %v14728_v0 }
0x108d   :  { %13713 = vmatmul.mubr.msk.bf16.vlgmr.msra.gmra.mrb[248].mxu1 %vm225_vm3, %v9970_v1 }
0x108e   :  { %13717 = vmatpush3.bf16.msra.mxu1 %v14350_v46  ;;  %13720 = vmatprep.mubr.msk.bf16.mxu1 %vm14729_vm1, %v14728_v0 }
0x108f   :  { %13718 = vmatprep.subr.bf16.mxu1 %v14728_v0 }
0x1092   :  { %13719 = vmatpush3.bf16.msra.mxu1 %v14351_v43 }
0x1093   :  { %13735 = vmatprep.subr.bf16.mxu1 %v14728_v0 }
0x1095   :  { %13721 = vmatmul.mubr.msk.bf16.vlgmr.msra.gmra.mrb[252].mxu1 %vm225_vm3, %v9970_v1 }
0x1096   :  { %13739 = vmatprep.mubr.msk.bf16.mxu1 %vm14729_vm1, %v14728_v0  ;;  %13736 = vmatpush3.bf16.msra.mxu1 %v14352_v28 }
0x1097   :  { %13737 = vmatprep.subr.bf16.mxu1 %v14728_v0 }
0x109a   :  { %13738 = vmatpush3.bf16.msra.mxu1 %v14353_v37 }
0x109b   :  { %13751 = vmatprep.subr.bf16.mxu1 %v14728_v0 }
0x1116   :  { %v9831_v8 = vpop.f32.mrb[240].mxu0 }
0x1117   :  { %v13658_v45 = vpop.f32.mrb[241].mxu0  ;;  %v13900_v25 = vadd.f32 %v9831_v8, %v9611_v49  ;;  %v14354_v8 = vld [vmem:[%s17520_s13 + $0x20] sm:$0xff]  }
0x1118   :  { %v9834_v19 = vpop.f32.mrb[242].mxu0 }
0x1119   :  { %v13659_v52 = vpop.f32.mrb[243].mxu0  ;;  %v11541_v23 = vmul.f32 -1.442695, %v13900_v25  ;;  %v11561_v19 = vld [vmem:[%s17525_s15 + $0x4] sm:$0x3] }
0x111b   :  { %14654 = vpow2.f32 %v11541_v23 }
0x1125   :  { %v14655_v51 = vpop.eup %14654 }
0x1126   :  { %v17385_v39 = vpop.f32.mrb[252].mxu0  ;;  %v9901_v62 = vadd.f32 1.0, %v14655_v51 }
0x1127   :  { %v13698_v55 = vpop.f32.mrb[253].mxu0  ;;  %v10137_v23 = vadd.f32 %v11561_v19, %v17385_v39  ;;  %v14357_v39 = vld [vmem:[%s17521_s14 + $0x8] sm:$0xff]  }
0x1128   :  { %v10139_v4 = vpop.f32.mrb[254].mxu0  ;;  %14656 = vrcp.f32 %v9901_v62  ;;  %v14355_v55 = vld [vmem:[%s17520_s13 + $0x28] sm:$0xff]  }
0x1129   :  { %v13699_v11 = vpop.f32.mrb[255].mxu0 }
0x1130   :  { %v9600_v41 = vpop.f32.mrb[236].mxu1 }
0x1131   :  { %v9601_v48 = vadd.f32 %v17022_v13, %v9600_v41  ;;  %v13627_v2 = vpop.f32.mrb[237].mxu1 }
0x1132   :  { %v10195_v40 = vpop.f32.mrb[248].mxu0  ;;  %v14657_v29 = vpop.eup %14656  ;;  %v14356_v2 = vld [vmem:[%s17521_s14] sm:$0xff]  }
0x1133   :  { %11507 = vst [vmem:[%s17528_s19 + $0xa] sm:$0x3] %v9601_v48  ;;  %v13706_v18 = vpop.f32.mrb[249].mxu0  ;;  %v13902_v38 = vadd.f32 %v10195_v40, %v9975_v56  ;;  %v14358_v56 = vld [vmem:[%s17520_s13 + $0x10] sm:$0xff]  }
0x1134   :  { %v10198_v44 = vpop.f32.mrb[250].mxu0 }
0x1135   :  { %v13707_v3 = vpop.f32.mrb[251].mxu0  ;;  %v11579_v53 = vmul.f32 -1.442695, %v13902_v38 }
0x1144   :  { %v9887_v60 = vpop.f32.mrb[240].mxu1 }
0x1145   :  { %v13901_v30 = vadd.f32 %v11515_v50, %v9887_v60  ;;  %v13666_v33 = vpop.f32.mrb[241].mxu1 }
0x1146   :  { %v9890_v5 = vpop.f32.mrb[242].mxu1  ;;  %v14359_v33 = vld [vmem:[%s17520_s13 + $0x18] sm:$0xff]  }
0x1147   :  { %v11542_v58 = vmul.f32 -1.442695, %v13901_v30  ;;  %v13667_v6 = vpop.f32.mrb[243].mxu1 }
0x1149   :  { %14658 = vpow2.f32 %v11542_v58 }
0x114a   :  { %14660 = vpow2.f32 %v11579_v53  ;;  %v10415_v53 = vld [vmem:[%s17525_s15] sm:$0x3] }
0x114c   :  { %v9958_v26 = vpop.f32.mrb[244].mxu1 }
0x114d   :  { %v9959_v36 = vadd.f32 %v9958_v26, %v9911_v22  ;;  %v13674_v63 = vpop.f32.mrb[245].mxu1 }
0x114e   :  { %v9961_v9 = vpop.f32.mrb[246].mxu1 }
0x114f   :  { %v9964_v14 = vmul.f32 %v14657_v29, %v9959_v36  ;;  %v13675_v47 = vpop.f32.mrb[247].mxu1 }
0x1151   :  { %v9965_v20 = vadd.f32 %v9964_v14, %v9773_v12 }
0x1153   :  { %v14659_v32 = vpop.eup %14658  ;;  %14662 = vtanh.f32 %v9965_v20  ;;  %v11593_v20 = vld [vmem:[%s17525_s15 + $0x2] sm:$0x3] }
0x1154   :  { %v9908_v1 = vadd.f32 1.0, %v14659_v32  ;;  %v14661_v59 = vpop.eup %14660 }
0x1155   :  { %v10265_v21 = vadd.f32 1.0, %v14661_v59 }
0x1156   :  { %14664 = vrcp.f32 %v9908_v1 }
0x1157   :  { %14666 = vrcp.f32 %v10265_v21 }
0x115d   :  { %v14663_v34 = vpop.eup %14662 }
0x115e   :  { %v9967_v35 = vsub.f32 %v17240_v17, %v14663_v34  ;;  %v10275_v17 = vld [vmem:[%s17526_s16] sm:$0x3] }
0x1160   :  { %v14665_v27 = vpop.eup %14664  ;;  %v10251_v15 = vpop.f32.mrb[248].mxu1 }
0x1161   :  { %v9968_v61 = vmul.f32 %v14665_v27, %v9967_v35  ;;  %v13903_v24 = vadd.f32 %v11553_v31, %v10251_v15  ;;  %v13714_v7 = vpop.f32.mrb[249].mxu1  ;;  %v14667_v11 = vpop.eup %14666  ;;  %v10718_v35 = vld [vmem:[%s17526_s16] sm:$0x3]  ;;  %v11601_v31 = vld [vmem:[%s17525_s15 + $0x4] sm:$0x3] }
0x1162   :  { %v10254_v46 = vpop.f32.mrb[250].mxu1 }
0x1163   :  { %v9969_v43 = vadd.f32 %v14663_v34, %v9968_v61  ;;  %v11580_v28 = vmul.f32 -1.442695, %v13903_v24  ;;  %v13715_v37 = vpop.f32.mrb[251].mxu1 }
0x1165   :  { %v10409_v45 = vpack.c.bf16 %v9969_v43, %v9969_v43  ;;  %14668 = vpow2.f32 %v11580_v28 }
0x1167   :  { %13740 = vmatmul.mubr.msk.bf16.vlgmr.msra.gmra.mrb[0].mxu1 %vm225_vm3, %v10409_v45 }
0x1168   :  { %v10322_v52 = vpop.f32.mrb[252].mxu1  ;;  %13752 = vmatpush3.bf16.msra.mxu1 %v14354_v8  ;;  %13755 = vmatprep.mubr.msk.bf16.mxu1 %vm14729_vm1, %v14728_v0 }
0x1169   :  { %v10323_v49 = vadd.f32 %v10322_v52, %v10275_v17  ;;  %v13722_v4 = vpop.f32.mrb[253].mxu1  ;;  %13753 = vmatprep.subr.bf16.mxu1 %v14728_v0 }
0x116a   :  { %v10325_v25 = vpop.f32.mrb[254].mxu1 }
0x116b   :  { %v10328_v41 = vmul.f32 %v14667_v11, %v10323_v49  ;;  %v13723_v48 = vpop.f32.mrb[255].mxu1  ;;  %v14727_v11 = vld [vmem:[%s17527_s18] sm:$0x3] }
0x116c   :  { %13754 = vmatpush3.bf16.msra.mxu1 %v14355_v55 }
0x116d   :  { %v10329_v40 = vadd.f32 %v10328_v41, %v10137_v23  ;;  %13759 = vmatprep.subr.bf16.mxu1 %v14728_v0 }
0x116f   :  { %v14669_v18 = vpop.eup %14668  ;;  %14670 = vtanh.f32 %v10329_v40  ;;  %13756 = vmatmul.mubr.msk.bf16.vlgmr.msra.gmra.mrb[4].mxu1 %vm225_vm3, %v10409_v45 }
0x1170   :  { %v10272_v44 = vadd.f32 1.0, %v14669_v18  ;;  %13760 = vmatpush3.bf16.msra.mxu1 %v14356_v2  ;;  %13763 = vmatprep.mubr.msk.bf16.mxu1 %vm14729_vm1, %v14728_v0 }
0x1171   :  { %13761 = vmatprep.subr.bf16.mxu1 %v14728_v0 }
0x1172   :  { %14672 = vrcp.f32 %v10272_v44 }
0x1174   :  { %13762 = vmatpush3.bf16.msra.mxu1 %v14357_v39 }
0x1175   :  { %13836 = vmatprep.subr.bf16.mxu1 %v14731_v57 }
0x1179   :  { %v14671_v3 = vpop.eup %14670 }
0x117a   :  { %v10331_v51 = vsub.f32 %v17295_v10, %v14671_v3  ;;  %v14360_v10 = vld [vmem:[%s17521_s14 + $0x10] sm:$0xff]  }
0x117c   :  { %v14673_v62 = vpop.eup %14672 }
0x117d   :  { %v10332_v50 = vmul.f32 %v14673_v62, %v10331_v51 }
0x117f   :  { %v17444_v60 = vadd.f32 %v14671_v3, %v10332_v50 }
0x1181   :  { %13733 = vmatmul.mubr.msk.f32.vlgmr.msra.gmra.mrb[222].mxu0 %vm225_vm3, %v17444_v60  ;;  %v10410_v30 = vpack.c.bf16 %v17444_v60, %v17444_v60 }
0x1182   :  { %13744 = vmatpush3.bf16.msra.mxu0 %v14358_v56  ;;  %13747 = vmatprep.mubr.msk.bf16.mxu0 %vm14729_vm1, %v14728_v0 }
0x1183   :  { %13764 = vmatmul.mubr.msk.bf16.vlgmr.msra.gmra.mrb[0].mxu1 %vm225_vm3, %v10410_v30  ;;  %13745 = vmatprep.subr.bf16.mxu0 %v14728_v0 }
0x1184   :  { %13838 = vmatpush3.bf16.msra.mxu1 %v16231_v54  ;;  %13791 = vmatprep.mubr.msk.f32.mxu1 %vm14729_vm1, %v14728_v0  ;;  %v14361_v54 = vld [vmem:[%s17521_s14 + $0x18] sm:$0xff]  }
0x1185   :  { %13839 = vmatprep.subr.bf16.mxu1 %v14731_v57  ;;  %v14362_v57 = vld [vmem:[%s17521_s14 + $0x20] sm:$0xff]  }
0x1186   :  { %13746 = vmatpush3.bf16.msra.mxu0 %v14359_v33 }
0x1187   :  { %13767 = vmatprep.subr.bf16.mxu0 %v14728_v0 }
0x1188   :  { %13841 = vmatpush3.bf16.msra.mxu1 %v16241_v16  ;;  %v14363_v16 = vld [vmem:[%s17521_s14 + $0x28] sm:$0xff]  }
0x1189   :  { %13748 = vmatmul.mubr.msk.bf16.vlgmr.msra.gmra.mrb[4].mxu0 %vm225_vm3, %v10409_v45 }
0x118a   :  { %13768 = vmatpush3.bf16.msra.mxu0 %v14360_v10  ;;  %13771 = vmatprep.mubr.msk.bf16.mxu0 %vm14729_vm1, %v14728_v0 }
0x118b   :  { %13769 = vmatprep.subr.bf16.mxu0 %v14728_v0 }
0x118e   :  { %13770 = vmatpush3.bf16.msra.mxu0 %v14361_v54 }
0x118f   :  { %13775 = vmatprep.subr.bf16.mxu0 %v14728_v0 }
0x1195   :  { %13772 = vmatmul.mubr.msk.bf16.vlgmr.msra.gmra.mrb[4].mxu0 %vm225_vm3, %v10410_v30 }
0x1196   :  { %13776 = vmatpush3.bf16.msra.mxu0 %v14362_v57  ;;  %13779 = vmatprep.mubr.msk.bf16.mxu0 %vm14729_vm1, %v14728_v0 }
0x1197   :  { %13777 = vmatprep.subr.bf16.mxu0 %v14728_v0 }
0x119a   :  { %13778 = vmatpush3.bf16.msra.mxu0 %v14363_v16 }
0x119d   :  { %13780 = vmatmul.mubr.msk.bf16.vlgmr.msra.gmra.mrb[0].mxu0 %vm225_vm3, %v10410_v30 }
0x1242   :  { %v10579_v5 = vpop.f32.mrb[4].mxu1 }
0x1243   :  { %v13757_v38 = vpop.f32.mrb[5].mxu1  ;;  %v10580_v46 = vadd.f32 %v11601_v31, %v10579_v5 }
0x1244   :  { %v10582_v58 = vpop.f32.mrb[6].mxu1 }
0x1245   :  { %v13758_v6 = vpop.f32.mrb[7].mxu1 }
0x1254   :  { %v10403_v22 = vpop.f32.mrb[222].mxu0 }
0x1255   :  { %v10404_v42 = vadd.f32 %v17022_v13, %v10403_v22  ;;  %v13734_v26 = vpop.f32.mrb[223].mxu0 }
0x1256   :  { %v10638_v36 = vpop.f32.mrb[0].mxu1 }
0x1257   :  { %11585 = vst [vmem:[%s17528_s19 + $0xc] sm:$0x3] %v10404_v42  ;;  %v13904_v0 = vadd.f32 %v10638_v36, %v10415_v53  ;;  %v13765_v63 = vpop.f32.mrb[1].mxu1 }
0x1258   :  { %v10641_v29 = vpop.f32.mrb[2].mxu1 }
0x1259   :  { %v11619_v9 = vmul.f32 -1.442695, %v13904_v0  ;;  %v13766_v12 = vpop.f32.mrb[3].mxu1 }
0x125b   :  { %14674 = vpow2.f32 %v11619_v9 }
0x1265   :  { %v14675_v14 = vpop.eup %14674 }
0x1266   :  { %v10708_v47 = vadd.f32 1.0, %v14675_v14 }
0x1268   :  { %14676 = vrcp.f32 %v10708_v47  ;;  %v10694_v13 = vpop.f32.mrb[4].mxu0 }
0x1269   :  { %v13905_v32 = vadd.f32 %v11593_v20, %v10694_v13  ;;  %v13773_v1 = vpop.f32.mrb[5].mxu0 }
0x126a   :  { %v10697_v59 = vpop.f32.mrb[6].mxu0 }
0x126b   :  { %v11620_v21 = vmul.f32 -1.442695, %v13905_v32  ;;  %v13774_v34 = vpop.f32.mrb[7].mxu0 }
0x126d   :  { %14678 = vpow2.f32 %v11620_v21 }
0x1270   :  { %v10765_v27 = vpop.f32.mrb[0].mxu0 }
0x1271   :  { %v10766_v15 = vadd.f32 %v10765_v27, %v10718_v35  ;;  %v13781_v61 = vpop.f32.mrb[1].mxu0 }
0x1272   :  { %v14677_v24 = vpop.eup %14676  ;;  %v10768_v7 = vpop.f32.mrb[2].mxu0 }
0x1273   :  { %v10771_v43 = vmul.f32 %v14677_v24, %v10766_v15  ;;  %v13782_v28 = vpop.f32.mrb[3].mxu0 }
0x1275   :  { %v10772_v37 = vadd.f32 %v10771_v43, %v10580_v46 }
0x1277   :  { %v14679_v8 = vpop.eup %14678  ;;  %14680 = vtanh.f32 %v10772_v37 }
0x1278   :  { %v10715_v45 = vadd.f32 1.0, %v14679_v8 }
0x127a   :  { %14682 = vrcp.f32 %v10715_v45 }
0x1281   :  { %v14681_v17 = vpop.eup %14680 }
0x1282   :  { %v10774_v19 = vsub.f32 %v17444_v60, %v14681_v17 }
0x1284   :  { %v14683_v52 = vpop.eup %14682 }
0x1285   :  { %v10775_v55 = vmul.f32 %v14683_v52, %v10774_v19 }
0x1287   :  { %v10776_v49 = vadd.f32 %v14681_v17, %v10775_v55 }
0x1289   :  { %13792 = vmatmul.mubr.msk.f32.vlgmr.msra.gmra.mrb[238].mxu1 %vm225_vm3, %v10776_v49 }
0x135c   :  { %v10846_v4 = vpop.f32.mrb[238].mxu1 }
0x135d   :  { %v10847_v25 = vadd.f32 %v14727_v11, %v10846_v4  ;;  %v13793_v23 = vpop.f32.mrb[239].mxu1 }
0x135f   :  { %11625 = vst [vmem:[%s17528_s19 + $0xe] sm:$0x3] %v10847_v25 }

</bundles_post_ra>
